<compile_context>
chip_gen: v6e
topology: v6e:2x2x1
jax: 0.10.0
libtpu: 0.0.40
codegen_flags: <defaults>
</compile_context>

<pallas_src>
import functools

import jax
import jax.numpy as jnp
from jax.experimental import pallas as pl
from jax.experimental.pallas import tpu as pltpu

D_LAYERS = 8
W_HID = 256
W_DIR = W_HID // 2            # 128
IN_XYZ = 63
IN_DIR = 27
IN_XYZ_PAD = 64               # lane-friendly padded input widths
IN_DIR_PAD = 32
SKIPS = (4,)
_BF16 = jnp.bfloat16


def nerf_kernel(
    xyz_ref, dir_ref,
    w0, b0, w1, b1, w2, b2, w3, b3,
    w4x, w4h, b4,
    w5, b5, w6, b6, w7, b7,
    wfd, bfd,
    wdd,
    wrgb4, bout4,
    out_ref,
    *, bf16_act,
):
    x_xyz = xyz_ref[...]            # (TB, 64)  bf16
    x_dir = dir_ref[...]            # (TB, 32)  bf16

    def act(y):
        # Bias already added in f32; optionally cast to bf16 once and ReLU in
        # bf16 (v6e/v7x bf16 VALU).  bf16(max(x,0)) == max(bf16(x),0), and the
        # next MXU dot needs bf16 anyway, so this is numerically identical.
        if bf16_act:
            y = y.astype(_BF16)
        return jnp.maximum(y, jnp.asarray(0.0, y.dtype))

    def dense(a, w_ref, b_ref):
        # bf16 MXU matmul, f32 accumulation, f32 bias add.
        return (
            jnp.dot(a.astype(_BF16), w_ref[...],
                    preferred_element_type=jnp.float32)
            + b_ref[...]
        )

    # ---- xyz (sigma) encoder: 8 layers, skip connection at layer index 4 ----
    h = act(dense(x_xyz, w0, b0))                    # layer 0
    h = act(dense(h, w1, b1))                        # layer 1
    h = act(dense(h, w2, b2))                        # layer 2
    h = act(dense(h, w3, b3))                        # layer 3
    # layer 4: input is cat([input_xyz, h]) -> split matmuls, kept adjacent so
    # the MXU result buffer can accumulate in place (v7x MRB).
    acc = jnp.dot(x_xyz, w4x[...], preferred_element_type=jnp.float32)
    acc = acc + jnp.dot(h.astype(_BF16), w4h[...],
                        preferred_element_type=jnp.float32)
    h = act(acc + b4[...])                           # layer 4
    h = act(dense(h, w5, b5))                        # layer 5
    h = act(dense(h, w6, b6))                        # layer 6
    h = act(dense(h, w7, b7))                        # layer 7

    # ---- fused head: one (256,256) matmul producing
    #      [dh_pre(128) | 0 0 0 sigma | pad], where
    #      dh_pre = xyz_final @ wdx + bf @ wdx + bd   (wf composed with wdx
    #      on the host; sigma weight lives in column W_DIR+3).
    head = dense(h, wfd, bfd)                        # (TB, 256) f32
    sig4 = head[:, W_DIR:W_DIR + 4]                  # (TB, 4) = [0, 0, 0, sigma]

    dacc = head[:, :W_DIR] + jnp.dot(x_dir, wdd[...],
                                     preferred_element_type=jnp.float32)
    dh = act(dacc)                                   # (TB, 128)

    # rgb head zero-padded to 4 lanes; add biases + sigma tail
    # -> [rgb_logits(3), sigma(1)], column-masked sigmoid (no concatenate).
    out4 = (
        jnp.dot(dh.astype(_BF16), wrgb4[...], preferred_element_type=jnp.float32)
        + bout4[...]
        + sig4
    )                                                # (TB, 4)
    col = jax.lax.broadcasted_iota(jnp.int32, out4.shape, 1)
    out_ref[...] = jnp.where(col < 3, jax.nn.sigmoid(out4), out4).astype(
        out_ref.dtype)


def init_params(key):
    """Deterministic synthetic init matching the module's parameter shapes."""
    def lin(key, fan_in, fan_out):
        kw, kb = jax.random.split(key)
        w = jax.random.normal(kw, (fan_in, fan_out), jnp.float32) / jnp.sqrt(
            jnp.float32(fan_in))
        b = 0.01 * jax.random.normal(kb, (1, fan_out), jnp.float32)
        return w, b

    keys = jax.random.split(key, 16)
    p = {}
    p["w0"], p["b0"] = lin(keys[0], IN_XYZ, W_HID)
    p["w1"], p["b1"] = lin(keys[1], W_HID, W_HID)
    p["w2"], p["b2"] = lin(keys[2], W_HID, W_HID)
    p["w3"], p["b3"] = lin(keys[3], W_HID, W_HID)
    # layer 4 takes cat([xyz(63), h(256)]) -> stored as two blocks
    w4_full, p["b4"] = lin(keys[4], IN_XYZ + W_HID, W_HID)
    p["w4x"] = w4_full[:IN_XYZ]
    p["w4h"] = w4_full[IN_XYZ:]
    p["w5"], p["b5"] = lin(keys[5], W_HID, W_HID)
    p["w6"], p["b6"] = lin(keys[6], W_HID, W_HID)
    p["w7"], p["b7"] = lin(keys[7], W_HID, W_HID)
    p["wf"], p["bf"] = lin(keys[8], W_HID, W_HID)
    p["wsig"], p["bsig"] = lin(keys[9], W_HID, 1)
    # dir encoding takes cat([xyz_final(256), dir(27)]) -> two blocks
    wd_full, p["bd"] = lin(keys[10], W_HID + IN_DIR, W_DIR)
    p["wdx"] = wd_full[:W_HID]
    p["wdd"] = wd_full[W_HID:]
    p["wrgb"], p["brgb"] = lin(keys[11], W_DIR, 3)
    return p


def pack_params(p):
    """Natural f32 params -> fused / padded / bf16 kernel layout (done once)."""
    f32 = jnp.float32

    def pad_rows(w, rows):
        return jnp.pad(w, ((0, rows - w.shape[0]), (0, 0)))

    w0 = pad_rows(p["w0"], IN_XYZ_PAD)               # (64, 256)
    w4x = pad_rows(p["w4x"], IN_XYZ_PAD)             # (64, 256)
    wdd = pad_rows(p["wdd"], IN_DIR_PAD)             # (32, 128)

    # Compose xyz_encoding_final with the xyz_final->dir half of dir_encoding,
    # and pack the sigma head into the padded columns (sigma at col W_DIR+3).
    wfd = jnp.zeros((W_HID, 2 * W_DIR), f32)         # (256, 256)
    wfd = wfd.at[:, :W_DIR].set(p["wf"] @ p["wdx"])
    wfd = wfd.at[:, W_DIR + 3].set(p["wsig"][:, 0])
    bfd = jnp.zeros((1, 2 * W_DIR), f32)
    bfd = bfd.at[:, :W_DIR].set(p["bf"] @ p["wdx"] + p["bd"])
    # Invariant: columns W_DIR..W_DIR+2 of wfd/bfd are exactly zero so adding
    # sig4[:, :3] to the rgb logits is a no-op.

    # rgb head zero-padded to 4 output lanes; sigma bias goes in column 3.
    wrgb4 = jnp.zeros((W_DIR, 4), f32).at[:, :3].set(p["wrgb"])
    bout4 = jnp.concatenate([p["brgb"], p["bsig"]], axis=1)   # (1, 4)

    def c(w):
        return w.astype(_BF16)

    return (
        c(w0), p["b0"], c(p["w1"]), p["b1"],
        c(p["w2"]), p["b2"], c(p["w3"]), p["b3"],
        c(w4x), c(p["w4h"]), p["b4"],
        c(p["w5"]), p["b5"], c(p["w6"]), p["b6"], c(p["w7"]), p["b7"],
        c(wfd), bfd,
        c(wdd),
        c(wrgb4), bout4,
    )


def _pick_block_b(batch, block_cap):
    """Aim for >= 2 grid steps (v7x has 2 TCs on the 'parallel' axis), cap at
    block_cap, sublane-align to 8."""
    tb = min(block_cap, -(-batch // 2))
    tb = max(8, ((tb + 7) // 8) * 8)
    return min(tb, block_cap)


def _bf16_epilogue_default():
    """bf16 ReLU epilogue only where the VPU has a bf16 VALU (v6e / v7x)."""
    try:
        kind = jax.devices()[0].device_kind.lower()
    except Exception:
        return False
    return ("v6" in kind) or ("v7" in kind)


@functools.partial(jax.jit, static_argnames=("block_b", "bf16_act"))
def nerf_forward(x, packed_params, block_b=1024, bf16_act=False):
    """x: (B, IN_XYZ + IN_DIR) -> out: (B, 4) = [rgb(3), sigma(1)]."""
    B = x.shape[0]
    tb = _pick_block_b(B, block_b)

    x_xyz = x[:, :IN_XYZ].astype(_BF16)
    x_dir = x[:, IN_XYZ:IN_XYZ + IN_DIR].astype(_BF16)

    # Pad batch to a multiple of tb (padded rows sliced off at the end) and
    # feature dims to lane-friendly widths (63->64, 27->32).
    b_pad = (-B) % tb
    x_xyz = jnp.pad(x_xyz, ((0, b_pad), (0, IN_XYZ_PAD - IN_XYZ)))
    x_dir = jnp.pad(x_dir, ((0, b_pad), (0, IN_DIR_PAD - IN_DIR)))
    Bp = B + b_pad

    grid = (Bp // tb,)
    param_list = list(packed_params)

    in_specs = [
        pl.BlockSpec((tb, IN_XYZ_PAD), lambda i: (i, 0)),
        pl.BlockSpec((tb, IN_DIR_PAD), lambda i: (i, 0)),
    ] + [pl.BlockSpec(p.shape, lambda i: (0, 0)) for p in param_list]

    out_spec = pl.BlockSpec((tb, 4), lambda i: (i, 0))

    # Advisory cost estimate (per-row MACs after the wf@wdx fusion).
    macs_per_row = (
        IN_XYZ_PAD * W_HID               # layer 0
        + 3 * W_HID * W_HID              # layers 1-3
        + (IN_XYZ_PAD + W_HID) * W_HID   # layer 4 (skip)
        + 3 * W_HID * W_HID              # layers 5-7
        + W_HID * 2 * W_DIR              # fused (wf@wdx | sigma) head
        + IN_DIR_PAD * W_DIR             # dir part of dir_encoding
        + W_DIR * 4                      # rgb head (padded to 4 lanes)
    )
    weight_bytes = sum(int(p.size) * p.dtype.itemsize for p in param_list)
    cost = pl.CostEstimate(
        flops=2 * macs_per_row * Bp,
        transcendentals=3 * Bp,
        bytes_accessed=Bp * ((IN_XYZ_PAD + IN_DIR_PAD) * 2 + 4 * 4)
        + weight_bytes,
    )

    # VMEM budget scales with the block; capped at 48 MiB (v7x has 64 MiB).
    vmem_limit = min(48 * 1024 * 1024, 16 * 1024 * 1024 + tb * 16 * 1024)

    out = pl.pallas_call(
        functools.partial(nerf_kernel, bf16_act=bf16_act),
        grid=grid,
        in_specs=in_specs,
        out_specs=out_spec,
        out_shape=jax.ShapeDtypeStruct((Bp, 4), jnp.float32),
        compiler_params=pltpu.CompilerParams(
            dimension_semantics=("parallel",),
            vmem_limit_bytes=vmem_limit,
        ),
        cost_estimate=cost,
    )(x_xyz, x_dir, *param_list)
    return out[:B]


def nerf_reference(x, params):
    """Pure-JAX f32 reference with the module's (unfused) math, for validation."""
    x_xyz = x[:, :IN_XYZ]
    x_dir = x[:, IN_XYZ:IN_XYZ + IN_DIR]
    p = params
    h = jax.nn.relu(x_xyz @ p["w0"] + p["b0"])
    h = jax.nn.relu(h @ p["w1"] + p["b1"])
    h = jax.nn.relu(h @ p["w2"] + p["b2"])
    h = jax.nn.relu(h @ p["w3"] + p["b3"])
    h = jax.nn.relu(x_xyz @ p["w4x"] + h @ p["w4h"] + p["b4"])
    h = jax.nn.relu(h @ p["w5"] + p["b5"])
    h = jax.nn.relu(h @ p["w6"] + p["b6"])
    h = jax.nn.relu(h @ p["w7"] + p["b7"])
    sigma = h @ p["wsig"] + p["bsig"]
    xyz_final = h @ p["wf"] + p["bf"]
    dh = jax.nn.relu(xyz_final @ p["wdx"] + x_dir @ p["wdd"] + p["bd"])
    rgb = jax.nn.sigmoid(dh @ p["wrgb"] + p["brgb"])
    return jnp.concatenate([rgb, sigma], axis=-1)


if __name__ == "__main__":
    key = jax.random.PRNGKey(0)
    k_x, k_p = jax.random.split(key)

    B = 1000  # non-multiple of the block: exercises batch padding + 2 grid steps
    x = jax.random.normal(k_x, (B, IN_XYZ + IN_DIR), jnp.float32)
    params = init_params(k_p)
    packed = pack_params(params)

    out = nerf_forward(x, packed, bf16_act=_bf16_epilogue_default())
    out = jax.block_until_ready(out)

    ref = nerf_reference(x, params)
    assert out.shape == (B, 4), out.shape
    max_err = float(jnp.max(jnp.abs(out - ref)))
    # bf16 matmuls with f32 accumulation: expect ~1e-2 drift vs f32 reference.
    assert jnp.allclose(out, ref, rtol=3e-2, atol=3e-2), max_err

    print("KERNEL_OK")
</pallas_src>

<mosaic_0001>
module attributes {stable_mosaic.version = 11 : i64} {
  func.func @nerf_kernel(%arg0: i32, %arg1: memref<504x64xbf16, #tpu.memory_space<vmem>>, %arg2: memref<504x32xbf16, #tpu.memory_space<vmem>>, %arg3: memref<64x256xbf16, #tpu.memory_space<vmem>>, %arg4: memref<1x256xf32, #tpu.memory_space<vmem>>, %arg5: memref<256x256xbf16, #tpu.memory_space<vmem>>, %arg6: memref<1x256xf32, #tpu.memory_space<vmem>>, %arg7: memref<256x256xbf16, #tpu.memory_space<vmem>>, %arg8: memref<1x256xf32, #tpu.memory_space<vmem>>, %arg9: memref<256x256xbf16, #tpu.memory_space<vmem>>, %arg10: memref<1x256xf32, #tpu.memory_space<vmem>>, %arg11: memref<64x256xbf16, #tpu.memory_space<vmem>>, %arg12: memref<256x256xbf16, #tpu.memory_space<vmem>>, %arg13: memref<1x256xf32, #tpu.memory_space<vmem>>, %arg14: memref<256x256xbf16, #tpu.memory_space<vmem>>, %arg15: memref<1x256xf32, #tpu.memory_space<vmem>>, %arg16: memref<256x256xbf16, #tpu.memory_space<vmem>>, %arg17: memref<1x256xf32, #tpu.memory_space<vmem>>, %arg18: memref<256x256xbf16, #tpu.memory_space<vmem>>, %arg19: memref<1x256xf32, #tpu.memory_space<vmem>>, %arg20: memref<256x256xbf16, #tpu.memory_space<vmem>>, %arg21: memref<1x256xf32, #tpu.memory_space<vmem>>, %arg22: memref<32x128xbf16, #tpu.memory_space<vmem>>, %arg23: memref<128x4xbf16, #tpu.memory_space<vmem>>, %arg24: memref<1x4xf32, #tpu.memory_space<vmem>>, %arg25: memref<504x4xf32, #tpu.memory_space<vmem>>) attributes {dimension_semantics = [#tpu.dimension_semantics<parallel>], iteration_bounds = array<i64: 2>, scalar_prefetch = 0 : i64, scratch_operands = 0 : i64, tpu.core_type = #tpu.core_type<tc>, window_params = [{transform_indices = @transform_0, window_bounds = array<i64: 504, 64>}, {transform_indices = @transform_1, window_bounds = array<i64: 504, 32>}, {pipeline_mode = #tpu.pipeline_mode<synchronous>, transform_indices = @transform_2, window_bounds = array<i64: 64, 256>}, {pipeline_mode = #tpu.pipeline_mode<synchronous>, transform_indices = @transform_3, window_bounds = array<i64: 1, 256>}, {pipeline_mode = #tpu.pipeline_mode<synchronous>, transform_indices = @transform_4, window_bounds = array<i64: 256, 256>}, {pipeline_mode = #tpu.pipeline_mode<synchronous>, transform_indices = @transform_5, window_bounds = array<i64: 1, 256>}, {pipeline_mode = #tpu.pipeline_mode<synchronous>, transform_indices = @transform_6, window_bounds = array<i64: 256, 256>}, {pipeline_mode = #tpu.pipeline_mode<synchronous>, transform_indices = @transform_7, window_bounds = array<i64: 1, 256>}, {pipeline_mode = #tpu.pipeline_mode<synchronous>, transform_indices = @transform_8, window_bounds = array<i64: 256, 256>}, {pipeline_mode = #tpu.pipeline_mode<synchronous>, transform_indices = @transform_9, window_bounds = array<i64: 1, 256>}, {pipeline_mode = #tpu.pipeline_mode<synchronous>, transform_indices = @transform_10, window_bounds = array<i64: 64, 256>}, {pipeline_mode = #tpu.pipeline_mode<synchronous>, transform_indices = @transform_11, window_bounds = array<i64: 256, 256>}, {pipeline_mode = #tpu.pipeline_mode<synchronous>, transform_indices = @transform_12, window_bounds = array<i64: 1, 256>}, {pipeline_mode = #tpu.pipeline_mode<synchronous>, transform_indices = @transform_13, window_bounds = array<i64: 256, 256>}, {pipeline_mode = #tpu.pipeline_mode<synchronous>, transform_indices = @transform_14, window_bounds = array<i64: 1, 256>}, {pipeline_mode = #tpu.pipeline_mode<synchronous>, transform_indices = @transform_15, window_bounds = array<i64: 256, 256>}, {pipeline_mode = #tpu.pipeline_mode<synchronous>, transform_indices = @transform_16, window_bounds = array<i64: 1, 256>}, {pipeline_mode = #tpu.pipeline_mode<synchronous>, transform_indices = @transform_17, window_bounds = array<i64: 256, 256>}, {pipeline_mode = #tpu.pipeline_mode<synchronous>, transform_indices = @transform_18, window_bounds = array<i64: 1, 256>}, {pipeline_mode = #tpu.pipeline_mode<synchronous>, transform_indices = @transform_19, window_bounds = array<i64: 256, 256>}, {pipeline_mode = #tpu.pipeline_mode<synchronous>, transform_indices = @transform_20, window_bounds = array<i64: 1, 256>}, {pipeline_mode = #tpu.pipeline_mode<synchronous>, transform_indices = @transform_21, window_bounds = array<i64: 32, 128>}, {pipeline_mode = #tpu.pipeline_mode<synchronous>, transform_indices = @transform_22, window_bounds = array<i64: 128, 4>}, {pipeline_mode = #tpu.pipeline_mode<synchronous>, transform_indices = @transform_23, window_bounds = array<i64: 1, 4>}, {transform_indices = @transform_24, window_bounds = array<i64: 504, 4>}]} {
    %c0 = arith.constant 0 : index
    %c0_0 = arith.constant 0 : index
    %0 = vector.load %arg1[%c0, %c0_0] : memref<504x64xbf16, #tpu.memory_space<vmem>>, vector<504x64xbf16>
    %c0_1 = arith.constant 0 : index
    %c0_2 = arith.constant 0 : index
    %1 = vector.load %arg2[%c0_1, %c0_2] : memref<504x32xbf16, #tpu.memory_space<vmem>>, vector<504x32xbf16>
    %c0_3 = arith.constant 0 : index
    %c0_4 = arith.constant 0 : index
    %2 = vector.load %arg3[%c0_3, %c0_4] : memref<64x256xbf16, #tpu.memory_space<vmem>>, vector<64x256xbf16>
    %cst = arith.constant dense<0.000000e+00> : vector<504x256xf32>
    %3 = tpu.matmul %0, %2, %cst {dimension_numbers = #tpu.dot_dimension_numbers<[1], [0], [0], [1], [0, 0, 1, 1], [], []>} : vector<504x64xbf16>, vector<64x256xbf16>, vector<504x256xf32> -> vector<504x256xf32>
    %c0_5 = arith.constant 0 : index
    %c0_6 = arith.constant 0 : index
    %4 = vector.load %arg4[%c0_5, %c0_6] : memref<1x256xf32, #tpu.memory_space<vmem>>, vector<1x256xf32>
    %5 = vector.broadcast %4 : vector<1x256xf32> to vector<504x256xf32>
    %6 = arith.addf %3, %5 : vector<504x256xf32>
    %cst_7 = arith.constant 0.000000e+00 : f32
    %7 = vector.broadcast %cst_7 : f32 to vector<504x256xf32>
    %8 = arith.maximumf %6, %7 : vector<504x256xf32>
    %9 = arith.truncf %8 : vector<504x256xf32> to vector<504x256xbf16>
    %c0_8 = arith.constant 0 : index
    %c0_9 = arith.constant 0 : index
    %10 = vector.load %arg5[%c0_8, %c0_9] : memref<256x256xbf16, #tpu.memory_space<vmem>>, vector<256x256xbf16>
    %cst_10 = arith.constant dense<0.000000e+00> : vector<504x256xf32>
    %11 = tpu.matmul %9, %10, %cst_10 {dimension_numbers = #tpu.dot_dimension_numbers<[1], [0], [0], [1], [0, 0, 1, 1], [], []>} : vector<504x256xbf16>, vector<256x256xbf16>, vector<504x256xf32> -> vector<504x256xf32>
    %c0_11 = arith.constant 0 : index
    %c0_12 = arith.constant 0 : index
    %12 = vector.load %arg6[%c0_11, %c0_12] : memref<1x256xf32, #tpu.memory_space<vmem>>, vector<1x256xf32>
    %13 = vector.broadcast %12 : vector<1x256xf32> to vector<504x256xf32>
    %14 = arith.addf %11, %13 : vector<504x256xf32>
    %cst_13 = arith.constant 0.000000e+00 : f32
    %15 = vector.broadcast %cst_13 : f32 to vector<504x256xf32>
    %16 = arith.maximumf %14, %15 : vector<504x256xf32>
    %17 = arith.truncf %16 : vector<504x256xf32> to vector<504x256xbf16>
    %c0_14 = arith.constant 0 : index
    %c0_15 = arith.constant 0 : index
    %18 = vector.load %arg7[%c0_14, %c0_15] : memref<256x256xbf16, #tpu.memory_space<vmem>>, vector<256x256xbf16>
    %cst_16 = arith.constant dense<0.000000e+00> : vector<504x256xf32>
    %19 = tpu.matmul %17, %18, %cst_16 {dimension_numbers = #tpu.dot_dimension_numbers<[1], [0], [0], [1], [0, 0, 1, 1], [], []>} : vector<504x256xbf16>, vector<256x256xbf16>, vector<504x256xf32> -> vector<504x256xf32>
    %c0_17 = arith.constant 0 : index
    %c0_18 = arith.constant 0 : index
    %20 = vector.load %arg8[%c0_17, %c0_18] : memref<1x256xf32, #tpu.memory_space<vmem>>, vector<1x256xf32>
    %21 = vector.broadcast %20 : vector<1x256xf32> to vector<504x256xf32>
    %22 = arith.addf %19, %21 : vector<504x256xf32>
    %cst_19 = arith.constant 0.000000e+00 : f32
    %23 = vector.broadcast %cst_19 : f32 to vector<504x256xf32>
    %24 = arith.maximumf %22, %23 : vector<504x256xf32>
    %25 = arith.truncf %24 : vector<504x256xf32> to vector<504x256xbf16>
    %c0_20 = arith.constant 0 : index
    %c0_21 = arith.constant 0 : index
    %26 = vector.load %arg9[%c0_20, %c0_21] : memref<256x256xbf16, #tpu.memory_space<vmem>>, vector<256x256xbf16>
    %cst_22 = arith.constant dense<0.000000e+00> : vector<504x256xf32>
    %27 = tpu.matmul %25, %26, %cst_22 {dimension_numbers = #tpu.dot_dimension_numbers<[1], [0], [0], [1], [0, 0, 1, 1], [], []>} : vector<504x256xbf16>, vector<256x256xbf16>, vector<504x256xf32> -> vector<504x256xf32>
    %c0_23 = arith.constant 0 : index
    %c0_24 = arith.constant 0 : index
    %28 = vector.load %arg10[%c0_23, %c0_24] : memref<1x256xf32, #tpu.memory_space<vmem>>, vector<1x256xf32>
    %29 = vector.broadcast %28 : vector<1x256xf32> to vector<504x256xf32>
    %30 = arith.addf %27, %29 : vector<504x256xf32>
    %cst_25 = arith.constant 0.000000e+00 : f32
    %31 = vector.broadcast %cst_25 : f32 to vector<504x256xf32>
    %32 = arith.maximumf %30, %31 : vector<504x256xf32>
    %c0_26 = arith.constant 0 : index
    %c0_27 = arith.constant 0 : index
    %33 = vector.load %arg11[%c0_26, %c0_27] : memref<64x256xbf16, #tpu.memory_space<vmem>>, vector<64x256xbf16>
    %cst_28 = arith.constant dense<0.000000e+00> : vector<504x256xf32>
    %34 = tpu.matmul %0, %33, %cst_28 {dimension_numbers = #tpu.dot_dimension_numbers<[1], [0], [0], [1], [0, 0, 1, 1], [], []>} : vector<504x64xbf16>, vector<64x256xbf16>, vector<504x256xf32> -> vector<504x256xf32>
    %35 = arith.truncf %32 : vector<504x256xf32> to vector<504x256xbf16>
    %c0_29 = arith.constant 0 : index
    %c0_30 = arith.constant 0 : index
    %36 = vector.load %arg12[%c0_29, %c0_30] : memref<256x256xbf16, #tpu.memory_space<vmem>>, vector<256x256xbf16>
    %cst_31 = arith.constant dense<0.000000e+00> : vector<504x256xf32>
    %37 = tpu.matmul %35, %36, %cst_31 {dimension_numbers = #tpu.dot_dimension_numbers<[1], [0], [0], [1], [0, 0, 1, 1], [], []>} : vector<504x256xbf16>, vector<256x256xbf16>, vector<504x256xf32> -> vector<504x256xf32>
    %38 = arith.addf %34, %37 : vector<504x256xf32>
    %c0_32 = arith.constant 0 : index
    %c0_33 = arith.constant 0 : index
    %39 = vector.load %arg13[%c0_32, %c0_33] : memref<1x256xf32, #tpu.memory_space<vmem>>, vector<1x256xf32>
    %40 = vector.broadcast %39 : vector<1x256xf32> to vector<504x256xf32>
    %41 = arith.addf %38, %40 : vector<504x256xf32>
    %cst_34 = arith.constant 0.000000e+00 : f32
    %42 = vector.broadcast %cst_34 : f32 to vector<504x256xf32>
    %43 = arith.maximumf %41, %42 : vector<504x256xf32>
    %44 = arith.truncf %43 : vector<504x256xf32> to vector<504x256xbf16>
    %c0_35 = arith.constant 0 : index
    %c0_36 = arith.constant 0 : index
    %45 = vector.load %arg14[%c0_35, %c0_36] : memref<256x256xbf16, #tpu.memory_space<vmem>>, vector<256x256xbf16>
    %cst_37 = arith.constant dense<0.000000e+00> : vector<504x256xf32>
    %46 = tpu.matmul %44, %45, %cst_37 {dimension_numbers = #tpu.dot_dimension_numbers<[1], [0], [0], [1], [0, 0, 1, 1], [], []>} : vector<504x256xbf16>, vector<256x256xbf16>, vector<504x256xf32> -> vector<504x256xf32>
    %c0_38 = arith.constant 0 : index
    %c0_39 = arith.constant 0 : index
    %47 = vector.load %arg15[%c0_38, %c0_39] : memref<1x256xf32, #tpu.memory_space<vmem>>, vector<1x256xf32>
    %48 = vector.broadcast %47 : vector<1x256xf32> to vector<504x256xf32>
    %49 = arith.addf %46, %48 : vector<504x256xf32>
    %cst_40 = arith.constant 0.000000e+00 : f32
    %50 = vector.broadcast %cst_40 : f32 to vector<504x256xf32>
    %51 = arith.maximumf %49, %50 : vector<504x256xf32>
    %52 = arith.truncf %51 : vector<504x256xf32> to vector<504x256xbf16>
    %c0_41 = arith.constant 0 : index
    %c0_42 = arith.constant 0 : index
    %53 = vector.load %arg16[%c0_41, %c0_42] : memref<256x256xbf16, #tpu.memory_space<vmem>>, vector<256x256xbf16>
    %cst_43 = arith.constant dense<0.000000e+00> : vector<504x256xf32>
    %54 = tpu.matmul %52, %53, %cst_43 {dimension_numbers = #tpu.dot_dimension_numbers<[1], [0], [0], [1], [0, 0, 1, 1], [], []>} : vector<504x256xbf16>, vector<256x256xbf16>, vector<504x256xf32> -> vector<504x256xf32>
    %c0_44 = arith.constant 0 : index
    %c0_45 = arith.constant 0 : index
    %55 = vector.load %arg17[%c0_44, %c0_45] : memref<1x256xf32, #tpu.memory_space<vmem>>, vector<1x256xf32>
    %56 = vector.broadcast %55 : vector<1x256xf32> to vector<504x256xf32>
    %57 = arith.addf %54, %56 : vector<504x256xf32>
    %cst_46 = arith.constant 0.000000e+00 : f32
    %58 = vector.broadcast %cst_46 : f32 to vector<504x256xf32>
    %59 = arith.maximumf %57, %58 : vector<504x256xf32>
    %60 = arith.truncf %59 : vector<504x256xf32> to vector<504x256xbf16>
    %c0_47 = arith.constant 0 : index
    %c0_48 = arith.constant 0 : index
    %61 = vector.load %arg18[%c0_47, %c0_48] : memref<256x256xbf16, #tpu.memory_space<vmem>>, vector<256x256xbf16>
    %cst_49 = arith.constant dense<0.000000e+00> : vector<504x256xf32>
    %62 = tpu.matmul %60, %61, %cst_49 {dimension_numbers = #tpu.dot_dimension_numbers<[1], [0], [0], [1], [0, 0, 1, 1], [], []>} : vector<504x256xbf16>, vector<256x256xbf16>, vector<504x256xf32> -> vector<504x256xf32>
    %c0_50 = arith.constant 0 : index
    %c0_51 = arith.constant 0 : index
    %63 = vector.load %arg19[%c0_50, %c0_51] : memref<1x256xf32, #tpu.memory_space<vmem>>, vector<1x256xf32>
    %64 = vector.broadcast %63 : vector<1x256xf32> to vector<504x256xf32>
    %65 = arith.addf %62, %64 : vector<504x256xf32>
    %cst_52 = arith.constant 0.000000e+00 : f32
    %66 = vector.broadcast %cst_52 : f32 to vector<504x256xf32>
    %67 = arith.maximumf %65, %66 : vector<504x256xf32>
    %68 = arith.truncf %67 : vector<504x256xf32> to vector<504x256xbf16>
    %c0_53 = arith.constant 0 : index
    %c0_54 = arith.constant 0 : index
    %69 = vector.load %arg20[%c0_53, %c0_54] : memref<256x256xbf16, #tpu.memory_space<vmem>>, vector<256x256xbf16>
    %cst_55 = arith.constant dense<0.000000e+00> : vector<504x256xf32>
    %70 = tpu.matmul %68, %69, %cst_55 {dimension_numbers = #tpu.dot_dimension_numbers<[1], [0], [0], [1], [0, 0, 1, 1], [], []>} : vector<504x256xbf16>, vector<256x256xbf16>, vector<504x256xf32> -> vector<504x256xf32>
    %c0_56 = arith.constant 0 : index
    %c0_57 = arith.constant 0 : index
    %71 = vector.load %arg21[%c0_56, %c0_57] : memref<1x256xf32, #tpu.memory_space<vmem>>, vector<1x256xf32>
    %72 = vector.broadcast %71 : vector<1x256xf32> to vector<504x256xf32>
    %73 = arith.addf %70, %72 : vector<504x256xf32>
    %74 = vector.extract_strided_slice %73 {offsets = [0, 128], sizes = [504, 4], strides = [1, 1]} : vector<504x256xf32> to vector<504x4xf32>
    %75 = vector.extract_strided_slice %73 {offsets = [0, 0], sizes = [504, 128], strides = [1, 1]} : vector<504x256xf32> to vector<504x128xf32>
    %c0_58 = arith.constant 0 : index
    %c0_59 = arith.constant 0 : index
    %76 = vector.load %arg22[%c0_58, %c0_59] : memref<32x128xbf16, #tpu.memory_space<vmem>>, vector<32x128xbf16>
    %cst_60 = arith.constant dense<0.000000e+00> : vector<504x128xf32>
    %77 = tpu.matmul %1, %76, %cst_60 {dimension_numbers = #tpu.dot_dimension_numbers<[1], [0], [0], [1], [0, 0, 1, 1], [], []>} : vector<504x32xbf16>, vector<32x128xbf16>, vector<504x128xf32> -> vector<504x128xf32>
    %78 = arith.addf %75, %77 : vector<504x128xf32>
    %cst_61 = arith.constant 0.000000e+00 : f32
    %79 = vector.broadcast %cst_61 : f32 to vector<504x128xf32>
    %80 = arith.maximumf %78, %79 : vector<504x128xf32>
    %81 = arith.truncf %80 : vector<504x128xf32> to vector<504x128xbf16>
    %c0_62 = arith.constant 0 : index
    %c0_63 = arith.constant 0 : index
    %82 = vector.load %arg23[%c0_62, %c0_63] : memref<128x4xbf16, #tpu.memory_space<vmem>>, vector<128x4xbf16>
    %cst_64 = arith.constant dense<0.000000e+00> : vector<504x4xf32>
    %83 = tpu.matmul %81, %82, %cst_64 {dimension_numbers = #tpu.dot_dimension_numbers<[1], [0], [0], [1], [0, 0, 1, 1], [], []>} : vector<504x128xbf16>, vector<128x4xbf16>, vector<504x4xf32> -> vector<504x4xf32>
    %c0_65 = arith.constant 0 : index
    %c0_66 = arith.constant 0 : index
    %84 = vector.load %arg24[%c0_65, %c0_66] : memref<1x4xf32, #tpu.memory_space<vmem>>, vector<1x4xf32>
    %85 = vector.broadcast %84 : vector<1x4xf32> to vector<504x4xf32>
    %86 = arith.addf %83, %85 : vector<504x4xf32>
    %87 = arith.addf %86, %74 : vector<504x4xf32>
    %88 = tpu.iota {dimensions = array<i32: 1>} : vector<504x4xi32>
    %c3_i32 = arith.constant 3 : i32
    %89 = vector.broadcast %c3_i32 : i32 to vector<504x4xi32>
    %90 = arith.cmpi slt, %88, %89 : vector<504x4xi32>
    %91 = arith.negf %87 : vector<504x4xf32>
    %92 = math.exp %91 : vector<504x4xf32>
    %cst_67 = arith.constant 1.000000e+00 : f32
    %93 = vector.broadcast %cst_67 : f32 to vector<504x4xf32>
    %94 = arith.addf %93, %92 : vector<504x4xf32>
    %95 = arith.divf %93, %94 : vector<504x4xf32>
    %96 = arith.select %90, %95, %87 : vector<504x4xi1>, vector<504x4xf32>
    %c0_68 = arith.constant 0 : index
    %c0_69 = arith.constant 0 : index
    %97 = vector.load %arg25[%c0_68, %c0_69] : memref<504x4xf32, #tpu.memory_space<vmem>>, vector<504x4xf32>
    tpu.vector_store %arg25[%c0_68, %c0_69], %96 {strides = array<i32>} : memref<504x4xf32, #tpu.memory_space<vmem>>, vector<504x4xf32>,
    return
  }
  func.func @transform_0(%arg0: i32) -> (i32, i32) {
    %c0_i32 = arith.constant 0 : i32
    %c0_i32_0 = arith.constant 0 : i32
    return %arg0, %c0_i32 : i32, i32
  }
  func.func @transform_1(%arg0: i32) -> (i32, i32) {
    %c0_i32 = arith.constant 0 : i32
    %c0_i32_0 = arith.constant 0 : i32
    return %arg0, %c0_i32 : i32, i32
  }
  func.func @transform_2(%arg0: i32) -> (i32, i32) {
    %c0_i32 = arith.constant 0 : i32
    %c0_i32_0 = arith.constant 0 : i32
    %c0_i32_1 = arith.constant 0 : i32
    return %c0_i32, %c0_i32_0 : i32, i32
  }
  func.func @transform_3(%arg0: i32) -> (i32, i32) {
    %c0_i32 = arith.constant 0 : i32
    %c0_i32_0 = arith.constant 0 : i32
    %c0_i32_1 = arith.constant 0 : i32
    return %c0_i32, %c0_i32_0 : i32, i32
  }
  func.func @transform_4(%arg0: i32) -> (i32, i32) {
    %c0_i32 = arith.constant 0 : i32
    %c0_i32_0 = arith.constant 0 : i32
    %c0_i32_1 = arith.constant 0 : i32
    return %c0_i32, %c0_i32_0 : i32, i32
  }
  func.func @transform_5(%arg0: i32) -> (i32, i32) {
    %c0_i32 = arith.constant 0 : i32
    %c0_i32_0 = arith.constant 0 : i32
    %c0_i32_1 = arith.constant 0 : i32
    return %c0_i32, %c0_i32_0 : i32, i32
  }
  func.func @transform_6(%arg0: i32) -> (i32, i32) {
    %c0_i32 = arith.constant 0 : i32
    %c0_i32_0 = arith.constant 0 : i32
    %c0_i32_1 = arith.constant 0 : i32
    return %c0_i32, %c0_i32_0 : i32, i32
  }
  func.func @transform_7(%arg0: i32) -> (i32, i32) {
    %c0_i32 = arith.constant 0 : i32
    %c0_i32_0 = arith.constant 0 : i32
    %c0_i32_1 = arith.constant 0 : i32
    return %c0_i32, %c0_i32_0 : i32, i32
  }
  func.func @transform_8(%arg0: i32) -> (i32, i32) {
    %c0_i32 = arith.constant 0 : i32
    %c0_i32_0 = arith.constant 0 : i32
    %c0_i32_1 = arith.constant 0 : i32
    return %c0_i32, %c0_i32_0 : i32, i32
  }
  func.func @transform_9(%arg0: i32) -> (i32, i32) {
    %c0_i32 = arith.constant 0 : i32
    %c0_i32_0 = arith.constant 0 : i32
    %c0_i32_1 = arith.constant 0 : i32
    return %c0_i32, %c0_i32_0 : i32, i32
  }
  func.func @transform_10(%arg0: i32) -> (i32, i32) {
    %c0_i32 = arith.constant 0 : i32
    %c0_i32_0 = arith.constant 0 : i32
    %c0_i32_1 = arith.constant 0 : i32
    return %c0_i32, %c0_i32_0 : i32, i32
  }
  func.func @transform_11(%arg0: i32) -> (i32, i32) {
    %c0_i32 = arith.constant 0 : i32
    %c0_i32_0 = arith.constant 0 : i32
    %c0_i32_1 = arith.constant 0 : i32
    return %c0_i32, %c0_i32_0 : i32, i32
  }
  func.func @transform_12(%arg0: i32) -> (i32, i32) {
    %c0_i32 = arith.constant 0 : i32
    %c0_i32_0 = arith.constant 0 : i32
    %c0_i32_1 = arith.constant 0 : i32
    return %c0_i32, %c0_i32_0 : i32, i32
  }
  func.func @transform_13(%arg0: i32) -> (i32, i32) {
    %c0_i32 = arith.constant 0 : i32
    %c0_i32_0 = arith.constant 0 : i32
    %c0_i32_1 = arith.constant 0 : i32
    return %c0_i32, %c0_i32_0 : i32, i32
  }
  func.func @transform_14(%arg0: i32) -> (i32, i32) {
    %c0_i32 = arith.constant 0 : i32
    %c0_i32_0 = arith.constant 0 : i32
    %c0_i32_1 = arith.constant 0 : i32
    return %c0_i32, %c0_i32_0 : i32, i32
  }
  func.func @transform_15(%arg0: i32) -> (i32, i32) {
    %c0_i32 = arith.constant 0 : i32
    %c0_i32_0 = arith.constant 0 : i32
    %c0_i32_1 = arith.constant 0 : i32
    return %c0_i32, %c0_i32_0 : i32, i32
  }
  func.func @transform_16(%arg0: i32) -> (i32, i32) {
    %c0_i32 = arith.constant 0 : i32
    %c0_i32_0 = arith.constant 0 : i32
    %c0_i32_1 = arith.constant 0 : i32
    return %c0_i32, %c0_i32_0 : i32, i32
  }
  func.func @transform_17(%arg0: i32) -> (i32, i32) {
    %c0_i32 = arith.constant 0 : i32
    %c0_i32_0 = arith.constant 0 : i32
    %c0_i32_1 = arith.constant 0 : i32
    return %c0_i32, %c0_i32_0 : i32, i32
  }
  func.func @transform_18(%arg0: i32) -> (i32, i32) {
    %c0_i32 = arith.constant 0 : i32
    %c0_i32_0 = arith.constant 0 : i32
    %c0_i32_1 = arith.constant 0 : i32
    return %c0_i32, %c0_i32_0 : i32, i32
  }
  func.func @transform_19(%arg0: i32) -> (i32, i32) {
    %c0_i32 = arith.constant 0 : i32
    %c0_i32_0 = arith.constant 0 : i32
    %c0_i32_1 = arith.constant 0 : i32
    return %c0_i32, %c0_i32_0 : i32, i32
  }
  func.func @transform_20(%arg0: i32) -> (i32, i32) {
    %c0_i32 = arith.constant 0 : i32
    %c0_i32_0 = arith.constant 0 : i32
    %c0_i32_1 = arith.constant 0 : i32
    return %c0_i32, %c0_i32_0 : i32, i32
  }
  func.func @transform_21(%arg0: i32) -> (i32, i32) {
    %c0_i32 = arith.constant 0 : i32
    %c0_i32_0 = arith.constant 0 : i32
    %c0_i32_1 = arith.constant 0 : i32
    return %c0_i32, %c0_i32_0 : i32, i32
  }
  func.func @transform_22(%arg0: i32) -> (i32, i32) {
    %c0_i32 = arith.constant 0 : i32
    %c0_i32_0 = arith.constant 0 : i32
    %c0_i32_1 = arith.constant 0 : i32
    return %c0_i32, %c0_i32_0 : i32, i32
  }
  func.func @transform_23(%arg0: i32) -> (i32, i32) {
    %c0_i32 = arith.constant 0 : i32
    %c0_i32_0 = arith.constant 0 : i32
    %c0_i32_1 = arith.constant 0 : i32
    return %c0_i32, %c0_i32_0 : i32, i32
  }
  func.func @transform_24(%arg0: i32) -> (i32, i32) {
    %c0_i32 = arith.constant 0 : i32
    %c0_i32_0 = arith.constant 0 : i32
    return %arg0, %c0_i32 : i32, i32
  }
}

</mosaic_0001>

<bundles_post_ra>
// kernel: nerf_forward.1
= control target key start
LH: loop header
LB: loop body
LE: loop exit
PB: predicated region body
PF: predicated region fallthrough
CT: control target
= control target key end

     0   :  { %s15155_s0 = inlined_call_operand.vmem [shape: bf16[1008,64], index: 0, kind: input, shape index: {}]   ;;  %s15156_s1 = inlined_call_operand.vmem [shape: bf16[1008,32], index: 1, kind: input, shape index: {}]   ;;  %s15157_s2 = inlined_call_operand.vmem [shape: bf16[64,256], index: 2, kind: input, shape index: {}]   ;;  %s15158_s3 = inlined_call_operand.vmem [shape: f32[1,256], index: 3, kind: input, shape index: {}]   ;;  %s15159_s4 = inlined_call_operand.vmem [shape: bf16[256,256], index: 4, kind: input, shape index: {}]   ;;  %s15160_s5 = inlined_call_operand.vmem [shape: f32[1,256], index: 5, kind: input, shape index: {}]   ;;  %s15161_s6 = inlined_call_operand.vmem [shape: bf16[256,256], index: 6, kind: input, shape index: {}]   ;;  %s15162_s7 = inlined_call_operand.vmem [shape: f32[1,256], index: 7, kind: input, shape index: {}]   ;;  %s15163_s8 = inlined_call_operand.vmem [shape: bf16[256,256], index: 8, kind: input, shape index: {}]   ;;  %s15164_s9 = inlined_call_operand.vmem [shape: f32[1,256], index: 9, kind: input, shape index: {}]   ;;  %s15165_s10 = inlined_call_operand.vmem [shape: bf16[64,256], index: 10, kind: input, shape index: {}]   ;;  %s15166_s11 = inlined_call_operand.vmem [shape: bf16[256,256], index: 11, kind: input, shape index: {}]   ;;  %s15167_s12 = inlined_call_operand.vmem [shape: f32[1,256], index: 12, kind: input, shape index: {}]   ;;  %s15168_s13 = inlined_call_operand.vmem [shape: bf16[256,256], index: 13, kind: input, shape index: {}]   ;;  %s15169_s14 = inlined_call_operand.vmem [shape: f32[1,256], index: 14, kind: input, shape index: {}]   ;;  %s15170_s15 = inlined_call_operand.vmem [shape: bf16[256,256], index: 15, kind: input, shape index: {}]   ;;  %s15171_s16 = inlined_call_operand.vmem [shape: f32[1,256], index: 16, kind: input, shape index: {}]   ;;  %s15172_s17 = inlined_call_operand.vmem [shape: bf16[256,256], index: 17, kind: input, shape index: {}]   ;;  %s15173_s18 = inlined_call_operand.vmem [shape: f32[1,256], index: 18, kind: input, shape index: {}]   ;;  %s15174_s19 = inlined_call_operand.vmem [shape: bf16[256,256], index: 19, kind: input, shape index: {}]   ;;  %s15175_s20 = inlined_call_operand.vmem [shape: f32[1,256], index: 20, kind: input, shape index: {}]   ;;  %s15176_s21 = inlined_call_operand.vmem [shape: bf16[32,128], index: 21, kind: input, shape index: {}]   ;;  %s15177_s22 = inlined_call_operand.vmem [shape: bf16[128,4], index: 22, kind: input, shape index: {}]   ;;  %s15178_s23 = inlined_call_operand.vmem [shape: f32[1,4], index: 23, kind: input, shape index: {}]   ;;  %s15179_s24 = inlined_call_operand.vmem [shape: f32[1008,4], index: 24, kind: output, shape index: {}]  }
   0x1   :  { %15187 = sst [smem:[#allocation21_spill]] %s15155_s0 }
   0x2   :  { %15188 = sst [smem:[#allocation22_spill]] %s15156_s1 }
   0x3   :  { %15189 = sst [smem:[#allocation23_spill]] %s15157_s2 }
   0x4   :  { %15190 = sst [smem:[#allocation24_spill]] %s15158_s3 }
   0x5   :  { %15191 = sst [smem:[#allocation25_spill]] %s15159_s4 }
   0x6   :  { %15192 = sst [smem:[#allocation26_spill]] %s15160_s5  ;;  %s11436_s5 = smov 0  }
   0x7   :  { %15193 = sst [smem:[#allocation27_spill]] %s15161_s6 }
   0x8   :  { %15194 = sst [smem:[#allocation28_spill]] %s15162_s7 }
   0x9   :  { %15195 = sst [smem:[#allocation29_spill]] %s15163_s8 }
   0xa LB: > { %s9756_s26 = sadd.s32 4294967295, %s11308_s5   ;;  %p9760_p0 = scmp.ge.s32.totalorder %s11308_s5, 1  ;;  %s11308_s5 = sphi %s11436_s5, %s34_s5  }
   0xb   : > { %p674_p1 = scmp.lt.s32.totalorder %s11308_s5, 3 }
   0xd   : > { %p675_p2 = pnand %p9760_p0, %p674_p1 }
   0xf   : > { %678 = sbr.rel (%p675_p2) target bundleno = 2430 (0x97e), region = 116 }
  0x14   : > { %s15196_s6 = sld [smem:[#allocation23_spill]]  ;;  %s745_s2 = smul.u32 63, %s9756_s26  ;;  %v11310_v2 = vmov 0   ;;  %vm1108_vm0 = vcmask 523264   ;;  %vm8215_vm1 = vcmask 261120   ;;  %vm9624_vm3 = vcmask 31744  }
  0x15   : > { %1237 = vmatprep.mubr.bf16.mxu0 %v11310_v2  ;;  %s15197_s0 = sld [smem:[#allocation21_spill]] }
  0x16   : > { %p746_p3 = scmp.lt.s32.totalorder %s745_s2, 125  ;;  %s15198_s26 = sld [smem:[#allocation25_spill]] }
  0x17   : > { %s15199_s4 = sld [smem:[#allocation27_spill]] }
  0x18   : > { %s15246_s2 = smov (!%p746_p3, %s745_s2), 125  ;;  %s15200_s1 = sld [smem:[#allocation24_spill]] }
  0x19   : > { %s15184_s27 = sshll.u32 %s15246_s2, 2  ;;  %s15201_s28 = sld [smem:[#allocation29_spill]] }
  0x1a   : > { %v10535_v0 = vld [vmem:[%s15196_s6 + $0x34] ss:$8 sps:$4 sm:$0xff]   ;;  %v10537_v1 = vld [vmem:[%s15196_s6 + $0x30] ss:$8 sps:$4 sm:$0xff]   ;;  %v10538_v3 = vld [vmem:[%s15196_s6 + $0x24] ss:$8 sps:$4 sm:$0xff]  }
  0x1b   : > { %1213 = vmatprep.subr.bf16.mxu0 %v10535_v0  ;;  %v10540_v4 = vld [vmem:[%s15196_s6 + $0x20] ss:$8 sps:$4 sm:$0xff]   ;;  %v10541_v5 = vld [vmem:[%s15196_s6 + $0x14] ss:$8 sps:$4 sm:$0xff]   ;;  %v10543_v6 = vld [vmem:[%s15196_s6 + $0x10] ss:$8 sps:$4 sm:$0xff]   ;;  %s11471_s7 = scalar_lea.vmem %s15197_s0, %s15184_s27 }
  0x1c   : > { %1214 = vmatpush1.bf16.msra.mxu0 %v10537_v1  ;;  %v10544_v7 = vld [vmem:[%s15196_s6 + $0x4] ss:$8 sps:$4 sm:$0xff]   ;;  %v10546_v8 = vld [vmem:[%s15196_s6] ss:$8 sps:$4 sm:$0xff]   ;;  %v10565_v11 = vld [vmem:[%s15198_s26 + $0x74] ss:$8 sps:$4 sm:$0xff]  }
  0x1d   : > { %1215 = vmatprep.subr.bf16.mxu0 %v10538_v3  ;;  %v10547_v9 = vld [vmem:[%s11471_s7] sm:$0xff]   ;;  %v10548_v10 = vld [vmem:[%s11471_s7 + $0x8] sm:$0xff]   ;;  %v10567_v12 = vld [vmem:[%s15198_s26 + $0x70] ss:$8 sps:$4 sm:$0xff]   ;;  %1950 = vmatprep.subr.bf16.mxu1 %v10565_v11  ;;  %s15202_s30 = sld [smem:[#allocation26_spill]]  ;;  %s15204_s8 = sshll.u32 %s15246_s2, 2 }
  0x1e   : > { %v10549_v13 = vld [vmem:[%s11471_s7 + $0x10] sm:$0xff]   ;;  %1951 = vmatpush1.bf16.msra.mxu1 %v10567_v12  ;;  %v10569_v14 = vld [vmem:[%s15198_s26 + $0x64] ss:$8 sps:$4 sm:$0xff]   ;;  %v10571_v15 = vld [vmem:[%s15198_s26 + $0x60] ss:$8 sps:$4 sm:$0xff]   ;;  %s15203_s6 = sld [smem:[#allocation28_spill]] }
  0x1f   : > { %v10572_v16 = vld [vmem:[%s15198_s26 + $0x54] ss:$8 sps:$4 sm:$0xff]   ;;  %v10574_v17 = vld [vmem:[%s15198_s26 + $0x50] ss:$8 sps:$4 sm:$0xff]   ;;  %1952 = vmatprep.subr.bf16.mxu1 %v10569_v14  ;;  %v10576_v19 = vld [vmem:[%s15198_s26 + $0x44] ss:$8 sps:$4 sm:$0xff]  }
  0x20   : > { %1216 = vmatpush1.bf16.msra.mxu0 %v10540_v4  ;;  %v10550_v18 = vld [vmem:[%s11471_s7 + $0x18] sm:$0xff]   ;;  %v10578_v20 = vld [vmem:[%s15198_s26 + $0x40] ss:$8 sps:$4 sm:$0xff]   ;;  %v10586_v26 = vld [vmem:[%s15198_s26 + $0x24] ss:$8 sps:$4 sm:$0xff]   ;;  %s15205_s29 = sld [smem:[#allocation22_spill]] }
  0x21   : > { %1217 = vmatprep.subr.bf16.mxu0 %v10541_v5  ;;  %v10579_v21 = vld [vmem:[%s15199_s4 + $0x70] ss:$8 sps:$4 sm:$0xff]   ;;  %v10581_v22 = vld [vmem:[%s15199_s4 + $0x74] ss:$8 sps:$4 sm:$0xff]   ;;  %v10551_v24 = vld [vmem:[%s11471_s7 + $0x20] sm:$0xff]  }
  0x22   : > { %1953 = vmatpush1.bf16.msra.mxu1 %v10571_v15  ;;  %v10582_v23 = vld [vmem:[%s15198_s26 + $0x34] ss:$8 sps:$4 sm:$0xff]   ;;  %v10584_v25 = vld [vmem:[%s15198_s26 + $0x30] ss:$8 sps:$4 sm:$0xff]   ;;  %v10588_v27 = vld [vmem:[%s15198_s26 + $0x20] ss:$8 sps:$4 sm:$0xff]  }
  0x23   : > { %1954 = vmatprep.subr.bf16.mxu1 %v10572_v16  ;;  %v10589_v28 = vld [vmem:[%s15198_s26 + $0x14] ss:$8 sps:$4 sm:$0xff]   ;;  %v10591_v29 = vld [vmem:[%s15198_s26 + $0x10] ss:$8 sps:$4 sm:$0xff]   ;;  %v10552_v30 = vld [vmem:[%s11471_s7 + $0x28] sm:$0xff]  }
  0x24   : > { %1218 = vmatpush1.bf16.msra.mxu0 %v10543_v6  ;;  %v10593_v31 = vld [vmem:[%s15198_s26 + $0x4] ss:$8 sps:$4 sm:$0xff]   ;;  %v10595_v32 = vld [vmem:[%s15198_s26] ss:$8 sps:$4 sm:$0xff]   ;;  %v10599_v35 = vld [vmem:[%s15198_s26 + $0xf4] ss:$8 sps:$4 sm:$0xff]  }
  0x25   : > { %1219 = vmatprep.subr.bf16.mxu0 %v10544_v7  ;;  %v10596_v33 = vld [vmem:[%s15199_s4 + $0x60] ss:$8 sps:$4 sm:$0xff]   ;;  %v10598_v34 = vld [vmem:[%s15199_s4 + $0x64] ss:$8 sps:$4 sm:$0xff]   ;;  %v10553_v36 = vld [vmem:[%s11471_s7 + $0x30] sm:$0xff]  }
  0x26   : > { %1955 = vmatpush1.bf16.msra.mxu1 %v10574_v17  ;;  %v10601_v37 = vld [vmem:[%s15198_s26 + $0xf0] ss:$8 sps:$4 sm:$0xff]   ;;  %v10603_v38 = vld [vmem:[%s15198_s26 + $0xe4] ss:$8 sps:$4 sm:$0xff]   ;;  %v10605_v39 = vld [vmem:[%s15198_s26 + $0xe0] ss:$8 sps:$4 sm:$0xff]   ;;  %s13848_s0 = scalar_lea.vmem %s15205_s29, %s15204_s8 }
  0x27   : > { %1956 = vmatprep.subr.bf16.mxu1 %v10576_v19  ;;  %v10606_v40 = vld [vmem:[%s15198_s26 + $0xd4] ss:$8 sps:$4 sm:$0xff]   ;;  %v10608_v41 = vld [vmem:[%s15198_s26 + $0xd0] ss:$8 sps:$4 sm:$0xff]   ;;  %v10610_v43 = vld [vmem:[%s15198_s26 + $0xc4] ss:$8 sps:$4 sm:$0xff]  }
  0x28   : > { %1220 = vmatpush1.bf16.msra.mxu0 %v10546_v8  ;;  %v10554_v42 = vld [vmem:[%s11471_s7 + $0x38] sm:$0xff]   ;;  %v10612_v44 = vld [vmem:[%s15198_s26 + $0xc0] ss:$8 sps:$4 sm:$0xff]   ;;  %v10620_v50 = vld [vmem:[%s15198_s26 + $0xa4] ss:$8 sps:$4 sm:$0xff]   ;;  %s9763_s8 = sshll.u32 %s15246_s2, 3 }
  0x29   : > { %2695 = vmatprep.subr.bf16.mxu0 %v10581_v22  ;;  %v10613_v45 = vld [vmem:[%s15199_s4 + $0x50] ss:$8 sps:$4 sm:$0xff]   ;;  %v10615_v46 = vld [vmem:[%s15199_s4 + $0x54] ss:$8 sps:$4 sm:$0xff]   ;;  %v10555_v48 = vld [vmem:[%s11471_s7 + $0x40] sm:$0xff]   ;;  %v15186_v22 = vlaneseq }
  0x2a   : > { %1957 = vmatpush1.bf16.msra.mxu1 %v10578_v20  ;;  %v10616_v47 = vld [vmem:[%s15198_s26 + $0xb4] ss:$8 sps:$4 sm:$0xff]   ;;  %v10618_v49 = vld [vmem:[%s15198_s26 + $0xb0] ss:$8 sps:$4 sm:$0xff]   ;;  %v10622_v51 = vld [vmem:[%s15198_s26 + $0xa0] ss:$8 sps:$4 sm:$0xff]  }
  0x2b   : > { %9804 = vmatmul.mubr.msk.bf16.vlgmr.msra.gmra.mxu0 %vm1108_vm0, %v10547_v9  ;;  %1958 = vmatprep.subr.bf16.mxu1 %v10582_v23  ;;  %v10556_v52 = vld [vmem:[%s11471_s7 + $0x48] sm:$0xff]   ;;  %v10623_v53 = vld [vmem:[%s15198_s26 + $0x94] ss:$8 sps:$4 sm:$0xff]   ;;  %v10625_v54 = vld [vmem:[%s15198_s26 + $0x90] ss:$8 sps:$4 sm:$0xff]   ;;  %v901_v23 = vshrl.u32 %v15186_v22, 7 }
  0x2c   : > { %1247 = vmatprep.mubr.bf16.mxu0 %v11310_v2  ;;  %2696 = vmatpush1.bf16.msra.mxu0 %v10579_v21  ;;  %v10627_v55 = vld [vmem:[%s15198_s26 + $0x84] ss:$8 sps:$4 sm:$0xff]   ;;  %v10629_v56 = vld [vmem:[%s15198_s26 + $0x80] ss:$8 sps:$4 sm:$0xff]   ;;  %v10557_v57 = vld [vmem:[%s11471_s7 + $0x50] sm:$0xff]  }
  0x2d   : > { %2697 = vmatprep.subr.bf16.mxu0 %v10598_v34  ;;  %v10630_v58 = vld [vmem:[%s15199_s4 + $0x40] ss:$8 sps:$4 sm:$0xff]   ;;  %v10632_v59 = vld [vmem:[%s15199_s4 + $0x44] ss:$8 sps:$4 sm:$0xff]   ;;  %v10558_v60 = vld [vmem:[%s11471_s7 + $0x58] sm:$0xff]  }
  0x2e   : > { %1959 = vmatpush1.bf16.msra.mxu1 %v10584_v25  ;;  %v10559_v61 = vld [vmem:[%s11471_s7 + $0x60] sm:$0xff]   ;;  %v10635_v62 = vld [vmem:[%s15199_s4 + $0x30] ss:$8 sps:$4 sm:$0xff]   ;;  %v10637_v63 = vld [vmem:[%s15199_s4 + $0x34] ss:$8 sps:$4 sm:$0xff]   ;;  %v11709_v25 = vsub.s32 1, %v901_v23 }
  0x2f   : > { %1960 = vmatprep.subr.bf16.mxu1 %v10586_v26  ;;  %v10560_v0 = vld [vmem:[%s11471_s7 + $0x68] sm:$0xff]   ;;  %v10561_v1 = vld [vmem:[%s11471_s7 + $0x70] sm:$0xff]   ;;  %v10562_v5 = vld [vmem:[%s11471_s7 + $0x78] sm:$0xff]  }
  0x30   : > { %2698 = vmatpush1.bf16.msra.mxu0 %v10596_v33  ;;  %v10640_v3 = vld [vmem:[%s15199_s4 + $0x20] ss:$8 sps:$4 sm:$0xff]   ;;  %v10642_v4 = vld [vmem:[%s15199_s4 + $0x24] ss:$8 sps:$4 sm:$0xff]   ;;  %v10644_v7 = vld [vmem:[%s15199_s4 + $0x10] ss:$8 sps:$4 sm:$0xff]  }
  0x31   : > { %2699 = vmatprep.subr.bf16.mxu0 %v10615_v46  ;;  %v10563_v6 = vld [vmem:[%s11471_s7 + $0x80] sm:$0xff]   ;;  %v10646_v8 = vld [vmem:[%s15199_s4 + $0x14] ss:$8 sps:$4 sm:$0xff]   ;;  %v10564_v9 = vld [vmem:[%s11471_s7 + $0x88] sm:$0xff]  }
  0x32   : > { %1961 = vmatpush1.bf16.msra.mxu1 %v10588_v27  ;;  %v10648_v11 = vld [vmem:[%s15199_s4] ss:$8 sps:$4 sm:$0xff]   ;;  %v10650_v12 = vld [vmem:[%s15199_s4 + $0x4] ss:$8 sps:$4 sm:$0xff]   ;;  %v10651_v15 = vld [vmem:[%s15199_s4 + $0xf0] ss:$8 sps:$4 sm:$0xff]  }
  0x33   : > { %9805 = vmatmul.mubr.msk.bf16.gmra.mxu0 %vm1108_vm0, %v10548_v10  ;;  %1962 = vmatprep.subr.bf16.mxu1 %v10589_v28  ;;  %v10568_v10 = vld [vmem:[%s11471_s7 + $0x90] sm:$0xff]   ;;  %v10585_v14 = vld [vmem:[%s11471_s7 + $0xa0] sm:$0xff]   ;;  %v10592_v17 = vld [vmem:[%s11471_s7 + $0xa8] sm:$0xff]   ;;  %v11717_v28 = vsub.s32 0, %v901_v23 }
  0x34   : > { %1257 = vmatprep.mubr.bf16.mxu0 %v11310_v2  ;;  %2700 = vmatpush1.bf16.msra.mxu0 %v10613_v45  ;;  %v10653_v16 = vld [vmem:[%s15199_s4 + $0xf4] ss:$8 sps:$4 sm:$0xff]   ;;  %v10654_v19 = vld [vmem:[%s15199_s4 + $0xe0] ss:$8 sps:$4 sm:$0xff]   ;;  %v10656_v20 = vld [vmem:[%s15199_s4 + $0xe4] ss:$8 sps:$4 sm:$0xff]  }
  0x35   : > { %2701 = vmatprep.subr.bf16.mxu0 %v10632_v59  ;;  %v10609_v21 = vld [vmem:[%s11471_s7 + $0xb8] sm:$0xff]  }
  0x36   : > { %1963 = vmatpush1.bf16.msra.mxu1 %v10591_v29  ;;  %v10657_v26 = vld [vmem:[%s15199_s4 + $0xd0] ss:$8 sps:$4 sm:$0xff]   ;;  %v10659_v27 = vld [vmem:[%s15199_s4 + $0xd4] ss:$8 sps:$4 sm:$0xff]   ;;  %v898_v29 = vld [vmem:[%s15200_s1] sm:$0x3] }
  0x37   : > { %1964 = vmatprep.subr.bf16.mxu1 %v10593_v31  ;;  %v11724_v31 = vrot.slane %v898_v29, %v11709_v25  ;;  %v10663_v23 = vld [vmem:[%s15199_s4 + $0xb0] ss:$8 sps:$4 sm:$0xff]  }
  0x38   : > { %2702 = vmatpush1.bf16.msra.mxu0 %v10630_v58 }
  0x39   : > { %2703 = vmatprep.subr.bf16.mxu0 %v10637_v63 }
  0x3a   : > { %1965 = vmatpush1.bf16.msra.mxu1 %v10595_v32  ;;  %v11728_v32 = vrot.slane %v898_v29, %v11717_v28 }
  0x3b   : > { %9806 = vmatmul.mubr.msk.bf16.gmra.mxu0 %vm1108_vm0, %v10549_v13  ;;  %1966 = vmatprep.subr.bf16.mxu1 %v10599_v35  ;;  %v10575_v13 = vld [vmem:[%s11471_s7 + $0x98] sm:$0xff]   ;;  %v10626_v35 = vld [vmem:[%s11471_s7 + $0xc8] sm:$0xff]  }
  0x3c   : > { %1267 = vmatprep.mubr.bf16.mxu0 %v11310_v2  ;;  %2704 = vmatpush1.bf16.msra.mxu0 %v10635_v62 }
  0x3d   : > { %2705 = vmatprep.subr.bf16.mxu0 %v10642_v4  ;;  %v10634_v4 = vld [vmem:[%s11471_s7 + $0xd8] sm:$0xff]  }
  0x3e   : > { %1967 = vmatpush2.bf16.msra.mxu1 %v10601_v37 }
  0x3f   : > { %1968 = vmatprep.subr.bf16.mxu1 %v10603_v38 }
  0x40   : > { %2706 = vmatpush1.bf16.msra.mxu0 %v10640_v3 }
  0x41   : > { %2707 = vmatprep.subr.bf16.mxu0 %v10646_v8 }
  0x42   : > { %1969 = vmatpush2.bf16.msra.mxu1 %v10605_v39 }
  0x43   : > { %9807 = vmatmul.mubr.msk.bf16.gmra.mxu0 %vm1108_vm0, %v10550_v18  ;;  %1970 = vmatprep.subr.bf16.mxu1 %v10606_v40  ;;  %v10602_v18 = vld [vmem:[%s11471_s7 + $0xb0] sm:$0xff]  }
  0x44   : > { %1277 = vmatprep.mubr.bf16.mxu0 %v11310_v2  ;;  %2708 = vmatpush1.bf16.msra.mxu0 %v10644_v7 }
  0x45   : > { %2709 = vmatprep.subr.bf16.mxu0 %v10650_v12 }
  0x46   : > { %1971 = vmatpush2.bf16.msra.mxu1 %v10608_v41 }
  0x47   : > { %1972 = vmatprep.subr.bf16.mxu1 %v10610_v43 }
  0x48   : > { %2710 = vmatpush1.bf16.msra.mxu0 %v10648_v11 }
  0x49   : > { %2711 = vmatprep.subr.bf16.mxu0 %v10653_v16 }
  0x4a   : > { %1973 = vmatpush2.bf16.msra.mxu1 %v10612_v44 }
  0x4b   : > { %9808 = vmatmul.mubr.msk.bf16.gmra.mxu0 %vm1108_vm0, %v10551_v24  ;;  %1974 = vmatprep.subr.bf16.mxu1 %v10616_v47  ;;  %v10619_v24 = vld [vmem:[%s11471_s7 + $0xc0] sm:$0xff]  }
  0x4c   : > { %1287 = vmatprep.mubr.bf16.mxu0 %v11310_v2  ;;  %2712 = vmatpush2.bf16.msra.mxu0 %v10651_v15 }
  0x4d   : > { %2713 = vmatprep.subr.bf16.mxu0 %v10656_v20 }
  0x4e   : > { %1975 = vmatpush2.bf16.msra.mxu1 %v10618_v49 }
  0x4f   : > { %1976 = vmatprep.subr.bf16.mxu1 %v10620_v50  ;;  %v10633_v50 = vld [vmem:[%s11471_s7 + $0xd0] sm:$0xff]  }
  0x50   : > { %2714 = vmatpush2.bf16.msra.mxu0 %v10654_v19  ;;  %v10638_v19 = vld [vmem:[%s11471_s7 + $0xe0] sm:$0xff]  }
  0x51   : > { %2715 = vmatprep.subr.bf16.mxu0 %v10659_v27 }
  0x52   : > { %1977 = vmatpush2.bf16.msra.mxu1 %v10622_v51 }
  0x53   : > { %9809 = vmatmul.mubr.msk.bf16.gmra.mxu0 %vm1108_vm0, %v10552_v30  ;;  %1978 = vmatprep.subr.bf16.mxu1 %v10623_v53  ;;  %v10660_v53 = vld [vmem:[%s15199_s4 + $0xc0] ss:$8 sps:$4 sm:$0xff]  }
  0x54   : > { %1297 = vmatprep.mubr.bf16.mxu0 %v11310_v2  ;;  %2716 = vmatpush2.bf16.msra.mxu0 %v10657_v26 }
  0x56   : > { %1979 = vmatpush2.bf16.msra.mxu1 %v10625_v54  ;;  %v10662_v54 = vld [vmem:[%s15199_s4 + $0xc4] ss:$8 sps:$4 sm:$0xff]  }
  0x57   : > { %1980 = vmatprep.subr.bf16.mxu1 %v10627_v55  ;;  %2717 = vmatprep.subr.bf16.mxu0 %v10662_v54  ;;  %v10666_v54 = vld [vmem:[%s15201_s28 + $0x70] ss:$8 sps:$4 sm:$0xff]  }
  0x58   : > { %2718 = vmatpush2.bf16.msra.mxu0 %v10660_v53 }
  0x5a   : > { %1981 = vmatpush2.bf16.msra.mxu1 %v10629_v56 }
  0x5b   : > { %9810 = vmatmul.mubr.msk.bf16.gmra.mxu0 %vm1108_vm0, %v10553_v36 }
  0x5c   : > { %1307 = vmatprep.mubr.bf16.mxu0 %v11310_v2 }
  0x63   : > { %9811 = vmatmul.mubr.msk.bf16.gmra.mxu0 %vm1108_vm0, %v10554_v42 }
  0x64   : > { %1317 = vmatprep.mubr.bf16.mxu0 %v11310_v2 }
  0x6b   : > { %9812 = vmatmul.mubr.msk.bf16.gmra.mxu0 %vm1108_vm0, %v10555_v48 }
  0x6c   : > { %1327 = vmatprep.mubr.bf16.mxu0 %v11310_v2 }
  0x73   : > { %9813 = vmatmul.mubr.msk.bf16.gmra.mxu0 %vm1108_vm0, %v10556_v52 }
  0x74   : > { %1337 = vmatprep.mubr.bf16.mxu0 %v11310_v2 }
  0x7b   : > { %9814 = vmatmul.mubr.msk.bf16.gmra.mxu0 %vm1108_vm0, %v10557_v57 }
  0x7c   : > { %1347 = vmatprep.mubr.bf16.mxu0 %v11310_v2 }
  0x83   : > { %9815 = vmatmul.mubr.msk.bf16.gmra.mxu0 %vm1108_vm0, %v10558_v60 }
  0x84   : > { %1357 = vmatprep.mubr.bf16.mxu0 %v11310_v2 }
  0x8b   : > { %9816 = vmatmul.mubr.msk.bf16.gmra.mxu0 %vm1108_vm0, %v10559_v61 }
  0x8c   : > { %1367 = vmatprep.mubr.bf16.mxu0 %v11310_v2 }
  0x93   : > { %9817 = vmatmul.mubr.msk.bf16.gmra.mxu0 %vm1108_vm0, %v10560_v0 }
  0x94   : > { %1377 = vmatprep.mubr.bf16.mxu0 %v11310_v2 }
  0x9b   : > { %9818 = vmatmul.mubr.msk.bf16.gmra.mxu0 %vm1108_vm0, %v10561_v1 }
  0x9c   : > { %1387 = vmatprep.mubr.bf16.mxu0 %v11310_v2 }
  0xa3   : > { %9819 = vmatmul.mubr.msk.bf16.gmra.mxu0 %vm1108_vm0, %v10562_v5 }
  0xa4   : > { %1397 = vmatprep.mubr.bf16.mxu0 %v11310_v2 }
  0xab   : > { %9820 = vmatmul.mubr.msk.bf16.gmra.mxu0 %vm1108_vm0, %v10563_v6 }
  0xac   : > { %1407 = vmatprep.mubr.bf16.mxu0 %v11310_v2 }
  0xb3   : > { %9821 = vmatmul.mubr.msk.bf16.gmra.mxu0 %vm1108_vm0, %v10564_v9 }
  0xb4   : > { %1417 = vmatprep.mubr.bf16.mxu0 %v11310_v2 }
  0xbb   : > { %9822 = vmatmul.mubr.msk.bf16.gmra.mxu0 %vm1108_vm0, %v10568_v10 }
  0xbc   : > { %1427 = vmatprep.mubr.bf16.mxu0 %v11310_v2 }
  0xc3   : > { %9823 = vmatmul.mubr.msk.bf16.gmra.mxu0 %vm1108_vm0, %v10575_v13 }
  0xc4   : > { %1437 = vmatprep.mubr.bf16.mxu0 %v11310_v2 }
  0xcb   : > { %9824 = vmatmul.mubr.msk.bf16.gmra.mxu0 %vm1108_vm0, %v10585_v14 }
  0xcc   : > { %1447 = vmatprep.mubr.bf16.mxu0 %v11310_v2 }
  0xd3   : > { %9825 = vmatmul.mubr.msk.bf16.gmra.mxu0 %vm1108_vm0, %v10592_v17 }
  0xd4   : > { %1457 = vmatprep.mubr.bf16.mxu0 %v11310_v2 }
  0xdb   : > { %9826 = vmatmul.mubr.msk.bf16.gmra.mxu0 %vm1108_vm0, %v10602_v18 }
  0xdc   : > { %1467 = vmatprep.mubr.bf16.mxu0 %v11310_v2 }
  0xe3   : > { %9827 = vmatmul.mubr.msk.bf16.gmra.mxu0 %vm1108_vm0, %v10609_v21 }
  0xe4   : > { %1477 = vmatprep.mubr.bf16.mxu0 %v11310_v2 }
  0xeb   : > { %v1239_v30 = vpop.f32.mrf.mxu0  ;;  %9828 = vmatmul.mubr.msk.bf16.gmra.mxu0 %vm1108_vm0, %v10619_v24  ;;  %v10665_v24 = vld [vmem:[%s15199_s4 + $0xb4] ss:$8 sps:$4 sm:$0xff]  }
  0xec   : > { %1487 = vmatprep.mubr.bf16.mxu0 %v11310_v2  ;;  %v1240_v38 = vadd.f32 %v1239_v30, %v11728_v32  ;;  %2719 = vmatprep.subr.bf16.mxu0 %v10665_v24 }
  0xed   : > { %v1241_v33 = vpop.f32.mrf.mxu0  ;;  %2720 = vmatpush2.bf16.msra.mxu0 %v10663_v23 }
  0xee   : > { %v1242_v36 = vadd.f32 %v1241_v33, %v11724_v31  ;;  %v1556_v45 = vmax.f32 %v1240_v38, 0.0 }
  0xef   : > { %v1243_v34 = vpop.f32.mrf.mxu0 }
  0xf0   : > { %v1244_v37 = vadd.f32 %v1243_v34, %v11728_v32  ;;  %v1557_v43 = vmax.f32 %v1242_v36, 0.0 }
  0xf1   : > { %v1245_v39 = vpop.f32.mrf.mxu0 }
  0xf2   : > { %v1246_v40 = vadd.f32 %v1245_v39, %v11724_v31  ;;  %v1558_v41 = vmax.f32 %v1244_v37, 0.0 }
  0xf3   : > { %v1249_v42 = vpop.f32.mrf.mxu0  ;;  %9829 = vmatmul.mubr.msk.bf16.gmra.mxu0 %vm1108_vm0, %v10626_v35 }
  0xf4   : > { %v1559_v44 = vmax.f32 %v1246_v40, 0.0  ;;  %1497 = vmatprep.mubr.bf16.mxu0 %v11310_v2  ;;  %v1682_v48 = vpack.c.bf16 %v1558_v41, %v1556_v45  ;;  %v1250_v55 = vadd.f32 %v1249_v42, %v11728_v32  ;;  %v10639_v41 = vld [vmem:[%s11471_s7 + $0xe8] sm:$0xff]  }
  0xf5   : > { %v1251_v46 = vpop.f32.mrf.mxu0 }
  0xf6   : > { %v1683_v47 = vpack.c.bf16 %v1559_v44, %v1557_v43  ;;  %v1252_v51 = vadd.f32 %v1251_v46, %v11724_v31  ;;  %v1560_v62 = vmax.f32 %v1250_v55, 0.0  ;;  %v10668_v55 = vld [vmem:[%s15201_s28 + $0x74] ss:$8 sps:$4 sm:$0xff]  }
  0xf7   : > { %v1253_v49 = vpop.f32.mrf.mxu0  ;;  %3440 = vmatprep.subr.bf16.mxu1 %v10668_v55 }
  0xf8   : > { %v1254_v52 = vadd.f32 %v1253_v49, %v11728_v32  ;;  %1982 = vmatprep.mubr.bf16.mxu1 %v1683_v47  ;;  %v1561_v60 = vmax.f32 %v1252_v51, 0.0 }
  0xf9   : > { %v1255_v56 = vpop.f32.mrf.mxu0  ;;  %1983 = vmatmul.mubr.bf16.vlgmr.msra.gmra.mxu1 %v1682_v48 }
  0xfa   : > { %v1256_v57 = vadd.f32 %v1255_v56, %v11724_v31  ;;  %v1562_v58 = vmax.f32 %v1254_v52, 0.0  ;;  %3441 = vmatpush1.bf16.msra.mxu1 %v10666_v54 }
  0xfb   : > { %v1259_v59 = vpop.f32.mrf.mxu0  ;;  %9830 = vmatmul.mubr.msk.bf16.gmra.mxu0 %vm1108_vm0, %v10633_v50 }
  0xfc   : > { %v1563_v61 = vmax.f32 %v1256_v57, 0.0  ;;  %1507 = vmatprep.mubr.bf16.mxu0 %v11310_v2  ;;  %v1684_v1 = vpack.c.bf16 %v1562_v58, %v1560_v62  ;;  %v1260_v7 = vadd.f32 %v1259_v59, %v11728_v32  ;;  %v10643_v58 = vld [vmem:[%s11471_s7 + $0xf0] sm:$0xff]   ;;  %v10671_v62 = vld [vmem:[%s15199_s4 + $0xa4] ss:$8 sps:$4 sm:$0xff]  }
  0xfd   : > { %v1261_v63 = vpop.f32.mrf.mxu0  ;;  %2721 = vmatprep.subr.bf16.mxu0 %v10671_v62  ;;  %v10678_v62 = vld [vmem:[%s15201_s28 + $0x50] ss:$8 sps:$4 sm:$0xff]  }
  0xfe   : > { %v1685_v0 = vpack.c.bf16 %v1563_v61, %v1561_v60  ;;  %v1262_v5 = vadd.f32 %v1261_v63, %v11724_v31  ;;  %v1564_v14 = vmax.f32 %v1260_v7, 0.0  ;;  %v10669_v61 = vld [vmem:[%s15199_s4 + $0xa0] ss:$8 sps:$4 sm:$0xff]  }
  0xff   : > { %v1263_v3 = vpop.f32.mrf.mxu0  ;;  %2722 = vmatpush2.bf16.msra.mxu0 %v10669_v61 }
 0x100   : > { %v1264_v6 = vadd.f32 %v1263_v3, %v11728_v32  ;;  %1992 = vmatprep.mubr.bf16.mxu1 %v1685_v0  ;;  %v1565_v12 = vmax.f32 %v1262_v5, 0.0 }
 0x101   : > { %v1265_v8 = vpop.f32.mrf.mxu0  ;;  %1993 = vmatmul.mubr.bf16.gmra.mxu1 %v1684_v1 }
 0x102   : > { %v1266_v9 = vadd.f32 %v1265_v8, %v11724_v31  ;;  %v1566_v10 = vmax.f32 %v1264_v6, 0.0 }
 0x103   : > { %v1269_v11 = vpop.f32.mrf.mxu0  ;;  %9831 = vmatmul.mubr.msk.bf16.gmra.mxu0 %vm1108_vm0, %v10634_v4 }
 0x104   : > { %v1567_v13 = vmax.f32 %v1266_v9, 0.0  ;;  %1517 = vmatprep.mubr.bf16.mxu0 %v11310_v2  ;;  %v1686_v17 = vpack.c.bf16 %v1566_v10, %v1564_v14  ;;  %v1270_v26 = vadd.f32 %v1269_v11, %v11728_v32 }
 0x105   : > { %v1271_v15 = vpop.f32.mrf.mxu0 }
 0x106   : > { %v1687_v16 = vpack.c.bf16 %v1567_v13, %v1565_v12  ;;  %v1272_v20 = vadd.f32 %v1271_v15, %v11724_v31  ;;  %v1568_v36 = vmax.f32 %v1270_v26, 0.0  ;;  %v10647_v12 = vld [vmem:[%s11471_s7 + $0xf8] ss:$0 sps:$4 sm:$0xff]  }
 0x107   : > { %v1273_v18 = vpop.f32.mrf.mxu0 }
 0x108   : > { %v1274_v21 = vadd.f32 %v1273_v18, %v11728_v32  ;;  %2002 = vmatprep.mubr.bf16.mxu1 %v1687_v16  ;;  %v1569_v34 = vmax.f32 %v1272_v20, 0.0 }
 0x109   : > { %v1275_v27 = vpop.f32.mrf.mxu0  ;;  %2003 = vmatmul.mubr.bf16.gmra.mxu1 %v1686_v17 }
 0x10a   : > { %v1276_v29 = vadd.f32 %v1275_v27, %v11724_v31  ;;  %v1570_v30 = vmax.f32 %v1274_v21, 0.0  ;;  %v10672_v27 = vld [vmem:[%s15201_s28 + $0x60] ss:$8 sps:$4 sm:$0xff]  }
 0x10b   : > { %v1279_v33 = vpop.f32.mrf.mxu0  ;;  %9832 = vmatmul.mubr.msk.bf16.gmra.mxu0 %vm1108_vm0, %v10638_v19 }
 0x10c   : > { %v1571_v35 = vmax.f32 %v1276_v29, 0.0  ;;  %1527 = vmatprep.mubr.bf16.mxu0 %v11310_v2  ;;  %v1688_v39 = vpack.c.bf16 %v1570_v30, %v1568_v36  ;;  %v1280_v44 = vadd.f32 %v1279_v33, %v11728_v32  ;;  %v10674_v29 = vld [vmem:[%s15201_s28 + $0x64] ss:$8 sps:$4 sm:$0xff]   ;;  %v10675_v36 = vld [vmem:[%s15199_s4 + $0x90] ss:$8 sps:$4 sm:$0xff]  }
 0x10d   : > { %v1281_v37 = vpop.f32.mrf.mxu0  ;;  %3442 = vmatprep.subr.bf16.mxu1 %v10674_v29 }
 0x10e   : > { %v1689_v38 = vpack.c.bf16 %v1571_v35, %v1569_v34  ;;  %v1282_v42 = vadd.f32 %v1281_v37, %v11724_v31  ;;  %v1572_v51 = vmax.f32 %v1280_v44, 0.0  ;;  %v10677_v37 = vld [vmem:[%s15199_s4 + $0x94] ss:$8 sps:$4 sm:$0xff]   ;;  %3443 = vmatpush1.bf16.msra.mxu1 %v10672_v27 }
 0x10f   : > { %v1283_v40 = vpop.f32.mrf.mxu0  ;;  %2723 = vmatprep.subr.bf16.mxu0 %v10677_v37  ;;  %v10686_v37 = vld [vmem:[%s15201_s28 + $0x44] ss:$8 sps:$4 sm:$0xff]  }
 0x110   : > { %v1284_v43 = vadd.f32 %v1283_v40, %v11728_v32  ;;  %2012 = vmatprep.mubr.bf16.mxu1 %v1689_v38  ;;  %v1573_v49 = vmax.f32 %v1282_v42, 0.0  ;;  %2724 = vmatpush2.bf16.msra.mxu0 %v10675_v36  ;;  %v10684_v36 = vld [vmem:[%s15201_s28 + $0x40] ss:$8 sps:$4 sm:$0xff]  }
 0x111   : > { %v1285_v45 = vpop.f32.mrf.mxu0  ;;  %2013 = vmatmul.mubr.bf16.gmra.mxu1 %v1688_v39 }
 0x112   : > { %v1286_v46 = vadd.f32 %v1285_v45, %v11724_v31  ;;  %v1574_v47 = vmax.f32 %v1284_v43, 0.0 }
 0x113   : > { %v1289_v48 = vpop.f32.mrf.mxu0  ;;  %9833 = vmatmul.mubr.msk.bf16.gmra.mxu0 %vm1108_vm0, %v10639_v41 }
 0x114   : > { %v1575_v50 = vmax.f32 %v1286_v46, 0.0  ;;  %1537 = vmatprep.mubr.bf16.mxu0 %v11310_v2  ;;  %v1690_v56 = vpack.c.bf16 %v1574_v47, %v1572_v51  ;;  %v1290_v63 = vadd.f32 %v1289_v48, %v11728_v32 }
 0x115   : > { %v1291_v52 = vpop.f32.mrf.mxu0 }
 0x116   : > { %v1691_v53 = vpack.c.bf16 %v1575_v50, %v1573_v49  ;;  %v1292_v59 = vadd.f32 %v1291_v52, %v11724_v31  ;;  %v1576_v7 = vmax.f32 %v1290_v63, 0.0  ;;  %v10680_v63 = vld [vmem:[%s15201_s28 + $0x54] ss:$8 sps:$4 sm:$0xff]  }
 0x117   : > { %v1293_v57 = vpop.f32.mrf.mxu0  ;;  %3444 = vmatprep.subr.bf16.mxu1 %v10680_v63 }
 0x118   : > { %v1294_v60 = vadd.f32 %v1293_v57, %v11728_v32  ;;  %2022 = vmatprep.mubr.bf16.mxu1 %v1691_v53  ;;  %v1577_v5 = vmax.f32 %v1292_v59, 0.0  ;;  %3445 = vmatpush1.bf16.msra.mxu1 %v10678_v62 }
 0x119   : > { %v1295_v0 = vpop.f32.mrf.mxu0  ;;  %2023 = vmatmul.mubr.bf16.gmra.mxu1 %v1690_v56  ;;  %3446 = vmatprep.subr.bf16.mxu1 %v10686_v37 }
 0x11a   : > { %v1296_v1 = vadd.f32 %v1295_v0, %v11724_v31  ;;  %v1578_v3 = vmax.f32 %v1294_v60, 0.0 }
 0x11b   : > { %v1299_v4 = vpop.f32.mrf.mxu0  ;;  %9834 = vmatmul.mubr.msk.bf16.gmra.mxu0 %vm1108_vm0, %v10643_v58 }
 0x11c   : > { %v1579_v6 = vmax.f32 %v1296_v1, 0.0  ;;  %1547 = vmatprep.mubr.bf16.mxu0 %v11310_v2  ;;  %v1692_v10 = vpack.c.bf16 %v1578_v3, %v1576_v7  ;;  %v1300_v15 = vadd.f32 %v1299_v4, %v11728_v32  ;;  %3447 = vmatpush1.bf16.msra.mxu1 %v10684_v36 }
 0x11d   : > { %v1301_v8 = vpop.f32.mrf.mxu0 }
 0x11e   : > { %v1693_v9 = vpack.c.bf16 %v1579_v6, %v1577_v5  ;;  %v1302_v13 = vadd.f32 %v1301_v8, %v11724_v31  ;;  %v1580_v23 = vmax.f32 %v1300_v15, 0.0  ;;  %v10681_v5 = vld [vmem:[%s15199_s4 + $0x80] ss:$8 sps:$4 sm:$0xff]   ;;  %v10683_v6 = vld [vmem:[%s15199_s4 + $0x84] ss:$8 sps:$4 sm:$0xff]  }
 0x11f   : > { %v1303_v11 = vpop.f32.mrf.mxu0  ;;  %2725 = vmatprep.subr.bf16.mxu0 %v10683_v6 }
 0x120   : > { %v1304_v14 = vadd.f32 %v1303_v11, %v11728_v32  ;;  %2032 = vmatprep.mubr.bf16.mxu1 %v1693_v9  ;;  %v1581_v20 = vmax.f32 %v1302_v13, 0.0  ;;  %2726 = vmatpush2.bf16.msra.mxu0 %v10681_v5 }
 0x121   : > { %v1305_v16 = vpop.f32.mrf.mxu0  ;;  %2033 = vmatmul.mubr.bf16.gmra.mxu1 %v1692_v10 }
 0x122   : > { %v1306_v17 = vadd.f32 %v1305_v16, %v11724_v31  ;;  %v1582_v18 = vmax.f32 %v1304_v14, 0.0 }
 0x123   : > { %v1309_v19 = vpop.f32.mrf.mxu0  ;;  %9835 = vmatmul.mubr.msk.bf16.gmra.mxu0 %vm1108_vm0, %v10647_v12 }
 0x124   : > { %v1583_v21 = vmax.f32 %v1306_v17, 0.0  ;;  %v1694_v30 = vpack.c.bf16 %v1582_v18, %v1580_v23  ;;  %v1310_v38 = vadd.f32 %v1309_v19, %v11728_v32 }
 0x125   : > { %v1311_v24 = vpop.f32.mrf.mxu0 }
 0x126   : > { %v1695_v26 = vpack.c.bf16 %v1583_v21, %v1581_v20  ;;  %v1312_v34 = vadd.f32 %v1311_v24, %v11724_v31  ;;  %v1584_v45 = vmax.f32 %v1310_v38, 0.0 }
 0x127   : > { %v1313_v33 = vpop.f32.mrf.mxu0 }
 0x128   : > { %v1314_v35 = vadd.f32 %v1313_v33, %v11728_v32  ;;  %2042 = vmatprep.mubr.bf16.mxu1 %v1695_v26  ;;  %v1585_v43 = vmax.f32 %v1312_v34, 0.0 }
 0x129   : > { %v1315_v39 = vpop.f32.mrf.mxu0  ;;  %2043 = vmatmul.mubr.bf16.gmra.mxu1 %v1694_v30 }
 0x12a   : > { %v1316_v40 = vadd.f32 %v1315_v39, %v11724_v31  ;;  %v1586_v41 = vmax.f32 %v1314_v35, 0.0 }
 0x12b   : > { %v1319_v42 = vpop.f32.mrf.mxu0 }
 0x12c   : > { %v1587_v44 = vmax.f32 %v1316_v40, 0.0  ;;  %v1696_v48 = vpack.c.bf16 %v1586_v41, %v1584_v45  ;;  %v1320_v52 = vadd.f32 %v1319_v42, %v11728_v32 }
 0x12d   : > { %v1321_v46 = vpop.f32.mrf.mxu0 }
 0x12e   : > { %v1697_v47 = vpack.c.bf16 %v1587_v44, %v1585_v43  ;;  %v1322_v50 = vadd.f32 %v1321_v46, %v11724_v31  ;;  %v1588_v59 = vmax.f32 %v1320_v52, 0.0 }
 0x12f   : > { %v1323_v49 = vpop.f32.mrf.mxu0 }
 0x130   : > { %v1324_v51 = vadd.f32 %v1323_v49, %v11728_v32  ;;  %2052 = vmatprep.mubr.bf16.mxu1 %v1697_v47  ;;  %v1589_v57 = vmax.f32 %v1322_v50, 0.0 }
 0x131   : > { %v1325_v53 = vpop.f32.mrf.mxu0  ;;  %2053 = vmatmul.mubr.bf16.gmra.mxu1 %v1696_v48 }
 0x132   : > { %v1326_v54 = vadd.f32 %v1325_v53, %v11724_v31  ;;  %v1590_v55 = vmax.f32 %v1324_v51, 0.0 }
 0x133   : > { %v1329_v56 = vpop.f32.mrf.mxu0 }
 0x134   : > { %v1591_v58 = vmax.f32 %v1326_v54, 0.0  ;;  %v1698_v0 = vpack.c.bf16 %v1590_v55, %v1588_v59  ;;  %v1330_v7 = vadd.f32 %v1329_v56, %v11728_v32 }
 0x135   : > { %v1331_v60 = vpop.f32.mrf.mxu0 }
 0x136   : > { %v1699_v61 = vpack.c.bf16 %v1591_v58, %v1589_v57  ;;  %v1332_v3 = vadd.f32 %v1331_v60, %v11724_v31  ;;  %v1592_v14 = vmax.f32 %v1330_v7, 0.0 }
 0x137   : > { %v1333_v1 = vpop.f32.mrf.mxu0 }
 0x138   : > { %v1334_v4 = vadd.f32 %v1333_v1, %v11728_v32  ;;  %2062 = vmatprep.mubr.bf16.mxu1 %v1699_v61  ;;  %v1593_v12 = vmax.f32 %v1332_v3, 0.0  ;;  %v10687_v3 = vld [vmem:[%s15201_s28 + $0x30] ss:$8 sps:$4 sm:$0xff]  }
 0x139   : > { %v1335_v8 = vpop.f32.mrf.mxu0  ;;  %2063 = vmatmul.mubr.bf16.gmra.mxu1 %v1698_v0 }
 0x13a   : > { %v1336_v9 = vadd.f32 %v1335_v8, %v11724_v31  ;;  %v1594_v10 = vmax.f32 %v1334_v4, 0.0  ;;  %v10689_v4 = vld [vmem:[%s15201_s28 + $0x34] ss:$8 sps:$4 sm:$0xff]  }
 0x13b   : > { %v1339_v11 = vpop.f32.mrf.mxu0  ;;  %3448 = vmatprep.subr.bf16.mxu1 %v10689_v4 }
 0x13c   : > { %v1595_v13 = vmax.f32 %v1336_v9, 0.0  ;;  %v1700_v17 = vpack.c.bf16 %v1594_v10, %v1592_v14  ;;  %v1340_v21 = vadd.f32 %v1339_v11, %v11728_v32  ;;  %3449 = vmatpush1.bf16.msra.mxu1 %v10687_v3 }
 0x13d   : > { %v1341_v15 = vpop.f32.mrf.mxu0 }
 0x13e   : > { %v1701_v16 = vpack.c.bf16 %v1595_v13, %v1593_v12  ;;  %v1342_v19 = vadd.f32 %v1341_v15, %v11724_v31  ;;  %v1596_v33 = vmax.f32 %v1340_v21, 0.0 }
 0x13f   : > { %v1343_v18 = vpop.f32.mrf.mxu0 }
 0x140   : > { %v1344_v20 = vadd.f32 %v1343_v18, %v11728_v32  ;;  %2072 = vmatprep.mubr.bf16.mxu1 %v1701_v16  ;;  %v1597_v29 = vmax.f32 %v1342_v19, 0.0 }
 0x141   : > { %v1345_v23 = vpop.f32.mrf.mxu0  ;;  %2073 = vmatmul.mubr.bf16.gmra.mxu1 %v1700_v17 }
 0x142   : > { %v1346_v24 = vadd.f32 %v1345_v23, %v11724_v31  ;;  %v1598_v26 = vmax.f32 %v1344_v20, 0.0 }
 0x143   : > { %v1349_v27 = vpop.f32.mrf.mxu0 }
 0x144   : > { %v1599_v30 = vmax.f32 %v1346_v24, 0.0  ;;  %v1702_v38 = vpack.c.bf16 %v1598_v26, %v1596_v33  ;;  %v1350_v42 = vadd.f32 %v1349_v27, %v11728_v32 }
 0x145   : > { %v1351_v34 = vpop.f32.mrf.mxu0 }
 0x146   : > { %v1703_v35 = vpack.c.bf16 %v1599_v30, %v1597_v29  ;;  %v1352_v40 = vadd.f32 %v1351_v34, %v11724_v31  ;;  %v1600_v49 = vmax.f32 %v1350_v42, 0.0 }
 0x147   : > { %v1353_v39 = vpop.f32.mrf.mxu0 }
 0x148   : > { %v1354_v41 = vadd.f32 %v1353_v39, %v11728_v32  ;;  %2082 = vmatprep.mubr.bf16.mxu1 %v1703_v35  ;;  %v1601_v47 = vmax.f32 %v1352_v40, 0.0  ;;  %v10692_v39 = vld [vmem:[%s15201_s28 + $0x24] ss:$8 sps:$4 sm:$0xff]  }
 0x149   : > { %v1355_v43 = vpop.f32.mrf.mxu0  ;;  %2083 = vmatmul.mubr.bf16.gmra.mxu1 %v1702_v38  ;;  %v10690_v38 = vld [vmem:[%s15201_s28 + $0x20] ss:$8 sps:$4 sm:$0xff]   ;;  %3450 = vmatprep.subr.bf16.mxu1 %v10692_v39 }
 0x14a   : > { %v1356_v44 = vadd.f32 %v1355_v43, %v11724_v31  ;;  %v1602_v45 = vmax.f32 %v1354_v41, 0.0  ;;  %3451 = vmatpush1.bf16.msra.mxu1 %v10690_v38 }
 0x14b   : > { %v1359_v46 = vpop.f32.mrf.mxu0 }
 0x14c   : > { %v1603_v48 = vmax.f32 %v1356_v44, 0.0  ;;  %v1704_v52 = vpack.c.bf16 %v1602_v45, %v1600_v49  ;;  %v1360_v56 = vadd.f32 %v1359_v46, %v11728_v32 }
 0x14d   : > { %v1361_v50 = vpop.f32.mrf.mxu0 }
 0x14e   : > { %v1705_v51 = vpack.c.bf16 %v1603_v48, %v1601_v47  ;;  %v1362_v54 = vadd.f32 %v1361_v50, %v11724_v31  ;;  %v1604_v63 = vmax.f32 %v1360_v56, 0.0 }
 0x14f   : > { %v1363_v53 = vpop.f32.mrf.mxu0 }
 0x150   : > { %v1364_v55 = vadd.f32 %v1363_v53, %v11728_v32  ;;  %2092 = vmatprep.mubr.bf16.mxu1 %v1705_v51  ;;  %v1605_v61 = vmax.f32 %v1362_v54, 0.0 }
 0x151   : > { %v1365_v57 = vpop.f32.mrf.mxu0  ;;  %2093 = vmatmul.mubr.bf16.gmra.mxu1 %v1704_v52 }
 0x152   : > { %v1366_v58 = vadd.f32 %v1365_v57, %v11724_v31  ;;  %v1606_v59 = vmax.f32 %v1364_v55, 0.0 }
 0x153   : > { %v1369_v60 = vpop.f32.mrf.mxu0 }
 0x154   : > { %v1607_v62 = vmax.f32 %v1366_v58, 0.0  ;;  %v1706_v5 = vpack.c.bf16 %v1606_v59, %v1604_v63  ;;  %v1370_v9 = vadd.f32 %v1369_v60, %v11728_v32 }
 0x155   : > { %v1371_v0 = vpop.f32.mrf.mxu0 }
 0x156   : > { %v1707_v1 = vpack.c.bf16 %v1607_v62, %v1605_v61  ;;  %v1372_v7 = vadd.f32 %v1371_v0, %v11724_v31  ;;  %v1608_v16 = vmax.f32 %v1370_v9, 0.0 }
 0x157   : > { %v1373_v6 = vpop.f32.mrf.mxu0 }
 0x158   : > { %v1374_v8 = vadd.f32 %v1373_v6, %v11728_v32  ;;  %2102 = vmatprep.mubr.bf16.mxu1 %v1707_v1  ;;  %v1609_v14 = vmax.f32 %v1372_v7, 0.0  ;;  %v10695_v6 = vld [vmem:[%s15201_s28 + $0x14] ss:$8 sps:$4 sm:$0xff]  }
 0x159   : > { %v1375_v10 = vpop.f32.mrf.mxu0  ;;  %2103 = vmatmul.mubr.bf16.gmra.mxu1 %v1706_v5  ;;  %v10693_v5 = vld [vmem:[%s15201_s28 + $0x10] ss:$8 sps:$4 sm:$0xff]   ;;  %3452 = vmatprep.subr.bf16.mxu1 %v10695_v6 }
 0x15a   : > { %v1376_v11 = vadd.f32 %v1375_v10, %v11724_v31  ;;  %v1610_v12 = vmax.f32 %v1374_v8, 0.0  ;;  %3453 = vmatpush1.bf16.msra.mxu1 %v10693_v5 }
 0x15b   : > { %v1379_v13 = vpop.f32.mrf.mxu0 }
 0x15c   : > { %v1611_v15 = vmax.f32 %v1376_v11, 0.0  ;;  %v1708_v19 = vpack.c.bf16 %v1610_v12, %v1608_v16  ;;  %v1380_v24 = vadd.f32 %v1379_v13, %v11728_v32 }
 0x15d   : > { %v1381_v17 = vpop.f32.mrf.mxu0 }
 0x15e   : > { %v1709_v18 = vpack.c.bf16 %v1611_v15, %v1609_v14  ;;  %v1382_v21 = vadd.f32 %v1381_v17, %v11724_v31  ;;  %v1612_v35 = vmax.f32 %v1380_v24, 0.0 }
 0x15f   : > { %v1383_v20 = vpop.f32.mrf.mxu0 }
 0x160   : > { %v1384_v23 = vadd.f32 %v1383_v20, %v11728_v32  ;;  %2112 = vmatprep.mubr.bf16.mxu1 %v1709_v18  ;;  %v1613_v33 = vmax.f32 %v1382_v21, 0.0 }
 0x161   : > { %v1385_v26 = vpop.f32.mrf.mxu0  ;;  %2113 = vmatmul.mubr.bf16.gmra.mxu1 %v1708_v19 }
 0x162   : > { %v1386_v27 = vadd.f32 %v1385_v26, %v11724_v31  ;;  %v1614_v29 = vmax.f32 %v1384_v23, 0.0 }
 0x163   : > { %v1389_v30 = vpop.f32.mrf.mxu0 }
 0x164   : > { %v1615_v34 = vmax.f32 %v1386_v27, 0.0  ;;  %v1710_v40 = vpack.c.bf16 %v1614_v29, %v1612_v35  ;;  %v1390_v44 = vadd.f32 %v1389_v30, %v11728_v32 }
 0x165   : > { %v1391_v36 = vpop.f32.mrf.mxu0 }
 0x166   : > { %v1711_v37 = vpack.c.bf16 %v1615_v34, %v1613_v33  ;;  %v1392_v42 = vadd.f32 %v1391_v36, %v11724_v31  ;;  %v1616_v51 = vmax.f32 %v1390_v44, 0.0 }
 0x167   : > { %v1393_v41 = vpop.f32.mrf.mxu0 }
 0x168   : > { %v1394_v43 = vadd.f32 %v1393_v41, %v11728_v32  ;;  %2122 = vmatprep.mubr.bf16.mxu1 %v1711_v37  ;;  %v1617_v49 = vmax.f32 %v1392_v42, 0.0  ;;  %v10698_v41 = vld [vmem:[%s15201_s28 + $0x4] ss:$8 sps:$4 sm:$0xff]  }
 0x169   : > { %v1395_v45 = vpop.f32.mrf.mxu0  ;;  %2123 = vmatmul.mubr.bf16.gmra.mxu1 %v1710_v40  ;;  %v10696_v40 = vld [vmem:[%s15201_s28] ss:$8 sps:$4 sm:$0xff]   ;;  %3454 = vmatprep.subr.bf16.mxu1 %v10698_v41 }
 0x16a   : > { %v1396_v46 = vadd.f32 %v1395_v45, %v11724_v31  ;;  %v1618_v47 = vmax.f32 %v1394_v43, 0.0  ;;  %3455 = vmatpush1.bf16.msra.mxu1 %v10696_v40 }
 0x16b   : > { %v1399_v48 = vpop.f32.mrf.mxu0 }
 0x16c   : > { %v1619_v50 = vmax.f32 %v1396_v46, 0.0  ;;  %v1712_v54 = vpack.c.bf16 %v1618_v47, %v1616_v51  ;;  %v1400_v58 = vadd.f32 %v1399_v48, %v11728_v32 }
 0x16d   : > { %v1401_v52 = vpop.f32.mrf.mxu0 }
 0x16e   : > { %v1713_v53 = vpack.c.bf16 %v1619_v50, %v1617_v49  ;;  %v1402_v56 = vadd.f32 %v1401_v52, %v11724_v31  ;;  %v1620_v1 = vmax.f32 %v1400_v58, 0.0 }
 0x16f   : > { %v1403_v55 = vpop.f32.mrf.mxu0 }
 0x170   : > { %v1404_v57 = vadd.f32 %v1403_v55, %v11728_v32  ;;  %2132 = vmatprep.mubr.bf16.mxu1 %v1713_v53  ;;  %v1621_v63 = vmax.f32 %v1402_v56, 0.0 }
 0x171   : > { %v1405_v59 = vpop.f32.mrf.mxu0  ;;  %2133 = vmatmul.mubr.bf16.gmra.mxu1 %v1712_v54 }
 0x172   : > { %v1406_v60 = vadd.f32 %v1405_v59, %v11724_v31  ;;  %v1622_v61 = vmax.f32 %v1404_v57, 0.0 }
 0x173   : > { %v1409_v62 = vpop.f32.mrf.mxu0 }
 0x174   : > { %v1623_v0 = vmax.f32 %v1406_v60, 0.0  ;;  %v1714_v7 = vpack.c.bf16 %v1622_v61, %v1620_v1  ;;  %v1410_v11 = vadd.f32 %v1409_v62, %v11728_v32 }
 0x175   : > { %v1411_v3 = vpop.f32.mrf.mxu0 }
 0x176   : > { %v1715_v4 = vpack.c.bf16 %v1623_v0, %v1621_v63  ;;  %v1412_v9 = vadd.f32 %v1411_v3, %v11724_v31  ;;  %v1624_v18 = vmax.f32 %v1410_v11, 0.0 }
 0x177   : > { %v1413_v8 = vpop.f32.mrf.mxu0 }
 0x178   : > { %v1414_v10 = vadd.f32 %v1413_v8, %v11728_v32  ;;  %2142 = vmatprep.mubr.bf16.mxu1 %v1715_v4  ;;  %v1625_v16 = vmax.f32 %v1412_v9, 0.0  ;;  %v10701_v8 = vld [vmem:[%s15201_s28 + $0xf4] ss:$8 sps:$4 sm:$0xff]  }
 0x179   : > { %v1415_v12 = vpop.f32.mrf.mxu0  ;;  %2143 = vmatmul.mubr.bf16.gmra.mxu1 %v1714_v7  ;;  %v10699_v7 = vld [vmem:[%s15201_s28 + $0xf0] ss:$8 sps:$4 sm:$0xff]   ;;  %3456 = vmatprep.subr.bf16.mxu1 %v10701_v8 }
 0x17a   : > { %v1416_v13 = vadd.f32 %v1415_v12, %v11724_v31  ;;  %v1626_v14 = vmax.f32 %v1414_v10, 0.0  ;;  %3457 = vmatpush2.bf16.msra.mxu1 %v10699_v7 }
 0x17b   : > { %v1419_v15 = vpop.f32.mrf.mxu0 }
 0x17c   : > { %v1627_v17 = vmax.f32 %v1416_v13, 0.0  ;;  %v1716_v21 = vpack.c.bf16 %v1626_v14, %v1624_v18  ;;  %v1420_v27 = vadd.f32 %v1419_v15, %v11728_v32 }
 0x17d   : > { %v1421_v19 = vpop.f32.mrf.mxu0 }
 0x17e   : > { %v1717_v20 = vpack.c.bf16 %v1627_v17, %v1625_v16  ;;  %v1422_v24 = vadd.f32 %v1421_v19, %v11724_v31  ;;  %v1628_v37 = vmax.f32 %v1420_v27, 0.0 }
 0x17f   : > { %v1423_v23 = vpop.f32.mrf.mxu0 }
 0x180   : > { %v1424_v26 = vadd.f32 %v1423_v23, %v11728_v32  ;;  %2152 = vmatprep.mubr.bf16.mxu1 %v1717_v20  ;;  %v1629_v35 = vmax.f32 %v1422_v24, 0.0 }
 0x181   : > { %v1425_v29 = vpop.f32.mrf.mxu0  ;;  %2153 = vmatmul.mubr.bf16.gmra.mxu1 %v1716_v21 }
 0x182   : > { %v1426_v30 = vadd.f32 %v1425_v29, %v11724_v31  ;;  %v1630_v33 = vmax.f32 %v1424_v26, 0.0 }
 0x183   : > { %v1429_v34 = vpop.f32.mrf.mxu0 }
 0x184   : > { %v1631_v36 = vmax.f32 %v1426_v30, 0.0  ;;  %v1718_v42 = vpack.c.bf16 %v1630_v33, %v1628_v37  ;;  %v1430_v46 = vadd.f32 %v1429_v34, %v11728_v32 }
 0x185   : > { %v1431_v38 = vpop.f32.mrf.mxu0 }
 0x186   : > { %v1719_v39 = vpack.c.bf16 %v1631_v36, %v1629_v35  ;;  %v1432_v44 = vadd.f32 %v1431_v38, %v11724_v31  ;;  %v1632_v53 = vmax.f32 %v1430_v46, 0.0 }
 0x187   : > { %v1433_v43 = vpop.f32.mrf.mxu0 }
 0x188   : > { %v1434_v45 = vadd.f32 %v1433_v43, %v11728_v32  ;;  %2162 = vmatprep.mubr.bf16.mxu1 %v1719_v39  ;;  %v1633_v51 = vmax.f32 %v1432_v44, 0.0  ;;  %v10704_v43 = vld [vmem:[%s15201_s28 + $0xe4] ss:$8 sps:$4 sm:$0xff]  }
 0x189   : > { %v1435_v47 = vpop.f32.mrf.mxu0  ;;  %2163 = vmatmul.mubr.bf16.gmra.mxu1 %v1718_v42  ;;  %v10702_v42 = vld [vmem:[%s15201_s28 + $0xe0] ss:$8 sps:$4 sm:$0xff]   ;;  %3458 = vmatprep.subr.bf16.mxu1 %v10704_v43 }
 0x18a   : > { %v1436_v48 = vadd.f32 %v1435_v47, %v11724_v31  ;;  %v1634_v49 = vmax.f32 %v1434_v45, 0.0  ;;  %3459 = vmatpush2.bf16.msra.mxu1 %v10702_v42 }
 0x18b   : > { %v1439_v50 = vpop.f32.mrf.mxu0 }
 0x18c   : > { %v1635_v52 = vmax.f32 %v1436_v48, 0.0  ;;  %v1720_v56 = vpack.c.bf16 %v1634_v49, %v1632_v53  ;;  %v1440_v60 = vadd.f32 %v1439_v50, %v11728_v32 }
 0x18d   : > { %v1441_v54 = vpop.f32.mrf.mxu0 }
 0x18e   : > { %v1721_v55 = vpack.c.bf16 %v1635_v52, %v1633_v51  ;;  %v1442_v58 = vadd.f32 %v1441_v54, %v11724_v31  ;;  %v1636_v4 = vmax.f32 %v1440_v60, 0.0 }
 0x18f   : > { %v1443_v57 = vpop.f32.mrf.mxu0 }
 0x190   : > { %v1444_v59 = vadd.f32 %v1443_v57, %v11728_v32  ;;  %2172 = vmatprep.mubr.bf16.mxu1 %v1721_v55  ;;  %v1637_v1 = vmax.f32 %v1442_v58, 0.0 }
 0x191   : > { %v1445_v61 = vpop.f32.mrf.mxu0  ;;  %2173 = vmatmul.mubr.bf16.gmra.mxu1 %v1720_v56 }
 0x192   : > { %v1446_v62 = vadd.f32 %v1445_v61, %v11724_v31  ;;  %v1638_v63 = vmax.f32 %v1444_v59, 0.0 }
 0x193   : > { %v1449_v0 = vpop.f32.mrf.mxu0 }
 0x194   : > { %v1639_v3 = vmax.f32 %v1446_v62, 0.0  ;;  %v1722_v9 = vpack.c.bf16 %v1638_v63, %v1636_v4  ;;  %v1450_v13 = vadd.f32 %v1449_v0, %v11728_v32 }
 0x195   : > { %v1451_v5 = vpop.f32.mrf.mxu0 }
 0x196   : > { %v1723_v6 = vpack.c.bf16 %v1639_v3, %v1637_v1  ;;  %v1452_v11 = vadd.f32 %v1451_v5, %v11724_v31  ;;  %v1640_v20 = vmax.f32 %v1450_v13, 0.0 }
 0x197   : > { %v1453_v10 = vpop.f32.mrf.mxu0 }
 0x198   : > { %v1454_v12 = vadd.f32 %v1453_v10, %v11728_v32  ;;  %2182 = vmatprep.mubr.bf16.mxu1 %v1723_v6  ;;  %v1641_v18 = vmax.f32 %v1452_v11, 0.0  ;;  %v10707_v10 = vld [vmem:[%s15201_s28 + $0xd4] ss:$8 sps:$4 sm:$0xff]  }
 0x199   : > { %v1455_v14 = vpop.f32.mrf.mxu0  ;;  %2183 = vmatmul.mubr.bf16.gmra.mxu1 %v1722_v9  ;;  %v10705_v9 = vld [vmem:[%s15201_s28 + $0xd0] ss:$8 sps:$4 sm:$0xff]   ;;  %3460 = vmatprep.subr.bf16.mxu1 %v10707_v10 }
 0x19a   : > { %v1456_v15 = vadd.f32 %v1455_v14, %v11724_v31  ;;  %v1642_v16 = vmax.f32 %v1454_v12, 0.0  ;;  %3461 = vmatpush2.bf16.msra.mxu1 %v10705_v9 }
 0x19b   : > { %v1459_v17 = vpop.f32.mrf.mxu0 }
 0x19c   : > { %v1643_v19 = vmax.f32 %v1456_v15, 0.0  ;;  %v1724_v24 = vpack.c.bf16 %v1642_v16, %v1640_v20  ;;  %v1460_v30 = vadd.f32 %v1459_v17, %v11728_v32  ;;  %v1778_v17 = vld [vmem:[%s15202_s30] sm:$0x3] }
 0x19d   : > { %v1461_v21 = vpop.f32.mrf.mxu0 }
 0x19e   : > { %v1725_v23 = vpack.c.bf16 %v1643_v19, %v1641_v18  ;;  %v1462_v27 = vadd.f32 %v1461_v21, %v11724_v31  ;;  %v1644_v39 = vmax.f32 %v1460_v30, 0.0 }
 0x19f   : > { %v1463_v26 = vpop.f32.mrf.mxu0 }
 0x1a0   : > { %v1464_v29 = vadd.f32 %v1463_v26, %v11728_v32  ;;  %2192 = vmatprep.mubr.bf16.mxu1 %v1725_v23  ;;  %v1645_v37 = vmax.f32 %v1462_v27, 0.0  ;;  %v11954_v23 = vrot.slane %v1778_v17, %v11709_v25 }
 0x1a1   : > { %v1465_v33 = vpop.f32.mrf.mxu0  ;;  %2193 = vmatmul.mubr.bf16.gmra.mxu1 %v1724_v24 }
 0x1a2   : > { %v1466_v34 = vadd.f32 %v1465_v33, %v11724_v31  ;;  %v1646_v35 = vmax.f32 %v1464_v29, 0.0  ;;  %v11957_v29 = vrot.slane %v1778_v17, %v11717_v28 }
 0x1a3   : > { %v1469_v36 = vpop.f32.mrf.mxu0 }
 0x1a4   : > { %v1647_v38 = vmax.f32 %v1466_v34, 0.0  ;;  %v1726_v44 = vpack.c.bf16 %v1646_v35, %v1644_v39  ;;  %v1470_v48 = vadd.f32 %v1469_v36, %v11728_v32 }
 0x1a5   : > { %v1471_v40 = vpop.f32.mrf.mxu0 }
 0x1a6   : > { %v1727_v41 = vpack.c.bf16 %v1647_v38, %v1645_v37  ;;  %v1472_v46 = vadd.f32 %v1471_v40, %v11724_v31  ;;  %v1648_v55 = vmax.f32 %v1470_v48, 0.0 }
 0x1a7   : > { %v1473_v45 = vpop.f32.mrf.mxu0 }
 0x1a8   : > { %v1474_v47 = vadd.f32 %v1473_v45, %v11728_v32  ;;  %2202 = vmatprep.mubr.bf16.mxu1 %v1727_v41  ;;  %v1649_v53 = vmax.f32 %v1472_v46, 0.0 }
 0x1a9   : > { %v1475_v49 = vpop.f32.mrf.mxu0  ;;  %2203 = vmatmul.mubr.bf16.gmra.mxu1 %v1726_v44 }
 0x1aa   : > { %v1476_v50 = vadd.f32 %v1475_v49, %v11724_v31  ;;  %v1650_v51 = vmax.f32 %v1474_v47, 0.0 }
 0x1ab   : > { %v1479_v52 = vpop.f32.mrf.mxu0 }
 0x1ac   : > { %v1651_v54 = vmax.f32 %v1476_v50, 0.0  ;;  %v1728_v58 = vpack.c.bf16 %v1650_v51, %v1648_v55  ;;  %v1480_v62 = vadd.f32 %v1479_v52, %v11728_v32 }
 0x1ad   : > { %v1481_v56 = vpop.f32.mrf.mxu0 }
 0x1ae   : > { %v1729_v57 = vpack.c.bf16 %v1651_v54, %v1649_v53  ;;  %v1482_v60 = vadd.f32 %v1481_v56, %v11724_v31  ;;  %v1652_v6 = vmax.f32 %v1480_v62, 0.0 }
 0x1af   : > { %v1483_v59 = vpop.f32.mrf.mxu0 }
 0x1b0   : > { %v1484_v61 = vadd.f32 %v1483_v59, %v11728_v32  ;;  %2212 = vmatprep.mubr.bf16.mxu1 %v1729_v57  ;;  %v1653_v4 = vmax.f32 %v1482_v60, 0.0 }
 0x1b1   : > { %v1485_v63 = vpop.f32.mrf.mxu0  ;;  %2213 = vmatmul.mubr.bf16.gmra.mxu1 %v1728_v58 }
 0x1b2   : > { %v1486_v0 = vadd.f32 %v1485_v63, %v11724_v31  ;;  %v1654_v1 = vmax.f32 %v1484_v61, 0.0 }
 0x1b3   : > { %v1489_v3 = vpop.f32.mrf.mxu0 }
 0x1b4   : > { %v1655_v5 = vmax.f32 %v1486_v0, 0.0  ;;  %v1730_v11 = vpack.c.bf16 %v1654_v1, %v1652_v6  ;;  %v1490_v15 = vadd.f32 %v1489_v3, %v11728_v32  ;;  %v10708_v0 = vld [vmem:[%s15201_s28 + $0xc0] ss:$8 sps:$4 sm:$0xff]   ;;  %v10710_v1 = vld [vmem:[%s15201_s28 + $0xc4] ss:$8 sps:$4 sm:$0xff]  }
 0x1b5   : > { %v1491_v7 = vpop.f32.mrf.mxu0  ;;  %3462 = vmatprep.subr.bf16.mxu1 %v10710_v1 }
 0x1b6   : > { %v1731_v8 = vpack.c.bf16 %v1655_v5, %v1653_v4  ;;  %v1492_v13 = vadd.f32 %v1491_v7, %v11724_v31  ;;  %v1656_v30 = vmax.f32 %v1490_v15, 0.0  ;;  %3463 = vmatpush2.bf16.msra.mxu1 %v10708_v0 }
 0x1b7   : > { %v1493_v12 = vpop.f32.mrf.mxu0 }
 0x1b8   : > { %v1494_v14 = vadd.f32 %v1493_v12, %v11728_v32  ;;  %2222 = vmatprep.mubr.bf16.mxu1 %v1731_v8  ;;  %v1657_v26 = vmax.f32 %v1492_v13, 0.0 }
 0x1b9   : > { %v1495_v16 = vpop.f32.mrf.mxu0  ;;  %v1984_v18 = vpop.f32.mrf.mxu1  ;;  %2223 = vmatmul.mubr.bf16.gmra.mxu1 %v1730_v11 }
 0x1ba   : > { %v1496_v19 = vadd.f32 %v1495_v16, %v11724_v31  ;;  %v1658_v20 = vmax.f32 %v1494_v14, 0.0  ;;  %v1985_v41 = vadd.f32 %v1984_v18, %v11957_v29 }
 0x1bb   : > { %v1499_v21 = vpop.f32.mrf.mxu0  ;;  %v1986_v24 = vpop.f32.mrf.mxu1 }
 0x1bc   : > { %v1659_v27 = vmax.f32 %v1496_v19, 0.0  ;;  %v1732_v37 = vpack.c.bf16 %v1658_v20, %v1656_v30  ;;  %v1987_v38 = vadd.f32 %v1986_v24, %v11954_v23  ;;  %v1500_v47 = vadd.f32 %v1499_v21, %v11728_v32 }
 0x1bd   : > { %v1501_v33 = vpop.f32.mrf.mxu0  ;;  %v1988_v34 = vpop.f32.mrf.mxu1  ;;  %v2301_v54 = vmax.f32 %v1985_v41, 0.0 }
 0x1be   : > { %v1989_v35 = vadd.f32 %v1988_v34, %v11957_v29  ;;  %v1733_v36 = vpack.c.bf16 %v1659_v27, %v1657_v26  ;;  %v1502_v44 = vadd.f32 %v1501_v33, %v11724_v31  ;;  %v2302_v51 = vmax.f32 %v1987_v38, 0.0 }
 0x1bf   : > { %v1503_v39 = vpop.f32.mrf.mxu0  ;;  %v1990_v40 = vpop.f32.mrf.mxu1  ;;  %v1660_v61 = vmax.f32 %v1500_v47, 0.0 }
 0x1c0   : > { %v1504_v42 = vadd.f32 %v1503_v39, %v11728_v32  ;;  %v1991_v43 = vadd.f32 %v1990_v40, %v11954_v23  ;;  %2232 = vmatprep.mubr.bf16.mxu1 %v1733_v36  ;;  %v2303_v48 = vmax.f32 %v1989_v35, 0.0  ;;  %v1661_v57 = vmax.f32 %v1502_v44, 0.0 }
 0x1c1   : > { %v1505_v45 = vpop.f32.mrf.mxu0  ;;  %v1994_v46 = vpop.f32.mrf.mxu1  ;;  %2233 = vmatmul.mubr.bf16.gmra.mxu1 %v1732_v37 }
 0x1c2   : > { %v2304_v49 = vmax.f32 %v1991_v43, 0.0  ;;  %v1506_v50 = vadd.f32 %v1505_v45, %v11724_v31  ;;  %v1662_v55 = vmax.f32 %v1504_v42, 0.0  ;;  %v2427_v62 = vpack.c.bf16 %v2303_v48, %v2301_v54 }
 0x1c3   : > { %v1509_v52 = vpop.f32.mrf.mxu0  ;;  %v1996_v53 = vpop.f32.mrf.mxu1  ;;  %v1995_v3 = vadd.f32 %v1994_v46, %v11957_v29 }
 0x1c4   : > { %v1663_v56 = vmax.f32 %v1506_v50, 0.0  ;;  %v2428_v60 = vpack.c.bf16 %v2304_v49, %v2302_v51  ;;  %v1997_v4 = vadd.f32 %v1996_v53, %v11954_v23  ;;  %v1734_v8 = vpack.c.bf16 %v1662_v55, %v1660_v61 }
 0x1c5   : > { %v1511_v58 = vpop.f32.mrf.mxu0  ;;  %v1998_v59 = vpop.f32.mrf.mxu1  ;;  %v1510_v14 = vadd.f32 %v1509_v52, %v11728_v32  ;;  %v2305_v21 = vmax.f32 %v1995_v3, 0.0  ;;  %v10711_v3 = vld [vmem:[%s15201_s28 + $0xb0] ss:$8 sps:$4 sm:$0xff]  }
 0x1c6   : > { %v1999_v63 = vadd.f32 %v1998_v59, %v11957_v29  ;;  %2727 = vmatprep.mubr.bf16.mxu0 %v2428_v60  ;;  %v1735_v7 = vpack.c.bf16 %v1663_v56, %v1661_v57  ;;  %v1512_v11 = vadd.f32 %v1511_v58, %v11724_v31  ;;  %v2306_v18 = vmax.f32 %v1997_v4, 0.0  ;;  %v10713_v4 = vld [vmem:[%s15201_s28 + $0xb4] ss:$8 sps:$4 sm:$0xff]  }
 0x1c7   : > { %v1513_v5 = vpop.f32.mrf.mxu0  ;;  %v2000_v6 = vpop.f32.mrf.mxu1  ;;  %2728 = vmatmul.mubr.bf16.vlgmr.msra.gmra.mxu0 %v2427_v62  ;;  %v1664_v35 = vmax.f32 %v1510_v14, 0.0  ;;  %3464 = vmatprep.subr.bf16.mxu1 %v10713_v4 }
 0x1c8   : > { %v1514_v9 = vadd.f32 %v1513_v5, %v11728_v32  ;;  %v2001_v10 = vadd.f32 %v2000_v6, %v11954_v23  ;;  %2242 = vmatprep.mubr.bf16.mxu1 %v1735_v7  ;;  %v2307_v15 = vmax.f32 %v1999_v63, 0.0  ;;  %v1665_v27 = vmax.f32 %v1512_v11, 0.0  ;;  %3465 = vmatpush2.bf16.msra.mxu1 %v10711_v3 }
 0x1c9   : > { %v1515_v12 = vpop.f32.mrf.mxu0  ;;  %v2004_v13 = vpop.f32.mrf.mxu1  ;;  %2243 = vmatmul.mubr.bf16.gmra.mxu1 %v1734_v8 }
 0x1ca   : > { %v2308_v16 = vmax.f32 %v2001_v10, 0.0  ;;  %v1516_v17 = vadd.f32 %v1515_v12, %v11724_v31  ;;  %v1666_v24 = vmax.f32 %v1514_v9, 0.0  ;;  %v2429_v36 = vpack.c.bf16 %v2307_v15, %v2305_v21 }
 0x1cb   : > { %v1519_v19 = vpop.f32.mrf.mxu0  ;;  %v2006_v20 = vpop.f32.mrf.mxu1  ;;  %v2005_v43 = vadd.f32 %v2004_v13, %v11957_v29 }
 0x1cc   : > { %v1667_v26 = vmax.f32 %v1516_v17, 0.0  ;;  %v2430_v34 = vpack.c.bf16 %v2308_v16, %v2306_v18  ;;  %v2007_v38 = vadd.f32 %v2006_v20, %v11954_v23  ;;  %v1736_v42 = vpack.c.bf16 %v1666_v24, %v1664_v35 }
 0x1cd   : > { %v1521_v30 = vpop.f32.mrf.mxu0  ;;  %v2008_v33 = vpop.f32.mrf.mxu1  ;;  %v1520_v49 = vadd.f32 %v1519_v19, %v11728_v32  ;;  %v2309_v56 = vmax.f32 %v2005_v43, 0.0 }
 0x1ce   : > { %v2009_v37 = vadd.f32 %v2008_v33, %v11957_v29  ;;  %2737 = vmatprep.mubr.bf16.mxu0 %v2430_v34  ;;  %v1737_v41 = vpack.c.bf16 %v1667_v26, %v1665_v27  ;;  %v1522_v46 = vadd.f32 %v1521_v30, %v11724_v31  ;;  %v2310_v53 = vmax.f32 %v2007_v38, 0.0 }
 0x1cf   : > { %v1523_v39 = vpop.f32.mrf.mxu0  ;;  %v2010_v40 = vpop.f32.mrf.mxu1  ;;  %2738 = vmatmul.mubr.bf16.gmra.mxu0 %v2429_v36  ;;  %v1668_v63 = vmax.f32 %v1520_v49, 0.0 }
 0x1d0   : > { %v1524_v44 = vadd.f32 %v1523_v39, %v11728_v32  ;;  %v2011_v45 = vadd.f32 %v2010_v40, %v11954_v23  ;;  %2252 = vmatprep.mubr.bf16.mxu1 %v1737_v41  ;;  %v2311_v50 = vmax.f32 %v2009_v37, 0.0  ;;  %v1669_v59 = vmax.f32 %v1522_v46, 0.0 }
 0x1d1   : > { %v1525_v47 = vpop.f32.mrf.mxu0  ;;  %v2014_v48 = vpop.f32.mrf.mxu1  ;;  %2253 = vmatmul.mubr.bf16.gmra.mxu1 %v1736_v42 }
 0x1d2   : > { %v2312_v51 = vmax.f32 %v2011_v45, 0.0  ;;  %v1526_v52 = vadd.f32 %v1525_v47, %v11724_v31  ;;  %v1670_v57 = vmax.f32 %v1524_v44, 0.0  ;;  %v2431_v0 = vpack.c.bf16 %v2311_v50, %v2309_v56 }
 0x1d3   : > { %v1529_v54 = vpop.f32.mrf.mxu0  ;;  %v2016_v55 = vpop.f32.mrf.mxu1  ;;  %v2015_v5 = vadd.f32 %v2014_v48, %v11957_v29 }
 0x1d4   : > { %v1671_v58 = vmax.f32 %v1526_v52, 0.0  ;;  %v2432_v62 = vpack.c.bf16 %v2312_v51, %v2310_v53  ;;  %v2017_v6 = vadd.f32 %v2016_v55, %v11954_v23  ;;  %v1738_v10 = vpack.c.bf16 %v1670_v57, %v1668_v63 }
 0x1d5   : > { %v1531_v60 = vpop.f32.mrf.mxu0  ;;  %v2018_v61 = vpop.f32.mrf.mxu1  ;;  %v1530_v16 = vadd.f32 %v1529_v54, %v11728_v32  ;;  %v2313_v26 = vmax.f32 %v2015_v5, 0.0 }
 0x1d6   : > { %v2019_v1 = vadd.f32 %v2018_v61, %v11957_v29  ;;  %2747 = vmatprep.mubr.bf16.mxu0 %v2432_v62  ;;  %v1739_v9 = vpack.c.bf16 %v1671_v58, %v1669_v59  ;;  %v1532_v13 = vadd.f32 %v1531_v60, %v11724_v31  ;;  %v2314_v20 = vmax.f32 %v2017_v6, 0.0 }
 0x1d7   : > { %v1533_v7 = vpop.f32.mrf.mxu0  ;;  %v2020_v8 = vpop.f32.mrf.mxu1  ;;  %2748 = vmatmul.mubr.bf16.gmra.mxu0 %v2431_v0  ;;  %v1672_v37 = vmax.f32 %v1530_v16, 0.0 }
 0x1d8   : > { %v1534_v11 = vadd.f32 %v1533_v7, %v11728_v32  ;;  %v2021_v12 = vadd.f32 %v2020_v8, %v11954_v23  ;;  %2262 = vmatprep.mubr.bf16.mxu1 %v1739_v9  ;;  %v2315_v17 = vmax.f32 %v2019_v1, 0.0  ;;  %v1673_v33 = vmax.f32 %v1532_v13, 0.0  ;;  %v10716_v9 = vld [vmem:[%s15201_s28 + $0xa4] ss:$8 sps:$4 sm:$0xff]   ;;  %v10717_v13 = vld [vmem:[%s15166_s11 + $0x70] ss:$8 sps:$4 sm:$0xff]  }
 0x1d9   : > { %v1535_v14 = vpop.f32.mrf.mxu0  ;;  %v2024_v15 = vpop.f32.mrf.mxu1  ;;  %2263 = vmatmul.mubr.bf16.gmra.mxu1 %v1738_v10  ;;  %3466 = vmatprep.subr.bf16.mxu1 %v10716_v9 }
 0x1da   : > { %v2316_v18 = vmax.f32 %v2021_v12, 0.0  ;;  %v1536_v19 = vadd.f32 %v1535_v14, %v11724_v31  ;;  %v1674_v27 = vmax.f32 %v1534_v11, 0.0  ;;  %v2433_v38 = vpack.c.bf16 %v2315_v17, %v2313_v26  ;;  %v10714_v12 = vld [vmem:[%s15201_s28 + $0xa0] ss:$8 sps:$4 sm:$0xff]  }
 0x1db   : > { %v1539_v21 = vpop.f32.mrf.mxu0  ;;  %v2026_v24 = vpop.f32.mrf.mxu1  ;;  %v2025_v41 = vadd.f32 %v2024_v15, %v11957_v29  ;;  %3467 = vmatpush2.bf16.msra.mxu1 %v10714_v12 }
 0x1dc   : > { %v1675_v30 = vmax.f32 %v1536_v19, 0.0  ;;  %v2434_v36 = vpack.c.bf16 %v2316_v18, %v2314_v20  ;;  %v2027_v39 = vadd.f32 %v2026_v24, %v11954_v23  ;;  %v1740_v45 = vpack.c.bf16 %v1674_v27, %v1672_v37 }
 0x1dd   : > { %v1541_v34 = vpop.f32.mrf.mxu0  ;;  %v2028_v35 = vpop.f32.mrf.mxu1  ;;  %v1540_v49 = vadd.f32 %v1539_v21, %v11728_v32  ;;  %v2317_v56 = vmax.f32 %v2025_v41, 0.0 }
 0x1de   : > { %v2029_v40 = vadd.f32 %v2028_v35, %v11957_v29  ;;  %2757 = vmatprep.mubr.bf16.mxu0 %v2434_v36  ;;  %v1741_v44 = vpack.c.bf16 %v1675_v30, %v1673_v33  ;;  %v1542_v46 = vadd.f32 %v1541_v34, %v11724_v31  ;;  %v2318_v53 = vmax.f32 %v2027_v39, 0.0 }
 0x1df   : > { %v1543_v42 = vpop.f32.mrf.mxu0  ;;  %v2030_v43 = vpop.f32.mrf.mxu1  ;;  %2758 = vmatmul.mubr.bf16.gmra.mxu0 %v2433_v38  ;;  %v1676_v63 = vmax.f32 %v1540_v49, 0.0 }
 0x1e0   : > { %v1544_v47 = vadd.f32 %v1543_v42, %v11728_v32  ;;  %v2031_v48 = vadd.f32 %v2030_v43, %v11954_v23  ;;  %v2319_v50 = vmax.f32 %v2029_v40, 0.0  ;;  %2272 = vmatprep.mubr.bf16.mxu1 %v1741_v44  ;;  %v1677_v59 = vmax.f32 %v1542_v46, 0.0 }
 0x1e1   : > { %v1545_v51 = vpop.f32.mrf.mxu0  ;;  %v2034_v52 = vpop.f32.mrf.mxu1  ;;  %2273 = vmatmul.mubr.bf16.gmra.mxu1 %v1740_v45 }
 0x1e2   : > { %v2320_v54 = vmax.f32 %v2031_v48, 0.0  ;;  %v1546_v55 = vadd.f32 %v1545_v51, %v11724_v31  ;;  %v1678_v60 = vmax.f32 %v1544_v47, 0.0  ;;  %v2435_v0 = vpack.c.bf16 %v2319_v50, %v2317_v56  ;;  %v10723_v56 = vld [vmem:[%s15166_s11 + $0x60] ss:$8 sps:$4 sm:$0xff]  }
 0x1e3   : > { %v2036_v57 = vpop.f32.mrf.mxu1  ;;  %v1549_v58 = vpop.f32.mrf.mxu0 }
 0x1e4   : > { %v1679_v61 = vmax.f32 %v1546_v55, 0.0  ;;  %v2436_v62 = vpack.c.bf16 %v2320_v54, %v2318_v53  ;;  %v2037_v1 = vadd.f32 %v2036_v57, %v11954_v23  ;;  %v1550_v6 = vadd.f32 %v1549_v58, %v11728_v32  ;;  %v10719_v32 = vld [vmem:[%s15166_s11 + $0x74] ss:$8 sps:$4 sm:$0xff]   ;;  %v10720_v53 = vld [vmem:[%s15201_s28 + $0x90] ss:$8 sps:$4 sm:$0xff]  }
 0x1e5   : > { %v2038_v3 = vpop.f32.mrf.mxu1  ;;  %v1551_v4 = vpop.f32.mrf.mxu0  ;;  %v1742_v14 = vpack.c.bf16 %v1678_v60, %v1676_v63  ;;  %4181 = vmatprep.subr.bf16.mxu0 %v10719_v32  ;;  %v10722_v54 = vld [vmem:[%s15201_s28 + $0x94] ss:$8 sps:$4 sm:$0xff]   ;;  %v10725_v57 = vld [vmem:[%s15166_s11 + $0x64] ss:$8 sps:$4 sm:$0xff]  }
 0x1e6   : > { %v2039_v5 = vadd.f32 %v2038_v3, %v11957_v29  ;;  %2767 = vmatprep.mubr.bf16.mxu0 %v2436_v62  ;;  %v1743_v7 = vpack.c.bf16 %v1679_v61, %v1677_v59  ;;  %v1552_v8 = vadd.f32 %v1551_v4, %v11724_v31  ;;  %v2035_v31 = vadd.f32 %v2034_v52, %v11957_v29 }
 0x1e7   : > { %v2040_v10 = vpop.f32.mrf.mxu1  ;;  %v1553_v11 = vpop.f32.mrf.mxu0  ;;  %2768 = vmatmul.mubr.bf16.gmra.mxu0 %v2435_v0  ;;  %v2322_v17 = vmax.f32 %v2037_v1, 0.0  ;;  %v1680_v21 = vmax.f32 %v1550_v6, 0.0  ;;  %3468 = vmatprep.subr.bf16.mxu1 %v10722_v54 }
 0x1e8   : > { %v2041_v15 = vadd.f32 %v2040_v10, %v11954_v23  ;;  %2282 = vmatprep.mubr.bf16.mxu1 %v1743_v7  ;;  %v1681_v16 = vmax.f32 %v1552_v8, 0.0  ;;  %v2323_v20 = vmax.f32 %v2039_v5, 0.0  ;;  %4182 = vmatpush1.bf16.msra.mxu0 %v10717_v13  ;;  %v2321_v30 = vmax.f32 %v2035_v31, 0.0 }
 0x1e9   : > { %v2044_v18 = vpop.f32.mrf.mxu1  ;;  %v1554_v19 = vpop.f32.mrf.mxu0  ;;  %2283 = vmatmul.mubr.bf16.gmra.mxu1 %v1742_v14  ;;  %v1744_v36 = vpack.c.bf16 %v1680_v21, %v1680_v21  ;;  %4183 = vmatprep.subr.bf16.mxu0 %v10725_v57  ;;  %v10728_v21 = vld [vmem:[%s15201_s28 + $0x84] ss:$8 sps:$4 sm:$0xff]  }
 0x1ea   : > { %v2324_v24 = vmax.f32 %v2041_v15, 0.0  ;;  %v1745_v26 = vpack.c.bf16 %v1681_v16, %v1681_v16  ;;  %v2437_v35 = vpack.c.bf16 %v2323_v20, %v2321_v30  ;;  %v2045_v40 = vadd.f32 %v2044_v18, %v11957_v29  ;;  %3469 = vmatpush2.bf16.msra.mxu1 %v10720_v53  ;;  %v10726_v20 = vld [vmem:[%s15201_s28 + $0x80] ss:$8 sps:$4 sm:$0xff]  }
 0x1eb   : > { %v2046_v27 = vpop.f32.mrf.mxu1  ;;  %3470 = vmatprep.subr.bf16.mxu1 %v10728_v21 }
 0x1ec   : > { %v2438_v33 = vpack.c.bf16 %v2324_v24, %v2322_v17  ;;  %2292 = vmatprep.mubr.bf16.mxu1 %v1745_v26  ;;  %v2047_v37 = vadd.f32 %v2046_v27, %v11954_v23  ;;  %v2325_v47 = vmax.f32 %v2045_v40, 0.0  ;;  %4184 = vmatpush1.bf16.msra.mxu0 %v10723_v56  ;;  %v10729_v26 = vld [vmem:[%s15166_s11 + $0x50] ss:$8 sps:$4 sm:$0xff]   ;;  %v10731_v27 = vld [vmem:[%s15166_s11 + $0x54] ss:$8 sps:$4 sm:$0xff]  }
 0x1ed   : > { %v2048_v34 = vpop.f32.mrf.mxu1  ;;  %4185 = vmatprep.subr.bf16.mxu0 %v10731_v27 }
 0x1ee   : > { %v2049_v38 = vadd.f32 %v2048_v34, %v11957_v29  ;;  %2777 = vmatprep.mubr.bf16.mxu0 %v2438_v33  ;;  %v2326_v43 = vmax.f32 %v2047_v37, 0.0  ;;  %3471 = vmatpush2.bf16.msra.mxu1 %v10726_v20 }
 0x1ef   : > { %v2050_v39 = vpop.f32.mrf.mxu1  ;;  %2778 = vmatmul.mubr.bf16.gmra.mxu0 %v2437_v35 }
 0x1f0   : > { %v2051_v41 = vadd.f32 %v2050_v39, %v11954_v23  ;;  %v2327_v44 = vmax.f32 %v2049_v38, 0.0  ;;  %4186 = vmatpush1.bf16.msra.mxu0 %v10729_v26 }
 0x1f1   : > { %v2054_v42 = vpop.f32.mrf.mxu1  ;;  %2293 = vmatmul.mubr.bf16.gmra.mxu1 %v1744_v36 }
 0x1f2   : > { %v2328_v45 = vmax.f32 %v2051_v41, 0.0  ;;  %v2439_v50 = vpack.c.bf16 %v2327_v44, %v2325_v47  ;;  %v2055_v58 = vadd.f32 %v2054_v42, %v11957_v29 }
 0x1f3   : > { %v2056_v46 = vpop.f32.mrf.mxu1 }
 0x1f4   : > { %v2440_v48 = vpack.c.bf16 %v2328_v45, %v2326_v43  ;;  %v2057_v51 = vadd.f32 %v2056_v46, %v11954_v23  ;;  %v2329_v1 = vmax.f32 %v2055_v58, 0.0 }
 0x1f5   : > { %v2058_v49 = vpop.f32.mrf.mxu1 }
 0x1f6   : > { %v2059_v52 = vadd.f32 %v2058_v49, %v11957_v29  ;;  %2787 = vmatprep.mubr.bf16.mxu0 %v2440_v48  ;;  %v2330_v61 = vmax.f32 %v2057_v51, 0.0 }
 0x1f7   : > { %v2060_v55 = vpop.f32.mrf.mxu1  ;;  %2788 = vmatmul.mubr.bf16.gmra.mxu0 %v2439_v50 }
 0x1f8   : > { %v2061_v59 = vadd.f32 %v2060_v55, %v11954_v23  ;;  %v2331_v62 = vmax.f32 %v2059_v52, 0.0 }
 0x1f9   : > { %v2064_v60 = vpop.f32.mrf.mxu1 }
 0x1fa   : > { %v2332_v63 = vmax.f32 %v2061_v59, 0.0  ;;  %v2441_v5 = vpack.c.bf16 %v2331_v62, %v2329_v1  ;;  %v2065_v9 = vadd.f32 %v2064_v60, %v11957_v29 }
 0x1fb   : > { %v2066_v0 = vpop.f32.mrf.mxu1 }
 0x1fc   : > { %v2442_v3 = vpack.c.bf16 %v2332_v63, %v2330_v61  ;;  %v2067_v6 = vadd.f32 %v2066_v0, %v11954_v23  ;;  %v2333_v31 = vmax.f32 %v2065_v9, 0.0  ;;  %v10732_v63 = vld [vmem:[%s15166_s11 + $0x40] ss:$8 sps:$4 sm:$0xff]   ;;  %v10734_v0 = vld [vmem:[%s15166_s11 + $0x44] ss:$8 sps:$4 sm:$0xff]  }
 0x1fd   : > { %v2068_v4 = vpop.f32.mrf.mxu1  ;;  %4187 = vmatprep.subr.bf16.mxu0 %v10734_v0 }
 0x1fe   : > { %v2069_v7 = vadd.f32 %v2068_v4, %v11957_v29  ;;  %2797 = vmatprep.mubr.bf16.mxu0 %v2442_v3  ;;  %v2334_v12 = vmax.f32 %v2067_v6, 0.0  ;;  %4188 = vmatpush1.bf16.msra.mxu0 %v10732_v63 }
 0x1ff   : > { %v2070_v8 = vpop.f32.mrf.mxu1  ;;  %2798 = vmatmul.mubr.bf16.gmra.mxu0 %v2441_v5  ;;  %v10737_v5 = vld [vmem:[%s15165_s10 + $0x34] ss:$8 sps:$4 sm:$0xff]  }
 0x200   : > { %v2071_v10 = vadd.f32 %v2070_v8, %v11954_v23  ;;  %v2335_v13 = vmax.f32 %v2069_v7, 0.0  ;;  %4580 = vmatprep.subr.bf16.mxu1 %v10737_v5 }
 0x201   : > { %v2074_v11 = vpop.f32.mrf.mxu1 }
 0x202   : > { %v2336_v32 = vmax.f32 %v2071_v10, 0.0  ;;  %v2443_v17 = vpack.c.bf16 %v2335_v13, %v2333_v31  ;;  %v2075_v30 = vadd.f32 %v2074_v11, %v11957_v29 }
 0x203   : > { %v2076_v14 = vpop.f32.mrf.mxu1 }
 0x204   : > { %v2444_v15 = vpack.c.bf16 %v2336_v32, %v2334_v12  ;;  %v2077_v18 = vadd.f32 %v2076_v14, %v11954_v23  ;;  %v2337_v39 = vmax.f32 %v2075_v30, 0.0 }
 0x205   : > { %v2078_v16 = vpop.f32.mrf.mxu1 }
 0x206   : > { %v2079_v19 = vadd.f32 %v2078_v16, %v11957_v29  ;;  %2807 = vmatprep.mubr.bf16.mxu0 %v2444_v15  ;;  %v2338_v35 = vmax.f32 %v2077_v18, 0.0 }
 0x207   : > { %v2080_v24 = vpop.f32.mrf.mxu1  ;;  %2808 = vmatmul.mubr.bf16.gmra.mxu0 %v2443_v17 }
 0x208   : > { %v2081_v33 = vadd.f32 %v2080_v24, %v11954_v23  ;;  %v2339_v36 = vmax.f32 %v2079_v19, 0.0 }
 0x209   : > { %v2084_v34 = vpop.f32.mrf.mxu1 }
 0x20a   : > { %v2340_v37 = vmax.f32 %v2081_v33, 0.0  ;;  %v2445_v42 = vpack.c.bf16 %v2339_v36, %v2337_v39  ;;  %v2085_v46 = vadd.f32 %v2084_v34, %v11957_v29  ;;  %v10738_v36 = vld [vmem:[%s15166_s11 + $0x30] ss:$8 sps:$4 sm:$0xff]  }
 0x20b   : > { %v2086_v38 = vpop.f32.mrf.mxu1 }
 0x20c   : > { %v2446_v40 = vpack.c.bf16 %v2340_v37, %v2338_v35  ;;  %v2087_v43 = vadd.f32 %v2086_v38, %v11954_v23  ;;  %v2341_v53 = vmax.f32 %v2085_v46, 0.0  ;;  %v10740_v37 = vld [vmem:[%s15166_s11 + $0x34] ss:$8 sps:$4 sm:$0xff]  }
 0x20d   : > { %v2088_v41 = vpop.f32.mrf.mxu1  ;;  %4189 = vmatprep.subr.bf16.mxu0 %v10740_v37 }
 0x20e   : > { %v2089_v44 = vadd.f32 %v2088_v41, %v11957_v29  ;;  %2817 = vmatprep.mubr.bf16.mxu0 %v2446_v40  ;;  %v2342_v49 = vmax.f32 %v2087_v43, 0.0  ;;  %4190 = vmatpush1.bf16.msra.mxu0 %v10738_v36 }
 0x20f   : > { %v2090_v45 = vpop.f32.mrf.mxu1  ;;  %2818 = vmatmul.mubr.bf16.gmra.mxu0 %v2445_v42 }
 0x210   : > { %v2091_v47 = vadd.f32 %v2090_v45, %v11954_v23  ;;  %v2343_v50 = vmax.f32 %v2089_v44, 0.0 }
 0x211   : > { %v2094_v48 = vpop.f32.mrf.mxu1 }
 0x212   : > { %v2344_v51 = vmax.f32 %v2091_v47, 0.0  ;;  %v2447_v56 = vpack.c.bf16 %v2343_v50, %v2341_v53  ;;  %v2095_v60 = vadd.f32 %v2094_v48, %v11957_v29 }
 0x213   : > { %v2096_v52 = vpop.f32.mrf.mxu1 }
 0x214   : > { %v2448_v54 = vpack.c.bf16 %v2344_v51, %v2342_v49  ;;  %v2097_v57 = vadd.f32 %v2096_v52, %v11954_v23  ;;  %v2345_v7 = vmax.f32 %v2095_v60, 0.0 }
 0x215   : > { %v2098_v55 = vpop.f32.mrf.mxu1 }
 0x216   : > { %v2099_v58 = vadd.f32 %v2098_v55, %v11957_v29  ;;  %2827 = vmatprep.mubr.bf16.mxu0 %v2448_v54  ;;  %v2346_v1 = vmax.f32 %v2097_v57, 0.0 }
 0x217   : > { %v2100_v59 = vpop.f32.mrf.mxu1  ;;  %2828 = vmatmul.mubr.bf16.gmra.mxu0 %v2447_v56 }
 0x218   : > { %v2101_v61 = vadd.f32 %v2100_v59, %v11954_v23  ;;  %v2347_v3 = vmax.f32 %v2099_v58, 0.0 }
 0x219   : > { %v2104_v62 = vpop.f32.mrf.mxu1 }
 0x21a   : > { %v2348_v4 = vmax.f32 %v2101_v61, 0.0  ;;  %v2449_v10 = vpack.c.bf16 %v2347_v3, %v2345_v7  ;;  %v2105_v32 = vadd.f32 %v2104_v62, %v11957_v29  ;;  %v10741_v3 = vld [vmem:[%s15166_s11 + $0x20] ss:$8 sps:$4 sm:$0xff]  }
 0x21b   : > { %v2106_v6 = vpop.f32.mrf.mxu1 }
 0x21c   : > { %v2450_v8 = vpack.c.bf16 %v2348_v4, %v2346_v1  ;;  %v2107_v11 = vadd.f32 %v2106_v6, %v11954_v23  ;;  %v2349_v19 = vmax.f32 %v2105_v32, 0.0  ;;  %v10743_v4 = vld [vmem:[%s15166_s11 + $0x24] ss:$8 sps:$4 sm:$0xff]  }
 0x21d   : > { %v2108_v9 = vpop.f32.mrf.mxu1  ;;  %4191 = vmatprep.subr.bf16.mxu0 %v10743_v4 }
 0x21e   : > { %v2109_v12 = vadd.f32 %v2108_v9, %v11957_v29  ;;  %2837 = vmatprep.mubr.bf16.mxu0 %v2450_v8  ;;  %v2350_v15 = vmax.f32 %v2107_v11, 0.0  ;;  %4192 = vmatpush1.bf16.msra.mxu0 %v10741_v3 }
 0x21f   : > { %v2110_v13 = vpop.f32.mrf.mxu1  ;;  %2838 = vmatmul.mubr.bf16.gmra.mxu0 %v2449_v10 }
 0x220   : > { %v2111_v14 = vadd.f32 %v2110_v13, %v11954_v23  ;;  %v2351_v16 = vmax.f32 %v2109_v12, 0.0 }
 0x221   : > { %v2114_v31 = vpop.f32.mrf.mxu1 }
 0x222   : > { %v2352_v17 = vmax.f32 %v2111_v14, 0.0  ;;  %v2451_v24 = vpack.c.bf16 %v2351_v16, %v2349_v19  ;;  %v2115_v33 = vadd.f32 %v2114_v31, %v11957_v29 }
 0x223   : > { %v2116_v18 = vpop.f32.mrf.mxu1 }
 0x224   : > { %v2452_v20 = vpack.c.bf16 %v2352_v17, %v2350_v15  ;;  %v2117_v26 = vadd.f32 %v2116_v18, %v11954_v23  ;;  %v2353_v42 = vmax.f32 %v2115_v33, 0.0 }
 0x225   : > { %v2118_v21 = vpop.f32.mrf.mxu1 }
 0x226   : > { %v2119_v27 = vadd.f32 %v2118_v21, %v11957_v29  ;;  %2847 = vmatprep.mubr.bf16.mxu0 %v2452_v20  ;;  %v2354_v38 = vmax.f32 %v2117_v26, 0.0 }
 0x227   : > { %v2120_v30 = vpop.f32.mrf.mxu1  ;;  %2848 = vmatmul.mubr.bf16.gmra.mxu0 %v2451_v24 }
 0x228   : > { %v2121_v34 = vadd.f32 %v2120_v30, %v11954_v23  ;;  %v2355_v39 = vmax.f32 %v2119_v27, 0.0 }
 0x229   : > { %v2124_v35 = vpop.f32.mrf.mxu1 }
 0x22a   : > { %v2356_v40 = vmax.f32 %v2121_v34, 0.0  ;;  %v2453_v45 = vpack.c.bf16 %v2355_v39, %v2353_v42  ;;  %v2125_v49 = vadd.f32 %v2124_v35, %v11957_v29  ;;  %v10746_v39 = vld [vmem:[%s15166_s11 + $0x14] ss:$8 sps:$4 sm:$0xff]  }
 0x22b   : > { %v2126_v41 = vpop.f32.mrf.mxu1  ;;  %4193 = vmatprep.subr.bf16.mxu0 %v10746_v39 }
 0x22c   : > { %v2454_v43 = vpack.c.bf16 %v2356_v40, %v2354_v38  ;;  %v2127_v46 = vadd.f32 %v2126_v41, %v11954_v23  ;;  %v2357_v56 = vmax.f32 %v2125_v49, 0.0  ;;  %v10744_v38 = vld [vmem:[%s15166_s11 + $0x10] ss:$8 sps:$4 sm:$0xff]  }
 0x22d   : > { %v2128_v44 = vpop.f32.mrf.mxu1  ;;  %4194 = vmatpush1.bf16.msra.mxu0 %v10744_v38 }
 0x22e   : > { %v2129_v47 = vadd.f32 %v2128_v44, %v11957_v29  ;;  %2857 = vmatprep.mubr.bf16.mxu0 %v2454_v43  ;;  %v2358_v52 = vmax.f32 %v2127_v46, 0.0 }
 0x22f   : > { %v2130_v48 = vpop.f32.mrf.mxu1  ;;  %2858 = vmatmul.mubr.bf16.gmra.mxu0 %v2453_v45 }
 0x230   : > { %v2131_v50 = vadd.f32 %v2130_v48, %v11954_v23  ;;  %v2359_v53 = vmax.f32 %v2129_v47, 0.0 }
 0x231   : > { %v2134_v51 = vpop.f32.mrf.mxu1 }
 0x232   : > { %v2360_v54 = vmax.f32 %v2131_v50, 0.0  ;;  %v2455_v59 = vpack.c.bf16 %v2359_v53, %v2357_v56  ;;  %v2135_v63 = vadd.f32 %v2134_v51, %v11957_v29 }
 0x233   : > { %v2136_v55 = vpop.f32.mrf.mxu1 }
 0x234   : > { %v2456_v57 = vpack.c.bf16 %v2360_v54, %v2358_v52  ;;  %v2137_v60 = vadd.f32 %v2136_v55, %v11954_v23  ;;  %v2361_v9 = vmax.f32 %v2135_v63, 0.0 }
 0x235   : > { %v2138_v58 = vpop.f32.mrf.mxu1 }
 0x236   : > { %v2139_v61 = vadd.f32 %v2138_v58, %v11957_v29  ;;  %2867 = vmatprep.mubr.bf16.mxu0 %v2456_v57  ;;  %v2362_v5 = vmax.f32 %v2137_v60, 0.0 }
 0x237   : > { %v2140_v62 = vpop.f32.mrf.mxu1  ;;  %2868 = vmatmul.mubr.bf16.gmra.mxu0 %v2455_v59 }
 0x238   : > { %v2141_v0 = vadd.f32 %v2140_v62, %v11954_v23  ;;  %v2363_v6 = vmax.f32 %v2139_v61, 0.0 }
 0x239   : > { %v2144_v1 = vpop.f32.mrf.mxu1 }
 0x23a   : > { %v2364_v7 = vmax.f32 %v2141_v0, 0.0  ;;  %v2457_v12 = vpack.c.bf16 %v2363_v6, %v2361_v9  ;;  %v2145_v31 = vadd.f32 %v2144_v1, %v11957_v29  ;;  %v10749_v6 = vld [vmem:[%s15166_s11 + $0x4] ss:$8 sps:$4 sm:$0xff]  }
 0x23b   : > { %v2146_v8 = vpop.f32.mrf.mxu1  ;;  %4195 = vmatprep.subr.bf16.mxu0 %v10749_v6 }
 0x23c   : > { %v2458_v10 = vpack.c.bf16 %v2364_v7, %v2362_v5  ;;  %v2147_v13 = vadd.f32 %v2146_v8, %v11954_v23  ;;  %v2365_v21 = vmax.f32 %v2145_v31, 0.0  ;;  %v10747_v5 = vld [vmem:[%s15166_s11] ss:$8 sps:$4 sm:$0xff]  }
 0x23d   : > { %v2148_v11 = vpop.f32.mrf.mxu1  ;;  %4196 = vmatpush1.bf16.msra.mxu0 %v10747_v5 }
 0x23e   : > { %v2149_v32 = vadd.f32 %v2148_v11, %v11957_v29  ;;  %2877 = vmatprep.mubr.bf16.mxu0 %v2458_v10  ;;  %v2366_v17 = vmax.f32 %v2147_v13, 0.0 }
 0x23f   : > { %v2150_v14 = vpop.f32.mrf.mxu1  ;;  %2878 = vmatmul.mubr.bf16.gmra.mxu0 %v2457_v12 }
 0x240   : > { %v2151_v15 = vadd.f32 %v2150_v14, %v11954_v23  ;;  %v2367_v18 = vmax.f32 %v2149_v32, 0.0 }
 0x241   : > { %v2154_v16 = vpop.f32.mrf.mxu1 }
 0x242   : > { %v2368_v19 = vmax.f32 %v2151_v15, 0.0  ;;  %v2459_v27 = vpack.c.bf16 %v2367_v18, %v2365_v21  ;;  %v2155_v35 = vadd.f32 %v2154_v16, %v11957_v29 }
 0x243   : > { %v2156_v20 = vpop.f32.mrf.mxu1 }
 0x244   : > { %v2460_v24 = vpack.c.bf16 %v2368_v19, %v2366_v17  ;;  %v2157_v30 = vadd.f32 %v2156_v20, %v11954_v23  ;;  %v2369_v44 = vmax.f32 %v2155_v35, 0.0 }
 0x245   : > { %v2158_v26 = vpop.f32.mrf.mxu1 }
 0x246   : > { %v2159_v33 = vadd.f32 %v2158_v26, %v11957_v29  ;;  %2887 = vmatprep.mubr.bf16.mxu0 %v2460_v24  ;;  %v2370_v40 = vmax.f32 %v2157_v30, 0.0 }
 0x247   : > { %v2160_v34 = vpop.f32.mrf.mxu1  ;;  %2888 = vmatmul.mubr.bf16.gmra.mxu0 %v2459_v27 }
 0x248   : > { %v2161_v36 = vadd.f32 %v2160_v34, %v11954_v23  ;;  %v2371_v41 = vmax.f32 %v2159_v33, 0.0 }
 0x249   : > { %v2164_v37 = vpop.f32.mrf.mxu1 }
 0x24a   : > { %v2372_v42 = vmax.f32 %v2161_v36, 0.0  ;;  %v2461_v47 = vpack.c.bf16 %v2371_v41, %v2369_v44  ;;  %v2165_v51 = vadd.f32 %v2164_v37, %v11957_v29  ;;  %v10755_v41 = vld [vmem:[%s15166_s11 + $0xf4] ss:$8 sps:$4 sm:$0xff]  }
 0x24b   : > { %v2166_v43 = vpop.f32.mrf.mxu1  ;;  %4197 = vmatprep.subr.bf16.mxu0 %v10755_v41  ;;  %v2523_v41 = vld [vmem:[%s15203_s6] sm:$0x3] }
 0x24c   : > { %v2462_v45 = vpack.c.bf16 %v2372_v42, %v2370_v40  ;;  %v2167_v48 = vadd.f32 %v2166_v43, %v11954_v23  ;;  %v2373_v58 = vmax.f32 %v2165_v51, 0.0  ;;  %v10753_v40 = vld [vmem:[%s15166_s11 + $0xf0] ss:$8 sps:$4 sm:$0xff]  }
 0x24d   : > { %v2168_v46 = vpop.f32.mrf.mxu1  ;;  %4198 = vmatpush2.bf16.msra.mxu0 %v10753_v40 }
 0x24e   : > { %v2169_v49 = vadd.f32 %v2168_v46, %v11957_v29  ;;  %2897 = vmatprep.mubr.bf16.mxu0 %v2462_v45  ;;  %v2374_v54 = vmax.f32 %v2167_v48, 0.0 }
 0x24f   : > { %v2170_v50 = vpop.f32.mrf.mxu1  ;;  %2898 = vmatmul.mubr.bf16.gmra.mxu0 %v2461_v47 }
 0x250   : > { %v2171_v52 = vadd.f32 %v2170_v50, %v11954_v23  ;;  %v2375_v55 = vmax.f32 %v2169_v49, 0.0 }
 0x251   : > { %v2174_v53 = vpop.f32.mrf.mxu1 }
 0x252   : > { %v2376_v56 = vmax.f32 %v2171_v52, 0.0  ;;  %v2463_v61 = vpack.c.bf16 %v2375_v55, %v2373_v58  ;;  %v2175_v1 = vadd.f32 %v2174_v53, %v11957_v29 }
 0x253   : > { %v2176_v57 = vpop.f32.mrf.mxu1 }
 0x254   : > { %v2464_v59 = vpack.c.bf16 %v2376_v56, %v2374_v54  ;;  %v2177_v62 = vadd.f32 %v2176_v57, %v11954_v23  ;;  %v2377_v11 = vmax.f32 %v2175_v1, 0.0 }
 0x255   : > { %v2178_v60 = vpop.f32.mrf.mxu1 }
 0x256   : > { %v2179_v63 = vadd.f32 %v2178_v60, %v11957_v29  ;;  %2907 = vmatprep.mubr.bf16.mxu0 %v2464_v59  ;;  %v2378_v7 = vmax.f32 %v2177_v62, 0.0 }
 0x257   : > { %v2180_v0 = vpop.f32.mrf.mxu1  ;;  %2908 = vmatmul.mubr.bf16.gmra.mxu0 %v2463_v61 }
 0x258   : > { %v2181_v3 = vadd.f32 %v2180_v0, %v11954_v23  ;;  %v2379_v8 = vmax.f32 %v2179_v63, 0.0 }
 0x259   : > { %v2184_v4 = vpop.f32.mrf.mxu1 }
 0x25a   : > { %v2380_v9 = vmax.f32 %v2181_v3, 0.0  ;;  %v2465_v32 = vpack.c.bf16 %v2379_v8, %v2377_v11  ;;  %v2185_v16 = vadd.f32 %v2184_v4, %v11957_v29  ;;  %v10758_v8 = vld [vmem:[%s15166_s11 + $0xe4] ss:$8 sps:$4 sm:$0xff]  }
 0x25b   : > { %v2186_v10 = vpop.f32.mrf.mxu1  ;;  %4199 = vmatprep.subr.bf16.mxu0 %v10758_v8 }
 0x25c   : > { %v2466_v12 = vpack.c.bf16 %v2380_v9, %v2378_v7  ;;  %v2187_v14 = vadd.f32 %v2186_v10, %v11954_v23  ;;  %v2381_v26 = vmax.f32 %v2185_v16, 0.0  ;;  %v10756_v7 = vld [vmem:[%s15166_s11 + $0xe0] ss:$8 sps:$4 sm:$0xff]  }
 0x25d   : > { %v2188_v13 = vpop.f32.mrf.mxu1  ;;  %4200 = vmatpush2.bf16.msra.mxu0 %v10756_v7 }
 0x25e   : > { %v2189_v31 = vadd.f32 %v2188_v13, %v11957_v29  ;;  %2917 = vmatprep.mubr.bf16.mxu0 %v2466_v12  ;;  %v2382_v19 = vmax.f32 %v2187_v14, 0.0 }
 0x25f   : > { %v2190_v15 = vpop.f32.mrf.mxu1  ;;  %2918 = vmatmul.mubr.bf16.gmra.mxu0 %v2465_v32 }
 0x260   : > { %v2191_v17 = vadd.f32 %v2190_v15, %v11954_v23  ;;  %v2383_v20 = vmax.f32 %v2189_v31, 0.0 }
 0x261   : > { %v2194_v18 = vpop.f32.mrf.mxu1 }
 0x262   : > { %v2384_v21 = vmax.f32 %v2191_v17, 0.0  ;;  %v2467_v33 = vpack.c.bf16 %v2383_v20, %v2381_v26  ;;  %v2195_v37 = vadd.f32 %v2194_v18, %v11957_v29 }
 0x263   : > { %v2196_v24 = vpop.f32.mrf.mxu1 }
 0x264   : > { %v2468_v27 = vpack.c.bf16 %v2384_v21, %v2382_v19  ;;  %v2197_v34 = vadd.f32 %v2196_v24, %v11954_v23  ;;  %v2385_v46 = vmax.f32 %v2195_v37, 0.0 }
 0x265   : > { %v2198_v30 = vpop.f32.mrf.mxu1 }
 0x266   : > { %v2199_v35 = vadd.f32 %v2198_v30, %v11957_v29  ;;  %2927 = vmatprep.mubr.bf16.mxu0 %v2468_v27  ;;  %v2386_v42 = vmax.f32 %v2197_v34, 0.0 }
 0x267   : > { %v2200_v36 = vpop.f32.mrf.mxu1  ;;  %2928 = vmatmul.mubr.bf16.gmra.mxu0 %v2467_v33 }
 0x268   : > { %v2201_v38 = vadd.f32 %v2200_v36, %v11954_v23  ;;  %v2387_v43 = vmax.f32 %v2199_v35, 0.0 }
 0x269   : > { %v2204_v39 = vpop.f32.mrf.mxu1 }
 0x26a   : > { %v2388_v44 = vmax.f32 %v2201_v38, 0.0  ;;  %v2469_v49 = vpack.c.bf16 %v2387_v43, %v2385_v46  ;;  %v2205_v53 = vadd.f32 %v2204_v39, %v11957_v29  ;;  %v10759_v43 = vld [vmem:[%s15166_s11 + $0xd0] ss:$8 sps:$4 sm:$0xff]  }
 0x26b   : > { %v2206_v45 = vpop.f32.mrf.mxu1 }
 0x26c   : > { %v2470_v47 = vpack.c.bf16 %v2388_v44, %v2386_v42  ;;  %v2207_v50 = vadd.f32 %v2206_v45, %v11954_v23  ;;  %v2389_v60 = vmax.f32 %v2205_v53, 0.0  ;;  %v10761_v44 = vld [vmem:[%s15166_s11 + $0xd4] ss:$8 sps:$4 sm:$0xff]  }
 0x26d   : > { %v2208_v48 = vpop.f32.mrf.mxu1  ;;  %4201 = vmatprep.subr.bf16.mxu0 %v10761_v44  ;;  %v10762_v44 = vld [vmem:[%s15166_s11 + $0xc0] ss:$8 sps:$4 sm:$0xff]  }
 0x26e   : > { %v2209_v51 = vadd.f32 %v2208_v48, %v11957_v29  ;;  %2937 = vmatprep.mubr.bf16.mxu0 %v2470_v47  ;;  %v2390_v56 = vmax.f32 %v2207_v50, 0.0  ;;  %4202 = vmatpush2.bf16.msra.mxu0 %v10759_v43 }
 0x26f   : > { %v2210_v52 = vpop.f32.mrf.mxu1  ;;  %2938 = vmatmul.mubr.bf16.gmra.mxu0 %v2469_v49  ;;  %v12188_v49 = vrot.slane %v2523_v41, %v11709_v25 }
 0x270   : > { %v2211_v54 = vadd.f32 %v2210_v52, %v11954_v23  ;;  %v2391_v57 = vmax.f32 %v2209_v51, 0.0  ;;  %v12191_v51 = vrot.slane %v2523_v41, %v11717_v28 }
 0x271   : > { %v2214_v55 = vpop.f32.mrf.mxu1 }
 0x272   : > { %v2392_v58 = vmax.f32 %v2211_v54, 0.0  ;;  %v2471_v63 = vpack.c.bf16 %v2391_v57, %v2389_v60  ;;  %v2215_v4 = vadd.f32 %v2214_v55, %v11957_v29 }
 0x273   : > { %v2216_v59 = vpop.f32.mrf.mxu1 }
 0x274   : > { %v2472_v61 = vpack.c.bf16 %v2392_v58, %v2390_v56  ;;  %v2217_v0 = vadd.f32 %v2216_v59, %v11954_v23  ;;  %v2393_v13 = vmax.f32 %v2215_v4, 0.0 }
 0x275   : > { %v2218_v62 = vpop.f32.mrf.mxu1 }
 0x276   : > { %v2219_v1 = vadd.f32 %v2218_v62, %v11957_v29  ;;  %2947 = vmatprep.mubr.bf16.mxu0 %v2472_v61  ;;  %v2394_v9 = vmax.f32 %v2217_v0, 0.0 }
 0x277   : > { %v2220_v3 = vpop.f32.mrf.mxu1  ;;  %2948 = vmatmul.mubr.bf16.gmra.mxu0 %v2471_v63 }
 0x278   : > { %v2221_v5 = vadd.f32 %v2220_v3, %v11954_v23  ;;  %v2395_v10 = vmax.f32 %v2219_v1, 0.0 }
 0x279   : > { %v2224_v6 = vpop.f32.mrf.mxu1 }
 0x27a   : > { %v2396_v11 = vmax.f32 %v2221_v5, 0.0  ;;  %v2473_v31 = vpack.c.bf16 %v2395_v10, %v2393_v13  ;;  %v2225_v18 = vadd.f32 %v2224_v6, %v11957_v29 }
 0x27b   : > { %v2226_v12 = vpop.f32.mrf.mxu1 }
 0x27c   : > { %v2474_v32 = vpack.c.bf16 %v2396_v11, %v2394_v9  ;;  %v2227_v15 = vadd.f32 %v2226_v12, %v11954_v23  ;;  %v2397_v30 = vmax.f32 %v2225_v18, 0.0 }
 0x27d   : > { %v2228_v14 = vpop.f32.mrf.mxu1 }
 0x27e   : > { %v2229_v16 = vadd.f32 %v2228_v14, %v11957_v29  ;;  %2957 = vmatprep.mubr.bf16.mxu0 %v2474_v32  ;;  %v2398_v21 = vmax.f32 %v2227_v15, 0.0 }
 0x27f   : > { %v2230_v17 = vpop.f32.mrf.mxu1  ;;  %2958 = vmatmul.mubr.bf16.gmra.mxu0 %v2473_v31 }
 0x280   : > { %v2231_v19 = vadd.f32 %v2230_v17, %v11954_v23  ;;  %v2399_v24 = vmax.f32 %v2229_v16, 0.0  ;;  %v10735_v16 = vld [vmem:[%s15165_s10 + $0x30] ss:$8 sps:$4 sm:$0xff]  }
 0x281   : > { %v2234_v20 = vpop.f32.mrf.mxu1 }
 0x282   : > { %v2400_v26 = vmax.f32 %v2231_v19, 0.0  ;;  %v2475_v35 = vpack.c.bf16 %v2399_v24, %v2397_v30  ;;  %v2235_v39 = vadd.f32 %v2234_v20, %v11957_v29  ;;  %v10752_v20 = vld [vmem:[%s15165_s10 + $0x24] ss:$8 sps:$4 sm:$0xff]  }
 0x283   : > { %v2236_v27 = vpop.f32.mrf.mxu1 }
 0x284   : > { %v2476_v33 = vpack.c.bf16 %v2400_v26, %v2398_v21  ;;  %v2237_v36 = vadd.f32 %v2236_v27, %v11954_v23  ;;  %v2401_v52 = vmax.f32 %v2235_v39, 0.0  ;;  %v10750_v39 = vld [vmem:[%s15165_s10 + $0x20] ss:$8 sps:$4 sm:$0xff]  }
 0x285   : > { %v2238_v34 = vpop.f32.mrf.mxu1 }
 0x286   : > { %v2239_v37 = vadd.f32 %v2238_v34, %v11957_v29  ;;  %2967 = vmatprep.mubr.bf16.mxu0 %v2476_v33  ;;  %v2402_v45 = vmax.f32 %v2237_v36, 0.0 }
 0x287   : > { %v2240_v38 = vpop.f32.mrf.mxu1  ;;  %v2729_v42 = vpop.f32.mrf.mxu0  ;;  %2968 = vmatmul.mubr.bf16.gmra.mxu0 %v2475_v35 }
 0x288   : > { %v2241_v40 = vadd.f32 %v2240_v38, %v11954_v23  ;;  %v2403_v46 = vmax.f32 %v2239_v37, 0.0  ;;  %v2730_v61 = vadd.f32 %v2729_v42, %v12191_v51 }
 0x289   : > { %v2244_v48 = vpop.f32.mrf.mxu1  ;;  %v2731_v50 = vpop.f32.mrf.mxu0 }
 0x28a   : > { %v2404_v47 = vmax.f32 %v2241_v40, 0.0  ;;  %v2477_v57 = vpack.c.bf16 %v2403_v46, %v2401_v52  ;;  %v2732_v58 = vadd.f32 %v2731_v50, %v12188_v49  ;;  %v2245_v4 = vadd.f32 %v2244_v48, %v11957_v29  ;;  %v10767_v50 = vld [vmem:[%s15165_s10 + $0x14] ss:$8 sps:$4 sm:$0xff]  }
 0x28b   : > { %v2246_v53 = vpop.f32.mrf.mxu1  ;;  %v2733_v54 = vpop.f32.mrf.mxu0  ;;  %v3046_v11 = vmax.f32 %v2730_v61, 0.0 }
 0x28c   : > { %v2478_v55 = vpack.c.bf16 %v2404_v47, %v2402_v45  ;;  %v2734_v56 = vadd.f32 %v2733_v54, %v12191_v51  ;;  %v2247_v0 = vadd.f32 %v2246_v53, %v11954_v23  ;;  %v3047_v8 = vmax.f32 %v2732_v58, 0.0  ;;  %v10764_v45 = vld [vmem:[%s15166_s11 + $0xc4] ss:$8 sps:$4 sm:$0xff]  }
 0x28d   : > { %v2248_v59 = vpop.f32.mrf.mxu1  ;;  %v2735_v60 = vpop.f32.mrf.mxu0  ;;  %v2405_v17 = vmax.f32 %v2245_v4, 0.0  ;;  %4203 = vmatprep.subr.bf16.mxu0 %v10764_v45 }
 0x28e   : > { %2977 = vmatprep.mubr.bf16.mxu0 %v2478_v55  ;;  %v2249_v62 = vadd.f32 %v2248_v59, %v11957_v29  ;;  %v2736_v63 = vadd.f32 %v2735_v60, %v12188_v49  ;;  %v3048_v5 = vmax.f32 %v2734_v56, 0.0  ;;  %v2406_v32 = vmax.f32 %v2247_v0, 0.0  ;;  %v10765_v59 = vld [vmem:[%s15165_s10 + $0x10] ss:$8 sps:$4 sm:$0xff]   ;;  %4204 = vmatpush2.bf16.msra.mxu0 %v10762_v44 }
 0x28f   : > { %v2250_v1 = vpop.f32.mrf.mxu1  ;;  %v2739_v3 = vpop.f32.mrf.mxu0  ;;  %2978 = vmatmul.mubr.bf16.gmra.mxu0 %v2477_v57 }
 0x290   : > { %v3049_v6 = vmax.f32 %v2736_v63, 0.0  ;;  %v2251_v7 = vadd.f32 %v2250_v1, %v11954_v23  ;;  %v2407_v12 = vmax.f32 %v2249_v62, 0.0  ;;  %v3172_v18 = vpack.c.bf16 %v3048_v5, %v3046_v11 }
 0x291   : > { %v2254_v9 = vpop.f32.mrf.mxu1  ;;  %v2741_v10 = vpop.f32.mrf.mxu0  ;;  %v2740_v33 = vadd.f32 %v2739_v3, %v12191_v51 }
 0x292   : > { %v2408_v13 = vmax.f32 %v2251_v7, 0.0  ;;  %v3173_v15 = vpack.c.bf16 %v3049_v6, %v3047_v8  ;;  %v2742_v21 = vadd.f32 %v2741_v10, %v12188_v49  ;;  %v2479_v30 = vpack.c.bf16 %v2407_v12, %v2405_v17 }
 0x293   : > { %v2256_v14 = vpop.f32.mrf.mxu1  ;;  %v2743_v31 = vpop.f32.mrf.mxu0  ;;  %v2255_v40 = vadd.f32 %v2254_v9, %v11957_v29  ;;  %v3050_v52 = vmax.f32 %v2740_v33, 0.0 }
 0x294   : > { %v2744_v19 = vadd.f32 %v2743_v31, %v12191_v51  ;;  %3472 = vmatprep.mubr.bf16.mxu1 %v3173_v15  ;;  %v2480_v27 = vpack.c.bf16 %v2408_v13, %v2406_v32  ;;  %v2257_v36 = vadd.f32 %v2256_v14, %v11954_v23  ;;  %v3051_v46 = vmax.f32 %v2742_v21, 0.0 }
 0x295   : > { %v2258_v24 = vpop.f32.mrf.mxu1  ;;  %v2745_v26 = vpop.f32.mrf.mxu0  ;;  %3473 = vmatmul.mubr.bf16.vlgmr.msra.gmra.mxu1 %v3172_v18  ;;  %v2409_v60 = vmax.f32 %v2255_v40, 0.0 }
 0x296   : > { %v2259_v34 = vadd.f32 %v2258_v24, %v11957_v29  ;;  %v2746_v35 = vadd.f32 %v2745_v26, %v12188_v49  ;;  %4581 = vmatpush1.bf16.msra.mxu1 %v10735_v16  ;;  %2987 = vmatprep.mubr.bf16.mxu0 %v2480_v27  ;;  %v3052_v41 = vmax.f32 %v2744_v19, 0.0  ;;  %v2410_v55 = vmax.f32 %v2257_v36, 0.0 }
 0x297   : > { %v2260_v37 = vpop.f32.mrf.mxu1  ;;  %v2749_v38 = vpop.f32.mrf.mxu0  ;;  %2988 = vmatmul.mubr.bf16.gmra.mxu0 %v2479_v30  ;;  %4582 = vmatprep.subr.bf16.mxu1 %v10752_v20 }
 0x298   : > { %v3053_v42 = vmax.f32 %v2746_v35, 0.0  ;;  %v2261_v43 = vadd.f32 %v2260_v37, %v11954_v23  ;;  %v2411_v53 = vmax.f32 %v2259_v34, 0.0  ;;  %v3174_v61 = vpack.c.bf16 %v3052_v41, %v3050_v52 }
 0x299   : > { %v2264_v47 = vpop.f32.mrf.mxu1  ;;  %v2751_v48 = vpop.f32.mrf.mxu0  ;;  %v2750_v5 = vadd.f32 %v2749_v38, %v12191_v51 }
 0x29a   : > { %v2412_v54 = vmax.f32 %v2261_v43, 0.0  ;;  %v3175_v58 = vpack.c.bf16 %v3053_v42, %v3051_v46  ;;  %4583 = vmatpush1.bf16.msra.mxu1 %v10750_v39  ;;  %v2752_v63 = vadd.f32 %v2751_v48, %v12188_v49  ;;  %v2481_v4 = vpack.c.bf16 %v2411_v53, %v2409_v60  ;;  %v10768_v48 = vld [vmem:[%s15166_s11 + $0xb0] ss:$8 sps:$4 sm:$0xff]  }
 0x29b   : > { %v2266_v56 = vpop.f32.mrf.mxu1  ;;  %v2753_v57 = vpop.f32.mrf.mxu0  ;;  %4584 = vmatprep.subr.bf16.mxu1 %v10767_v50  ;;  %v2265_v11 = vadd.f32 %v2264_v47, %v11957_v29  ;;  %v3054_v16 = vmax.f32 %v2750_v5, 0.0  ;;  %v10770_v50 = vld [vmem:[%s15166_s11 + $0xb4] ss:$8 sps:$4 sm:$0xff]  }
 0x29c   : > { %v2754_v62 = vadd.f32 %v2753_v57, %v12191_v51  ;;  %3482 = vmatprep.mubr.bf16.mxu1 %v3175_v58  ;;  %v2482_v3 = vpack.c.bf16 %v2412_v54, %v2410_v55  ;;  %v2267_v8 = vadd.f32 %v2266_v56, %v11954_v23  ;;  %v3055_v14 = vmax.f32 %v2752_v63, 0.0  ;;  %4205 = vmatprep.subr.bf16.mxu0 %v10770_v50 }
 0x29d   : > { %v2268_v0 = vpop.f32.mrf.mxu1  ;;  %v2755_v1 = vpop.f32.mrf.mxu0  ;;  %3483 = vmatmul.mubr.bf16.gmra.mxu1 %v3174_v61  ;;  %v2413_v26 = vmax.f32 %v2265_v11, 0.0  ;;  %4206 = vmatpush2.bf16.msra.mxu0 %v10768_v48 }
 0x29e   : > { %v2269_v6 = vadd.f32 %v2268_v0, %v11957_v29  ;;  %v2756_v7 = vadd.f32 %v2755_v1, %v12188_v49  ;;  %2997 = vmatprep.mubr.bf16.mxu0 %v2482_v3  ;;  %4585 = vmatpush1.bf16.msra.mxu1 %v10765_v59  ;;  %v3056_v12 = vmax.f32 %v2754_v62, 0.0  ;;  %v2414_v19 = vmax.f32 %v2267_v8, 0.0 }
 0x29f   : > { %v2270_v9 = vpop.f32.mrf.mxu1  ;;  %v2759_v10 = vpop.f32.mrf.mxu0  ;;  %2998 = vmatmul.mubr.bf16.gmra.mxu0 %v2481_v4 }
 0x2a0   : > { %v3057_v13 = vmax.f32 %v2756_v7, 0.0  ;;  %v2271_v32 = vadd.f32 %v2270_v9, %v11954_v23  ;;  %v2415_v17 = vmax.f32 %v2269_v6, 0.0  ;;  %v3176_v27 = vpack.c.bf16 %v3056_v12, %v3054_v16 }
 0x2a1   : > { %v2274_v31 = vpop.f32.mrf.mxu1  ;;  %v2761_v15 = vpop.f32.mrf.mxu0  ;;  %v2760_v38 = vadd.f32 %v2759_v10, %v12191_v51 }
 0x2a2   : > { %v2416_v18 = vmax.f32 %v2271_v32, 0.0  ;;  %v3177_v24 = vpack.c.bf16 %v3057_v13, %v3055_v14  ;;  %v2762_v33 = vadd.f32 %v2761_v15, %v12188_v49  ;;  %v2483_v37 = vpack.c.bf16 %v2415_v17, %v2413_v26 }
 0x2a3   : > { %v2276_v20 = vpop.f32.mrf.mxu1  ;;  %v2763_v21 = vpop.f32.mrf.mxu0  ;;  %v2275_v44 = vadd.f32 %v2274_v31, %v11957_v29  ;;  %v3058_v55 = vmax.f32 %v2760_v38, 0.0 }
 0x2a4   : > { %v2764_v30 = vadd.f32 %v2763_v21, %v12191_v51  ;;  %3492 = vmatprep.mubr.bf16.mxu1 %v3177_v24  ;;  %v2484_v36 = vpack.c.bf16 %v2416_v18, %v2414_v19  ;;  %v2277_v41 = vadd.f32 %v2276_v20, %v11954_v23  ;;  %v3059_v52 = vmax.f32 %v2762_v33, 0.0 }
 0x2a5   : > { %v2278_v34 = vpop.f32.mrf.mxu1  ;;  %v2765_v35 = vpop.f32.mrf.mxu0  ;;  %3493 = vmatmul.mubr.bf16.gmra.mxu1 %v3176_v27  ;;  %v2417_v62 = vmax.f32 %v2275_v44, 0.0 }
 0x2a6   : > { %v2279_v39 = vadd.f32 %v2278_v34, %v11957_v29  ;;  %v2766_v40 = vadd.f32 %v2765_v35, %v12188_v49  ;;  %3007 = vmatprep.mubr.bf16.mxu0 %v2484_v36  ;;  %v3060_v45 = vmax.f32 %v2764_v30, 0.0  ;;  %v2418_v58 = vmax.f32 %v2277_v41, 0.0 }
 0x2a7   : > { %v2280_v42 = vpop.f32.mrf.mxu1  ;;  %v2769_v43 = vpop.f32.mrf.mxu0  ;;  %3008 = vmatmul.mubr.bf16.gmra.mxu0 %v2483_v37 }
 0x2a8   : > { %v3061_v46 = vmax.f32 %v2766_v40, 0.0  ;;  %v2281_v47 = vadd.f32 %v2280_v42, %v11954_v23  ;;  %v2419_v56 = vmax.f32 %v2279_v39, 0.0  ;;  %v3178_v63 = vpack.c.bf16 %v3060_v45, %v3058_v55 }
 0x2a9   : > { %v2284_v53 = vpop.f32.mrf.mxu1  ;;  %v2771_v54 = vpop.f32.mrf.mxu0  ;;  %v2770_v7 = vadd.f32 %v2769_v43, %v12191_v51 }
 0x2aa   : > { %v2420_v57 = vmax.f32 %v2281_v47, 0.0  ;;  %v3179_v61 = vpack.c.bf16 %v3061_v46, %v3059_v52  ;;  %v2772_v1 = vadd.f32 %v2771_v54, %v12188_v49  ;;  %v2485_v6 = vpack.c.bf16 %v2419_v56, %v2417_v62  ;;  %v10771_v52 = vld [vmem:[%s15166_s11 + $0xa0] ss:$8 sps:$4 sm:$0xff]  }
 0x2ab   : > { %v2286_v59 = vpop.f32.mrf.mxu1  ;;  %v2773_v60 = vpop.f32.mrf.mxu0  ;;  %v2285_v13 = vadd.f32 %v2284_v53, %v11957_v29  ;;  %v3062_v18 = vmax.f32 %v2770_v7, 0.0 }
 0x2ac   : > { %v2774_v0 = vadd.f32 %v2773_v60, %v12191_v51  ;;  %3502 = vmatprep.mubr.bf16.mxu1 %v3179_v61  ;;  %v2486_v5 = vpack.c.bf16 %v2420_v57, %v2418_v58  ;;  %v2287_v10 = vadd.f32 %v2286_v59, %v11954_v23  ;;  %v3063_v15 = vmax.f32 %v2772_v1, 0.0 }
 0x2ad   : > { %v2288_v3 = vpop.f32.mrf.mxu1  ;;  %v2775_v4 = vpop.f32.mrf.mxu0  ;;  %3503 = vmatmul.mubr.bf16.gmra.mxu1 %v3178_v63  ;;  %v2421_v33 = vmax.f32 %v2285_v13, 0.0 }
 0x2ae   : > { %v2289_v8 = vadd.f32 %v2288_v3, %v11957_v29  ;;  %v2776_v9 = vadd.f32 %v2775_v4, %v12188_v49  ;;  %3017 = vmatprep.mubr.bf16.mxu0 %v2486_v5  ;;  %v3064_v32 = vmax.f32 %v2774_v0, 0.0  ;;  %v2422_v21 = vmax.f32 %v2287_v10, 0.0 }
 0x2af   : > { %v2290_v11 = vpop.f32.mrf.mxu1  ;;  %v2779_v12 = vpop.f32.mrf.mxu0  ;;  %3018 = vmatmul.mubr.bf16.gmra.mxu0 %v2485_v6 }
 0x2b0   : > { %v3065_v14 = vmax.f32 %v2776_v9, 0.0  ;;  %v2291_v31 = vadd.f32 %v2290_v11, %v11954_v23  ;;  %v2423_v19 = vmax.f32 %v2289_v8, 0.0  ;;  %v3180_v34 = vpack.c.bf16 %v3064_v32, %v3062_v18  ;;  %v10774_v18 = vld [vmem:[%s15166_s11 + $0x90] ss:$8 sps:$4 sm:$0xff]  }
 0x2b1   : > { %v2294_v16 = vpop.f32.mrf.mxu1  ;;  %v2781_v17 = vpop.f32.mrf.mxu0  ;;  %v2780_v37 = vadd.f32 %v2779_v12, %v12191_v51 }
 0x2b2   : > { %v2424_v20 = vmax.f32 %v2291_v31, 0.0  ;;  %v2782_v24 = vadd.f32 %v2781_v17, %v12188_v49  ;;  %v3181_v30 = vpack.c.bf16 %v3065_v14, %v3063_v15  ;;  %v2487_v41 = vpack.c.bf16 %v2423_v19, %v2421_v33  ;;  %v10776_v19 = vld [vmem:[%s15166_s11 + $0x94] ss:$8 sps:$4 sm:$0xff]  }
 0x2b3   : > { %v2296_v26 = vpop.f32.mrf.mxu1  ;;  %v2783_v27 = vpop.f32.mrf.mxu0  ;;  %v2295_v42 = vadd.f32 %v2294_v16, %v11957_v29  ;;  %v10773_v29 = vld [vmem:[%s15166_s11 + $0xa4] ss:$8 sps:$4 sm:$0xff]   ;;  %v3066_v54 = vmax.f32 %v2780_v37, 0.0 }
 0x2b4   : > { %v2297_v35 = vadd.f32 %v2296_v26, %v11954_v23  ;;  %v2784_v36 = vadd.f32 %v2783_v27, %v12191_v51  ;;  %3512 = vmatprep.mubr.bf16.mxu1 %v3181_v30  ;;  %v2488_v40 = vpack.c.bf16 %v2424_v20, %v2422_v21  ;;  %v3067_v45 = vmax.f32 %v2782_v24, 0.0  ;;  %4207 = vmatprep.subr.bf16.mxu0 %v10773_v29 }
 0x2b5   : > { %v2298_v38 = vpop.f32.mrf.mxu1  ;;  %v2785_v39 = vpop.f32.mrf.mxu0  ;;  %3513 = vmatmul.mubr.bf16.gmra.mxu1 %v3180_v34  ;;  %v2425_v55 = vmax.f32 %v2295_v42, 0.0  ;;  %4208 = vmatpush2.bf16.msra.mxu0 %v10771_v52 }
 0x2b6   : > { %v2426_v43 = vmax.f32 %v2297_v35, 0.0  ;;  %v2786_v44 = vadd.f32 %v2785_v39, %v12188_v49  ;;  %3027 = vmatprep.mubr.bf16.mxu0 %v2488_v40  ;;  %v3068_v48 = vmax.f32 %v2784_v36, 0.0  ;;  %4209 = vmatprep.subr.bf16.mxu0 %v10776_v19 }
 0x2b7   : > { %v2299_v46 = vpop.f32.mrf.mxu1  ;;  %v2789_v47 = vpop.f32.mrf.mxu0  ;;  %3028 = vmatmul.mubr.bf16.gmra.mxu0 %v2487_v41  ;;  %v2489_v62 = vpack.c.bf16 %v2425_v55, %v2425_v55  ;;  %v10777_v55 = vld [vmem:[%s15166_s11 + $0x80] ss:$8 sps:$4 sm:$0xff]  }
 0x2b8   : > { %v2490_v23 = vpack.c.bf16 %v2426_v43, %v2426_v43  ;;  %v3069_v50 = vmax.f32 %v2786_v44, 0.0  ;;  %v3182_v58 = vpack.c.bf16 %v3068_v48, %v3066_v54  ;;  %v2790_v63 = vadd.f32 %v2789_v47, %v12191_v51 }
 0x2b9   : > { %v2791_v53 = vpop.f32.mrf.mxu0  ;;  %4210 = vmatpush2.bf16.msra.mxu0 %v10774_v18 }
 0x2ba   : > { %v3183_v56 = vpack.c.bf16 %v3069_v50, %v3067_v45  ;;  %3037 = vmatprep.mubr.bf16.mxu0 %v2490_v23  ;;  %v2792_v59 = vadd.f32 %v2791_v53, %v12188_v49  ;;  %v3070_v7 = vmax.f32 %v2790_v63, 0.0 }
 0x2bb   : > { %v2793_v57 = vpop.f32.mrf.mxu0 }
 0x2bc   : > { %v2794_v60 = vadd.f32 %v2793_v57, %v12191_v51  ;;  %3522 = vmatprep.mubr.bf16.mxu1 %v3183_v56  ;;  %v3071_v3 = vmax.f32 %v2792_v59, 0.0  ;;  %v10779_v56 = vld [vmem:[%s15166_s11 + $0x84] ss:$8 sps:$4 sm:$0xff]  }
 0x2bd   : > { %v2795_v61 = vpop.f32.mrf.mxu0  ;;  %3523 = vmatmul.mubr.bf16.gmra.mxu1 %v3182_v58  ;;  %v10780_v58 = vld [vmem:[%s15165_s10] ss:$8 sps:$4 sm:$0xff]   ;;  %v10782_v59 = vld [vmem:[%s15165_s10 + $0x4] ss:$8 sps:$4 sm:$0xff]   ;;  %4211 = vmatprep.subr.bf16.mxu0 %v10779_v56 }
 0x2be   : > { %v2796_v0 = vadd.f32 %v2795_v61, %v12188_v49  ;;  %v3072_v4 = vmax.f32 %v2794_v60, 0.0  ;;  %4586 = vmatprep.subr.bf16.mxu1 %v10782_v59  ;;  %4212 = vmatpush2.bf16.msra.mxu0 %v10777_v55 }
 0x2bf   : > { %v2799_v1 = vpop.f32.mrf.mxu0  ;;  %3038 = vmatmul.mubr.bf16.gmra.mxu0 %v2489_v62  ;;  %4587 = vmatpush1.bf16.msra.mxu1 %v10780_v58 }
 0x2c0   : > { %v3073_v5 = vmax.f32 %v2796_v0, 0.0  ;;  %v3184_v11 = vpack.c.bf16 %v3072_v4, %v3070_v7  ;;  %v2800_v32 = vadd.f32 %v2799_v1, %v12191_v51 }
 0x2c1   : > { %v2801_v6 = vpop.f32.mrf.mxu0 }
 0x2c2   : > { %v3185_v8 = vpack.c.bf16 %v3073_v5, %v3071_v3  ;;  %v2802_v9 = vadd.f32 %v2801_v6, %v12188_v49  ;;  %v3074_v21 = vmax.f32 %v2800_v32, 0.0 }
 0x2c3   : > { %v2803_v10 = vpop.f32.mrf.mxu0 }
 0x2c4   : > { %v2804_v12 = vadd.f32 %v2803_v10, %v12191_v51  ;;  %3532 = vmatprep.mubr.bf16.mxu1 %v3185_v8  ;;  %v3075_v31 = vmax.f32 %v2802_v9, 0.0 }
 0x2c5   : > { %v2805_v13 = vpop.f32.mrf.mxu0  ;;  %3533 = vmatmul.mubr.bf16.gmra.mxu1 %v3184_v11 }
 0x2c6   : > { %v2806_v14 = vadd.f32 %v2805_v13, %v12188_v49  ;;  %v3076_v16 = vmax.f32 %v2804_v12, 0.0 }
 0x2c7   : > { %v2809_v15 = vpop.f32.mrf.mxu0 }
 0x2c8   : > { %v3077_v17 = vmax.f32 %v2806_v14, 0.0  ;;  %v3186_v27 = vpack.c.bf16 %v3076_v16, %v3074_v21  ;;  %v2810_v35 = vadd.f32 %v2809_v15, %v12191_v51 }
 0x2c9   : > { %v2811_v20 = vpop.f32.mrf.mxu0 }
 0x2ca   : > { %v3187_v24 = vpack.c.bf16 %v3077_v17, %v3075_v31  ;;  %v2812_v30 = vadd.f32 %v2811_v20, %v12188_v49  ;;  %v3078_v42 = vmax.f32 %v2810_v35, 0.0 }
 0x2cb   : > { %v2813_v26 = vpop.f32.mrf.mxu0 }
 0x2cc   : > { %v2814_v33 = vadd.f32 %v2813_v26, %v12191_v51  ;;  %3542 = vmatprep.mubr.bf16.mxu1 %v3187_v24  ;;  %v3079_v38 = vmax.f32 %v2812_v30, 0.0  ;;  %v10785_v26 = vld [vmem:[%s15168_s13 + $0x74] ss:$8 sps:$4 sm:$0xff]  }
 0x2cd   : > { %v2815_v34 = vpop.f32.mrf.mxu0  ;;  %3543 = vmatmul.mubr.bf16.gmra.mxu1 %v3186_v27  ;;  %5455 = vmatprep.subr.bf16.mxu0 %v10785_v26 }
 0x2ce   : > { %v2816_v36 = vadd.f32 %v2815_v34, %v12188_v49  ;;  %v3080_v39 = vmax.f32 %v2814_v33, 0.0 }
 0x2cf   : > { %v2819_v37 = vpop.f32.mrf.mxu0 }
 0x2d0   : > { %v3081_v40 = vmax.f32 %v2816_v36, 0.0  ;;  %v3188_v46 = vpack.c.bf16 %v3080_v39, %v3078_v42  ;;  %v2820_v48 = vadd.f32 %v2819_v37, %v12191_v51 }
 0x2d1   : > { %v2821_v41 = vpop.f32.mrf.mxu0 }
 0x2d2   : > { %v3189_v43 = vpack.c.bf16 %v3081_v40, %v3079_v38  ;;  %v2822_v44 = vadd.f32 %v2821_v41, %v12188_v49  ;;  %v3082_v60 = vmax.f32 %v2820_v48, 0.0 }
 0x2d3   : > { %v2823_v45 = vpop.f32.mrf.mxu0 }
 0x2d4   : > { %v2824_v47 = vadd.f32 %v2823_v45, %v12191_v51  ;;  %3552 = vmatprep.mubr.bf16.mxu1 %v3189_v43  ;;  %v3083_v52 = vmax.f32 %v2822_v44, 0.0 }
 0x2d5   : > { %v2825_v23 = vpop.f32.mrf.mxu0  ;;  %3553 = vmatmul.mubr.bf16.gmra.mxu1 %v3188_v46 }
 0x2d6   : > { %v2826_v50 = vadd.f32 %v2825_v23, %v12188_v49  ;;  %v3084_v53 = vmax.f32 %v2824_v47, 0.0 }
 0x2d7   : > { %v2829_v29 = vpop.f32.mrf.mxu0 }
 0x2d8   : > { %v3085_v54 = vmax.f32 %v2826_v50, 0.0  ;;  %v3190_v63 = vpack.c.bf16 %v3084_v53, %v3082_v60  ;;  %v2830_v4 = vadd.f32 %v2829_v29, %v12191_v51 }
 0x2d9   : > { %v2831_v57 = vpop.f32.mrf.mxu0 }
 0x2da   : > { %v3191_v61 = vpack.c.bf16 %v3085_v54, %v3083_v52  ;;  %v2832_v0 = vadd.f32 %v2831_v57, %v12188_v49  ;;  %v3086_v11 = vmax.f32 %v2830_v4, 0.0 }
 0x2db   : > { %v2833_v62 = vpop.f32.mrf.mxu0 }
 0x2dc   : > { %v2834_v1 = vadd.f32 %v2833_v62, %v12191_v51  ;;  %3562 = vmatprep.mubr.bf16.mxu1 %v3191_v61  ;;  %v3087_v7 = vmax.f32 %v2832_v0, 0.0 }
 0x2dd   : > { %v2835_v3 = vpop.f32.mrf.mxu0  ;;  %3563 = vmatmul.mubr.bf16.gmra.mxu1 %v3190_v63 }
 0x2de   : > { %v2836_v5 = vadd.f32 %v2835_v3, %v12188_v49  ;;  %v3088_v8 = vmax.f32 %v2834_v1, 0.0 }
 0x2df   : > { %v2839_v6 = vpop.f32.mrf.mxu0 }
 0x2e0   : > { %v3089_v9 = vmax.f32 %v2836_v5, 0.0  ;;  %v3192_v32 = vpack.c.bf16 %v3088_v8, %v3086_v11  ;;  %v2840_v16 = vadd.f32 %v2839_v6, %v12191_v51 }
 0x2e1   : > { %v2841_v10 = vpop.f32.mrf.mxu0 }
 0x2e2   : > { %v3193_v12 = vpack.c.bf16 %v3089_v9, %v3087_v7  ;;  %v2842_v14 = vadd.f32 %v2841_v10, %v12188_v49  ;;  %v3090_v27 = vmax.f32 %v2840_v16, 0.0 }
 0x2e3   : > { %v2843_v13 = vpop.f32.mrf.mxu0 }
 0x2e4   : > { %v2844_v31 = vadd.f32 %v2843_v13, %v12191_v51  ;;  %3572 = vmatprep.mubr.bf16.mxu1 %v3193_v12  ;;  %v3091_v19 = vmax.f32 %v2842_v14, 0.0 }
 0x2e5   : > { %v2845_v15 = vpop.f32.mrf.mxu0  ;;  %3573 = vmatmul.mubr.bf16.gmra.mxu1 %v3192_v32 }
 0x2e6   : > { %v2846_v17 = vadd.f32 %v2845_v15, %v12188_v49  ;;  %v3092_v20 = vmax.f32 %v2844_v31, 0.0 }
 0x2e7   : > { %v2849_v18 = vpop.f32.mrf.mxu0 }
 0x2e8   : > { %v3093_v21 = vmax.f32 %v2846_v17, 0.0  ;;  %v3194_v34 = vpack.c.bf16 %v3092_v20, %v3090_v27  ;;  %v2850_v38 = vadd.f32 %v2849_v18, %v12191_v51 }
 0x2e9   : > { %v2851_v24 = vpop.f32.mrf.mxu0 }
 0x2ea   : > { %v3195_v30 = vpack.c.bf16 %v3093_v21, %v3091_v19  ;;  %v2852_v35 = vadd.f32 %v2851_v24, %v12188_v49  ;;  %v3094_v45 = vmax.f32 %v2850_v38, 0.0 }
 0x2eb   : > { %v2853_v33 = vpop.f32.mrf.mxu0 }
 0x2ec   : > { %v2854_v36 = vadd.f32 %v2853_v33, %v12191_v51  ;;  %3582 = vmatprep.mubr.bf16.mxu1 %v3195_v30  ;;  %v3095_v41 = vmax.f32 %v2852_v35, 0.0 }
 0x2ed   : > { %v2855_v37 = vpop.f32.mrf.mxu0  ;;  %3583 = vmatmul.mubr.bf16.gmra.mxu1 %v3194_v34 }
 0x2ee   : > { %v2856_v39 = vadd.f32 %v2855_v37, %v12188_v49  ;;  %v3096_v42 = vmax.f32 %v2854_v36, 0.0 }
 0x2ef   : > { %v2859_v40 = vpop.f32.mrf.mxu0 }
 0x2f0   : > { %v3097_v43 = vmax.f32 %v2856_v39, 0.0  ;;  %v3196_v23 = vpack.c.bf16 %v3096_v42, %v3094_v45  ;;  %v2860_v29 = vadd.f32 %v2859_v40, %v12191_v51 }
 0x2f1   : > { %v2861_v44 = vpop.f32.mrf.mxu0 }
 0x2f2   : > { %v3197_v46 = vpack.c.bf16 %v3097_v43, %v3095_v41  ;;  %v2862_v48 = vadd.f32 %v2861_v44, %v12188_v49  ;;  %v3098_v59 = vmax.f32 %v2860_v29, 0.0 }
 0x2f3   : > { %v2863_v47 = vpop.f32.mrf.mxu0 }
 0x2f4   : > { %v2864_v50 = vadd.f32 %v2863_v47, %v12191_v51  ;;  %3592 = vmatprep.mubr.bf16.mxu1 %v3197_v46  ;;  %v3099_v55 = vmax.f32 %v2862_v48, 0.0 }
 0x2f5   : > { %v2865_v52 = vpop.f32.mrf.mxu0  ;;  %3593 = vmatmul.mubr.bf16.gmra.mxu1 %v3196_v23 }
 0x2f6   : > { %v2866_v53 = vadd.f32 %v2865_v52, %v12188_v49  ;;  %v3100_v56 = vmax.f32 %v2864_v50, 0.0 }
 0x2f7   : > { %v2869_v54 = vpop.f32.mrf.mxu0 }
 0x2f8   : > { %v3101_v57 = vmax.f32 %v2866_v53, 0.0  ;;  %v3198_v62 = vpack.c.bf16 %v3100_v56, %v3098_v59  ;;  %v2870_v3 = vadd.f32 %v2869_v54, %v12191_v51 }
 0x2f9   : > { %v2871_v58 = vpop.f32.mrf.mxu0 }
 0x2fa   : > { %v3199_v60 = vpack.c.bf16 %v3101_v57, %v3099_v55  ;;  %v2872_v63 = vadd.f32 %v2871_v58, %v12188_v49  ;;  %v3102_v10 = vmax.f32 %v2870_v3, 0.0 }
 0x2fb   : > { %v2873_v61 = vpop.f32.mrf.mxu0 }
 0x2fc   : > { %v2874_v0 = vadd.f32 %v2873_v61, %v12191_v51  ;;  %3602 = vmatprep.mubr.bf16.mxu1 %v3199_v60  ;;  %v3103_v6 = vmax.f32 %v2872_v63, 0.0 }
 0x2fd   : > { %v2875_v1 = vpop.f32.mrf.mxu0  ;;  %3603 = vmatmul.mubr.bf16.gmra.mxu1 %v3198_v62 }
 0x2fe   : > { %v2876_v4 = vadd.f32 %v2875_v1, %v12188_v49  ;;  %v3104_v7 = vmax.f32 %v2874_v0, 0.0 }
 0x2ff   : > { %v2879_v5 = vpop.f32.mrf.mxu0 }
 0x300   : > { %v3105_v8 = vmax.f32 %v2876_v4, 0.0  ;;  %v3200_v13 = vpack.c.bf16 %v3104_v7, %v3102_v10  ;;  %v2880_v15 = vadd.f32 %v2879_v5, %v12191_v51 }
 0x301   : > { %v2881_v9 = vpop.f32.mrf.mxu0 }
 0x302   : > { %v3201_v11 = vpack.c.bf16 %v3105_v8, %v3103_v6  ;;  %v2882_v32 = vadd.f32 %v2881_v9, %v12188_v49  ;;  %v3106_v24 = vmax.f32 %v2880_v15, 0.0 }
 0x303   : > { %v2883_v12 = vpop.f32.mrf.mxu0 }
 0x304   : > { %v2884_v14 = vadd.f32 %v2883_v12, %v12191_v51  ;;  %3612 = vmatprep.mubr.bf16.mxu1 %v3201_v11  ;;  %v3107_v18 = vmax.f32 %v2882_v32, 0.0 }
 0x305   : > { %v2885_v31 = vpop.f32.mrf.mxu0  ;;  %3613 = vmatmul.mubr.bf16.gmra.mxu1 %v3200_v13 }
 0x306   : > { %v2886_v16 = vadd.f32 %v2885_v31, %v12188_v49  ;;  %v3108_v19 = vmax.f32 %v2884_v14, 0.0 }
 0x307   : > { %v2889_v17 = vpop.f32.mrf.mxu0 }
 0x308   : > { %v3109_v20 = vmax.f32 %v2886_v16, 0.0  ;;  %v3202_v30 = vpack.c.bf16 %v3108_v19, %v3106_v24  ;;  %v2890_v36 = vadd.f32 %v2889_v17, %v12191_v51 }
 0x309   : > { %v2891_v21 = vpop.f32.mrf.mxu0 }
 0x30a   : > { %v3203_v26 = vpack.c.bf16 %v3109_v20, %v3107_v18  ;;  %v2892_v33 = vadd.f32 %v2891_v21, %v12188_v49  ;;  %v3110_v43 = vmax.f32 %v2890_v36, 0.0 }
 0x30b   : > { %v2893_v27 = vpop.f32.mrf.mxu0 }
 0x30c   : > { %v2894_v34 = vadd.f32 %v2893_v27, %v12191_v51  ;;  %3622 = vmatprep.mubr.bf16.mxu1 %v3203_v26  ;;  %v3111_v39 = vmax.f32 %v2892_v33, 0.0 }
 0x30d   : > { %v2895_v35 = vpop.f32.mrf.mxu0  ;;  %3623 = vmatmul.mubr.bf16.gmra.mxu1 %v3202_v30 }
 0x30e   : > { %v2896_v37 = vadd.f32 %v2895_v35, %v12188_v49  ;;  %v3112_v40 = vmax.f32 %v2894_v34, 0.0 }
 0x30f   : > { %v2899_v38 = vpop.f32.mrf.mxu0 }
 0x310   : > { %v3113_v41 = vmax.f32 %v2896_v37, 0.0  ;;  %v3204_v46 = vpack.c.bf16 %v3112_v40, %v3110_v43  ;;  %v2900_v50 = vadd.f32 %v2899_v38, %v12191_v51 }
 0x311   : > { %v2901_v42 = vpop.f32.mrf.mxu0 }
 0x312   : > { %v3205_v44 = vpack.c.bf16 %v3113_v41, %v3111_v39  ;;  %v2902_v47 = vadd.f32 %v2901_v42, %v12188_v49  ;;  %v3114_v57 = vmax.f32 %v2900_v50, 0.0 }
 0x313   : > { %v2903_v45 = vpop.f32.mrf.mxu0 }
 0x314   : > { %v2904_v23 = vadd.f32 %v2903_v45, %v12191_v51  ;;  %3632 = vmatprep.mubr.bf16.mxu1 %v3205_v44  ;;  %v3115_v53 = vmax.f32 %v2902_v47, 0.0 }
 0x315   : > { %v2905_v48 = vpop.f32.mrf.mxu0  ;;  %3633 = vmatmul.mubr.bf16.gmra.mxu1 %v3204_v46 }
 0x316   : > { %v2906_v52 = vadd.f32 %v2905_v48, %v12188_v49  ;;  %v3116_v54 = vmax.f32 %v2904_v23, 0.0 }
 0x317   : > { %v2909_v29 = vpop.f32.mrf.mxu0 }
 0x318   : > { %v3117_v55 = vmax.f32 %v2906_v52, 0.0  ;;  %v3206_v60 = vpack.c.bf16 %v3116_v54, %v3114_v57  ;;  %v2910_v0 = vadd.f32 %v2909_v29, %v12191_v51 }
 0x319   : > { %v2911_v56 = vpop.f32.mrf.mxu0 }
 0x31a   : > { %v3207_v58 = vpack.c.bf16 %v3117_v55, %v3115_v53  ;;  %v2912_v61 = vadd.f32 %v2911_v56, %v12188_v49  ;;  %v3118_v8 = vmax.f32 %v2910_v0, 0.0 }
 0x31b   : > { %v2913_v59 = vpop.f32.mrf.mxu0 }
 0x31c   : > { %v2914_v62 = vadd.f32 %v2913_v59, %v12191_v51  ;;  %3642 = vmatprep.mubr.bf16.mxu1 %v3207_v58  ;;  %v3119_v4 = vmax.f32 %v2912_v61, 0.0 }
 0x31d   : > { %v2915_v63 = vpop.f32.mrf.mxu0  ;;  %3643 = vmatmul.mubr.bf16.gmra.mxu1 %v3206_v60 }
 0x31e   : > { %v2916_v1 = vadd.f32 %v2915_v63, %v12188_v49  ;;  %v3120_v5 = vmax.f32 %v2914_v62, 0.0 }
 0x31f   : > { %v2919_v3 = vpop.f32.mrf.mxu0 }
 0x320   : > { %v3121_v6 = vmax.f32 %v2916_v1, 0.0  ;;  %v3208_v11 = vpack.c.bf16 %v3120_v5, %v3118_v8  ;;  %v2920_v14 = vadd.f32 %v2919_v3, %v12191_v51 }
 0x321   : > { %v2921_v7 = vpop.f32.mrf.mxu0 }
 0x322   : > { %v3209_v9 = vpack.c.bf16 %v3121_v6, %v3119_v4  ;;  %v2922_v12 = vadd.f32 %v2921_v7, %v12188_v49  ;;  %v3122_v20 = vmax.f32 %v2920_v14, 0.0 }
 0x323   : > { %v2923_v10 = vpop.f32.mrf.mxu0 }
 0x324   : > { %v2924_v13 = vadd.f32 %v2923_v10, %v12191_v51  ;;  %3652 = vmatprep.mubr.bf16.mxu1 %v3209_v9  ;;  %v3123_v16 = vmax.f32 %v2922_v12, 0.0 }
 0x325   : > { %v2925_v32 = vpop.f32.mrf.mxu0  ;;  %3653 = vmatmul.mubr.bf16.gmra.mxu1 %v3208_v11 }
 0x326   : > { %v2926_v31 = vadd.f32 %v2925_v32, %v12188_v49  ;;  %v3124_v17 = vmax.f32 %v2924_v13, 0.0 }
 0x327   : > { %v2929_v15 = vpop.f32.mrf.mxu0 }
 0x328   : > { %v3125_v18 = vmax.f32 %v2926_v31, 0.0  ;;  %v3210_v26 = vpack.c.bf16 %v3124_v17, %v3122_v20  ;;  %v2930_v34 = vadd.f32 %v2929_v15, %v12191_v51 }
 0x329   : > { %v2931_v19 = vpop.f32.mrf.mxu0 }
 0x32a   : > { %v3211_v21 = vpack.c.bf16 %v3125_v18, %v3123_v16  ;;  %v2932_v27 = vadd.f32 %v2931_v19, %v12188_v49  ;;  %v3126_v41 = vmax.f32 %v2930_v34, 0.0 }
 0x32b   : > { %v2933_v24 = vpop.f32.mrf.mxu0 }
 0x32c   : > { %v2934_v30 = vadd.f32 %v2933_v24, %v12191_v51  ;;  %3662 = vmatprep.mubr.bf16.mxu1 %v3211_v21  ;;  %v3127_v37 = vmax.f32 %v2932_v27, 0.0 }
 0x32d   : > { %v2935_v33 = vpop.f32.mrf.mxu0  ;;  %3663 = vmatmul.mubr.bf16.gmra.mxu1 %v3210_v26 }
 0x32e   : > { %v2936_v35 = vadd.f32 %v2935_v33, %v12188_v49  ;;  %v3128_v38 = vmax.f32 %v2934_v30, 0.0 }
 0x32f   : > { %v2939_v36 = vpop.f32.mrf.mxu0 }
 0x330   : > { %v3129_v39 = vmax.f32 %v2936_v35, 0.0  ;;  %v3212_v44 = vpack.c.bf16 %v3128_v38, %v3126_v41  ;;  %v2940_v23 = vadd.f32 %v2939_v36, %v12191_v51 }
 0x331   : > { %v2941_v40 = vpop.f32.mrf.mxu0 }
 0x332   : > { %v3213_v42 = vpack.c.bf16 %v3129_v39, %v3127_v37  ;;  %v2942_v45 = vadd.f32 %v2941_v40, %v12188_v49  ;;  %v3130_v55 = vmax.f32 %v2940_v23, 0.0  ;;  %v3268_v23 = vld [vmem:[%s15164_s9] sm:$0x3] }
 0x333   : > { %v2943_v43 = vpop.f32.mrf.mxu0 }
 0x334   : > { %v2944_v46 = vadd.f32 %v2943_v43, %v12191_v51  ;;  %3672 = vmatprep.mubr.bf16.mxu1 %v3213_v42  ;;  %v3131_v52 = vmax.f32 %v2942_v45, 0.0 }
 0x335   : > { %v2945_v47 = vpop.f32.mrf.mxu0  ;;  %3673 = vmatmul.mubr.bf16.gmra.mxu1 %v3212_v44 }
 0x336   : > { %v2946_v48 = vadd.f32 %v2945_v47, %v12188_v49  ;;  %v3132_v29 = vmax.f32 %v2944_v46, 0.0 }
 0x337   : > { %v2949_v50 = vpop.f32.mrf.mxu0 }
 0x338   : > { %v3133_v53 = vmax.f32 %v2946_v48, 0.0  ;;  %v3214_v58 = vpack.c.bf16 %v3132_v29, %v3130_v55  ;;  %v2950_v62 = vadd.f32 %v2949_v50, %v12191_v51 }
 0x339   : > { %v2951_v54 = vpop.f32.mrf.mxu0 }
 0x33a   : > { %v3215_v56 = vpack.c.bf16 %v3133_v53, %v3131_v52  ;;  %v2952_v59 = vadd.f32 %v2951_v54, %v12188_v49  ;;  %v3134_v6 = vmax.f32 %v2950_v62, 0.0  ;;  %v12377_v54 = vrot.slane %v3268_v23, %v11709_v25 }
 0x33b   : > { %v2953_v57 = vpop.f32.mrf.mxu0 }
 0x33c   : > { %v2954_v60 = vadd.f32 %v2953_v57, %v12191_v51  ;;  %3682 = vmatprep.mubr.bf16.mxu1 %v3215_v56  ;;  %v3135_v1 = vmax.f32 %v2952_v59, 0.0  ;;  %v12380_v56 = vrot.slane %v3268_v23, %v11717_v28 }
 0x33d   : > { %v2955_v61 = vpop.f32.mrf.mxu0  ;;  %3683 = vmatmul.mubr.bf16.gmra.mxu1 %v3214_v58 }
 0x33e   : > { %v2956_v63 = vadd.f32 %v2955_v61, %v12188_v49  ;;  %v3136_v3 = vmax.f32 %v2954_v60, 0.0 }
 0x33f   : > { %v2959_v0 = vpop.f32.mrf.mxu0 }
 0x340   : > { %v3137_v4 = vmax.f32 %v2956_v63, 0.0  ;;  %v3216_v9 = vpack.c.bf16 %v3136_v3, %v3134_v6  ;;  %v2960_v13 = vadd.f32 %v2959_v0, %v12191_v51 }
 0x341   : > { %v2961_v5 = vpop.f32.mrf.mxu0 }
 0x342   : > { %v3217_v7 = vpack.c.bf16 %v3137_v4, %v3135_v1  ;;  %v2962_v10 = vadd.f32 %v2961_v5, %v12188_v49  ;;  %v3138_v18 = vmax.f32 %v2960_v13, 0.0 }
 0x343   : > { %v2963_v8 = vpop.f32.mrf.mxu0 }
 0x344   : > { %v2964_v11 = vadd.f32 %v2963_v8, %v12191_v51  ;;  %3692 = vmatprep.mubr.bf16.mxu1 %v3217_v7  ;;  %v3139_v31 = vmax.f32 %v2962_v10, 0.0 }
 0x345   : > { %v2965_v12 = vpop.f32.mrf.mxu0  ;;  %3693 = vmatmul.mubr.bf16.gmra.mxu1 %v3216_v9 }
 0x346   : > { %v2966_v32 = vadd.f32 %v2965_v12, %v12188_v49  ;;  %v3140_v15 = vmax.f32 %v2964_v11, 0.0 }
 0x347   : > { %v2969_v14 = vpop.f32.mrf.mxu0 }
 0x348   : > { %v3141_v16 = vmax.f32 %v2966_v32, 0.0  ;;  %v3218_v21 = vpack.c.bf16 %v3140_v15, %v3138_v18  ;;  %v2970_v30 = vadd.f32 %v2969_v14, %v12191_v51 }
 0x349   : > { %v2971_v17 = vpop.f32.mrf.mxu0 }
 0x34a   : > { %v3219_v19 = vpack.c.bf16 %v3141_v16, %v3139_v31  ;;  %v2972_v24 = vadd.f32 %v2971_v17, %v12188_v49  ;;  %v3142_v39 = vmax.f32 %v2970_v30, 0.0  ;;  %v10788_v30 = vld [vmem:[%s15168_s13 + $0x64] ss:$8 sps:$4 sm:$0xff]  }
 0x34b   : > { %v2973_v20 = vpop.f32.mrf.mxu0 }
 0x34c   : > { %v2974_v26 = vadd.f32 %v2973_v20, %v12191_v51  ;;  %3702 = vmatprep.mubr.bf16.mxu1 %v3219_v19  ;;  %v3143_v35 = vmax.f32 %v2972_v24, 0.0 }
 0x34d   : > { %v2975_v27 = vpop.f32.mrf.mxu0  ;;  %3703 = vmatmul.mubr.bf16.gmra.mxu1 %v3218_v21  ;;  %v10783_v21 = vld [vmem:[%s15168_s13 + $0x70] ss:$8 sps:$4 sm:$0xff]  }
 0x34e   : > { %v2976_v33 = vadd.f32 %v2975_v27, %v12188_v49  ;;  %v3144_v36 = vmax.f32 %v2974_v26, 0.0 }
 0x34f   : > { %v2979_v34 = vpop.f32.mrf.mxu0 }
 0x350   : > { %v3145_v37 = vmax.f32 %v2976_v33, 0.0  ;;  %v3220_v42 = vpack.c.bf16 %v3144_v36, %v3142_v39  ;;  %v2980_v46 = vadd.f32 %v2979_v34, %v12191_v51 }
 0x351   : > { %v2981_v38 = vpop.f32.mrf.mxu0 }
 0x352   : > { %v3221_v40 = vpack.c.bf16 %v3145_v37, %v3143_v35  ;;  %v2982_v43 = vadd.f32 %v2981_v38, %v12188_v49  ;;  %v3146_v57 = vmax.f32 %v2980_v46, 0.0 }
 0x353   : > { %v2983_v41 = vpop.f32.mrf.mxu0 }
 0x354   : > { %v2984_v44 = vadd.f32 %v2983_v41, %v12191_v51  ;;  %3712 = vmatprep.mubr.bf16.mxu1 %v3221_v40  ;;  %v3147_v50 = vmax.f32 %v2982_v43, 0.0 }
 0x355   : > { %v2985_v45 = vpop.f32.mrf.mxu0  ;;  %v3474_v48 = vpop.f32.mrf.mxu1  ;;  %3713 = vmatmul.mubr.bf16.gmra.mxu1 %v3220_v42 }
 0x356   : > { %v2986_v47 = vadd.f32 %v2985_v45, %v12188_v49  ;;  %v3148_v52 = vmax.f32 %v2984_v44, 0.0  ;;  %v3475_v3 = vadd.f32 %v3474_v48, %v12380_v56  ;;  %v10786_v44 = vld [vmem:[%s15168_s13 + $0x60] ss:$8 sps:$4 sm:$0xff]   ;;  %v10791_v48 = vld [vmem:[%s15168_s13 + $0x54] ss:$8 sps:$4 sm:$0xff]  }
 0x357   : > { %v2989_v53 = vpop.f32.mrf.mxu0  ;;  %v3476_v55 = vpop.f32.mrf.mxu1 }
 0x358   : > { %v3149_v29 = vmax.f32 %v2986_v47, 0.0  ;;  %v3222_v62 = vpack.c.bf16 %v3148_v52, %v3146_v57  ;;  %v3477_v63 = vadd.f32 %v3476_v55, %v12377_v54  ;;  %v2990_v9 = vadd.f32 %v2989_v53, %v12191_v51 }
 0x359   : > { %v2991_v58 = vpop.f32.mrf.mxu0  ;;  %v3478_v59 = vpop.f32.mrf.mxu1  ;;  %v3791_v31 = vmax.f32 %v3475_v3, 0.0  ;;  %v10794_v3 = vld [vmem:[%s15168_s13 + $0x44] ss:$8 sps:$4 sm:$0xff]  }
 0x35a   : > { %v3223_v60 = vpack.c.bf16 %v3149_v29, %v3147_v50  ;;  %v3479_v61 = vadd.f32 %v3478_v59, %v12380_v56  ;;  %v2992_v6 = vadd.f32 %v2991_v58, %v12188_v49  ;;  %v3792_v13 = vmax.f32 %v3477_v63, 0.0 }
 0x35b   : > { %v2993_v0 = vpop.f32.mrf.mxu0  ;;  %v3480_v1 = vpop.f32.mrf.mxu1  ;;  %v3150_v24 = vmax.f32 %v2990_v9, 0.0 }
 0x35c   : > { %3722 = vmatprep.mubr.bf16.mxu1 %v3223_v60  ;;  %v2994_v4 = vadd.f32 %v2993_v0, %v12191_v51  ;;  %v3481_v5 = vadd.f32 %v3480_v1, %v12377_v54  ;;  %v3793_v10 = vmax.f32 %v3479_v61, 0.0  ;;  %v3151_v17 = vmax.f32 %v2992_v6, 0.0 }
 0x35d   : > { %v2995_v7 = vpop.f32.mrf.mxu0  ;;  %v3484_v8 = vpop.f32.mrf.mxu1  ;;  %3723 = vmatmul.mubr.bf16.gmra.mxu1 %v3222_v62  ;;  %v10789_v62 = vld [vmem:[%s15168_s13 + $0x50] ss:$8 sps:$4 sm:$0xff]  }
 0x35e   : > { %v3794_v11 = vmax.f32 %v3481_v5, 0.0  ;;  %v2996_v12 = vadd.f32 %v2995_v7, %v12188_v49  ;;  %v3152_v15 = vmax.f32 %v2994_v4, 0.0  ;;  %v3925_v26 = vpack.c.bf16 %v3793_v10, %v3791_v31 }
 0x35f   : > { %v2999_v32 = vpop.f32.mrf.mxu0  ;;  %v3486_v14 = vpop.f32.mrf.mxu1  ;;  %v3485_v38 = vadd.f32 %v3484_v8, %v12380_v56 }
 0x360   : > { %v3153_v16 = vmax.f32 %v2996_v12, 0.0  ;;  %v3926_v20 = vpack.c.bf16 %v3794_v11, %v3792_v13  ;;  %v3487_v33 = vadd.f32 %v3486_v14, %v12377_v54  ;;  %v3224_v37 = vpack.c.bf16 %v3152_v15, %v3150_v24  ;;  %v10792_v14 = vld [vmem:[%s15168_s13 + $0x40] ss:$8 sps:$4 sm:$0xff]  }
 0x361   : > { %v3001_v18 = vpop.f32.mrf.mxu0  ;;  %v3488_v19 = vpop.f32.mrf.mxu1  ;;  %v3000_v45 = vadd.f32 %v2999_v32, %v12191_v51  ;;  %v3795_v53 = vmax.f32 %v3485_v38, 0.0 }
 0x362   : > { %v3489_v27 = vadd.f32 %v3488_v19, %v12380_v56  ;;  %4213 = vmatprep.mubr.bf16.mxu0 %v3926_v20  ;;  %v3225_v36 = vpack.c.bf16 %v3153_v16, %v3151_v17  ;;  %v3002_v41 = vadd.f32 %v3001_v18, %v12188_v49  ;;  %v3796_v50 = vmax.f32 %v3487_v33, 0.0  ;;  %v10797_v18 = vld [vmem:[%s15168_s13 + $0x34] ss:$8 sps:$4 sm:$0xff]  }
 0x363   : > { %v3003_v34 = vpop.f32.mrf.mxu0  ;;  %v3490_v35 = vpop.f32.mrf.mxu1  ;;  %4214 = vmatmul.mubr.bf16.vlgmr.msra.gmra.mxu0 %v3925_v26  ;;  %v3154_v63 = vmax.f32 %v3000_v45, 0.0 }
 0x364   : > { %v3004_v39 = vadd.f32 %v3003_v34, %v12191_v51  ;;  %v3491_v40 = vadd.f32 %v3490_v35, %v12377_v54  ;;  %3732 = vmatprep.mubr.bf16.mxu1 %v3225_v36  ;;  %5456 = vmatpush1.bf16.msra.mxu0 %v10783_v21  ;;  %v3797_v46 = vmax.f32 %v3489_v27, 0.0  ;;  %v3155_v58 = vmax.f32 %v3002_v41, 0.0  ;;  %v10795_v36 = vld [vmem:[%s15168_s13 + $0x30] ss:$8 sps:$4 sm:$0xff]  }
 0x365   : > { %v3005_v42 = vpop.f32.mrf.mxu0  ;;  %v3494_v43 = vpop.f32.mrf.mxu1  ;;  %3733 = vmatmul.mubr.bf16.gmra.mxu1 %v3224_v37  ;;  %5457 = vmatprep.subr.bf16.mxu0 %v10788_v30 }
 0x366   : > { %v3798_v47 = vmax.f32 %v3491_v40, 0.0  ;;  %v3006_v23 = vadd.f32 %v3005_v42, %v12188_v49  ;;  %v3156_v55 = vmax.f32 %v3004_v39, 0.0  ;;  %v3927_v0 = vpack.c.bf16 %v3797_v46, %v3795_v53  ;;  %v10800_v40 = vld [vmem:[%s15168_s13 + $0x24] ss:$8 sps:$4 sm:$0xff]  }
 0x367   : > { %v3009_v52 = vpop.f32.mrf.mxu0  ;;  %v3496_v29 = vpop.f32.mrf.mxu1  ;;  %v3495_v9 = vadd.f32 %v3494_v43, %v12380_v56 }
 0x368   : > { %v3157_v57 = vmax.f32 %v3006_v23, 0.0  ;;  %v3928_v61 = vpack.c.bf16 %v3798_v47, %v3796_v50  ;;  %5458 = vmatpush1.bf16.msra.mxu0 %v10786_v44  ;;  %v3497_v4 = vadd.f32 %v3496_v29, %v12377_v54  ;;  %v3226_v8 = vpack.c.bf16 %v3156_v55, %v3154_v63  ;;  %v10798_v29 = vld [vmem:[%s15168_s13 + $0x20] ss:$8 sps:$4 sm:$0xff]  }
 0x369   : > { %v3011_v59 = vpop.f32.mrf.mxu0  ;;  %v3498_v60 = vpop.f32.mrf.mxu1  ;;  %5459 = vmatprep.subr.bf16.mxu0 %v10791_v48  ;;  %v3010_v31 = vadd.f32 %v3009_v52, %v12191_v51  ;;  %v3799_v24 = vmax.f32 %v3495_v9, 0.0 }
 0x36a   : > { %v3499_v1 = vadd.f32 %v3498_v60, %v12380_v56  ;;  %4223 = vmatprep.mubr.bf16.mxu0 %v3928_v61  ;;  %v3227_v7 = vpack.c.bf16 %v3157_v57, %v3155_v58  ;;  %v3012_v12 = vadd.f32 %v3011_v59, %v12188_v49  ;;  %v3800_v19 = vmax.f32 %v3497_v4, 0.0  ;;  %v10803_v59 = vld [vmem:[%s15168_s13 + $0x14] ss:$8 sps:$4 sm:$0xff]  }
 0x36b   : > { %v3013_v5 = vpop.f32.mrf.mxu0  ;;  %v3500_v6 = vpop.f32.mrf.mxu1  ;;  %4224 = vmatmul.mubr.bf16.gmra.mxu0 %v3927_v0  ;;  %v3158_v37 = vmax.f32 %v3010_v31, 0.0 }
 0x36c   : > { %v3014_v10 = vadd.f32 %v3013_v5, %v12191_v51  ;;  %v3501_v11 = vadd.f32 %v3500_v6, %v12377_v54  ;;  %3742 = vmatprep.mubr.bf16.mxu1 %v3227_v7  ;;  %5460 = vmatpush1.bf16.msra.mxu0 %v10789_v62  ;;  %v3801_v15 = vmax.f32 %v3499_v1, 0.0  ;;  %v3159_v30 = vmax.f32 %v3012_v12, 0.0  ;;  %v10801_v7 = vld [vmem:[%s15168_s13 + $0x10] ss:$8 sps:$4 sm:$0xff]  }
 0x36d   : > { %v3015_v13 = vpop.f32.mrf.mxu0  ;;  %v3504_v32 = vpop.f32.mrf.mxu1  ;;  %3743 = vmatmul.mubr.bf16.gmra.mxu1 %v3226_v8  ;;  %5461 = vmatprep.subr.bf16.mxu0 %v10794_v3 }
 0x36e   : > { %v3802_v16 = vmax.f32 %v3501_v11, 0.0  ;;  %v3016_v17 = vadd.f32 %v3015_v13, %v12188_v49  ;;  %v3160_v26 = vmax.f32 %v3014_v10, 0.0  ;;  %v3929_v38 = vpack.c.bf16 %v3801_v15, %v3799_v24  ;;  %v10806_v11 = vld [vmem:[%s15168_s13 + $0x4] ss:$8 sps:$4 sm:$0xff]   ;;  %v10804_v24 = vld [vmem:[%s15168_s13] ss:$8 sps:$4 sm:$0xff]  }
 0x36f   : > { %v3019_v20 = vpop.f32.mrf.mxu0  ;;  %v3506_v21 = vpop.f32.mrf.mxu1  ;;  %v3505_v46 = vadd.f32 %v3504_v32, %v12380_v56 }
 0x370   : > { %v3161_v27 = vmax.f32 %v3016_v17, 0.0  ;;  %v3930_v35 = vpack.c.bf16 %v3802_v16, %v3800_v19  ;;  %5462 = vmatpush1.bf16.msra.mxu0 %v10792_v14  ;;  %v3507_v41 = vadd.f32 %v3506_v21, %v12377_v54  ;;  %v3228_v45 = vpack.c.bf16 %v3160_v26, %v3158_v37 }
 0x371   : > { %v3021_v33 = vpop.f32.mrf.mxu0  ;;  %v3508_v34 = vpop.f32.mrf.mxu1  ;;  %5463 = vmatprep.subr.bf16.mxu0 %v10797_v18  ;;  %v3020_v53 = vadd.f32 %v3019_v20, %v12191_v51  ;;  %v3803_v63 = vmax.f32 %v3505_v46, 0.0 }
 0x372   : > { %v3509_v39 = vadd.f32 %v3508_v34, %v12380_v56  ;;  %4233 = vmatprep.mubr.bf16.mxu0 %v3930_v35  ;;  %v3229_v44 = vpack.c.bf16 %v3161_v27, %v3159_v30  ;;  %v3022_v48 = vadd.f32 %v3021_v33, %v12188_v49  ;;  %v3804_v60 = vmax.f32 %v3507_v41, 0.0  ;;  %v10809_v33 = vld [vmem:[%s15168_s13 + $0xf4] ss:$8 sps:$4 sm:$0xff]  }
 0x373   : > { %v3023_v42 = vpop.f32.mrf.mxu0  ;;  %v3510_v43 = vpop.f32.mrf.mxu1  ;;  %4234 = vmatmul.mubr.bf16.gmra.mxu0 %v3929_v38  ;;  %v3162_v8 = vmax.f32 %v3020_v53, 0.0 }
 0x374   : > { %v3024_v47 = vadd.f32 %v3023_v42, %v12191_v51  ;;  %v3511_v23 = vadd.f32 %v3510_v43, %v12377_v54  ;;  %3752 = vmatprep.mubr.bf16.mxu1 %v3229_v44  ;;  %5464 = vmatpush1.bf16.msra.mxu0 %v10795_v36  ;;  %v3805_v55 = vmax.f32 %v3509_v39, 0.0  ;;  %v3163_v3 = vmax.f32 %v3022_v48, 0.0 }
 0x375   : > { %v3025_v50 = vpop.f32.mrf.mxu0  ;;  %v3514_v52 = vpop.f32.mrf.mxu1  ;;  %3753 = vmatmul.mubr.bf16.gmra.mxu1 %v3228_v45  ;;  %5465 = vmatprep.subr.bf16.mxu0 %v10800_v40  ;;  %v10807_v45 = vld [vmem:[%s15168_s13 + $0xf0] ss:$8 sps:$4 sm:$0xff]  }
 0x376   : > { %v3806_v57 = vmax.f32 %v3511_v23, 0.0  ;;  %v3026_v58 = vadd.f32 %v3025_v50, %v12188_v49  ;;  %v3164_v0 = vmax.f32 %v3024_v47, 0.0  ;;  %v3931_v9 = vpack.c.bf16 %v3805_v55, %v3803_v63  ;;  %v10812_v50 = vld [vmem:[%s15168_s13 + $0xe4] ss:$8 sps:$4 sm:$0xff]  }
 0x377   : > { %v3029_v61 = vpop.f32.mrf.mxu0  ;;  %v3516_v62 = vpop.f32.mrf.mxu1  ;;  %v3515_v15 = vadd.f32 %v3514_v52, %v12380_v56 }
 0x378   : > { %v3165_v1 = vmax.f32 %v3026_v58, 0.0  ;;  %v3932_v6 = vpack.c.bf16 %v3806_v57, %v3804_v60  ;;  %5466 = vmatpush1.bf16.msra.mxu0 %v10798_v29  ;;  %v3517_v12 = vadd.f32 %v3516_v62, %v12377_v54  ;;  %v3230_v31 = vpack.c.bf16 %v3164_v0, %v3162_v8  ;;  %v10810_v62 = vld [vmem:[%s15168_s13 + $0xe0] ss:$8 sps:$4 sm:$0xff]  }
 0x379   : > { %v3031_v4 = vpop.f32.mrf.mxu0  ;;  %v3518_v5 = vpop.f32.mrf.mxu1  ;;  %5467 = vmatprep.subr.bf16.mxu0 %v10803_v59  ;;  %v3030_v18 = vadd.f32 %v3029_v61, %v12191_v51  ;;  %v3807_v37 = vmax.f32 %v3515_v15, 0.0 }
 0x37a   : > { %v3519_v10 = vadd.f32 %v3518_v5, %v12380_v56  ;;  %4243 = vmatprep.mubr.bf16.mxu0 %v3932_v6  ;;  %v3231_v14 = vpack.c.bf16 %v3165_v1, %v3163_v3  ;;  %v3032_v19 = vadd.f32 %v3031_v4, %v12188_v49  ;;  %v3808_v34 = vmax.f32 %v3517_v12, 0.0 }
 0x37b   : > { %v3033_v13 = vpop.f32.mrf.mxu0  ;;  %v3520_v32 = vpop.f32.mrf.mxu1  ;;  %4244 = vmatmul.mubr.bf16.gmra.mxu0 %v3931_v9  ;;  %v3166_v40 = vmax.f32 %v3030_v18, 0.0  ;;  %v10813_v9 = vld [vmem:[%s15168_s13 + $0xd0] ss:$8 sps:$4 sm:$0xff]  }
 0x37c   : > { %v3034_v16 = vadd.f32 %v3033_v13, %v12191_v51  ;;  %v3521_v17 = vadd.f32 %v3520_v32, %v12377_v54  ;;  %3762 = vmatprep.mubr.bf16.mxu1 %v3231_v14  ;;  %5468 = vmatpush1.bf16.msra.mxu0 %v10801_v7  ;;  %v3809_v26 = vmax.f32 %v3519_v10, 0.0  ;;  %v3167_v41 = vmax.f32 %v3032_v19, 0.0 }
 0x37d   : > { %v3035_v20 = vpop.f32.mrf.mxu0  ;;  %v3524_v21 = vpop.f32.mrf.mxu1  ;;  %3763 = vmatmul.mubr.bf16.gmra.mxu1 %v3230_v31  ;;  %5469 = vmatprep.subr.bf16.mxu0 %v10806_v11 }
 0x37e   : > { %v3810_v27 = vmax.f32 %v3521_v17, 0.0  ;;  %v3036_v30 = vadd.f32 %v3035_v20, %v12188_v49  ;;  %v3168_v38 = vmax.f32 %v3034_v16, 0.0  ;;  %v3933_v46 = vpack.c.bf16 %v3809_v26, %v3807_v37 }
 0x37f   : > { %v3039_v35 = vpop.f32.mrf.mxu0  ;;  %v3526_v36 = vpop.f32.mrf.mxu1  ;;  %v3525_v52 = vadd.f32 %v3524_v21, %v12380_v56 }
 0x380   : > { %v3169_v39 = vmax.f32 %v3036_v30, 0.0  ;;  %v3934_v44 = vpack.c.bf16 %v3810_v27, %v3808_v34  ;;  %5470 = vmatpush1.bf16.msra.mxu0 %v10804_v24  ;;  %v3527_v47 = vadd.f32 %v3526_v36, %v12377_v54  ;;  %v3232_v57 = vpack.c.bf16 %v3168_v38, %v3166_v40  ;;  %v11269_v40 = vld [vmem:[%s11471_s7] sm:$0xff]  }
 0x381   : > { %v3041_v42 = vpop.f32.mrf.mxu0  ;;  %v3528_v43 = vpop.f32.mrf.mxu1  ;;  %5471 = vmatprep.subr.bf16.mxu0 %v10809_v33  ;;  %v3040_v58 = vadd.f32 %v3039_v35, %v12191_v51  ;;  %v10815_v51 = vld [vmem:[%s15168_s13 + $0xd4] ss:$8 sps:$4 sm:$0xff]   ;;  %v3811_v5 = vmax.f32 %v3525_v52, 0.0 }
 0x382   : > { %v3042_v23 = vadd.f32 %v3041_v42, %v12188_v49  ;;  %v3529_v48 = vadd.f32 %v3528_v43, %v12380_v56  ;;  %4253 = vmatprep.mubr.bf16.mxu0 %v3934_v44  ;;  %v3233_v55 = vpack.c.bf16 %v3169_v39, %v3167_v41  ;;  %v3812_v63 = vmax.f32 %v3527_v47, 0.0  ;;  %v10816_v41 = vld [vmem:[%s15168_s13 + $0xc0] ss:$8 sps:$4 sm:$0xff]   ;;  %v10818_v42 = vld [vmem:[%s15168_s13 + $0xc4] ss:$8 sps:$4 sm:$0xff]  }
 0x383   : > { %v3043_v29 = vpop.f32.mrf.mxu0  ;;  %v3530_v53 = vpop.f32.mrf.mxu1  ;;  %4254 = vmatmul.mubr.bf16.gmra.mxu0 %v3933_v46  ;;  %v3170_v6 = vmax.f32 %v3040_v58, 0.0 }
 0x384   : > { %v3171_v59 = vmax.f32 %v3042_v23, 0.0  ;;  %v3531_v60 = vadd.f32 %v3530_v53, %v12377_v54  ;;  %3772 = vmatprep.mubr.bf16.mxu1 %v3233_v55  ;;  %5472 = vmatpush2.bf16.msra.mxu0 %v10807_v45  ;;  %v3813_v1 = vmax.f32 %v3529_v48, 0.0 }
 0x385   : > { %v3044_v49 = vpop.f32.mrf.mxu0  ;;  %v3534_v61 = vpop.f32.mrf.mxu1  ;;  %3773 = vmatmul.mubr.bf16.gmra.mxu1 %v3232_v57  ;;  %5473 = vmatprep.subr.bf16.mxu0 %v10812_v50  ;;  %v3234_v32 = vpack.c.bf16 %v3170_v6, %v3170_v6 }
 0x386   : > { %v3235_v0 = vpack.c.bf16 %v3171_v59, %v3171_v59  ;;  %v3814_v3 = vmax.f32 %v3531_v60, 0.0  ;;  %v3935_v10 = vpack.c.bf16 %v3813_v1, %v3811_v5  ;;  %v3535_v14 = vadd.f32 %v3534_v61, %v12380_v56  ;;  %v11270_v59 = vld [vmem:[%s11471_s7 + $0x8] sm:$0xff]  }
 0x387   : > { %v3536_v4 = vpop.f32.mrf.mxu1 }
 0x388   : > { %3782 = vmatprep.mubr.bf16.mxu1 %v3235_v0  ;;  %v3936_v7 = vpack.c.bf16 %v3814_v3, %v3812_v63  ;;  %5474 = vmatpush2.bf16.msra.mxu0 %v10810_v62  ;;  %v3537_v11 = vadd.f32 %v3536_v4, %v12377_v54  ;;  %v3815_v20 = vmax.f32 %v3535_v14, 0.0 }
 0x389   : > { %v3538_v8 = vpop.f32.mrf.mxu1  ;;  %5475 = vmatprep.subr.bf16.mxu0 %v10815_v51 }
 0x38a   : > { %v3539_v12 = vadd.f32 %v3538_v8, %v12380_v56  ;;  %4263 = vmatprep.mubr.bf16.mxu0 %v3936_v7  ;;  %v3816_v16 = vmax.f32 %v3537_v11, 0.0  ;;  %v10821_v11 = vld [vmem:[%s15168_s13 + $0xb4] ss:$8 sps:$4 sm:$0xff]  }
 0x38b   : > { %v3540_v13 = vpop.f32.mrf.mxu1  ;;  %4264 = vmatmul.mubr.bf16.gmra.mxu0 %v3935_v10  ;;  %v10819_v10 = vld [vmem:[%s15168_s13 + $0xb0] ss:$8 sps:$4 sm:$0xff]  }
 0x38c   : > { %v3541_v31 = vadd.f32 %v3540_v13, %v12377_v54  ;;  %5476 = vmatpush2.bf16.msra.mxu0 %v10813_v9  ;;  %v3817_v17 = vmax.f32 %v3539_v12, 0.0  ;;  %v11271_v9 = vld [vmem:[%s11471_s7 + $0x10] sm:$0xff]  }
 0x38d   : > { %v3544_v15 = vpop.f32.mrf.mxu1  ;;  %3783 = vmatmul.mubr.bf16.gmra.mxu1 %v3234_v32  ;;  %5477 = vmatprep.subr.bf16.mxu0 %v10818_v42 }
 0x38e   : > { %v3818_v18 = vmax.f32 %v3541_v31, 0.0  ;;  %4604 = vmatprep.mubr.bf16.mxu1 %v11310_v2  ;;  %v3937_v27 = vpack.c.bf16 %v3817_v17, %v3815_v20  ;;  %v3545_v34 = vadd.f32 %v3544_v15, %v12380_v56 }
 0x38f   : > { %v3546_v19 = vpop.f32.mrf.mxu1 }
 0x390   : > { %v3938_v21 = vpack.c.bf16 %v3818_v18, %v3816_v16  ;;  %v3547_v24 = vadd.f32 %v3546_v19, %v12377_v54  ;;  %v3819_v44 = vmax.f32 %v3545_v34, 0.0  ;;  %5478 = vmatpush2.bf16.msra.mxu0 %v10816_v41 }
 0x391   : > { %v3548_v26 = vpop.f32.mrf.mxu1  ;;  %5479 = vmatprep.subr.bf16.mxu0 %v10821_v11 }
 0x392   : > { %v3549_v30 = vadd.f32 %v3548_v26, %v12380_v56  ;;  %4273 = vmatprep.mubr.bf16.mxu0 %v3938_v21  ;;  %v3820_v36 = vmax.f32 %v3547_v24, 0.0 }
 0x393   : > { %v3550_v33 = vpop.f32.mrf.mxu1  ;;  %4274 = vmatmul.mubr.bf16.gmra.mxu0 %v3937_v27  ;;  %v11272_v27 = vld [vmem:[%s11471_s7 + $0x18] sm:$0xff]  }
 0x394   : > { %v3551_v35 = vadd.f32 %v3550_v33, %v12377_v54  ;;  %v3821_v38 = vmax.f32 %v3549_v30, 0.0  ;;  %5480 = vmatpush2.bf16.msra.mxu0 %v10819_v10 }
 0x395   : > { %v3554_v37 = vpop.f32.mrf.mxu1  ;;  %9972 = vmatmul.mubr.msk.bf16.vlgmr.msra.gmra.mxu1 %vm1108_vm0, %v11269_v40 }
 0x396   : > { %v3822_v39 = vmax.f32 %v3551_v35, 0.0  ;;  %4614 = vmatprep.mubr.bf16.mxu1 %v11310_v2  ;;  %v3939_v47 = vpack.c.bf16 %v3821_v38, %v3819_v44  ;;  %v3555_v52 = vadd.f32 %v3554_v37, %v12380_v56 }
 0x397   : > { %v3556_v43 = vpop.f32.mrf.mxu1 }
 0x398   : > { %v3940_v45 = vpack.c.bf16 %v3822_v39, %v3820_v36  ;;  %v3557_v23 = vadd.f32 %v3556_v43, %v12377_v54  ;;  %v3823_v49 = vmax.f32 %v3555_v52, 0.0 }
 0x399   : > { %v3558_v46 = vpop.f32.mrf.mxu1 }
 0x39a   : > { %v3559_v48 = vadd.f32 %v3558_v46, %v12380_v56  ;;  %4283 = vmatprep.mubr.bf16.mxu0 %v3940_v45  ;;  %v3824_v55 = vmax.f32 %v3557_v23, 0.0  ;;  %v11273_v46 = vld [vmem:[%s11471_s7 + $0x20] sm:$0xff]   ;;  %v10822_v23 = vld [vmem:[%s15170_s15 + $0x70] ss:$8 sps:$4 sm:$0xff]  }
 0x39b   : > { %v3560_v50 = vpop.f32.mrf.mxu1  ;;  %4284 = vmatmul.mubr.bf16.gmra.mxu0 %v3939_v47 }
 0x39c   : > { %v3561_v29 = vadd.f32 %v3560_v50, %v12377_v54  ;;  %v3825_v57 = vmax.f32 %v3559_v48, 0.0  ;;  %v10824_v48 = vld [vmem:[%s15170_s15 + $0x74] ss:$8 sps:$4 sm:$0xff]  }
 0x39d   : > { %v3564_v53 = vpop.f32.mrf.mxu1  ;;  %9973 = vmatmul.mubr.msk.bf16.gmra.mxu1 %vm1108_vm0, %v11270_v59  ;;  %6200 = vmatprep.subr.bf16.mxu1 %v10824_v48 }
 0x39e   : > { %v3826_v58 = vmax.f32 %v3561_v29, 0.0  ;;  %4624 = vmatprep.mubr.bf16.mxu1 %v11310_v2  ;;  %v3941_v0 = vpack.c.bf16 %v3825_v57, %v3823_v49  ;;  %v3565_v51 = vadd.f32 %v3564_v53, %v12380_v56  ;;  %v10827_v29 = vld [vmem:[%s15168_s13 + $0xa4] ss:$8 sps:$4 sm:$0xff]   ;;  %6201 = vmatpush1.bf16.msra.mxu1 %v10822_v23 }
 0x39f   : > { %v3566_v60 = vpop.f32.mrf.mxu1  ;;  %5481 = vmatprep.subr.bf16.mxu0 %v10827_v29 }
 0x3a0   : > { %v3942_v61 = vpack.c.bf16 %v3826_v58, %v3824_v55  ;;  %v3567_v62 = vadd.f32 %v3566_v60, %v12377_v54  ;;  %v3827_v13 = vmax.f32 %v3565_v51, 0.0  ;;  %v10825_v55 = vld [vmem:[%s15168_s13 + $0xa0] ss:$8 sps:$4 sm:$0xff]  }
 0x3a1   : > { %v3568_v63 = vpop.f32.mrf.mxu1  ;;  %5482 = vmatpush2.bf16.msra.mxu0 %v10825_v55  ;;  %v10836_v55 = vld [vmem:[%s15170_s15 + $0x54] ss:$8 sps:$4 sm:$0xff]  }
 0x3a2   : > { %v3569_v1 = vadd.f32 %v3568_v63, %v12380_v56  ;;  %4293 = vmatprep.mubr.bf16.mxu0 %v3942_v61  ;;  %v3828_v5 = vmax.f32 %v3567_v62, 0.0 }
 0x3a3   : > { %v3570_v3 = vpop.f32.mrf.mxu1  ;;  %4294 = vmatmul.mubr.bf16.gmra.mxu0 %v3941_v0 }
 0x3a4   : > { %v3571_v4 = vadd.f32 %v3570_v3, %v12377_v54  ;;  %v3829_v7 = vmax.f32 %v3569_v1, 0.0  ;;  %v11274_v3 = vld [vmem:[%s11471_s7 + $0x28] sm:$0xff]  }
 0x3a5   : > { %v3574_v6 = vpop.f32.mrf.mxu1  ;;  %9974 = vmatmul.mubr.msk.bf16.gmra.mxu1 %vm1108_vm0, %v11271_v9 }
 0x3a6   : > { %v3830_v8 = vmax.f32 %v3571_v4, 0.0  ;;  %4634 = vmatprep.mubr.bf16.mxu1 %v11310_v2  ;;  %v3943_v31 = vpack.c.bf16 %v3829_v7, %v3827_v13  ;;  %v3575_v18 = vadd.f32 %v3574_v6, %v12380_v56 }
 0x3a7   : > { %v3576_v12 = vpop.f32.mrf.mxu1 }
 0x3a8   : > { %v3944_v32 = vpack.c.bf16 %v3830_v8, %v3828_v5  ;;  %v3577_v15 = vadd.f32 %v3576_v12, %v12377_v54  ;;  %v3831_v33 = vmax.f32 %v3575_v18, 0.0  ;;  %v10830_v18 = vld [vmem:[%s15170_s15 + $0x64] ss:$8 sps:$4 sm:$0xff]  }
 0x3a9   : > { %v3578_v14 = vpop.f32.mrf.mxu1  ;;  %6202 = vmatprep.subr.bf16.mxu1 %v10830_v18 }
 0x3aa   : > { %v3579_v16 = vadd.f32 %v3578_v14, %v12380_v56  ;;  %4303 = vmatprep.mubr.bf16.mxu0 %v3944_v32  ;;  %v3832_v21 = vmax.f32 %v3577_v15, 0.0  ;;  %v11275_v15 = vld [vmem:[%s11471_s7 + $0x30] sm:$0xff]  }
 0x3ab   : > { %v3580_v17 = vpop.f32.mrf.mxu1  ;;  %4304 = vmatmul.mubr.bf16.gmra.mxu0 %v3943_v31 }
 0x3ac   : > { %v3581_v19 = vadd.f32 %v3580_v17, %v12377_v54  ;;  %v3833_v24 = vmax.f32 %v3579_v16, 0.0  ;;  %v10828_v17 = vld [vmem:[%s15170_s15 + $0x60] ss:$8 sps:$4 sm:$0xff]  }
 0x3ad   : > { %v3584_v20 = vpop.f32.mrf.mxu1  ;;  %9975 = vmatmul.mubr.msk.bf16.gmra.mxu1 %vm1108_vm0, %v11272_v27 }
 0x3ae   : > { %v3834_v26 = vmax.f32 %v3581_v19, 0.0  ;;  %4644 = vmatprep.mubr.bf16.mxu1 %v11310_v2  ;;  %v3945_v36 = vpack.c.bf16 %v3833_v24, %v3831_v33  ;;  %v3585_v40 = vadd.f32 %v3584_v20, %v12380_v56  ;;  %6203 = vmatpush1.bf16.msra.mxu1 %v10828_v17 }
 0x3af   : > { %v3586_v30 = vpop.f32.mrf.mxu1  ;;  %6204 = vmatprep.subr.bf16.mxu1 %v10836_v55 }
 0x3b0   : > { %v3946_v34 = vpack.c.bf16 %v3834_v26, %v3832_v21  ;;  %v3587_v37 = vadd.f32 %v3586_v30, %v12377_v54  ;;  %v3835_v50 = vmax.f32 %v3585_v40, 0.0  ;;  %v10833_v21 = vld [vmem:[%s15168_s13 + $0x94] ss:$8 sps:$4 sm:$0xff]   ;;  %v10831_v26 = vld [vmem:[%s15168_s13 + $0x90] ss:$8 sps:$4 sm:$0xff]  }
 0x3b1   : > { %v3588_v35 = vpop.f32.mrf.mxu1  ;;  %5483 = vmatprep.subr.bf16.mxu0 %v10833_v21 }
 0x3b2   : > { %v3589_v38 = vadd.f32 %v3588_v35, %v12380_v56  ;;  %4313 = vmatprep.mubr.bf16.mxu0 %v3946_v34  ;;  %v3836_v43 = vmax.f32 %v3587_v37, 0.0  ;;  %5484 = vmatpush2.bf16.msra.mxu0 %v10831_v26 }
 0x3b3   : > { %v3590_v39 = vpop.f32.mrf.mxu1  ;;  %4314 = vmatmul.mubr.bf16.gmra.mxu0 %v3945_v36 }
 0x3b4   : > { %v3591_v41 = vadd.f32 %v3590_v39, %v12377_v54  ;;  %v3837_v44 = vmax.f32 %v3589_v38, 0.0 }
 0x3b5   : > { %v3594_v42 = vpop.f32.mrf.mxu1  ;;  %9976 = vmatmul.mubr.msk.bf16.gmra.mxu1 %vm1108_vm0, %v11273_v46 }
 0x3b6   : > { %v3838_v45 = vmax.f32 %v3591_v41, 0.0  ;;  %4654 = vmatprep.mubr.bf16.mxu1 %v11310_v2  ;;  %v3947_v57 = vpack.c.bf16 %v3837_v44, %v3835_v50  ;;  %v3595_v49 = vadd.f32 %v3594_v42, %v12380_v56  ;;  %v11276_v41 = vld [vmem:[%s11471_s7 + $0x38] sm:$0xff]  }
 0x3b7   : > { %v3596_v47 = vpop.f32.mrf.mxu1 }
 0x3b8   : > { %v3948_v52 = vpack.c.bf16 %v3838_v45, %v3836_v43  ;;  %v3597_v58 = vadd.f32 %v3596_v47, %v12377_v54  ;;  %v3839_v4 = vmax.f32 %v3595_v49, 0.0  ;;  %v11277_v49 = vld [vmem:[%s11471_s7 + $0x40] sm:$0xff]  }
 0x3b9   : > { %v3598_v53 = vpop.f32.mrf.mxu1 }
 0x3ba   : > { %v3599_v59 = vadd.f32 %v3598_v53, %v12380_v56  ;;  %4323 = vmatprep.mubr.bf16.mxu0 %v3948_v52  ;;  %v3840_v63 = vmax.f32 %v3597_v58, 0.0  ;;  %v10834_v53 = vld [vmem:[%s15170_s15 + $0x50] ss:$8 sps:$4 sm:$0xff]  }
 0x3bb   : > { %v3600_v60 = vpop.f32.mrf.mxu1  ;;  %4324 = vmatmul.mubr.bf16.gmra.mxu0 %v3947_v57  ;;  %v10837_v57 = vld [vmem:[%s15168_s13 + $0x80] ss:$8 sps:$4 sm:$0xff]   ;;  %6205 = vmatpush1.bf16.msra.mxu1 %v10834_v53 }
 0x3bc   : > { %v3601_v61 = vadd.f32 %v3600_v60, %v12377_v54  ;;  %v3841_v0 = vmax.f32 %v3599_v59, 0.0 }
 0x3bd   : > { %v3604_v62 = vpop.f32.mrf.mxu1  ;;  %9977 = vmatmul.mubr.msk.bf16.gmra.mxu1 %vm1108_vm0, %v11274_v3 }
 0x3be   : > { %v3842_v1 = vmax.f32 %v3601_v61, 0.0  ;;  %4664 = vmatprep.mubr.bf16.mxu1 %v11310_v2  ;;  %v3949_v7 = vpack.c.bf16 %v3841_v0, %v3839_v4  ;;  %v3605_v11 = vadd.f32 %v3604_v62, %v12380_v56  ;;  %v10839_v61 = vld [vmem:[%s15168_s13 + $0x84] ss:$8 sps:$4 sm:$0xff]  }
 0x3bf   : > { %v3606_v51 = vpop.f32.mrf.mxu1  ;;  %5485 = vmatprep.subr.bf16.mxu0 %v10839_v61 }
 0x3c0   : > { %v3950_v5 = vpack.c.bf16 %v3842_v1, %v3840_v63  ;;  %v3607_v8 = vadd.f32 %v3606_v51, %v12377_v54  ;;  %v3843_v19 = vmax.f32 %v3605_v11, 0.0  ;;  %5486 = vmatpush2.bf16.msra.mxu0 %v10837_v57 }
 0x3c1   : > { %v3608_v6 = vpop.f32.mrf.mxu1 }
 0x3c2   : > { %v3609_v9 = vadd.f32 %v3608_v6, %v12380_v56  ;;  %4333 = vmatprep.mubr.bf16.mxu0 %v3950_v5  ;;  %v3844_v32 = vmax.f32 %v3607_v8, 0.0 }
 0x3c3   : > { %v3610_v10 = vpop.f32.mrf.mxu1  ;;  %4334 = vmatmul.mubr.bf16.gmra.mxu0 %v3949_v7 }
 0x3c4   : > { %v3611_v12 = vadd.f32 %v3610_v10, %v12377_v54  ;;  %v3845_v14 = vmax.f32 %v3609_v9, 0.0 }
 0x3c5   : > { %v3614_v13 = vpop.f32.mrf.mxu1  ;;  %9978 = vmatmul.mubr.msk.bf16.gmra.mxu1 %vm1108_vm0, %v11275_v15 }
 0x3c6   : > { %v3846_v31 = vmax.f32 %v3611_v12, 0.0  ;;  %4674 = vmatprep.mubr.bf16.mxu1 %v11310_v2  ;;  %v3951_v27 = vpack.c.bf16 %v3845_v14, %v3843_v19  ;;  %v3615_v35 = vadd.f32 %v3614_v13, %v12380_v56  ;;  %v11278_v12 = vld [vmem:[%s11471_s7 + $0x48] sm:$0xff]  }
 0x3c7   : > { %v3616_v16 = vpop.f32.mrf.mxu1 }
 0x3c8   : > { %v3952_v20 = vpack.c.bf16 %v3846_v31, %v3844_v32  ;;  %v3617_v30 = vadd.f32 %v3616_v16, %v12377_v54  ;;  %v3847_v43 = vmax.f32 %v3615_v35, 0.0 }
 0x3c9   : > { %v3618_v24 = vpop.f32.mrf.mxu1 }
 0x3ca   : > { %v3619_v33 = vadd.f32 %v3618_v24, %v12380_v56  ;;  %4343 = vmatprep.mubr.bf16.mxu0 %v3952_v20  ;;  %v3848_v38 = vmax.f32 %v3617_v30, 0.0  ;;  %v11279_v30 = vld [vmem:[%s11471_s7 + $0x50] sm:$0xff]  }
 0x3cb   : > { %v3620_v34 = vpop.f32.mrf.mxu1  ;;  %4344 = vmatmul.mubr.bf16.gmra.mxu0 %v3951_v27 }
 0x3cc   : > { %v3621_v36 = vadd.f32 %v3620_v34, %v12377_v54  ;;  %v3849_v39 = vmax.f32 %v3619_v33, 0.0 }
 0x3cd   : > { %v3624_v37 = vpop.f32.mrf.mxu1  ;;  %9979 = vmatmul.mubr.msk.bf16.gmra.mxu1 %vm1108_vm0, %v11276_v41 }
 0x3ce   : > { %v3850_v40 = vmax.f32 %v3621_v36, 0.0  ;;  %4684 = vmatprep.mubr.bf16.mxu1 %v11310_v2  ;;  %v3953_v46 = vpack.c.bf16 %v3849_v39, %v3847_v43  ;;  %v3625_v50 = vadd.f32 %v3624_v37, %v12380_v56  ;;  %v10840_v37 = vld [vmem:[%s15170_s15 + $0x40] ss:$8 sps:$4 sm:$0xff]  }
 0x3cf   : > { %v3626_v42 = vpop.f32.mrf.mxu1 }
 0x3d0   : > { %v3954_v44 = vpack.c.bf16 %v3850_v40, %v3848_v38  ;;  %v3627_v47 = vadd.f32 %v3626_v42, %v12377_v54  ;;  %v3851_v63 = vmax.f32 %v3625_v50, 0.0  ;;  %v10842_v38 = vld [vmem:[%s15170_s15 + $0x44] ss:$8 sps:$4 sm:$0xff]  }
 0x3d1   : > { %v3628_v45 = vpop.f32.mrf.mxu1  ;;  %6206 = vmatprep.subr.bf16.mxu1 %v10842_v38  ;;  %v11283_v38 = vld [vmem:[%s11471_s7 + $0x70] sm:$0xff]  }
 0x3d2   : > { %v3629_v23 = vadd.f32 %v3628_v45, %v12380_v56  ;;  %4353 = vmatprep.mubr.bf16.mxu0 %v3954_v44  ;;  %v3852_v58 = vmax.f32 %v3627_v47, 0.0  ;;  %6207 = vmatpush1.bf16.msra.mxu1 %v10840_v37 }
 0x3d3   : > { %v3630_v48 = vpop.f32.mrf.mxu1  ;;  %4354 = vmatmul.mubr.bf16.gmra.mxu0 %v3953_v46 }
 0x3d4   : > { %v3631_v52 = vadd.f32 %v3630_v48, %v12377_v54  ;;  %v3853_v59 = vmax.f32 %v3629_v23, 0.0  ;;  %v11280_v48 = vld [vmem:[%s11471_s7 + $0x58] sm:$0xff]  }
 0x3d5   : > { %v3634_v29 = vpop.f32.mrf.mxu1  ;;  %9980 = vmatmul.mubr.msk.bf16.gmra.mxu1 %vm1108_vm0, %v11277_v49 }
 0x3d6   : > { %v3854_v60 = vmax.f32 %v3631_v52, 0.0  ;;  %4694 = vmatprep.mubr.bf16.mxu1 %v11310_v2  ;;  %v3955_v3 = vpack.c.bf16 %v3853_v59, %v3851_v63  ;;  %v3635_v6 = vadd.f32 %v3634_v29, %v12380_v56 }
 0x3d7   : > { %v3636_v62 = vpop.f32.mrf.mxu1 }
 0x3d8   : > { %v3956_v0 = vpack.c.bf16 %v3854_v60, %v3852_v58  ;;  %v3637_v51 = vadd.f32 %v3636_v62, %v12377_v54  ;;  %v3855_v32 = vmax.f32 %v3635_v6, 0.0  ;;  %v10843_v6 = vld [vmem:[%s15170_s15 + $0x30] ss:$8 sps:$4 sm:$0xff]  }
 0x3d9   : > { %v3638_v1 = vpop.f32.mrf.mxu1 }
 0x3da   : > { %v3639_v4 = vadd.f32 %v3638_v1, %v12380_v56  ;;  %4363 = vmatprep.mubr.bf16.mxu0 %v3956_v0  ;;  %v3856_v9 = vmax.f32 %v3637_v51, 0.0  ;;  %v11281_v1 = vld [vmem:[%s11471_s7 + $0x60] sm:$0xff]  }
 0x3db   : > { %v3640_v5 = vpop.f32.mrf.mxu1  ;;  %4364 = vmatmul.mubr.bf16.gmra.mxu0 %v3955_v3 }
 0x3dc   : > { %v3641_v7 = vadd.f32 %v3640_v5, %v12377_v54  ;;  %v3857_v10 = vmax.f32 %v3639_v4, 0.0 }
 0x3dd   : > { %v3644_v8 = vpop.f32.mrf.mxu1  ;;  %9981 = vmatmul.mubr.msk.bf16.gmra.mxu1 %vm1108_vm0, %v11278_v12 }
 0x3de   : > { %v3858_v11 = vmax.f32 %v3641_v7, 0.0  ;;  %4704 = vmatprep.mubr.bf16.mxu1 %v11310_v2  ;;  %v3957_v15 = vpack.c.bf16 %v3857_v10, %v3855_v32  ;;  %v3645_v19 = vadd.f32 %v3644_v8, %v12380_v56  ;;  %v10845_v7 = vld [vmem:[%s15170_s15 + $0x34] ss:$8 sps:$4 sm:$0xff]  }
 0x3df   : > { %v3646_v13 = vpop.f32.mrf.mxu1  ;;  %6208 = vmatprep.subr.bf16.mxu1 %v10845_v7  ;;  %v11285_v7 = vld [vmem:[%s11471_s7 + $0x80] sm:$0xff]  }
 0x3e0   : > { %v3958_v14 = vpack.c.bf16 %v3858_v11, %v3856_v9  ;;  %v3647_v16 = vadd.f32 %v3646_v13, %v12377_v54  ;;  %v3859_v34 = vmax.f32 %v3645_v19, 0.0  ;;  %6209 = vmatpush1.bf16.msra.mxu1 %v10843_v6 }
 0x3e1   : > { %v3648_v31 = vpop.f32.mrf.mxu1 }
 0x3e2   : > { %v3649_v17 = vadd.f32 %v3648_v31, %v12380_v56  ;;  %4373 = vmatprep.mubr.bf16.mxu0 %v3958_v14  ;;  %v3860_v24 = vmax.f32 %v3647_v16, 0.0  ;;  %v11282_v16 = vld [vmem:[%s11471_s7 + $0x68] sm:$0xff]  }
 0x3e3   : > { %v3650_v18 = vpop.f32.mrf.mxu1  ;;  %4374 = vmatmul.mubr.bf16.gmra.mxu0 %v3957_v15 }
 0x3e4   : > { %v3651_v20 = vadd.f32 %v3650_v18, %v12377_v54  ;;  %v3861_v26 = vmax.f32 %v3649_v17, 0.0 }
 0x3e5   : > { %v3654_v21 = vpop.f32.mrf.mxu1  ;;  %9982 = vmatmul.mubr.msk.bf16.gmra.mxu1 %vm1108_vm0, %v11279_v30 }
 0x3e6   : > { %v3862_v27 = vmax.f32 %v3651_v20, 0.0  ;;  %4714 = vmatprep.mubr.bf16.mxu1 %v11310_v2  ;;  %v3959_v39 = vpack.c.bf16 %v3861_v26, %v3859_v34  ;;  %v3655_v43 = vadd.f32 %v3654_v21, %v12380_v56 }
 0x3e7   : > { %v3656_v33 = vpop.f32.mrf.mxu1 }
 0x3e8   : > { %v3960_v35 = vpack.c.bf16 %v3862_v27, %v3860_v24  ;;  %v3657_v40 = vadd.f32 %v3656_v33, %v12377_v54  ;;  %v3863_v52 = vmax.f32 %v3655_v43, 0.0  ;;  %v10846_v43 = vld [vmem:[%s15170_s15 + $0x20] ss:$8 sps:$4 sm:$0xff]  }
 0x3e9   : > { %v3658_v36 = vpop.f32.mrf.mxu1 }
 0x3ea   : > { %v3659_v41 = vadd.f32 %v3658_v36, %v12380_v56  ;;  %4383 = vmatprep.mubr.bf16.mxu0 %v3960_v35  ;;  %v3864_v46 = vmax.f32 %v3657_v40, 0.0 }
 0x3eb   : > { %v3660_v42 = vpop.f32.mrf.mxu1  ;;  %4384 = vmatmul.mubr.bf16.gmra.mxu0 %v3959_v39 }
 0x3ec   : > { %v3661_v44 = vadd.f32 %v3660_v42, %v12377_v54  ;;  %v3865_v47 = vmax.f32 %v3659_v41, 0.0 }
 0x3ed   : > { %v3664_v45 = vpop.f32.mrf.mxu1  ;;  %9983 = vmatmul.mubr.msk.bf16.gmra.mxu1 %vm1108_vm0, %v11280_v48 }
 0x3ee   : > { %v3866_v23 = vmax.f32 %v3661_v44, 0.0  ;;  %4724 = vmatprep.mubr.bf16.mxu1 %v11310_v2  ;;  %v3961_v55 = vpack.c.bf16 %v3865_v47, %v3863_v52  ;;  %v3665_v60 = vadd.f32 %v3664_v45, %v12380_v56  ;;  %v10848_v44 = vld [vmem:[%s15170_s15 + $0x24] ss:$8 sps:$4 sm:$0xff]  }
 0x3ef   : > { %v3666_v50 = vpop.f32.mrf.mxu1  ;;  %6210 = vmatprep.subr.bf16.mxu1 %v10848_v44 }
 0x3f0   : > { %v3962_v29 = vpack.c.bf16 %v3866_v23, %v3864_v46  ;;  %v3667_v57 = vadd.f32 %v3666_v50, %v12377_v54  ;;  %v3867_v51 = vmax.f32 %v3665_v60, 0.0  ;;  %6211 = vmatpush1.bf16.msra.mxu1 %v10846_v43 }
 0x3f1   : > { %v3668_v53 = vpop.f32.mrf.mxu1 }
 0x3f2   : > { %v3669_v58 = vadd.f32 %v3668_v53, %v12380_v56  ;;  %4393 = vmatprep.mubr.bf16.mxu0 %v3962_v29  ;;  %v3868_v62 = vmax.f32 %v3667_v57, 0.0  ;;  %v11284_v57 = vld [vmem:[%s11471_s7 + $0x78] sm:$0xff]  }
 0x3f3   : > { %v3670_v59 = vpop.f32.mrf.mxu1  ;;  %4394 = vmatmul.mubr.bf16.gmra.mxu0 %v3961_v55 }
 0x3f4   : > { %v3671_v49 = vadd.f32 %v3670_v59, %v12377_v54  ;;  %v3869_v63 = vmax.f32 %v3669_v58, 0.0 }
 0x3f5   : > { %v3674_v61 = vpop.f32.mrf.mxu1  ;;  %9984 = vmatmul.mubr.msk.bf16.gmra.mxu1 %vm1108_vm0, %v11281_v1 }
 0x3f6   : > { %v3870_v0 = vmax.f32 %v3671_v49, 0.0  ;;  %4734 = vmatprep.mubr.bf16.mxu1 %v11310_v2  ;;  %v3963_v8 = vpack.c.bf16 %v3869_v63, %v3867_v51  ;;  %v3675_v12 = vadd.f32 %v3674_v61, %v12380_v56 }
 0x3f7   : > { %v3676_v3 = vpop.f32.mrf.mxu1 }
 0x3f8   : > { %v3964_v4 = vpack.c.bf16 %v3870_v0, %v3868_v62  ;;  %v3677_v9 = vadd.f32 %v3676_v3, %v12377_v54  ;;  %v3871_v18 = vmax.f32 %v3675_v12, 0.0  ;;  %v10849_v12 = vld [vmem:[%s15170_s15 + $0x10] ss:$8 sps:$4 sm:$0xff]  }
 0x3f9   : > { %v3678_v5 = vpop.f32.mrf.mxu1 }
 0x3fa   : > { %v3679_v10 = vadd.f32 %v3678_v5, %v12380_v56  ;;  %4403 = vmatprep.mubr.bf16.mxu0 %v3964_v4  ;;  %v3872_v14 = vmax.f32 %v3677_v9, 0.0 }
 0x3fb   : > { %v3680_v11 = vpop.f32.mrf.mxu1  ;;  %4404 = vmatmul.mubr.bf16.gmra.mxu0 %v3963_v8 }
 0x3fc   : > { %v3681_v13 = vadd.f32 %v3680_v11, %v12377_v54  ;;  %v3873_v31 = vmax.f32 %v3679_v10, 0.0 }
 0x3fd   : > { %v3684_v32 = vpop.f32.mrf.mxu1  ;;  %9985 = vmatmul.mubr.msk.bf16.gmra.mxu1 %vm1108_vm0, %v11282_v16 }
 0x3fe   : > { %v3874_v15 = vmax.f32 %v3681_v13, 0.0  ;;  %4744 = vmatprep.mubr.bf16.mxu1 %v11310_v2  ;;  %v3965_v21 = vpack.c.bf16 %v3873_v31, %v3871_v18  ;;  %v3685_v30 = vadd.f32 %v3684_v32, %v12380_v56  ;;  %v10851_v13 = vld [vmem:[%s15170_s15 + $0x14] ss:$8 sps:$4 sm:$0xff]  }
 0x3ff   : > { %v3686_v17 = vpop.f32.mrf.mxu1  ;;  %6212 = vmatprep.subr.bf16.mxu1 %v10851_v13 }
 0x400   : > { %v3966_v19 = vpack.c.bf16 %v3874_v15, %v3872_v14  ;;  %v3687_v24 = vadd.f32 %v3686_v17, %v12377_v54  ;;  %v3875_v40 = vmax.f32 %v3685_v30, 0.0  ;;  %6213 = vmatpush1.bf16.msra.mxu1 %v10849_v12 }
 0x401   : > { %v3688_v20 = vpop.f32.mrf.mxu1 }
 0x402   : > { %v3689_v26 = vadd.f32 %v3688_v20, %v12380_v56  ;;  %4413 = vmatprep.mubr.bf16.mxu0 %v3966_v19  ;;  %v3876_v35 = vmax.f32 %v3687_v24, 0.0  ;;  %v11286_v24 = vld [vmem:[%s11471_s7 + $0x88] sm:$0xff]  }
 0x403   : > { %v3690_v27 = vpop.f32.mrf.mxu1  ;;  %4414 = vmatmul.mubr.bf16.gmra.mxu0 %v3965_v21 }
 0x404   : > { %v3691_v33 = vadd.f32 %v3690_v27, %v12377_v54  ;;  %v3877_v36 = vmax.f32 %v3689_v26, 0.0 }
 0x405   : > { %v3694_v34 = vpop.f32.mrf.mxu1  ;;  %9986 = vmatmul.mubr.msk.bf16.gmra.mxu1 %vm1108_vm0, %v11283_v38 }
 0x406   : > { %v3878_v37 = vmax.f32 %v3691_v33, 0.0  ;;  %4754 = vmatprep.mubr.bf16.mxu1 %v11310_v2  ;;  %v3967_v45 = vpack.c.bf16 %v3877_v36, %v3875_v40  ;;  %v3695_v48 = vadd.f32 %v3694_v34, %v12380_v56 }
 0x407   : > { %v3696_v39 = vpop.f32.mrf.mxu1 }
 0x408   : > { %v3968_v41 = vpack.c.bf16 %v3878_v37, %v3876_v35  ;;  %v3697_v46 = vadd.f32 %v3696_v39, %v12377_v54  ;;  %v3879_v59 = vmax.f32 %v3695_v48, 0.0 }
 0x409   : > { %v3698_v42 = vpop.f32.mrf.mxu1 }
 0x40a   : > { %v3699_v47 = vadd.f32 %v3698_v42, %v12380_v56  ;;  %4423 = vmatprep.mubr.bf16.mxu0 %v3968_v41  ;;  %v3880_v29 = vmax.f32 %v3697_v46, 0.0  ;;  %v11287_v46 = vld [vmem:[%s11471_s7 + $0x90] sm:$0xff]  }
 0x40b   : > { %v3700_v23 = vpop.f32.mrf.mxu1  ;;  %4424 = vmatmul.mubr.bf16.gmra.mxu0 %v3967_v45 }
 0x40c   : > { %v3701_v50 = vadd.f32 %v3700_v23, %v12377_v54  ;;  %v3881_v53 = vmax.f32 %v3699_v47, 0.0 }
 0x40d   : > { %v3704_v52 = vpop.f32.mrf.mxu1  ;;  %9987 = vmatmul.mubr.msk.bf16.gmra.mxu1 %vm1108_vm0, %v11284_v57 }
 0x40e   : > { %v3882_v55 = vmax.f32 %v3701_v50, 0.0  ;;  %4764 = vmatprep.mubr.bf16.mxu1 %v11310_v2  ;;  %v3969_v61 = vpack.c.bf16 %v3881_v53, %v3879_v59  ;;  %v3705_v1 = vadd.f32 %v3704_v52, %v12380_v56  ;;  %v10852_v52 = vld [vmem:[%s15170_s15] ss:$8 sps:$4 sm:$0xff]  }
 0x40f   : > { %v3706_v58 = vpop.f32.mrf.mxu1 }
 0x410   : > { %v3970_v60 = vpack.c.bf16 %v3882_v55, %v3880_v29  ;;  %v3707_v62 = vadd.f32 %v3706_v58, %v12377_v54  ;;  %v3883_v9 = vmax.f32 %v3705_v1, 0.0  ;;  %v10854_v29 = vld [vmem:[%s15170_s15 + $0x4] ss:$8 sps:$4 sm:$0xff]  }
 0x411   : > { %v3708_v49 = vpop.f32.mrf.mxu1  ;;  %6214 = vmatprep.subr.bf16.mxu1 %v10854_v29 }
 0x412   : > { %v3709_v63 = vadd.f32 %v3708_v49, %v12380_v56  ;;  %4433 = vmatprep.mubr.bf16.mxu0 %v3970_v60  ;;  %v3884_v4 = vmax.f32 %v3707_v62, 0.0  ;;  %6215 = vmatpush1.bf16.msra.mxu1 %v10852_v52 }
 0x413   : > { %v3710_v0 = vpop.f32.mrf.mxu1  ;;  %4434 = vmatmul.mubr.bf16.gmra.mxu0 %v3969_v61 }
 0x414   : > { %v3711_v3 = vadd.f32 %v3710_v0, %v12377_v54  ;;  %v3885_v5 = vmax.f32 %v3709_v63, 0.0 }
 0x415   : > { %v3714_v51 = vpop.f32.mrf.mxu1  ;;  %9988 = vmatmul.mubr.msk.bf16.gmra.mxu1 %vm1108_vm0, %v11285_v7 }
 0x416   : > { %v3886_v6 = vmax.f32 %v3711_v3, 0.0  ;;  %4774 = vmatprep.mubr.bf16.mxu1 %v11310_v2  ;;  %v3971_v32 = vpack.c.bf16 %v3885_v5, %v3883_v9  ;;  %v3715_v16 = vadd.f32 %v3714_v51, %v12380_v56  ;;  %v11288_v3 = vld [vmem:[%s11471_s7 + $0x98] sm:$0xff]  }
 0x417   : > { %v3716_v8 = vpop.f32.mrf.mxu1 }
 0x418   : > { %v3972_v10 = vpack.c.bf16 %v3886_v6, %v3884_v4  ;;  %v3717_v14 = vadd.f32 %v3716_v8, %v12377_v54  ;;  %v3887_v27 = vmax.f32 %v3715_v16, 0.0 }
 0x419   : > { %v3718_v11 = vpop.f32.mrf.mxu1 }
 0x41a   : > { %v3719_v31 = vadd.f32 %v3718_v11, %v12380_v56  ;;  %4443 = vmatprep.mubr.bf16.mxu0 %v3972_v10  ;;  %v3888_v19 = vmax.f32 %v3717_v14, 0.0 }
 0x41b   : > { %v3720_v15 = vpop.f32.mrf.mxu1  ;;  %4444 = vmatmul.mubr.bf16.gmra.mxu0 %v3971_v32 }
 0x41c   : > { %v3721_v17 = vadd.f32 %v3720_v15, %v12377_v54  ;;  %v3889_v20 = vmax.f32 %v3719_v31, 0.0 }
 0x41d   : > { %v3724_v18 = vpop.f32.mrf.mxu1  ;;  %9989 = vmatmul.mubr.msk.bf16.gmra.mxu1 %vm1108_vm0, %v11286_v24 }
 0x41e   : > { %v3890_v21 = vmax.f32 %v3721_v17, 0.0  ;;  %4784 = vmatprep.mubr.bf16.mxu1 %v11310_v2  ;;  %v3973_v34 = vpack.c.bf16 %v3889_v20, %v3887_v27  ;;  %v3725_v38 = vadd.f32 %v3724_v18, %v12380_v56 }
 0x41f   : > { %v3726_v26 = vpop.f32.mrf.mxu1 }
 0x420   : > { %v3974_v30 = vpack.c.bf16 %v3890_v21, %v3888_v19  ;;  %v3727_v35 = vadd.f32 %v3726_v26, %v12377_v54  ;;  %v3891_v47 = vmax.f32 %v3725_v38, 0.0  ;;  %v11289_v19 = vld [vmem:[%s11471_s7 + $0xa0] sm:$0xff]  }
 0x421   : > { %v3728_v33 = vpop.f32.mrf.mxu1 }
 0x422   : > { %v3729_v36 = vadd.f32 %v3728_v33, %v12380_v56  ;;  %4453 = vmatprep.mubr.bf16.mxu0 %v3974_v30  ;;  %v3892_v41 = vmax.f32 %v3727_v35, 0.0  ;;  %v10855_v33 = vld [vmem:[%s15170_s15 + $0xf0] ss:$8 sps:$4 sm:$0xff]  }
 0x423   : > { %v3730_v37 = vpop.f32.mrf.mxu1  ;;  %v12698_v40 = vpop.f32.mrf.mxu0  ;;  %4454 = vmatmul.mubr.bf16.gmra.mxu0 %v3973_v34  ;;  %v10857_v34 = vld [vmem:[%s15170_s15 + $0xf4] ss:$8 sps:$4 sm:$0xff]  }
 0x424   : > { %v3731_v39 = vadd.f32 %v3730_v37, %v12377_v54  ;;  %v3893_v42 = vmax.f32 %v3729_v36, 0.0  ;;  %6216 = vmatprep.subr.bf16.mxu1 %v10857_v34 }
 0x425   : > { %v3734_v44 = vpop.f32.mrf.mxu1  ;;  %v12700_v45 = vpop.f32.mrf.mxu0  ;;  %9990 = vmatmul.mubr.msk.bf16.gmra.mxu1 %vm1108_vm0, %v11287_v46 }
 0x426   : > { %v3894_v43 = vmax.f32 %v3731_v39, 0.0  ;;  %4794 = vmatprep.mubr.bf16.mxu1 %v11310_v2  ;;  %v3975_v53 = vpack.c.bf16 %v3893_v42, %v3891_v47  ;;  %v3735_v60 = vadd.f32 %v3734_v44, %v12380_v56  ;;  %6217 = vmatpush2.bf16.msra.mxu1 %v10855_v33 }
 0x427   : > { %v3736_v23 = vpop.f32.mrf.mxu1  ;;  %v12705_v48 = vpop.f32.mrf.mxu0 }
 0x428   : > { %v3976_v50 = vpack.c.bf16 %v3894_v43, %v3892_v41  ;;  %v3737_v58 = vadd.f32 %v3736_v23, %v12377_v54  ;;  %v3895_v5 = vmax.f32 %v3735_v60, 0.0 }
 0x429   : > { %v3738_v55 = vpop.f32.mrf.mxu1  ;;  %v12713_v57 = vpop.f32.mrf.mxu0 }
 0x42a   : > { %4463 = vmatprep.mubr.bf16.mxu0 %v3976_v50  ;;  %v3739_v59 = vadd.f32 %v3738_v55, %v12380_v56  ;;  %v3896_v51 = vmax.f32 %v3737_v58, 0.0  ;;  %v11290_v50 = vld [vmem:[%s11471_s7 + $0xa8] sm:$0xff]  }
 0x42b   : > { %v3740_v49 = vpop.f32.mrf.mxu1  ;;  %v12718_v61 = vpop.f32.mrf.mxu0  ;;  %4464 = vmatmul.mubr.bf16.gmra.mxu0 %v3975_v53 }
 0x42c   : > { %v3741_v62 = vadd.f32 %v3740_v49, %v12377_v54  ;;  %v3897_v63 = vmax.f32 %v3739_v59, 0.0 }
 0x42d   : > { %v3744_v0 = vpop.f32.mrf.mxu1  ;;  %v12721_v1 = vpop.f32.mrf.mxu0  ;;  %9991 = vmatmul.mubr.msk.bf16.gmra.mxu1 %vm1108_vm0, %v11288_v3 }
 0x42e   : > { %v3898_v4 = vmax.f32 %v3741_v62, 0.0  ;;  %4804 = vmatprep.mubr.bf16.mxu1 %v11310_v2  ;;  %v3977_v9 = vpack.c.bf16 %v3897_v63, %v3895_v5  ;;  %v3745_v32 = vadd.f32 %v3744_v0, %v12380_v56 }
 0x42f   : > { %v3746_v6 = vpop.f32.mrf.mxu1  ;;  %v12726_v7 = vpop.f32.mrf.mxu0 }
 0x430   : > { %v3978_v8 = vpack.c.bf16 %v3898_v4, %v3896_v51  ;;  %v3747_v12 = vadd.f32 %v3746_v6, %v12377_v54  ;;  %v3899_v24 = vmax.f32 %v3745_v32, 0.0 }
 0x431   : > { %v3748_v10 = vpop.f32.mrf.mxu1  ;;  %v12728_v11 = vpop.f32.mrf.mxu0 }
 0x432   : > { %v3749_v13 = vadd.f32 %v3748_v10, %v12380_v56  ;;  %4473 = vmatprep.mubr.bf16.mxu0 %v3978_v8  ;;  %v3900_v20 = vmax.f32 %v3747_v12, 0.0  ;;  %v11291_v10 = vld [vmem:[%s11471_s7 + $0xb0] sm:$0xff]  }
 0x433   : > { %v3750_v14 = vpop.f32.mrf.mxu1  ;;  %v12733_v31 = vpop.f32.mrf.mxu0  ;;  %4474 = vmatmul.mubr.bf16.gmra.mxu0 %v3977_v9 }
 0x434   : > { %v3751_v15 = vadd.f32 %v3750_v14, %v12377_v54  ;;  %v3901_v16 = vmax.f32 %v3749_v13, 0.0 }
 0x435   : > { %v3754_v17 = vpop.f32.mrf.mxu1  ;;  %v12736_v18 = vpop.f32.mrf.mxu0  ;;  %9992 = vmatmul.mubr.msk.bf16.gmra.mxu1 %vm1108_vm0, %v11289_v19  ;;  %v10860_v19 = vld [vmem:[%s15170_s15 + $0xe4] ss:$8 sps:$4 sm:$0xff]  }
 0x436   : > { %v3902_v21 = vmax.f32 %v3751_v15, 0.0  ;;  %4814 = vmatprep.mubr.bf16.mxu1 %v11310_v2  ;;  %v3979_v35 = vpack.c.bf16 %v3901_v16, %v3899_v24  ;;  %v3755_v41 = vadd.f32 %v3754_v17, %v12380_v56  ;;  %v10858_v17 = vld [vmem:[%s15170_s15 + $0xe0] ss:$8 sps:$4 sm:$0xff]   ;;  %6218 = vmatprep.subr.bf16.mxu1 %v10860_v19 }
 0x437   : > { %v3756_v26 = vpop.f32.mrf.mxu1  ;;  %v12741_v27 = vpop.f32.mrf.mxu0  ;;  %6219 = vmatpush2.bf16.msra.mxu1 %v10858_v17 }
 0x438   : > { %v3980_v30 = vpack.c.bf16 %v3902_v21, %v3900_v20  ;;  %v3757_v38 = vadd.f32 %v3756_v26, %v12377_v54  ;;  %v3903_v53 = vmax.f32 %v3755_v41, 0.0 }
 0x439   : > { %v3758_v36 = vpop.f32.mrf.mxu1  ;;  %v12749_v37 = vpop.f32.mrf.mxu0 }
 0x43a   : > { %v3759_v39 = vadd.f32 %v3758_v36, %v12380_v56  ;;  %4483 = vmatprep.mubr.bf16.mxu0 %v3980_v30  ;;  %v3904_v52 = vmax.f32 %v3757_v38, 0.0 }
 0x43b   : > { %v3760_v42 = vpop.f32.mrf.mxu1  ;;  %v12754_v43 = vpop.f32.mrf.mxu0  ;;  %4484 = vmatmul.mubr.bf16.gmra.mxu0 %v3979_v35 }
 0x43c   : > { %v3761_v44 = vadd.f32 %v3760_v42, %v12377_v54  ;;  %v3905_v46 = vmax.f32 %v3759_v39, 0.0  ;;  %v11292_v42 = vld [vmem:[%s11471_s7 + $0xb8] sm:$0xff]  }
 0x43d   : > { %v3764_v47 = vpop.f32.mrf.mxu1  ;;  %v12757_v23 = vpop.f32.mrf.mxu0  ;;  %9993 = vmatmul.mubr.msk.bf16.gmra.mxu1 %vm1108_vm0, %v11290_v50 }
 0x43e   : > { %v3906_v29 = vmax.f32 %v3761_v44, 0.0  ;;  %4824 = vmatprep.mubr.bf16.mxu1 %v11310_v2  ;;  %v3981_v60 = vpack.c.bf16 %v3905_v46, %v3903_v53  ;;  %v3765_v3 = vadd.f32 %v3764_v47, %v12380_v56 }
 0x43f   : > { %v3766_v55 = vpop.f32.mrf.mxu1  ;;  %v12762_v58 = vpop.f32.mrf.mxu0 }
 0x440   : > { %v3982_v59 = vpack.c.bf16 %v3906_v29, %v3904_v52  ;;  %v3767_v63 = vadd.f32 %v3766_v55, %v12377_v54  ;;  %v3907_v32 = vmax.f32 %v3765_v3, 0.0 }
 0x441   : > { %v3768_v49 = vpop.f32.mrf.mxu1  ;;  %v12764_v62 = vpop.f32.mrf.mxu0 }
 0x442   : > { %v3769_v0 = vadd.f32 %v3768_v49, %v12380_v56  ;;  %4493 = vmatprep.mubr.bf16.mxu0 %v3982_v59  ;;  %v3908_v12 = vmax.f32 %v3767_v63, 0.0 }
 0x443   : > { %v3770_v51 = vpop.f32.mrf.mxu1  ;;  %v12769_v4 = vpop.f32.mrf.mxu0  ;;  %4494 = vmatmul.mubr.bf16.gmra.mxu0 %v3981_v60 }
 0x444   : > { %v3771_v5 = vadd.f32 %v3770_v51, %v12377_v54  ;;  %v3909_v6 = vmax.f32 %v3769_v0, 0.0 }
 0x445   : > { %v3774_v8 = vpop.f32.mrf.mxu1  ;;  %v12772_v9 = vpop.f32.mrf.mxu0  ;;  %9994 = vmatmul.mubr.msk.bf16.gmra.mxu1 %vm1108_vm0, %v11291_v10  ;;  %v11293_v10 = vld [vmem:[%s11471_s7 + $0xc0] sm:$0xff]  }
 0x446   : > { %v3910_v13 = vmax.f32 %v3771_v5, 0.0  ;;  %4834 = vmatprep.mubr.bf16.mxu1 %v11310_v2  ;;  %v3983_v20 = vpack.c.bf16 %v3909_v6, %v3907_v32  ;;  %v3775_v33 = vadd.f32 %v3774_v8, %v12380_v56 }
 0x447   : > { %v3776_v14 = vpop.f32.mrf.mxu1  ;;  %v12777_v15 = vpop.f32.mrf.mxu0 }
 0x448   : > { %v3984_v16 = vpack.c.bf16 %v3910_v13, %v3908_v12  ;;  %v3777_v26 = vadd.f32 %v3776_v14, %v12377_v54  ;;  %v3911_v47 = vmax.f32 %v3775_v33, 0.0  ;;  %v10861_v14 = vld [vmem:[%s15170_s15 + $0xd0] ss:$8 sps:$4 sm:$0xff]  }
 0x449   : > { %v3778_v21 = vpop.f32.mrf.mxu1  ;;  %v12785_v24 = vpop.f32.mrf.mxu0 }
 0x44a   : > { %v3779_v30 = vadd.f32 %v3778_v21, %v12380_v56  ;;  %4503 = vmatprep.mubr.bf16.mxu0 %v3984_v16  ;;  %v3912_v44 = vmax.f32 %v3777_v26, 0.0  ;;  %v10863_v16 = vld [vmem:[%s15170_s15 + $0xd4] ss:$8 sps:$4 sm:$0xff]  }
 0x44b   : > { %v3780_v34 = vpop.f32.mrf.mxu1  ;;  %v12790_v35 = vpop.f32.mrf.mxu0  ;;  %4504 = vmatmul.mubr.bf16.gmra.mxu0 %v3983_v20  ;;  %6220 = vmatprep.subr.bf16.mxu1 %v10863_v16  ;;  %v11295_v16 = vld [vmem:[%s11471_s7 + $0xd0] sm:$0xff]  }
 0x44c   : > { %v3781_v36 = vadd.f32 %v3780_v34, %v12377_v54  ;;  %v3913_v38 = vmax.f32 %v3779_v30, 0.0  ;;  %6221 = vmatpush2.bf16.msra.mxu1 %v10861_v14 }
 0x44d   : > { %v3784_v39 = vpop.f32.mrf.mxu1  ;;  %v12793_v41 = vpop.f32.mrf.mxu0  ;;  %9995 = vmatmul.mubr.msk.bf16.gmra.mxu1 %vm1108_vm0, %v11292_v42 }
 0x44e   : > { %v3914_v46 = vmax.f32 %v3781_v36, 0.0  ;;  %4844 = vmatprep.mubr.bf16.mxu1 %v11310_v2  ;;  %v3985_v55 = vpack.c.bf16 %v3913_v38, %v3911_v47  ;;  %v3785_v59 = vadd.f32 %v3784_v39, %v12380_v56 }
 0x44f   : > { %v3786_v50 = vpop.f32.mrf.mxu1  ;;  %v12798_v52 = vpop.f32.mrf.mxu0 }
 0x450   : > { %v3787_v29 = vadd.f32 %v3786_v50, %v12377_v54  ;;  %v3986_v53 = vpack.c.bf16 %v3914_v46, %v3912_v44  ;;  %v3915_v5 = vmax.f32 %v3785_v59, 0.0  ;;  %v4923_v54 = vld [vmem:[%s15167_s12] sm:$0x3]  ;;  %v11294_v44 = vld [vmem:[%s11471_s7 + $0xc8] sm:$0xff]  }
 0x451   : > { %v3788_v60 = vpop.f32.mrf.mxu1  ;;  %v12802_v49 = vpop.f32.mrf.mxu0  ;;  %v12818_v32 = vrot.slane %v4923_v54, %v11709_v25  ;;  %v12828_v20 = vrot.slane %v4923_v54, %v11717_v28 }
 0x452   : > { %v3916_v63 = vmax.f32 %v3787_v29, 0.0  ;;  %4513 = vmatprep.mubr.bf16.mxu0 %v3986_v53  ;;  %v3987_v17 = vpack.c.bf16 %v3915_v5, %v3915_v5 }
 0x453   : > { %v3789_v0 = vpop.f32.mrf.mxu1  ;;  %v12804_v3 = vpop.f32.mrf.mxu0  ;;  %4514 = vmatmul.mubr.bf16.gmra.mxu0 %v3985_v55 }
 0x454   : > { %v3988_v51 = vpack.c.bf16 %v3916_v63, %v3916_v63 }
 0x455   : > { %v12806_v6 = vpop.f32.mrf.mxu0  ;;  %v4606_v8 = vpop.f32.mrf.mxu1  ;;  %9996 = vmatmul.mubr.msk.bf16.gmra.mxu1 %vm1108_vm0, %v11293_v10 }
 0x456   : > { %4523 = vmatprep.mubr.bf16.mxu0 %v3988_v51  ;;  %4854 = vmatprep.mubr.bf16.mxu1 %v11310_v2  ;;  %v4607_v19 = vadd.f32 %v4606_v8, %v12698_v40 }
 0x457   : > { %v12814_v56 = vpop.f32.mrf.mxu0  ;;  %v4608_v12 = vpop.f32.mrf.mxu1 }
 0x458   : > { %v4609_v13 = vadd.f32 %v4608_v12, %v12700_v45  ;;  %v4935_v38 = vadd.f32 %v12828_v20, %v4607_v19 }
 0x459   : > { %v12830_v21 = vpop.f32.mrf.mxu0  ;;  %v4610_v45 = vpop.f32.mrf.mxu1 }
 0x45a   : > { %v4611_v26 = vadd.f32 %v4610_v45, %v12705_v48  ;;  %v4936_v34 = vadd.f32 %v12818_v32, %v4609_v13  ;;  %v5061_v55 = vmax.f32 %v4935_v38, 0.0 }
 0x45b   : > { %v12833_v30 = vpop.f32.mrf.mxu0  ;;  %4524 = vmatmul.mubr.bf16.gmra.mxu0 %v3987_v17  ;;  %v4612_v33 = vpop.f32.mrf.mxu1 }
 0x45c   : > { %v4937_v36 = vadd.f32 %v12828_v20, %v4611_v26  ;;  %v4613_v40 = vadd.f32 %v4612_v33, %v12713_v57  ;;  %v5062_v29 = vmax.f32 %v4936_v34, 0.0  ;;  %v10864_v34 = vld [vmem:[%s15170_s15 + $0xc0] ss:$8 sps:$4 sm:$0xff]  }
 0x45d   : > { %v12839_v39 = vpop.f32.mrf.mxu0  ;;  %v4616_v42 = vpop.f32.mrf.mxu1  ;;  %9997 = vmatmul.mubr.msk.bf16.gmra.mxu1 %vm1108_vm0, %v11294_v44 }
 0x45e   : > { %v4938_v48 = vadd.f32 %v12818_v32, %v4613_v40  ;;  %4864 = vmatprep.mubr.bf16.mxu1 %v11310_v2  ;;  %v5063_v46 = vmax.f32 %v4937_v36, 0.0  ;;  %v4617_v59 = vadd.f32 %v4616_v42, %v12718_v61  ;;  %v10866_v36 = vld [vmem:[%s15170_s15 + $0xc4] ss:$8 sps:$4 sm:$0xff]  }
 0x45f   : > { %v12845_v47 = vpop.f32.mrf.mxu0  ;;  %v4618_v50 = vpop.f32.mrf.mxu1  ;;  %6222 = vmatprep.subr.bf16.mxu1 %v10866_v36 }
 0x460   : > { %v5064_v53 = vmax.f32 %v4938_v48, 0.0  ;;  %v4619_v57 = vadd.f32 %v4618_v50, %v12721_v1  ;;  %v5187_v5 = vpack.c.bf16 %v5063_v46, %v5061_v55  ;;  %v4939_v13 = vadd.f32 %v12828_v20, %v4617_v59  ;;  %6223 = vmatpush2.bf16.msra.mxu1 %v10864_v34 }
 0x461   : > { %v12849_v60 = vpop.f32.mrf.mxu0  ;;  %v4620_v63 = vpop.f32.mrf.mxu1 }
 0x462   : > { %v4621_v0 = vadd.f32 %v4620_v63, %v12726_v7  ;;  %v5188_v51 = vpack.c.bf16 %v5064_v53, %v5062_v29  ;;  %v4940_v54 = vadd.f32 %v12818_v32, %v4619_v57  ;;  %v5065_v40 = vmax.f32 %v4939_v13, 0.0 }
 0x463   : > { %v12852_v8 = vpop.f32.mrf.mxu0  ;;  %v4622_v10 = vpop.f32.mrf.mxu1 }
 0x464   : > { %v4941_v12 = vadd.f32 %v12828_v20, %v4621_v0  ;;  %v4623_v1 = vadd.f32 %v4622_v10, %v12728_v11  ;;  %5487 = vmatprep.mubr.bf16.mxu0 %v5188_v51  ;;  %v5066_v26 = vmax.f32 %v4940_v54, 0.0 }
 0x465   : > { %v12858_v61 = vpop.f32.mrf.mxu0  ;;  %v4626_v14 = vpop.f32.mrf.mxu1  ;;  %9998 = vmatmul.mubr.msk.bf16.gmra.mxu1 %vm1108_vm0, %v11295_v16  ;;  %5488 = vmatmul.mubr.bf16.vlgmr.msra.gmra.mxu0 %v5187_v5 }
 0x466   : > { %v4942_v7 = vadd.f32 %v12818_v32, %v4623_v1  ;;  %4874 = vmatprep.mubr.bf16.mxu1 %v11310_v2  ;;  %v5067_v17 = vmax.f32 %v4941_v12, 0.0  ;;  %v4627_v38 = vadd.f32 %v4626_v14, %v12733_v31 }
 0x467   : > { %v12864_v19 = vpop.f32.mrf.mxu0  ;;  %v4628_v45 = vpop.f32.mrf.mxu1 }
 0x468   : > { %v5068_v11 = vmax.f32 %v4942_v7, 0.0  ;;  %v4629_v33 = vadd.f32 %v4628_v45, %v12736_v18  ;;  %v5189_v18 = vpack.c.bf16 %v5067_v17, %v5065_v40  ;;  %v4943_v31 = vadd.f32 %v12828_v20, %v4627_v38  ;;  %v11297_v38 = vld [vmem:[%s11471_s7 + $0xe0] sm:$0xff]  }
 0x469   : > { %v12874_v42 = vpop.f32.mrf.mxu0  ;;  %v4630_v44 = vpop.f32.mrf.mxu1 }
 0x46a   : > { %v4631_v48 = vadd.f32 %v4630_v44, %v12741_v27  ;;  %v5190_v46 = vpack.c.bf16 %v5068_v11, %v5066_v26  ;;  %v4944_v53 = vadd.f32 %v12818_v32, %v4629_v33  ;;  %v11296_v27 = vld [vmem:[%s11471_s7 + $0xd8] sm:$0xff]   ;;  %v5069_v1 = vmax.f32 %v4943_v31, 0.0 }
 0x46b   : > { %v12877_v50 = vpop.f32.mrf.mxu0  ;;  %v4632_v29 = vpop.f32.mrf.mxu1 }
 0x46c   : > { %v4945_v57 = vadd.f32 %v12828_v20, %v4631_v48  ;;  %v4633_v55 = vadd.f32 %v4632_v29, %v12749_v37  ;;  %5497 = vmatprep.mubr.bf16.mxu0 %v5190_v46  ;;  %v5070_v54 = vmax.f32 %v4944_v53, 0.0  ;;  %v10867_v53 = vld [vmem:[%s15170_s15 + $0xb0] ss:$8 sps:$4 sm:$0xff]  }
 0x46d   : > { %v12883_v59 = vpop.f32.mrf.mxu0  ;;  %v4636_v63 = vpop.f32.mrf.mxu1  ;;  %9999 = vmatmul.mubr.msk.bf16.gmra.mxu1 %vm1108_vm0, %v11296_v27  ;;  %5498 = vmatmul.mubr.bf16.gmra.mxu0 %v5189_v18 }
 0x46e   : > { %v4946_v0 = vadd.f32 %v12818_v32, %v4633_v55  ;;  %4884 = vmatprep.mubr.bf16.mxu1 %v11310_v2  ;;  %v5071_v51 = vmax.f32 %v4945_v57, 0.0  ;;  %v4637_v13 = vadd.f32 %v4636_v63, %v12754_v43  ;;  %v10869_v57 = vld [vmem:[%s15170_s15 + $0xb4] ss:$8 sps:$4 sm:$0xff]  }
 0x46f   : > { %v12889_v5 = vpop.f32.mrf.mxu0  ;;  %v4638_v10 = vpop.f32.mrf.mxu1  ;;  %6224 = vmatprep.subr.bf16.mxu1 %v10869_v57 }
 0x470   : > { %v5072_v37 = vmax.f32 %v4946_v0, 0.0  ;;  %v4639_v12 = vadd.f32 %v4638_v10, %v12757_v23  ;;  %v5191_v45 = vpack.c.bf16 %v5071_v51, %v5069_v1  ;;  %v4947_v36 = vadd.f32 %v12828_v20, %v4637_v13  ;;  %6225 = vmatpush2.bf16.msra.mxu1 %v10867_v53 }
 0x471   : > { %v12893_v14 = vpop.f32.mrf.mxu0  ;;  %v4640_v16 = vpop.f32.mrf.mxu1 }
 0x472   : > { %v4641_v7 = vadd.f32 %v4640_v16, %v12762_v58  ;;  %v5192_v17 = vpack.c.bf16 %v5072_v37, %v5070_v54  ;;  %v4948_v33 = vadd.f32 %v12818_v32, %v4639_v12  ;;  %v5073_v55 = vmax.f32 %v4947_v36, 0.0 }
 0x473   : > { %v12896_v26 = vpop.f32.mrf.mxu0  ;;  %v4642_v11 = vpop.f32.mrf.mxu1 }
 0x474   : > { %v4949_v34 = vadd.f32 %v12828_v20, %v4641_v7  ;;  %v4643_v23 = vadd.f32 %v4642_v11, %v12764_v62  ;;  %5507 = vmatprep.mubr.bf16.mxu0 %v5192_v17  ;;  %v5074_v18 = vmax.f32 %v4948_v33, 0.0 }
 0x475   : > { %v12902_v43 = vpop.f32.mrf.mxu0  ;;  %v4646_v40 = vpop.f32.mrf.mxu1  ;;  %10000 = vmatmul.mubr.msk.bf16.gmra.mxu1 %vm1108_vm0, %v11297_v38  ;;  %5508 = vmatmul.mubr.bf16.gmra.mxu0 %v5191_v45 }
 0x476   : > { %v4950_v58 = vadd.f32 %v12818_v32, %v4643_v23  ;;  %4894 = vmatprep.mubr.bf16.mxu1 %v11310_v2  ;;  %v5075_v44 = vmax.f32 %v4949_v34, 0.0  ;;  %v4647_v31 = vadd.f32 %v4646_v40, %v12769_v4 }
 0x477   : > { %v12908_v48 = vpop.f32.mrf.mxu0  ;;  %v4648_v46 = vpop.f32.mrf.mxu1 }
 0x478   : > { %v5076_v62 = vmax.f32 %v4950_v58, 0.0  ;;  %v4649_v29 = vadd.f32 %v4648_v46, %v12772_v9  ;;  %v5193_v9 = vpack.c.bf16 %v5075_v44, %v5073_v55  ;;  %v4951_v4 = vadd.f32 %v12828_v20, %v4647_v31 }
 0x479   : > { %v12918_v63 = vpop.f32.mrf.mxu0  ;;  %v4650_v27 = vpop.f32.mrf.mxu1 }
 0x47a   : > { %v4651_v0 = vadd.f32 %v4650_v27, %v12777_v15  ;;  %v5194_v51 = vpack.c.bf16 %v5076_v62, %v5074_v18  ;;  %v4952_v37 = vadd.f32 %v12818_v32, %v4649_v29  ;;  %v11298_v15 = vld [vmem:[%s11471_s7 + $0xe8] sm:$0xff]   ;;  %v5077_v23 = vmax.f32 %v4951_v4, 0.0  ;;  %v11299_v27 = vld [vmem:[%s11471_s7 + $0xf0] sm:$0xff]  }
 0x47b   : > { %v12921_v10 = vpop.f32.mrf.mxu0  ;;  %v4652_v54 = vpop.f32.mrf.mxu1  ;;  %v10875_v4 = vld [vmem:[%s15170_s15 + $0xa4] ss:$8 sps:$4 sm:$0xff]  }
 0x47c   : > { %v4953_v12 = vadd.f32 %v12828_v20, %v4651_v0  ;;  %v4653_v1 = vadd.f32 %v4652_v54, %v12785_v24  ;;  %5517 = vmatprep.mubr.bf16.mxu0 %v5194_v51  ;;  %v5078_v33 = vmax.f32 %v4952_v37, 0.0  ;;  %6226 = vmatprep.subr.bf16.mxu1 %v10875_v4 }
 0x47d   : > { %v12927_v13 = vpop.f32.mrf.mxu0  ;;  %v4656_v16 = vpop.f32.mrf.mxu1  ;;  %10001 = vmatmul.mubr.msk.bf16.gmra.mxu1 %vm1108_vm0, %v11298_v15  ;;  %5518 = vmatmul.mubr.bf16.gmra.mxu0 %v5193_v9 }
 0x47e   : > { %v4954_v7 = vadd.f32 %v12818_v32, %v4653_v1  ;;  %4904 = vmatprep.mubr.bf16.mxu1 %v11310_v2  ;;  %v5079_v17 = vmax.f32 %v4953_v12, 0.0  ;;  %v4657_v36 = vadd.f32 %v4656_v16, %v12790_v35  ;;  %v10870_v35 = vld [vmem:[%s15172_s17 + $0x70] ss:$8 sps:$4 sm:$0xff]   ;;  %v10873_v1 = vld [vmem:[%s15170_s15 + $0xa0] ss:$8 sps:$4 sm:$0xff]  }
 0x47f   : > { %v12933_v45 = vpop.f32.mrf.mxu0  ;;  %v4658_v11 = vpop.f32.mrf.mxu1  ;;  %6227 = vmatpush2.bf16.msra.mxu1 %v10873_v1 }
 0x480   : > { %v5080_v24 = vmax.f32 %v4954_v7, 0.0  ;;  %v4659_v34 = vadd.f32 %v4658_v11, %v12793_v41  ;;  %v5195_v46 = vpack.c.bf16 %v5079_v17, %v5077_v23  ;;  %v4955_v57 = vadd.f32 %v12828_v20, %v4657_v36 }
 0x481   : > { %v12937_v40 = vpop.f32.mrf.mxu0  ;;  %v4660_v38 = vpop.f32.mrf.mxu1 }
 0x482   : > { %v4661_v58 = vadd.f32 %v4660_v38, %v12798_v52  ;;  %v5196_v44 = vpack.c.bf16 %v5080_v24, %v5078_v33  ;;  %v4956_v29 = vadd.f32 %v12818_v32, %v4659_v34  ;;  %v10872_v52 = vld [vmem:[%s15172_s17 + $0x74] ss:$8 sps:$4 sm:$0xff]   ;;  %v5081_v16 = vmax.f32 %v4955_v57, 0.0 }
 0x483   : > { %v12940_v18 = vpop.f32.mrf.mxu0  ;;  %v4662_v62 = vpop.f32.mrf.mxu1  ;;  %6945 = vmatprep.subr.bf16.mxu0 %v10872_v52 }
 0x484   : > { %v4957_v53 = vadd.f32 %v12828_v20, %v4661_v58  ;;  %v4663_v41 = vadd.f32 %v4662_v62, %v12802_v49  ;;  %5527 = vmatprep.mubr.bf16.mxu0 %v5196_v44  ;;  %6946 = vmatpush1.bf16.msra.mxu0 %v10870_v35  ;;  %v5082_v54 = vmax.f32 %v4956_v29, 0.0 }
 0x485   : > { %v12952_v55 = vpop.f32.mrf.mxu0  ;;  %v4666_v31 = vpop.f32.mrf.mxu1  ;;  %10002 = vmatmul.mubr.msk.bf16.gmra.mxu1 %vm1108_vm0, %v11299_v27  ;;  %5528 = vmatmul.mubr.bf16.gmra.mxu0 %v5195_v46 }
 0x486   : > { %v4958_v49 = vadd.f32 %v12818_v32, %v4663_v41  ;;  %4914 = vmatprep.mubr.bf16.mxu1 %v11310_v2  ;;  %v5083_v0 = vmax.f32 %v4957_v53, 0.0  ;;  %v4667_v2 = vadd.f32 %v4666_v31, %v12804_v3 }
 0x487   : > { %v12958_v51 = vpop.f32.mrf.mxu0  ;;  %v4668_v9 = vpop.f32.mrf.mxu1 }
 0x488   : > { %v5084_v37 = vmax.f32 %v4958_v49, 0.0  ;;  %v4669_v12 = vadd.f32 %v4668_v9, %v12806_v6  ;;  %v5197_v6 = vpack.c.bf16 %v5083_v0, %v5081_v16  ;;  %v4959_v3 = vadd.f32 %v12828_v20, %v4667_v2 }
 0x489   : > { %v12968_v15 = vpop.f32.mrf.mxu0  ;;  %v4670_v7 = vpop.f32.mrf.mxu1 }
 0x48a   : > { %v4671_v17 = vadd.f32 %v4670_v7, %v12814_v56  ;;  %v5198_v11 = vpack.c.bf16 %v5084_v37, %v5082_v54  ;;  %v4960_v34 = vadd.f32 %v12818_v32, %v4669_v12  ;;  %v11300_v56 = vld [vmem:[%s11471_s7 + $0xf8] ss:$0 sps:$4 sm:$0xff]   ;;  %v5085_v35 = vmax.f32 %v4959_v3, 0.0  ;;  %s14564_s7 = scalar_lea.vmem %s15179_s24, %s9763_s8 }
 0x48b   : > { %v12971_v33 = vpop.f32.mrf.mxu0  ;;  %v4672_v24 = vpop.f32.mrf.mxu1 }
 0x48c   : > { %v4961_v23 = vadd.f32 %v12828_v20, %v4671_v17  ;;  %v4673_v36 = vadd.f32 %v4672_v24, %v12830_v21  ;;  %5537 = vmatprep.mubr.bf16.mxu0 %v5198_v11  ;;  %v5086_v53 = vmax.f32 %v4960_v34, 0.0  ;;  %v10879_v34 = vld [vmem:[%s15170_s15 + $0x90] ss:$8 sps:$4 sm:$0xff]  }
 0x48d   : > { %v12977_v38 = vpop.f32.mrf.mxu0  ;;  %v4676_v58 = vpop.f32.mrf.mxu1  ;;  %10003 = vmatmul.mubr.msk.bf16.gmra.mxu1 %vm1108_vm0, %v11300_v56  ;;  %5538 = vmatmul.mubr.bf16.gmra.mxu0 %v5197_v6 }
 0x48e   : > { %v4962_v44 = vadd.f32 %v12818_v32, %v4673_v36  ;;  %v5087_v46 = vmax.f32 %v4961_v23, 0.0  ;;  %v4677_v52 = vadd.f32 %v4676_v58, %v12833_v30  ;;  %v10876_v30 = vld [vmem:[%s15172_s17 + $0x60] ss:$8 sps:$4 sm:$0xff]   ;;  %v10881_v23 = vld [vmem:[%s15170_s15 + $0x94] ss:$8 sps:$4 sm:$0xff]  }
 0x48f   : > { %v12982_v62 = vpop.f32.mrf.mxu0  ;;  %v4678_v29 = vpop.f32.mrf.mxu1  ;;  %6228 = vmatprep.subr.bf16.mxu1 %v10881_v23 }
 0x490   : > { %v5088_v41 = vmax.f32 %v4962_v44, 0.0  ;;  %v4679_v21 = vadd.f32 %v4678_v29, %v12839_v39  ;;  %v5199_v0 = vpack.c.bf16 %v5087_v46, %v5085_v35  ;;  %v10878_v39 = vld [vmem:[%s15172_s17 + $0x64] ss:$8 sps:$4 sm:$0xff]   ;;  %6229 = vmatpush2.bf16.msra.mxu1 %v10879_v34 }
 0x491   : > { %v12986_v57 = vpop.f32.mrf.mxu0  ;;  %v4680_v31 = vpop.f32.mrf.mxu1  ;;  %6947 = vmatprep.subr.bf16.mxu0 %v10878_v39 }
 0x492   : > { %v4681_v27 = vadd.f32 %v4680_v31, %v12845_v47  ;;  %v5200_v49 = vpack.c.bf16 %v5088_v41, %v5086_v53  ;;  %v4964_v37 = vadd.f32 %v12818_v32, %v4679_v21  ;;  %v4963_v47 = vadd.f32 %v12828_v20, %v4677_v52  ;;  %6948 = vmatpush1.bf16.msra.mxu0 %v10876_v30 }
 0x493   : > { %v12989_v9 = vpop.f32.mrf.mxu0  ;;  %v4682_v54 = vpop.f32.mrf.mxu1 }
 0x494   : > { %v4965_v12 = vadd.f32 %v12828_v20, %v4681_v27  ;;  %v4683_v1 = vadd.f32 %v4682_v54, %v12849_v60  ;;  %5547 = vmatprep.mubr.bf16.mxu0 %v5200_v49  ;;  %v5090_v11 = vmax.f32 %v4964_v37, 0.0  ;;  %v5089_v36 = vmax.f32 %v4963_v47, 0.0 }
 0x495   : > { %v13001_v4 = vpop.f32.mrf.mxu0  ;;  %v4686_v16 = vpop.f32.mrf.mxu1  ;;  %5548 = vmatmul.mubr.bf16.gmra.mxu0 %v5199_v0 }
 0x496   : > { %v4966_v2 = vadd.f32 %v12818_v32, %v4683_v1  ;;  %v5091_v7 = vmax.f32 %v4965_v12, 0.0  ;;  %v4687_v3 = vadd.f32 %v4686_v16, %v12852_v8 }
 0x497   : > { %v13004_v60 = vpop.f32.mrf.mxu0  ;;  %v4688_v17 = vpop.f32.mrf.mxu1 }
 0x498   : > { %v5092_v6 = vmax.f32 %v4966_v2, 0.0  ;;  %v4689_v24 = vadd.f32 %v4688_v17, %v12858_v61  ;;  %v5201_v29 = vpack.c.bf16 %v5091_v7, %v5089_v36  ;;  %v4967_v8 = vadd.f32 %v12828_v20, %v4687_v3 }
 0x499   : > { %v13014_v58 = vpop.f32.mrf.mxu0  ;;  %v4690_v56 = vpop.f32.mrf.mxu1 }
 0x49a   : > { %v4691_v44 = vadd.f32 %v4690_v56, %v12864_v19  ;;  %v5202_v46 = vpack.c.bf16 %v5092_v6, %v5090_v11  ;;  %v4968_v41 = vadd.f32 %v12818_v32, %v4689_v24  ;;  %v5093_v1 = vmax.f32 %v4967_v8, 0.0 }
 0x49b   : > { %v13017_v61 = vpop.f32.mrf.mxu0  ;;  %v4692_v53 = vpop.f32.mrf.mxu1 }
 0x49c   : > { %v4969_v21 = vadd.f32 %v12828_v20, %v4691_v44  ;;  %v4693_v35 = vadd.f32 %v4692_v53, %v12874_v42  ;;  %5557 = vmatprep.mubr.bf16.mxu0 %v5202_v46  ;;  %v5094_v54 = vmax.f32 %v4968_v41, 0.0  ;;  %v10885_v53 = vld [vmem:[%s15170_s15 + $0x80] ss:$8 sps:$4 sm:$0xff]   ;;  %v10887_v41 = vld [vmem:[%s15170_s15 + $0x84] ss:$8 sps:$4 sm:$0xff]  }
 0x49d   : > { %v13023_v52 = vpop.f32.mrf.mxu0  ;;  %v4696_v31 = vpop.f32.mrf.mxu1  ;;  %5558 = vmatmul.mubr.bf16.gmra.mxu0 %v5201_v29  ;;  %6230 = vmatprep.subr.bf16.mxu1 %v10887_v41 }
 0x49e   : > { %v4970_v19 = vadd.f32 %v12818_v32, %v4693_v35  ;;  %v5095_v27 = vmax.f32 %v4969_v21, 0.0  ;;  %v4697_v42 = vadd.f32 %v4696_v31, %v12877_v50  ;;  %v10882_v50 = vld [vmem:[%s15172_s17 + $0x50] ss:$8 sps:$4 sm:$0xff]   ;;  %6231 = vmatpush2.bf16.msra.mxu1 %v10885_v53 }
 0x49f   : > { %v13026_v49 = vpop.f32.mrf.mxu0  ;;  %v4698_v0 = vpop.f32.mrf.mxu1 }
 0x4a0   : > { %v5096_v37 = vmax.f32 %v4970_v19, 0.0  ;;  %v4699_v12 = vadd.f32 %v4698_v0, %v12883_v59  ;;  %v5203_v2 = vpack.c.bf16 %v5095_v27, %v5093_v1  ;;  %v10884_v59 = vld [vmem:[%s15172_s17 + $0x54] ss:$8 sps:$4 sm:$0xff]  }
 0x4a1   : > { %v13030_v30 = vpop.f32.mrf.mxu0  ;;  %v4700_v39 = vpop.f32.mrf.mxu1  ;;  %6949 = vmatprep.subr.bf16.mxu0 %v10884_v59 }
 0x4a2   : > { %v4701_v47 = vadd.f32 %v4700_v39, %v12889_v5  ;;  %v5204_v16 = vpack.c.bf16 %v5096_v37, %v5094_v54  ;;  %v4972_v11 = vadd.f32 %v12818_v32, %v4699_v12  ;;  %v4971_v5 = vadd.f32 %v12828_v20, %v4697_v42  ;;  %6950 = vmatpush1.bf16.msra.mxu0 %v10882_v50 }
 0x4a3   : > { %v13033_v7 = vpop.f32.mrf.mxu0  ;;  %v4702_v17 = vpop.f32.mrf.mxu1 }
 0x4a4   : > { %v4973_v6 = vadd.f32 %v12828_v20, %v4701_v47  ;;  %v4703_v24 = vadd.f32 %v4702_v17, %v12893_v14  ;;  %5567 = vmatprep.mubr.bf16.mxu0 %v5204_v16  ;;  %v5098_v44 = vmax.f32 %v4972_v11, 0.0  ;;  %v5097_v21 = vmax.f32 %v4971_v5, 0.0 }
 0x4a5   : > { %v13045_v34 = vpop.f32.mrf.mxu0  ;;  %v4706_v23 = vpop.f32.mrf.mxu1  ;;  %5568 = vmatmul.mubr.bf16.gmra.mxu0 %v5203_v2 }
 0x4a6   : > { %v4974_v36 = vadd.f32 %v12818_v32, %v4703_v24  ;;  %v5099_v3 = vmax.f32 %v4973_v6, 0.0  ;;  %v4707_v35 = vadd.f32 %v4706_v23, %v12896_v26 }
 0x4a7   : > { %v13048_v14 = vpop.f32.mrf.mxu0  ;;  %v4708_v56 = vpop.f32.mrf.mxu1 }
 0x4a8   : > { %v5100_v46 = vmax.f32 %v4974_v36, 0.0  ;;  %v4709_v29 = vadd.f32 %v4708_v56, %v12902_v43  ;;  %v5205_v0 = vpack.c.bf16 %v5099_v3, %v5097_v21  ;;  %v4975_v26 = vadd.f32 %v12828_v20, %v4707_v35 }
 0x4a9   : > { %v13058_v8 = vpop.f32.mrf.mxu0  ;;  %v4710_v31 = vpop.f32.mrf.mxu1 }
 0x4aa   : > { %v4711_v19 = vadd.f32 %v4710_v31, %v12908_v48  ;;  %v5206_v27 = vpack.c.bf16 %v5100_v46, %v5098_v44  ;;  %v4976_v37 = vadd.f32 %v12818_v32, %v4709_v29  ;;  %v5101_v24 = vmax.f32 %v4975_v26, 0.0 }
 0x4ab   : > { %v13061_v43 = vpop.f32.mrf.mxu0  ;;  %v4712_v54 = vpop.f32.mrf.mxu1 }
 0x4ac   : > { %v4977_v12 = vadd.f32 %v12828_v20, %v4711_v19  ;;  %v4713_v1 = vadd.f32 %v4712_v54, %v12918_v63  ;;  %5577 = vmatprep.mubr.bf16.mxu0 %v5206_v27  ;;  %v5102_v17 = vmax.f32 %v4976_v37, 0.0 }
 0x4ad   : > { %v13067_v42 = vpop.f32.mrf.mxu0  ;;  %v4716_v39 = vpop.f32.mrf.mxu1  ;;  %5578 = vmatmul.mubr.bf16.gmra.mxu0 %v5205_v0 }
 0x4ae   : > { %v4978_v48 = vadd.f32 %v12818_v32, %v4713_v1  ;;  %v5103_v47 = vmax.f32 %v4977_v12, 0.0  ;;  %v4717_v63 = vadd.f32 %v4716_v39, %v12921_v10  ;;  %v10888_v10 = vld [vmem:[%s15172_s17 + $0x40] ss:$8 sps:$4 sm:$0xff]  }
 0x4af   : > { %v13070_v16 = vpop.f32.mrf.mxu0  ;;  %v4718_v2 = vpop.f32.mrf.mxu1 }
 0x4b0   : > { %v5104_v11 = vmax.f32 %v4978_v48, 0.0  ;;  %v4719_v6 = vadd.f32 %v4718_v2, %v12927_v13  ;;  %v5207_v36 = vpack.c.bf16 %v5103_v47, %v5101_v24  ;;  %v10890_v13 = vld [vmem:[%s15172_s17 + $0x44] ss:$8 sps:$4 sm:$0xff]  }
 0x4b1   : > { %v13074_v50 = vpop.f32.mrf.mxu0  ;;  %v4720_v59 = vpop.f32.mrf.mxu1  ;;  %6951 = vmatprep.subr.bf16.mxu0 %v10890_v13 }
 0x4b2   : > { %v4721_v5 = vadd.f32 %v4720_v59, %v12933_v45  ;;  %v5208_v23 = vpack.c.bf16 %v5104_v11, %v5102_v17  ;;  %v4980_v44 = vadd.f32 %v12818_v32, %v4719_v6  ;;  %v4979_v45 = vadd.f32 %v12828_v20, %v4717_v63  ;;  %6952 = vmatpush1.bf16.msra.mxu0 %v10888_v10 }
 0x4b3   : > { %v13077_v3 = vpop.f32.mrf.mxu0  ;;  %v4722_v56 = vpop.f32.mrf.mxu1 }
 0x4b4   : > { %v4981_v46 = vadd.f32 %v12828_v20, %v4721_v5  ;;  %v4723_v29 = vadd.f32 %v4722_v56, %v12937_v40  ;;  %5587 = vmatprep.mubr.bf16.mxu0 %v5208_v23  ;;  %v5106_v19 = vmax.f32 %v4980_v44, 0.0  ;;  %v5105_v54 = vmax.f32 %v4979_v45, 0.0 }
 0x4b5   : > { %v13089_v53 = vpop.f32.mrf.mxu0  ;;  %v4726_v41 = vpop.f32.mrf.mxu1  ;;  %5588 = vmatmul.mubr.bf16.gmra.mxu0 %v5207_v36 }
 0x4b6   : > { %v4982_v21 = vadd.f32 %v12818_v32, %v4723_v29  ;;  %v5107_v35 = vmax.f32 %v4981_v46, 0.0  ;;  %v4727_v37 = vadd.f32 %v4726_v41, %v12940_v18 }
 0x4b7   : > { %v13092_v40 = vpop.f32.mrf.mxu0  ;;  %v4728_v31 = vpop.f32.mrf.mxu1 }
 0x4b8   : > { %v5108_v27 = vmax.f32 %v4982_v21, 0.0  ;;  %v4729_v0 = vadd.f32 %v4728_v31, %v12952_v55  ;;  %v5209_v48 = vpack.c.bf16 %v5107_v35, %v5105_v54  ;;  %v4983_v55 = vadd.f32 %v12828_v20, %v4727_v37 }
 0x4b9   : > { %v13096_v12 = vpop.f32.mrf.mxu0  ;;  %v4730_v1 = vpop.f32.mrf.mxu1 }
 0x4ba   : > { %v4731_v26 = vadd.f32 %v4730_v1, %v12958_v51  ;;  %v5210_v39 = vpack.c.bf16 %v5108_v27, %v5106_v19  ;;  %v4984_v17 = vadd.f32 %v12818_v32, %v4729_v0  ;;  %v5109_v44 = vmax.f32 %v4983_v55, 0.0 }
 0x4bb   : > { %v13099_v47 = vpop.f32.mrf.mxu0  ;;  %v4732_v2 = vpop.f32.mrf.mxu1 }
 0x4bc   : > { %v4985_v11 = vadd.f32 %v12828_v20, %v4731_v26  ;;  %v4733_v6 = vadd.f32 %v4732_v2, %v12968_v15  ;;  %5597 = vmatprep.mubr.bf16.mxu0 %v5210_v39  ;;  %v5110_v23 = vmax.f32 %v4984_v17, 0.0 }
 0x4bd   : > { %v13105_v18 = vpop.f32.mrf.mxu0  ;;  %v4736_v24 = vpop.f32.mrf.mxu1  ;;  %5598 = vmatmul.mubr.bf16.gmra.mxu0 %v5209_v48 }
 0x4be   : > { %v4986_v51 = vadd.f32 %v12818_v32, %v4733_v6  ;;  %v5111_v63 = vmax.f32 %v4985_v11, 0.0  ;;  %v4737_v15 = vadd.f32 %v4736_v24, %v12971_v33  ;;  %v10891_v33 = vld [vmem:[%s15172_s17 + $0x30] ss:$8 sps:$4 sm:$0xff]  }
 0x4bf   : > { %v13108_v59 = vpop.f32.mrf.mxu0  ;;  %v4738_v5 = vpop.f32.mrf.mxu1 }
 0x4c0   : > { %v5112_v36 = vmax.f32 %v4986_v51, 0.0  ;;  %v4739_v56 = vadd.f32 %v4738_v5, %v12977_v38  ;;  %v5211_v45 = vpack.c.bf16 %v5111_v63, %v5109_v44  ;;  %v10893_v38 = vld [vmem:[%s15172_s17 + $0x34] ss:$8 sps:$4 sm:$0xff]  }
 0x4c1   : > { %v13112_v46 = vpop.f32.mrf.mxu0  ;;  %v4740_v29 = vpop.f32.mrf.mxu1  ;;  %6953 = vmatprep.subr.bf16.mxu0 %v10893_v38 }
 0x4c2   : > { %v4741_v10 = vadd.f32 %v4740_v29, %v12982_v62  ;;  %v5212_v13 = vpack.c.bf16 %v5112_v36, %v5110_v23  ;;  %v4988_v35 = vadd.f32 %v12818_v32, %v4739_v56  ;;  %v4987_v62 = vadd.f32 %v12828_v20, %v4737_v15  ;;  %6954 = vmatpush1.bf16.msra.mxu0 %v10891_v33 }
 0x4c3   : > { %v13115_v41 = vpop.f32.mrf.mxu0  ;;  %v4742_v21 = vpop.f32.mrf.mxu1 }
 0x4c4   : > { %v4989_v31 = vadd.f32 %v12828_v20, %v4741_v10  ;;  %v4743_v19 = vadd.f32 %v4742_v21, %v12986_v57  ;;  %5607 = vmatprep.mubr.bf16.mxu0 %v5212_v13  ;;  %v5114_v26 = vmax.f32 %v4988_v35, 0.0  ;;  %v5113_v2 = vmax.f32 %v4987_v62, 0.0 }
 0x4c5   : > { %v13127_v27 = vpop.f32.mrf.mxu0  ;;  %v4746_v0 = vpop.f32.mrf.mxu1  ;;  %5608 = vmatmul.mubr.bf16.gmra.mxu0 %v5211_v45 }
 0x4c6   : > { %v4990_v54 = vadd.f32 %v12818_v32, %v4743_v19  ;;  %v5115_v37 = vmax.f32 %v4989_v31, 0.0  ;;  %v4747_v17 = vadd.f32 %v4746_v0, %v12989_v9 }
 0x4c7   : > { %v13130_v57 = vpop.f32.mrf.mxu0  ;;  %v4748_v1 = vpop.f32.mrf.mxu1 }
 0x4c8   : > { %v5116_v39 = vmax.f32 %v4990_v54, 0.0  ;;  %v4749_v48 = vadd.f32 %v4748_v1, %v13001_v4  ;;  %v5213_v51 = vpack.c.bf16 %v5115_v37, %v5113_v2  ;;  %v4991_v4 = vadd.f32 %v12828_v20, %v4747_v17  ;;  %v10896_v2 = vld [vmem:[%s15172_s17 + $0x24] ss:$8 sps:$4 sm:$0xff]  }
 0x4c9   : > { %v13134_v11 = vpop.f32.mrf.mxu0  ;;  %v4750_v6 = vpop.f32.mrf.mxu1  ;;  %6955 = vmatprep.subr.bf16.mxu0 %v10896_v2 }
 0x4ca   : > { %v4751_v55 = vadd.f32 %v4750_v6, %v13004_v60  ;;  %v5214_v24 = vpack.c.bf16 %v5116_v39, %v5114_v26  ;;  %v4992_v23 = vadd.f32 %v12818_v32, %v4749_v48  ;;  %v5117_v35 = vmax.f32 %v4991_v4, 0.0  ;;  %v10894_v48 = vld [vmem:[%s15172_s17 + $0x20] ss:$8 sps:$4 sm:$0xff]  }
 0x4cb   : > { %v13137_v63 = vpop.f32.mrf.mxu0  ;;  %v4752_v5 = vpop.f32.mrf.mxu1  ;;  %6956 = vmatpush1.bf16.msra.mxu0 %v10894_v48  ;;  %v10899_v48 = vld [vmem:[%s15172_s17 + $0x14] ss:$8 sps:$4 sm:$0xff]  }
 0x4cc   : > { %v4993_v36 = vadd.f32 %v12828_v20, %v4751_v55  ;;  %v4753_v56 = vadd.f32 %v4752_v5, %v13014_v58  ;;  %5617 = vmatprep.mubr.bf16.mxu0 %v5214_v24  ;;  %v5118_v13 = vmax.f32 %v4992_v23, 0.0  ;;  %6957 = vmatprep.subr.bf16.mxu0 %v10899_v48 }
 0x4cd   : > { %v13143_v9 = vpop.f32.mrf.mxu0  ;;  %v4756_v44 = vpop.f32.mrf.mxu1  ;;  %5618 = vmatmul.mubr.bf16.gmra.mxu0 %v5213_v51 }
 0x4ce   : > { %v4994_v60 = vadd.f32 %v12818_v32, %v4753_v56  ;;  %v5119_v15 = vmax.f32 %v4993_v36, 0.0  ;;  %v4757_v58 = vadd.f32 %v4756_v44, %v13017_v61 }
 0x4cf   : > { %v13146_v29 = vpop.f32.mrf.mxu0  ;;  %v4758_v10 = vpop.f32.mrf.mxu1 }
 0x4d0   : > { %v5120_v45 = vmax.f32 %v4994_v60, 0.0  ;;  %v4759_v21 = vadd.f32 %v4758_v10, %v13023_v52  ;;  %v5215_v62 = vpack.c.bf16 %v5119_v15, %v5117_v35  ;;  %v4995_v52 = vadd.f32 %v12828_v20, %v4757_v58 }
 0x4d1   : > { %v13150_v31 = vpop.f32.mrf.mxu0  ;;  %v4760_v19 = vpop.f32.mrf.mxu1 }
 0x4d2   : > { %v4761_v33 = vadd.f32 %v4760_v19, %v13026_v49  ;;  %v5216_v38 = vpack.c.bf16 %v5120_v45, %v5118_v13  ;;  %v4996_v37 = vadd.f32 %v12818_v32, %v4759_v21  ;;  %v5121_v5 = vmax.f32 %v4995_v52, 0.0 }
 0x4d3   : > { %v13153_v0 = vpop.f32.mrf.mxu0  ;;  %v4762_v54 = vpop.f32.mrf.mxu1 }
 0x4d4   : > { %v4997_v1 = vadd.f32 %v12828_v20, %v4761_v33  ;;  %v4763_v26 = vadd.f32 %v4762_v54, %v13030_v30  ;;  %5627 = vmatprep.mubr.bf16.mxu0 %v5216_v38  ;;  %v5122_v55 = vmax.f32 %v4996_v37, 0.0 }
 0x4d5   : > { %v13159_v61 = vpop.f32.mrf.mxu0  ;;  %v4766_v39 = vpop.f32.mrf.mxu1  ;;  %5628 = vmatmul.mubr.bf16.gmra.mxu0 %v5215_v62 }
 0x4d6   : > { %v4998_v49 = vadd.f32 %v12818_v32, %v4763_v26  ;;  %v5123_v17 = vmax.f32 %v4997_v1, 0.0  ;;  %v4767_v23 = vadd.f32 %v4766_v39, %v13033_v7 }
 0x4d7   : > { %v13168_v6 = vpop.f32.mrf.mxu0  ;;  %v4768_v30 = vpop.f32.mrf.mxu1 }
 0x4d8   : > { %v5124_v24 = vmax.f32 %v4998_v49, 0.0  ;;  %v4769_v51 = vadd.f32 %v4768_v30, %v13045_v34  ;;  %v5217_v60 = vpack.c.bf16 %v5123_v17, %v5121_v5  ;;  %v4999_v7 = vadd.f32 %v12828_v20, %v4767_v23  ;;  %v10897_v49 = vld [vmem:[%s15172_s17 + $0x10] ss:$8 sps:$4 sm:$0xff]  }
 0x4d9   : > { %v13172_v36 = vpop.f32.mrf.mxu0  ;;  %v4770_v56 = vpop.f32.mrf.mxu1  ;;  %6958 = vmatpush1.bf16.msra.mxu0 %v10897_v49 }
 0x4da   : > { %v4771_v4 = vadd.f32 %v4770_v56, %v13048_v14  ;;  %v5218_v44 = vpack.c.bf16 %v5124_v24, %v5122_v55  ;;  %v5000_v13 = vadd.f32 %v12818_v32, %v4769_v51  ;;  %v5125_v37 = vmax.f32 %v4999_v7, 0.0 }
 0x4db   : > { %v13175_v15 = vpop.f32.mrf.mxu0  ;;  %v4772_v10 = vpop.f32.mrf.mxu1 }
 0x4dc   : > { %v5001_v45 = vadd.f32 %v12828_v20, %v4771_v4  ;;  %v4773_v34 = vadd.f32 %v4772_v10, %v13058_v8  ;;  %5637 = vmatprep.mubr.bf16.mxu0 %v5218_v44  ;;  %v5126_v38 = vmax.f32 %v5000_v13, 0.0 }
 0x4dd   : > { %v13181_v21 = vpop.f32.mrf.mxu0  ;;  %v4776_v35 = vpop.f32.mrf.mxu1  ;;  %5638 = vmatmul.mubr.bf16.gmra.mxu0 %v5217_v60 }
 0x4de   : > { %v5002_v14 = vadd.f32 %v12818_v32, %v4773_v34  ;;  %v5127_v58 = vmax.f32 %v5001_v45, 0.0  ;;  %v4777_v8 = vadd.f32 %v4776_v35, %v13061_v43 }
 0x4df   : > { %v13184_v19 = vpop.f32.mrf.mxu0  ;;  %v4778_v33 = vpop.f32.mrf.mxu1 }
 0x4e0   : > { %v5128_v62 = vmax.f32 %v5002_v14, 0.0  ;;  %v4779_v54 = vadd.f32 %v4778_v33, %v13067_v42  ;;  %v5219_v2 = vpack.c.bf16 %v5127_v58, %v5125_v37 }
 0x4e1   : > { %v13188_v1 = vpop.f32.mrf.mxu0  ;;  %v4780_v26 = vpop.f32.mrf.mxu1 }
 0x4e2   : > { %v4781_v52 = vadd.f32 %v4780_v26, %v13070_v16  ;;  %v5220_v39 = vpack.c.bf16 %v5128_v62, %v5126_v38  ;;  %v5004_v43 = vadd.f32 %v12818_v32, %v4779_v54  ;;  %v5003_v16 = vadd.f32 %v12828_v20, %v4777_v8 }
 0x4e3   : > { %v13197_v17 = vpop.f32.mrf.mxu0  ;;  %v4782_v42 = vpop.f32.mrf.mxu1 }
 0x4e4   : > { %v5005_v30 = vadd.f32 %v12828_v20, %v4781_v52  ;;  %v4783_v55 = vadd.f32 %v4782_v42, %v13074_v50  ;;  %5647 = vmatprep.mubr.bf16.mxu0 %v5220_v39  ;;  %v5130_v44 = vmax.f32 %v5004_v43, 0.0  ;;  %v5129_v50 = vmax.f32 %v5003_v16, 0.0  ;;  %v10900_v16 = vld [vmem:[%s15172_s17] ss:$8 sps:$4 sm:$0xff]  }
 0x4e5   : > { %v13203_v24 = vpop.f32.mrf.mxu0  ;;  %v4786_v51 = vpop.f32.mrf.mxu1  ;;  %5648 = vmatmul.mubr.bf16.gmra.mxu0 %v5219_v2 }
 0x4e6   : > { %v5006_v5 = vadd.f32 %v12818_v32, %v4783_v55  ;;  %v5131_v23 = vmax.f32 %v5005_v30, 0.0  ;;  %v4787_v13 = vadd.f32 %v4786_v51, %v13077_v3  ;;  %v10902_v51 = vld [vmem:[%s15172_s17 + $0x4] ss:$8 sps:$4 sm:$0xff]  }
 0x4e7   : > { %v13206_v56 = vpop.f32.mrf.mxu0  ;;  %v4788_v4 = vpop.f32.mrf.mxu1  ;;  %6959 = vmatprep.subr.bf16.mxu0 %v10902_v51 }
 0x4e8   : > { %v5132_v60 = vmax.f32 %v5006_v5, 0.0  ;;  %v4789_v10 = vadd.f32 %v4788_v4, %v13089_v53  ;;  %v5221_v14 = vpack.c.bf16 %v5131_v23, %v5129_v50  ;;  %v5007_v53 = vadd.f32 %v12828_v20, %v4787_v13  ;;  %6960 = vmatpush1.bf16.msra.mxu0 %v10900_v16 }
 0x4e9   : > { %v13210_v45 = vpop.f32.mrf.mxu0  ;;  %v4790_v34 = vpop.f32.mrf.mxu1 }
 0x4ea   : > { %v4791_v7 = vadd.f32 %v4790_v34, %v13092_v40  ;;  %v5222_v35 = vpack.c.bf16 %v5132_v60, %v5130_v44  ;;  %v5008_v38 = vadd.f32 %v12818_v32, %v4789_v10  ;;  %v5133_v2 = vmax.f32 %v5007_v53, 0.0 }
 0x4eb   : > { %v13213_v58 = vpop.f32.mrf.mxu0  ;;  %v4792_v33 = vpop.f32.mrf.mxu1 }
 0x4ec   : > { %v5009_v62 = vadd.f32 %v12828_v20, %v4791_v7  ;;  %v4793_v54 = vadd.f32 %v4792_v33, %v13096_v12  ;;  %5657 = vmatprep.mubr.bf16.mxu0 %v5222_v35  ;;  %v5134_v39 = vmax.f32 %v5008_v38, 0.0 }
 0x4ed   : > { %v13219_v3 = vpop.f32.mrf.mxu0  ;;  %v4796_v37 = vpop.f32.mrf.mxu1  ;;  %5658 = vmatmul.mubr.bf16.gmra.mxu0 %v5221_v14 }
 0x4ee   : > { %v5010_v40 = vadd.f32 %v12818_v32, %v4793_v54  ;;  %v5135_v8 = vmax.f32 %v5009_v62, 0.0  ;;  %v4797_v12 = vadd.f32 %v4796_v37, %v13099_v47 }
 0x4ef   : > { %v13222_v26 = vpop.f32.mrf.mxu0  ;;  %v4798_v52 = vpop.f32.mrf.mxu1 }
 0x4f0   : > { %v5136_v49 = vmax.f32 %v5010_v40, 0.0  ;;  %v4799_v48 = vadd.f32 %v4798_v52, %v13105_v18  ;;  %v5223_v5 = vpack.c.bf16 %v5135_v8, %v5133_v2 }
 0x4f1   : > { %v13226_v42 = vpop.f32.mrf.mxu0  ;;  %v4800_v43 = vpop.f32.mrf.mxu1 }
 0x4f2   : > { %v4801_v30 = vadd.f32 %v4800_v43, %v13108_v59  ;;  %v5224_v55 = vpack.c.bf16 %v5136_v49, %v5134_v39  ;;  %v5012_v47 = vadd.f32 %v12818_v32, %v4799_v48  ;;  %v5011_v59 = vadd.f32 %v12828_v20, %v4797_v12 }
 0x4f3   : > { %v13235_v23 = vpop.f32.mrf.mxu0  ;;  %v4802_v18 = vpop.f32.mrf.mxu1 }
 0x4f4   : > { %v5013_v4 = vadd.f32 %v12828_v20, %v4801_v30  ;;  %v4803_v44 = vadd.f32 %v4802_v18, %v13112_v46  ;;  %5667 = vmatprep.mubr.bf16.mxu0 %v5224_v55  ;;  %v5138_v35 = vmax.f32 %v5012_v47, 0.0  ;;  %v5137_v46 = vmax.f32 %v5011_v59, 0.0  ;;  %v10903_v59 = vld [vmem:[%s15172_s17 + $0xf0] ss:$8 sps:$4 sm:$0xff]  }
 0x4f5   : > { %v13241_v60 = vpop.f32.mrf.mxu0  ;;  %v4806_v10 = vpop.f32.mrf.mxu1  ;;  %5668 = vmatmul.mubr.bf16.gmra.mxu0 %v5223_v5 }
 0x4f6   : > { %v5014_v50 = vadd.f32 %v12818_v32, %v4803_v44  ;;  %v5139_v13 = vmax.f32 %v5013_v4, 0.0  ;;  %v4807_v38 = vadd.f32 %v4806_v10, %v13115_v41  ;;  %v10905_v10 = vld [vmem:[%s15172_s17 + $0xf4] ss:$8 sps:$4 sm:$0xff]  }
 0x4f7   : > { %v13244_v34 = vpop.f32.mrf.mxu0  ;;  %v4808_v7 = vpop.f32.mrf.mxu1  ;;  %6961 = vmatprep.subr.bf16.mxu0 %v10905_v10 }
 0x4f8   : > { %v5140_v14 = vmax.f32 %v5014_v50, 0.0  ;;  %v4809_v33 = vadd.f32 %v4808_v7, %v13127_v27  ;;  %v5225_v40 = vpack.c.bf16 %v5139_v13, %v5137_v46  ;;  %v5015_v27 = vadd.f32 %v12828_v20, %v4807_v38  ;;  %6962 = vmatpush2.bf16.msra.mxu0 %v10903_v59 }
 0x4f9   : > { %v13248_v62 = vpop.f32.mrf.mxu0  ;;  %v4810_v54 = vpop.f32.mrf.mxu1 }
 0x4fa   : > { %v4811_v53 = vadd.f32 %v4810_v54, %v13130_v57  ;;  %v5226_v37 = vpack.c.bf16 %v5140_v14, %v5138_v35  ;;  %v5016_v39 = vadd.f32 %v12818_v32, %v4809_v33  ;;  %v5141_v5 = vmax.f32 %v5015_v27, 0.0 }
 0x4fb   : > { %v13251_v8 = vpop.f32.mrf.mxu0  ;;  %v4812_v52 = vpop.f32.mrf.mxu1 }
 0x4fc   : > { %v5017_v49 = vadd.f32 %v12828_v20, %v4811_v53  ;;  %v4813_v48 = vadd.f32 %v4812_v52, %v13134_v11  ;;  %5677 = vmatprep.mubr.bf16.mxu0 %v5226_v37  ;;  %v5142_v55 = vmax.f32 %v5016_v39, 0.0 }
 0x4fd   : > { %v13257_v41 = vpop.f32.mrf.mxu0  ;;  %v4816_v2 = vpop.f32.mrf.mxu1  ;;  %5678 = vmatmul.mubr.bf16.gmra.mxu0 %v5225_v40 }
 0x4fe   : > { %v5018_v57 = vadd.f32 %v12818_v32, %v4813_v48  ;;  %v5143_v12 = vmax.f32 %v5017_v49, 0.0  ;;  %v4817_v11 = vadd.f32 %v4816_v2, %v13137_v63 }
 0x4ff   : > { %v13260_v43 = vpop.f32.mrf.mxu0  ;;  %v4818_v30 = vpop.f32.mrf.mxu1 }
 0x500   : > { %v5144_v16 = vmax.f32 %v5018_v57, 0.0  ;;  %v4819_v51 = vadd.f32 %v4818_v30, %v13143_v9  ;;  %v5227_v50 = vpack.c.bf16 %v5143_v12, %v5141_v5 }
 0x501   : > { %v13264_v18 = vpop.f32.mrf.mxu0  ;;  %v4820_v47 = vpop.f32.mrf.mxu1 }
 0x502   : > { %v4821_v4 = vadd.f32 %v4820_v47, %v13146_v29  ;;  %v5228_v44 = vpack.c.bf16 %v5144_v16, %v5142_v55  ;;  %v5020_v63 = vadd.f32 %v12818_v32, %v4819_v51  ;;  %v5019_v29 = vadd.f32 %v12828_v20, %v4817_v11 }
 0x503   : > { %v13273_v13 = vpop.f32.mrf.mxu0  ;;  %v4822_v9 = vpop.f32.mrf.mxu1 }
 0x504   : > { %v5021_v7 = vadd.f32 %v12828_v20, %v4821_v4  ;;  %v4823_v35 = vadd.f32 %v4822_v9, %v13150_v31  ;;  %5687 = vmatprep.mubr.bf16.mxu0 %v5228_v44  ;;  %v5146_v37 = vmax.f32 %v5020_v63, 0.0  ;;  %v5145_v31 = vmax.f32 %v5019_v29, 0.0  ;;  %v10906_v29 = vld [vmem:[%s15172_s17 + $0xe0] ss:$8 sps:$4 sm:$0xff]  }
 0x505   : > { %v13279_v14 = vpop.f32.mrf.mxu0  ;;  %v4826_v33 = vpop.f32.mrf.mxu1  ;;  %5688 = vmatmul.mubr.bf16.gmra.mxu0 %v5227_v50 }
 0x506   : > { %v5022_v46 = vadd.f32 %v12818_v32, %v4823_v35  ;;  %v5147_v38 = vmax.f32 %v5021_v7, 0.0  ;;  %v4827_v39 = vadd.f32 %v4826_v33, %v13153_v0  ;;  %v10908_v33 = vld [vmem:[%s15172_s17 + $0xe4] ss:$8 sps:$4 sm:$0xff]  }
 0x507   : > { %v13282_v54 = vpop.f32.mrf.mxu0  ;;  %v4828_v53 = vpop.f32.mrf.mxu1  ;;  %6963 = vmatprep.subr.bf16.mxu0 %v10908_v33 }
 0x508   : > { %v5148_v40 = vmax.f32 %v5022_v46, 0.0  ;;  %v4829_v52 = vadd.f32 %v4828_v53, %v13159_v61  ;;  %v5229_v57 = vpack.c.bf16 %v5147_v38, %v5145_v31  ;;  %v5023_v61 = vadd.f32 %v12828_v20, %v4827_v39  ;;  %6964 = vmatpush2.bf16.msra.mxu0 %v10906_v29 }
 0x509   : > { %v13286_v49 = vpop.f32.mrf.mxu0  ;;  %v4830_v48 = vpop.f32.mrf.mxu1 }
 0x50a   : > { %v4831_v27 = vadd.f32 %v4830_v48, %v13168_v6  ;;  %v5230_v2 = vpack.c.bf16 %v5148_v40, %v5146_v37  ;;  %v5024_v55 = vadd.f32 %v12818_v32, %v4829_v52  ;;  %v5149_v50 = vmax.f32 %v5023_v61, 0.0 }
 0x50b   : > { %v13289_v12 = vpop.f32.mrf.mxu0  ;;  %v4832_v30 = vpop.f32.mrf.mxu1 }
 0x50c   : > { %v5025_v16 = vadd.f32 %v12828_v20, %v4831_v27  ;;  %v4833_v51 = vadd.f32 %v4832_v30, %v13172_v36  ;;  %5697 = vmatprep.mubr.bf16.mxu0 %v5230_v2  ;;  %v5150_v44 = vmax.f32 %v5024_v55, 0.0 }
 0x50d   : > { %v13295_v0 = vpop.f32.mrf.mxu0  ;;  %v4836_v5 = vpop.f32.mrf.mxu1  ;;  %5698 = vmatmul.mubr.bf16.gmra.mxu0 %v5229_v57 }
 0x50e   : > { %v5026_v6 = vadd.f32 %v12818_v32, %v4833_v51  ;;  %v5151_v11 = vmax.f32 %v5025_v16, 0.0  ;;  %v4837_v36 = vadd.f32 %v4836_v5, %v13175_v15 }
 0x50f   : > { %v13298_v47 = vpop.f32.mrf.mxu0  ;;  %v4838_v4 = vpop.f32.mrf.mxu1 }
 0x510   : > { %v5152_v59 = vmax.f32 %v5026_v6, 0.0  ;;  %v4839_v10 = vadd.f32 %v4838_v4, %v13181_v21  ;;  %v5231_v46 = vpack.c.bf16 %v5151_v11, %v5149_v50 }
 0x511   : > { %v13302_v9 = vpop.f32.mrf.mxu0  ;;  %v4840_v63 = vpop.f32.mrf.mxu1 }
 0x512   : > { %v4841_v7 = vadd.f32 %v4840_v63, %v13184_v19  ;;  %v5232_v35 = vpack.c.bf16 %v5152_v59, %v5150_v44  ;;  %v5028_v15 = vadd.f32 %v12818_v32, %v4839_v10  ;;  %v5027_v19 = vadd.f32 %v12828_v20, %v4837_v36 }
 0x513   : > { %v13311_v38 = vpop.f32.mrf.mxu0  ;;  %v4842_v21 = vpop.f32.mrf.mxu1 }
 0x514   : > { %v5029_v53 = vadd.f32 %v12828_v20, %v4841_v7  ;;  %v4843_v37 = vadd.f32 %v4842_v21, %v13188_v1  ;;  %5707 = vmatprep.mubr.bf16.mxu0 %v5232_v35  ;;  %v5154_v2 = vmax.f32 %v5028_v15, 0.0  ;;  %v5153_v1 = vmax.f32 %v5027_v19, 0.0  ;;  %v10909_v19 = vld [vmem:[%s15172_s17 + $0xd0] ss:$8 sps:$4 sm:$0xff]  }
 0x515   : > { %v13317_v40 = vpop.f32.mrf.mxu0  ;;  %v4846_v52 = vpop.f32.mrf.mxu1  ;;  %5708 = vmatmul.mubr.bf16.gmra.mxu0 %v5231_v46 }
 0x516   : > { %v5030_v31 = vadd.f32 %v12818_v32, %v4843_v37  ;;  %v5155_v39 = vmax.f32 %v5029_v53, 0.0  ;;  %v4847_v55 = vadd.f32 %v4846_v52, %v13197_v17  ;;  %v10911_v52 = vld [vmem:[%s15172_s17 + $0xd4] ss:$8 sps:$4 sm:$0xff]  }
 0x517   : > { %v13320_v48 = vpop.f32.mrf.mxu0  ;;  %v4848_v27 = vpop.f32.mrf.mxu1  ;;  %6965 = vmatprep.subr.bf16.mxu0 %v10911_v52 }
 0x518   : > { %v5156_v57 = vmax.f32 %v5030_v31, 0.0  ;;  %v4849_v30 = vadd.f32 %v4848_v27, %v13203_v24  ;;  %v5233_v6 = vpack.c.bf16 %v5155_v39, %v5153_v1  ;;  %v5031_v24 = vadd.f32 %v12828_v20, %v4847_v55  ;;  %6966 = vmatpush2.bf16.msra.mxu0 %v10909_v19 }
 0x519   : > { %v13324_v16 = vpop.f32.mrf.mxu0  ;;  %v4850_v51 = vpop.f32.mrf.mxu1 }
 0x51a   : > { %v4851_v61 = vadd.f32 %v4850_v51, %v13206_v56  ;;  %v5234_v5 = vpack.c.bf16 %v5156_v57, %v5154_v2  ;;  %v5032_v44 = vadd.f32 %v12818_v32, %v4849_v30  ;;  %v5157_v46 = vmax.f32 %v5031_v24, 0.0  ;;  %v5283_v57 = vld [vmem:[%s15169_s14] sm:$0x3] }
 0x51b   : > { %v13327_v11 = vpop.f32.mrf.mxu0  ;;  %v4852_v4 = vpop.f32.mrf.mxu1 }
 0x51c   : > { %v5033_v59 = vadd.f32 %v12828_v20, %v4851_v61  ;;  %v4853_v10 = vadd.f32 %v4852_v4, %v13210_v45  ;;  %5717 = vmatprep.mubr.bf16.mxu0 %v5234_v5  ;;  %v5158_v35 = vmax.f32 %v5032_v44, 0.0  ;;  %v13354_v61 = vrot.slane %v5283_v57, %v11709_v25 }
 0x51d   : > { %v13333_v17 = vpop.f32.mrf.mxu0  ;;  %v4856_v50 = vpop.f32.mrf.mxu1  ;;  %5718 = vmatmul.mubr.bf16.gmra.mxu0 %v5233_v6  ;;  %v13357_v4 = vrot.slane %v5283_v57, %v11717_v28 }
 0x51e   : > { %v5034_v56 = vadd.f32 %v12818_v32, %v4853_v10  ;;  %v5159_v36 = vmax.f32 %v5033_v59, 0.0  ;;  %v4857_v21 = vadd.f32 %v4856_v50, %v13213_v58 }
 0x51f   : > { %v4529_v63 = vpop.f32.mrf.mxu0  ;;  %v4858_v7 = vpop.f32.mrf.mxu1 }
 0x520   : > { %v5160_v29 = vmax.f32 %v5034_v56, 0.0  ;;  %v4859_v33 = vadd.f32 %v4858_v7, %v13219_v3  ;;  %v5235_v31 = vpack.c.bf16 %v5159_v36, %v5157_v46 }
 0x521   : > { %v4530_v45 = vpop.f32.mrf.mxu0  ;;  %v4860_v15 = vpop.f32.mrf.mxu1 }
 0x522   : > { %v4861_v53 = vadd.f32 %v4860_v15, %v13222_v26  ;;  %v5236_v37 = vpack.c.bf16 %v5160_v29, %v5158_v35  ;;  %v5036_v3 = vadd.f32 %v12818_v32, %v4859_v33  ;;  %v5035_v26 = vadd.f32 %v12828_v20, %v4857_v21 }
 0x523   : > { %v4862_v39 = vpop.f32.mrf.mxu1 }
 0x524   : > { %v5037_v27 = vadd.f32 %v12828_v20, %v4861_v53  ;;  %v4863_v58 = vadd.f32 %v4862_v39, %v13226_v42  ;;  %5727 = vmatprep.mubr.bf16.mxu0 %v5236_v37  ;;  %v5162_v5 = vmax.f32 %v5036_v3, 0.0  ;;  %v5161_v44 = vmax.f32 %v5035_v26, 0.0 }
 0x525   : > { %v4866_v2 = vpop.f32.mrf.mxu1  ;;  %v5489_v30 = vpop.f32.mrf.mxu0  ;;  %5728 = vmatmul.mubr.bf16.gmra.mxu0 %v5235_v31 }
 0x526   : > { %v5038_v1 = vadd.f32 %v12818_v32, %v4863_v58  ;;  %v5163_v55 = vmax.f32 %v5037_v27, 0.0  ;;  %v4867_v59 = vadd.f32 %v4866_v2, %v13235_v23  ;;  %v5490_v46 = vadd.f32 %v5489_v30, %v13357_v4 }
 0x527   : > { %v4868_v51 = vpop.f32.mrf.mxu1  ;;  %v5491_v42 = vpop.f32.mrf.mxu0 }
 0x528   : > { %v5164_v6 = vmax.f32 %v5038_v1, 0.0  ;;  %v4869_v10 = vadd.f32 %v4868_v51, %v13241_v60  ;;  %v5237_v7 = vpack.c.bf16 %v5163_v55, %v5161_v44  ;;  %v5492_v35 = vadd.f32 %v5491_v42, %v13354_v61  ;;  %v10912_v44 = vld [vmem:[%s15172_s17 + $0xc0] ss:$8 sps:$4 sm:$0xff]  }
 0x529   : > { %v4870_v24 = vpop.f32.mrf.mxu1  ;;  %v5493_v50 = vpop.f32.mrf.mxu0  ;;  %v5039_v45 = vadd.f32 %v12828_v20, %v4867_v59  ;;  %v5806_v27 = vmax.f32 %v5490_v46, 0.0  ;;  %v10914_v59 = vld [vmem:[%s15172_s17 + $0xc4] ss:$8 sps:$4 sm:$0xff]  }
 0x52a   : > { %v4871_v56 = vadd.f32 %v4870_v24, %v13244_v34  ;;  %v5494_v36 = vadd.f32 %v5493_v50, %v13357_v4  ;;  %v5238_v63 = vpack.c.bf16 %v5164_v6, %v5162_v5  ;;  %v5040_v34 = vadd.f32 %v12818_v32, %v4869_v10  ;;  %6967 = vmatprep.subr.bf16.mxu0 %v10914_v59 }
 0x52b   : > { %v4872_v29 = vpop.f32.mrf.mxu1  ;;  %v5495_v33 = vpop.f32.mrf.mxu0  ;;  %v5807_v31 = vmax.f32 %v5492_v35, 0.0  ;;  %v5165_v26 = vmax.f32 %v5039_v45, 0.0  ;;  %6968 = vmatpush2.bf16.msra.mxu0 %v10912_v44 }
 0x52c   : > { %v5041_v21 = vadd.f32 %v12828_v20, %v4871_v56  ;;  %v4873_v23 = vadd.f32 %v4872_v29, %v13248_v62  ;;  %v5496_v60 = vadd.f32 %v5495_v33, %v13354_v61  ;;  %5737 = vmatprep.mubr.bf16.mxu0 %v5238_v63  ;;  %v5808_v37 = vmax.f32 %v5494_v36, 0.0 }
 0x52d   : > { %v4876_v15 = vpop.f32.mrf.mxu1  ;;  %v5499_v53 = vpop.f32.mrf.mxu0  ;;  %5738 = vmatmul.mubr.bf16.gmra.mxu0 %v5237_v7  ;;  %v5166_v2 = vmax.f32 %v5040_v34, 0.0 }
 0x52e   : > { %v5042_v19 = vadd.f32 %v12818_v32, %v4873_v23  ;;  %v5809_v52 = vmax.f32 %v5496_v60, 0.0  ;;  %v5167_v58 = vmax.f32 %v5041_v21, 0.0  ;;  %v5932_v51 = vpack.c.bf16 %v5808_v37, %v5806_v27 }
 0x52f   : > { %v4878_v39 = vpop.f32.mrf.mxu1  ;;  %v5501_v3 = vpop.f32.mrf.mxu0  ;;  %v4877_v42 = vadd.f32 %v4876_v15, %v13251_v8 }
 0x530   : > { %v5168_v62 = vmax.f32 %v5042_v19, 0.0  ;;  %v4879_v57 = vadd.f32 %v4878_v39, %v13257_v41  ;;  %v5933_v55 = vpack.c.bf16 %v5809_v52, %v5807_v31  ;;  %v5500_v41 = vadd.f32 %v5499_v53, %v13357_v4 }
 0x531   : > { %v4880_v30 = vpop.f32.mrf.mxu1  ;;  %v5503_v1 = vpop.f32.mrf.mxu0  ;;  %v5502_v10 = vadd.f32 %v5501_v3, %v13354_v61  ;;  %v5239_v56 = vpack.c.bf16 %v5167_v58, %v5165_v26  ;;  %v5043_v33 = vadd.f32 %v12828_v20, %v4877_v42 }
 0x532   : > { %v4881_v5 = vadd.f32 %v4880_v30, %v13260_v43  ;;  %v5504_v6 = vadd.f32 %v5503_v1, %v13357_v4  ;;  %6232 = vmatprep.mubr.bf16.mxu1 %v5933_v55  ;;  %v5240_v8 = vpack.c.bf16 %v5168_v62, %v5166_v2  ;;  %v5044_v63 = vadd.f32 %v12818_v32, %v4879_v57 }
 0x533   : > { %v4882_v24 = vpop.f32.mrf.mxu1  ;;  %v5505_v50 = vpop.f32.mrf.mxu0  ;;  %6233 = vmatmul.mubr.bf16.vlgmr.msra.gmra.mxu1 %v5932_v51  ;;  %v5811_v23 = vmax.f32 %v5502_v10, 0.0  ;;  %v5810_v34 = vmax.f32 %v5500_v41, 0.0  ;;  %v5169_v27 = vmax.f32 %v5043_v33, 0.0 }
 0x534   : > { %v5045_v43 = vadd.f32 %v12828_v20, %v4881_v5  ;;  %v4883_v36 = vadd.f32 %v4882_v24, %v13264_v18  ;;  %v5506_v7 = vadd.f32 %v5505_v50, %v13354_v61  ;;  %5747 = vmatprep.mubr.bf16.mxu0 %v5240_v8  ;;  %v5812_v46 = vmax.f32 %v5504_v6, 0.0 }
 0x535   : > { %v4886_v35 = vpop.f32.mrf.mxu1  ;;  %v5509_v29 = vpop.f32.mrf.mxu0  ;;  %5748 = vmatmul.mubr.bf16.gmra.mxu0 %v5239_v56  ;;  %v5170_v37 = vmax.f32 %v5044_v63, 0.0 }
 0x536   : > { %v5046_v21 = vadd.f32 %v12818_v32, %v4883_v36  ;;  %v5813_v60 = vmax.f32 %v5506_v7, 0.0  ;;  %v5171_v15 = vmax.f32 %v5045_v43, 0.0  ;;  %v4887_v19 = vadd.f32 %v4886_v35, %v13273_v13 }
 0x537   : > { %v4888_v45 = vpop.f32.mrf.mxu1  ;;  %v5511_v18 = vpop.f32.mrf.mxu0  ;;  %v5934_v58 = vpack.c.bf16 %v5812_v46, %v5810_v34  ;;  %v5510_v13 = vadd.f32 %v5509_v29, %v13357_v4 }
 0x538   : > { %v5172_v53 = vmax.f32 %v5046_v21, 0.0  ;;  %v4889_v52 = vadd.f32 %v4888_v45, %v13279_v14  ;;  %v5935_v3 = vpack.c.bf16 %v5813_v60, %v5811_v23  ;;  %v5512_v2 = vadd.f32 %v5511_v18, %v13354_v61  ;;  %v10915_v45 = vld [vmem:[%s15172_s17 + $0xb0] ss:$8 sps:$4 sm:$0xff]   ;;  %v10917_v18 = vld [vmem:[%s15172_s17 + $0xb4] ss:$8 sps:$4 sm:$0xff]  }
 0x539   : > { %v4890_v31 = vpop.f32.mrf.mxu1  ;;  %v5513_v39 = vpop.f32.mrf.mxu0  ;;  %v5241_v55 = vpack.c.bf16 %v5171_v15, %v5169_v27  ;;  %v5047_v42 = vadd.f32 %v12828_v20, %v4887_v19  ;;  %v5814_v56 = vmax.f32 %v5510_v13, 0.0  ;;  %6969 = vmatprep.subr.bf16.mxu0 %v10917_v18 }
 0x53a   : > { %v4891_v62 = vadd.f32 %v4890_v31, %v13282_v54  ;;  %v5514_v26 = vadd.f32 %v5513_v39, %v13357_v4  ;;  %6242 = vmatprep.mubr.bf16.mxu1 %v5935_v3  ;;  %v5242_v1 = vpack.c.bf16 %v5172_v53, %v5170_v37  ;;  %v5048_v54 = vadd.f32 %v12818_v32, %v4889_v52 }
 0x53b   : > { %v4892_v57 = vpop.f32.mrf.mxu1  ;;  %v5515_v30 = vpop.f32.mrf.mxu0  ;;  %6243 = vmatmul.mubr.bf16.gmra.mxu1 %v5934_v58  ;;  %v5815_v10 = vmax.f32 %v5512_v2, 0.0  ;;  %v5173_v36 = vmax.f32 %v5047_v42, 0.0  ;;  %6970 = vmatpush2.bf16.msra.mxu0 %v10915_v45 }
 0x53c   : > { %v5049_v14 = vadd.f32 %v12828_v20, %v4891_v62  ;;  %v4893_v51 = vadd.f32 %v4892_v57, %v13286_v49  ;;  %v5516_v5 = vadd.f32 %v5515_v30, %v13354_v61  ;;  %5757 = vmatprep.mubr.bf16.mxu0 %v5242_v1  ;;  %v5816_v59 = vmax.f32 %v5514_v26, 0.0 }
 0x53d   : > { %v4896_v6 = vpop.f32.mrf.mxu1  ;;  %v5519_v44 = vpop.f32.mrf.mxu0  ;;  %5758 = vmatmul.mubr.bf16.gmra.mxu0 %v5241_v55  ;;  %v5174_v63 = vmax.f32 %v5048_v54, 0.0 }
 0x53e   : > { %v5050_v41 = vadd.f32 %v12818_v32, %v4893_v51  ;;  %v5817_v24 = vmax.f32 %v5516_v5, 0.0  ;;  %v5175_v49 = vmax.f32 %v5049_v14, 0.0  ;;  %v5936_v46 = vpack.c.bf16 %v5816_v59, %v5814_v56 }
 0x53f   : > { %v4898_v50 = vpop.f32.mrf.mxu1  ;;  %v5521_v8 = vpop.f32.mrf.mxu0  ;;  %v4897_v21 = vadd.f32 %v4896_v6, %v13289_v12 }
 0x540   : > { %v5176_v43 = vmax.f32 %v5050_v41, 0.0  ;;  %v4899_v7 = vadd.f32 %v4898_v50, %v13295_v0  ;;  %v5937_v33 = vpack.c.bf16 %v5817_v24, %v5815_v10  ;;  %v5520_v0 = vadd.f32 %v5519_v44, %v13357_v4 }
 0x541   : > { %v4900_v35 = vpop.f32.mrf.mxu1  ;;  %v5523_v29 = vpop.f32.mrf.mxu0  ;;  %v5522_v34 = vadd.f32 %v5521_v8, %v13354_v61  ;;  %v5243_v37 = vpack.c.bf16 %v5175_v49, %v5173_v36  ;;  %v5051_v27 = vadd.f32 %v12828_v20, %v4897_v21 }
 0x542   : > { %v4901_v23 = vadd.f32 %v4900_v35, %v13298_v47  ;;  %v5524_v60 = vadd.f32 %v5523_v29, %v13357_v4  ;;  %6252 = vmatprep.mubr.bf16.mxu1 %v5937_v33  ;;  %v5244_v12 = vpack.c.bf16 %v5176_v43, %v5174_v63  ;;  %v5052_v52 = vadd.f32 %v12818_v32, %v4899_v7 }
 0x543   : > { %v4902_v15 = vpop.f32.mrf.mxu1  ;;  %v5525_v53 = vpop.f32.mrf.mxu0  ;;  %6253 = vmatmul.mubr.bf16.gmra.mxu1 %v5936_v46  ;;  %v5819_v26 = vmax.f32 %v5522_v34, 0.0  ;;  %v5818_v30 = vmax.f32 %v5520_v0, 0.0  ;;  %v5177_v6 = vmax.f32 %v5051_v27, 0.0 }
 0x544   : > { %v5053_v47 = vadd.f32 %v12828_v20, %v4901_v23  ;;  %v4903_v19 = vadd.f32 %v4902_v15, %v13302_v9  ;;  %v5526_v31 = vadd.f32 %v5525_v53, %v13354_v61  ;;  %5767 = vmatprep.mubr.bf16.mxu0 %v5244_v12  ;;  %v5820_v58 = vmax.f32 %v5524_v60, 0.0 }
 0x545   : > { %v4906_v39 = vpop.f32.mrf.mxu1  ;;  %v5529_v3 = vpop.f32.mrf.mxu0  ;;  %5768 = vmatmul.mubr.bf16.gmra.mxu0 %v5243_v37  ;;  %v5178_v14 = vmax.f32 %v5052_v52, 0.0 }
 0x546   : > { %v5054_v62 = vadd.f32 %v12818_v32, %v4903_v19  ;;  %v5821_v2 = vmax.f32 %v5526_v31, 0.0  ;;  %v5179_v1 = vmax.f32 %v5053_v47, 0.0  ;;  %v4907_v51 = vadd.f32 %v4906_v39, %v13311_v38 }
 0x547   : > { %v4908_v57 = vpop.f32.mrf.mxu1  ;;  %v5531_v9 = vpop.f32.mrf.mxu0  ;;  %v5938_v44 = vpack.c.bf16 %v5820_v58, %v5818_v30  ;;  %v5530_v10 = vadd.f32 %v5529_v3, %v13357_v4  ;;  %v10920_v3 = vld [vmem:[%s15172_s17 + $0xa4] ss:$8 sps:$4 sm:$0xff]   ;;  %v10918_v58 = vld [vmem:[%s15172_s17 + $0xa0] ss:$8 sps:$4 sm:$0xff]  }
 0x548   : > { %v5180_v55 = vmax.f32 %v5054_v62, 0.0  ;;  %v4909_v13 = vadd.f32 %v4908_v57, %v13317_v40  ;;  %v5939_v5 = vpack.c.bf16 %v5821_v2, %v5819_v26  ;;  %v5532_v50 = vadd.f32 %v5531_v9, %v13354_v61  ;;  %6971 = vmatprep.subr.bf16.mxu0 %v10920_v3 }
 0x549   : > { %v4910_v42 = vpop.f32.mrf.mxu1  ;;  %v5533_v54 = vpop.f32.mrf.mxu0  ;;  %v5245_v38 = vpack.c.bf16 %v5179_v1, %v5177_v6  ;;  %v5822_v33 = vmax.f32 %v5530_v10, 0.0  ;;  %6972 = vmatpush2.bf16.msra.mxu0 %v10918_v58 }
 0x54a   : > { %v4911_v59 = vadd.f32 %v4910_v42, %v13320_v48  ;;  %v5534_v41 = vadd.f32 %v5533_v54, %v13357_v4  ;;  %v5056_v24 = vadd.f32 %v12818_v32, %v4909_v13  ;;  %6262 = vmatprep.mubr.bf16.mxu1 %v5939_v5  ;;  %v5246_v56 = vpack.c.bf16 %v5180_v55, %v5178_v14 }
 0x54b   : > { %v4912_v40 = vpop.f32.mrf.mxu1  ;;  %v5535_v8 = vpop.f32.mrf.mxu0  ;;  %6263 = vmatmul.mubr.bf16.gmra.mxu1 %v5938_v44  ;;  %v5055_v48 = vadd.f32 %v12828_v20, %v4907_v51  ;;  %v5823_v21 = vmax.f32 %v5532_v50, 0.0 }
 0x54c   : > { %v5057_v49 = vadd.f32 %v12828_v20, %v4911_v59  ;;  %v4913_v43 = vadd.f32 %v4912_v40, %v13324_v16  ;;  %v5824_v36 = vmax.f32 %v5534_v41, 0.0  ;;  %v5536_v63 = vadd.f32 %v5535_v8, %v13354_v61  ;;  %5777 = vmatprep.mubr.bf16.mxu0 %v5246_v56 }
 0x54d   : > { %v4916_v7 = vpop.f32.mrf.mxu1  ;;  %v5539_v35 = vpop.f32.mrf.mxu0  ;;  %5778 = vmatmul.mubr.bf16.gmra.mxu0 %v5245_v38  ;;  %v5182_v46 = vmax.f32 %v5056_v24, 0.0  ;;  %v5181_v15 = vmax.f32 %v5055_v48, 0.0 }
 0x54e   : > { %v5058_v29 = vadd.f32 %v12818_v32, %v4913_v43  ;;  %v5825_v23 = vmax.f32 %v5536_v63, 0.0  ;;  %v5183_v18 = vmax.f32 %v5057_v49, 0.0  ;;  %v4917_v0 = vadd.f32 %v4916_v7, %v13327_v11  ;;  %v10921_v7 = vld [vmem:[%s15172_s17 + $0x90] ss:$8 sps:$4 sm:$0xff]  }
 0x54f   : > { %v4918_v60 = vpop.f32.mrf.mxu1  ;;  %v5541_v45 = vpop.f32.mrf.mxu0  ;;  %v5940_v53 = vpack.c.bf16 %v5824_v36, %v5822_v33  ;;  %v5540_v11 = vadd.f32 %v5539_v35, %v13357_v4  ;;  %v10923_v35 = vld [vmem:[%s15172_s17 + $0x94] ss:$8 sps:$4 sm:$0xff]  }
 0x550   : > { %v5184_v16 = vmax.f32 %v5058_v29, 0.0  ;;  %v4919_v34 = vadd.f32 %v4918_v60, %v13333_v17  ;;  %v5941_v37 = vpack.c.bf16 %v5825_v23, %v5823_v21  ;;  %v5542_v52 = vadd.f32 %v5541_v45, %v13354_v61  ;;  %6973 = vmatprep.subr.bf16.mxu0 %v10923_v35 }
 0x551   : > { %v5543_v12 = vpop.f32.mrf.mxu0  ;;  %v4920_v47 = vpop.f32.mrf.mxu1  ;;  %v5247_v62 = vpack.c.bf16 %v5183_v18, %v5181_v15  ;;  %v5826_v51 = vmax.f32 %v5540_v11, 0.0  ;;  %6974 = vmatpush2.bf16.msra.mxu0 %v10921_v7  ;;  %v10926_v15 = vld [vmem:[%s15174_s19 + $0x74] ss:$8 sps:$4 sm:$0xff]  }
 0x552   : > { %v5060_v19 = vadd.f32 %v12818_v32, %v4919_v34  ;;  %v5544_v31 = vadd.f32 %v5543_v12, %v13357_v4  ;;  %v5248_v39 = vpack.c.bf16 %v5184_v16, %v5182_v46  ;;  %6272 = vmatprep.mubr.bf16.mxu1 %v5941_v37  ;;  %v5059_v32 = vadd.f32 %v12828_v20, %v4917_v0  ;;  %v13462_v34 = vld [vmem:[%s15174_s19 + $0x70] ss:$8 sps:$4 sm:$0xff]  }
 0x553   : > { %v5545_v17 = vpop.f32.mrf.mxu0  ;;  %v4921_v27 = vpop.f32.mrf.mxu1  ;;  %6273 = vmatmul.mubr.bf16.gmra.mxu1 %v5940_v53  ;;  %v5827_v30 = vmax.f32 %v5542_v52, 0.0  ;;  %10494 = vmatprep.subr.bf16.mxu1 %v10926_v15 }
 0x554   : > { %v5186_v26 = vmax.f32 %v5060_v19, 0.0  ;;  %v5546_v2 = vadd.f32 %v5545_v17, %v13354_v61  ;;  %5787 = vmatprep.mubr.bf16.mxu0 %v5248_v39  ;;  %v5828_v1 = vmax.f32 %v5544_v31, 0.0  ;;  %v5185_v14 = vmax.f32 %v5059_v32, 0.0  ;;  %10510 = vmatpush1.bf16.msra.mxu1 %v13462_v34 }
 0x555   : > { %v5549_v57 = vpop.f32.mrf.mxu0  ;;  %5788 = vmatmul.mubr.bf16.gmra.mxu0 %v5247_v62 }
 0x556   : > { %v5250_v9 = vpack.c.bf16 %v5186_v26, %v5186_v26  ;;  %v5829_v55 = vmax.f32 %v5546_v2, 0.0  ;;  %v5942_v20 = vpack.c.bf16 %v5828_v1, %v5826_v51  ;;  %v5249_v59 = vpack.c.bf16 %v5185_v14, %v5185_v14 }
 0x557   : > { %v5551_v13 = vpop.f32.mrf.mxu0  ;;  %v5550_v41 = vadd.f32 %v5549_v57, %v13357_v4 }
 0x558   : > { %5797 = vmatprep.mubr.bf16.mxu0 %v5250_v9  ;;  %v5943_v42 = vpack.c.bf16 %v5829_v55, %v5827_v30  ;;  %v5552_v5 = vadd.f32 %v5551_v13, %v13354_v61  ;;  %v10927_v9 = vld [vmem:[%s15172_s17 + $0x80] ss:$8 sps:$4 sm:$0xff]   ;;  %v10929_v30 = vld [vmem:[%s15172_s17 + $0x84] ss:$8 sps:$4 sm:$0xff]  }
 0x559   : > { %v5553_v54 = vpop.f32.mrf.mxu0  ;;  %v5830_v38 = vmax.f32 %v5550_v41, 0.0  ;;  %6975 = vmatprep.subr.bf16.mxu0 %v10929_v30  ;;  %v13490_v41 = vld [vmem:[%s15174_s19 + $0x64] ss:$8 sps:$4 sm:$0xff]  }
 0x55a   : > { %v5554_v6 = vadd.f32 %v5553_v54, %v13357_v4  ;;  %6282 = vmatprep.mubr.bf16.mxu1 %v5943_v42  ;;  %v5831_v50 = vmax.f32 %v5552_v5, 0.0  ;;  %6976 = vmatpush2.bf16.msra.mxu0 %v10927_v9 }
 0x55b   : > { %v5555_v44 = vpop.f32.mrf.mxu0  ;;  %6283 = vmatmul.mubr.bf16.gmra.mxu1 %v5942_v20  ;;  %7690 = vmatprep.subr.bf16.mxu0 %v10926_v15 }
 0x55c   : > { %v5556_v10 = vadd.f32 %v5555_v44, %v13354_v61  ;;  %v5832_v40 = vmax.f32 %v5554_v6, 0.0  ;;  %10495 = vmatprep.subr.bf16.mxu1 %v13490_v41 }
 0x55d   : > { %v5559_v24 = vpop.f32.mrf.mxu0  ;;  %5798 = vmatmul.mubr.bf16.gmra.mxu0 %v5249_v59  ;;  %v13485_v59 = vld [vmem:[%s15174_s19 + $0x60] ss:$8 sps:$4 sm:$0xff]  }
 0x55e   : > { %v5833_v8 = vmax.f32 %v5556_v10, 0.0  ;;  %v5944_v48 = vpack.c.bf16 %v5832_v40, %v5830_v38  ;;  %v5560_v33 = vadd.f32 %v5559_v24, %v13357_v4  ;;  %10511 = vmatpush1.bf16.msra.mxu1 %v13485_v59 }
 0x55f   : > { %v5561_v56 = vpop.f32.mrf.mxu0 }
 0x560   : > { %v5945_v49 = vpack.c.bf16 %v5833_v8, %v5831_v50  ;;  %v5562_v36 = vadd.f32 %v5561_v56, %v13354_v61  ;;  %v5834_v16 = vmax.f32 %v5560_v33, 0.0 }
 0x561   : > { %v5563_v43 = vpop.f32.mrf.mxu0 }
 0x562   : > { %v5564_v63 = vadd.f32 %v5563_v43, %v13357_v4  ;;  %6292 = vmatprep.mubr.bf16.mxu1 %v5945_v49  ;;  %v5835_v23 = vmax.f32 %v5562_v36, 0.0 }
 0x563   : > { %v5565_v29 = vpop.f32.mrf.mxu0  ;;  %6293 = vmatmul.mubr.bf16.gmra.mxu1 %v5944_v48 }
 0x564   : > { %v5566_v46 = vadd.f32 %v5565_v29, %v13354_v61  ;;  %v5836_v60 = vmax.f32 %v5564_v63, 0.0 }
 0x565   : > { %v5569_v21 = vpop.f32.mrf.mxu0 }
 0x566   : > { %v5837_v45 = vmax.f32 %v5566_v46, 0.0  ;;  %v5946_v12 = vpack.c.bf16 %v5836_v60, %v5834_v16  ;;  %v5570_v52 = vadd.f32 %v5569_v21, %v13357_v4 }
 0x567   : > { %v5571_v18 = vpop.f32.mrf.mxu0 }
 0x568   : > { %v5947_v0 = vpack.c.bf16 %v5837_v45, %v5835_v23  ;;  %v5572_v37 = vadd.f32 %v5571_v18, %v13354_v61  ;;  %v5838_v58 = vmax.f32 %v5570_v52, 0.0 }
 0x569   : > { %v5573_v53 = vpop.f32.mrf.mxu0 }
 0x56a   : > { %v5574_v47 = vadd.f32 %v5573_v53, %v13357_v4  ;;  %6302 = vmatprep.mubr.bf16.mxu1 %v5947_v0  ;;  %v5839_v3 = vmax.f32 %v5572_v37, 0.0 }
 0x56b   : > { %v5575_v19 = vpop.f32.mrf.mxu0  ;;  %6303 = vmatmul.mubr.bf16.gmra.mxu1 %v5946_v12 }
 0x56c   : > { %v5576_v31 = vadd.f32 %v5575_v19, %v13354_v61  ;;  %v5840_v11 = vmax.f32 %v5574_v47, 0.0  ;;  %v13505_v47 = vld [vmem:[%s15174_s19 + $0x50] ss:$8 sps:$4 sm:$0xff]   ;;  %v13510_v19 = vld [vmem:[%s15174_s19 + $0x54] ss:$8 sps:$4 sm:$0xff]  }
 0x56d   : > { %v5579_v39 = vpop.f32.mrf.mxu0  ;;  %10496 = vmatprep.subr.bf16.mxu1 %v13510_v19 }
 0x56e   : > { %v5841_v17 = vmax.f32 %v5576_v31, 0.0  ;;  %v5948_v26 = vpack.c.bf16 %v5840_v11, %v5838_v58  ;;  %v5580_v55 = vadd.f32 %v5579_v39, %v13357_v4  ;;  %10512 = vmatpush1.bf16.msra.mxu1 %v13505_v47 }
 0x56f   : > { %v5581_v27 = vpop.f32.mrf.mxu0 }
 0x570   : > { %v5949_v62 = vpack.c.bf16 %v5841_v17, %v5839_v3  ;;  %v5582_v2 = vadd.f32 %v5581_v27, %v13354_v61  ;;  %v5842_v5 = vmax.f32 %v5580_v55, 0.0 }
 0x571   : > { %v5583_v32 = vpop.f32.mrf.mxu0 }
 0x572   : > { %v5584_v57 = vadd.f32 %v5583_v32, %v13357_v4  ;;  %6312 = vmatprep.mubr.bf16.mxu1 %v5949_v62  ;;  %v5843_v51 = vmax.f32 %v5582_v2, 0.0 }
 0x573   : > { %v5585_v1 = vpop.f32.mrf.mxu0  ;;  %6313 = vmatmul.mubr.bf16.gmra.mxu1 %v5948_v26 }
 0x574   : > { %v5586_v13 = vadd.f32 %v5585_v1, %v13354_v61  ;;  %v5844_v42 = vmax.f32 %v5584_v57, 0.0 }
 0x575   : > { %v5589_v14 = vpop.f32.mrf.mxu0 }
 0x576   : > { %v5845_v54 = vmax.f32 %v5586_v13, 0.0  ;;  %v5950_v10 = vpack.c.bf16 %v5844_v42, %v5842_v5  ;;  %v5590_v8 = vadd.f32 %v5589_v14, %v13357_v4 }
 0x577   : > { %v5591_v20 = vpop.f32.mrf.mxu0 }
 0x578   : > { %v5951_v6 = vpack.c.bf16 %v5845_v54, %v5843_v51  ;;  %v5592_v24 = vadd.f32 %v5591_v20, %v13354_v61  ;;  %v5846_v63 = vmax.f32 %v5590_v8, 0.0 }
 0x579   : > { %v5593_v44 = vpop.f32.mrf.mxu0 }
 0x57a   : > { %v5594_v50 = vadd.f32 %v5593_v44, %v13357_v4  ;;  %6322 = vmatprep.mubr.bf16.mxu1 %v5951_v6  ;;  %v5847_v49 = vmax.f32 %v5592_v24, 0.0 }
 0x57b   : > { %v5595_v40 = vpop.f32.mrf.mxu0  ;;  %6323 = vmatmul.mubr.bf16.gmra.mxu1 %v5950_v10 }
 0x57c   : > { %v5596_v56 = vadd.f32 %v5595_v40, %v13354_v61  ;;  %v5848_v43 = vmax.f32 %v5594_v50, 0.0  ;;  %v13525_v50 = vld [vmem:[%s15174_s19 + $0x40] ss:$8 sps:$4 sm:$0xff]   ;;  %v13530_v40 = vld [vmem:[%s15174_s19 + $0x44] ss:$8 sps:$4 sm:$0xff]  }
 0x57d   : > { %v5599_v38 = vpop.f32.mrf.mxu0  ;;  %10497 = vmatprep.subr.bf16.mxu1 %v13530_v40 }
 0x57e   : > { %v5849_v48 = vmax.f32 %v5596_v56, 0.0  ;;  %v5952_v29 = vpack.c.bf16 %v5848_v43, %v5846_v63  ;;  %v5600_v23 = vadd.f32 %v5599_v38, %v13357_v4  ;;  %10513 = vmatpush1.bf16.msra.mxu1 %v13525_v50 }
 0x57f   : > { %v5601_v36 = vpop.f32.mrf.mxu0 }
 0x580   : > { %v5953_v7 = vpack.c.bf16 %v5849_v48, %v5847_v49  ;;  %v5602_v33 = vadd.f32 %v5601_v36, %v13354_v61  ;;  %v5850_v53 = vmax.f32 %v5600_v23, 0.0 }
 0x581   : > { %v5603_v35 = vpop.f32.mrf.mxu0 }
 0x582   : > { %v5604_v46 = vadd.f32 %v5603_v35, %v13357_v4  ;;  %6332 = vmatprep.mubr.bf16.mxu1 %v5953_v7  ;;  %v5851_v18 = vmax.f32 %v5602_v33, 0.0 }
 0x583   : > { %v5605_v21 = vpop.f32.mrf.mxu0  ;;  %6333 = vmatmul.mubr.bf16.gmra.mxu1 %v5952_v29 }
 0x584   : > { %v5606_v60 = vadd.f32 %v5605_v21, %v13354_v61  ;;  %v5852_v16 = vmax.f32 %v5604_v46, 0.0 }
 0x585   : > { %v5609_v45 = vpop.f32.mrf.mxu0 }
 0x586   : > { %v5853_v0 = vmax.f32 %v5606_v60, 0.0  ;;  %v5954_v52 = vpack.c.bf16 %v5852_v16, %v5850_v53  ;;  %v5610_v11 = vadd.f32 %v5609_v45, %v13357_v4 }
 0x587   : > { %v5611_v15 = vpop.f32.mrf.mxu0 }
 0x588   : > { %v5955_v12 = vpack.c.bf16 %v5853_v0, %v5851_v18  ;;  %v5612_v31 = vadd.f32 %v5611_v15, %v13354_v61  ;;  %v5854_v2 = vmax.f32 %v5610_v11, 0.0  ;;  %v13545_v11 = vld [vmem:[%s15174_s19 + $0x30] ss:$8 sps:$4 sm:$0xff]  }
 0x589   : > { %v5613_v37 = vpop.f32.mrf.mxu0 }
 0x58a   : > { %v5614_v39 = vadd.f32 %v5613_v37, %v13357_v4  ;;  %6342 = vmatprep.mubr.bf16.mxu1 %v5955_v12  ;;  %v5855_v58 = vmax.f32 %v5612_v31, 0.0 }
 0x58b   : > { %v5615_v3 = vpop.f32.mrf.mxu0  ;;  %6343 = vmatmul.mubr.bf16.gmra.mxu1 %v5954_v52 }
 0x58c   : > { %v5616_v17 = vadd.f32 %v5615_v3, %v13354_v61  ;;  %v5856_v62 = vmax.f32 %v5614_v39, 0.0 }
 0x58d   : > { %v5619_v27 = vpop.f32.mrf.mxu0 }
 0x58e   : > { %v5857_v32 = vmax.f32 %v5616_v17, 0.0  ;;  %v5956_v30 = vpack.c.bf16 %v5856_v62, %v5854_v2  ;;  %v5620_v14 = vadd.f32 %v5619_v27, %v13357_v4  ;;  %v13550_v17 = vld [vmem:[%s15174_s19 + $0x34] ss:$8 sps:$4 sm:$0xff]  }
 0x58f   : > { %v5621_v26 = vpop.f32.mrf.mxu0  ;;  %10498 = vmatprep.subr.bf16.mxu1 %v13550_v17 }
 0x590   : > { %v5957_v57 = vpack.c.bf16 %v5857_v32, %v5855_v58  ;;  %v5622_v1 = vadd.f32 %v5621_v26, %v13354_v61  ;;  %v5858_v44 = vmax.f32 %v5620_v14, 0.0  ;;  %10514 = vmatpush1.bf16.msra.mxu1 %v13545_v11 }
 0x591   : > { %v5623_v9 = vpop.f32.mrf.mxu0 }
 0x592   : > { %v5624_v55 = vadd.f32 %v5623_v9, %v13357_v4  ;;  %6352 = vmatprep.mubr.bf16.mxu1 %v5957_v57  ;;  %v5859_v54 = vmax.f32 %v5622_v1, 0.0 }
 0x593   : > { %v5625_v13 = vpop.f32.mrf.mxu0  ;;  %6353 = vmatmul.mubr.bf16.gmra.mxu1 %v5956_v30 }
 0x594   : > { %v5626_v51 = vadd.f32 %v5625_v13, %v13354_v61  ;;  %v5860_v20 = vmax.f32 %v5624_v55, 0.0 }
 0x595   : > { %v5629_v42 = vpop.f32.mrf.mxu0 }
 0x596   : > { %v5861_v5 = vmax.f32 %v5626_v51, 0.0  ;;  %v5958_v8 = vpack.c.bf16 %v5860_v20, %v5858_v44  ;;  %v5630_v43 = vadd.f32 %v5629_v42, %v13357_v4 }
 0x597   : > { %v5631_v6 = vpop.f32.mrf.mxu0 }
 0x598   : > { %v5959_v10 = vpack.c.bf16 %v5861_v5, %v5859_v54  ;;  %v5632_v56 = vadd.f32 %v5631_v6, %v13354_v61  ;;  %v5862_v33 = vmax.f32 %v5630_v43, 0.0 }
 0x599   : > { %v5633_v24 = vpop.f32.mrf.mxu0 }
 0x59a   : > { %v5634_v38 = vadd.f32 %v5633_v24, %v13357_v4  ;;  %6362 = vmatprep.mubr.bf16.mxu1 %v5959_v10  ;;  %v5863_v63 = vmax.f32 %v5632_v56, 0.0 }
 0x59b   : > { %v5635_v49 = vpop.f32.mrf.mxu0  ;;  %6363 = vmatmul.mubr.bf16.gmra.mxu1 %v5958_v8 }
 0x59c   : > { %v5636_v48 = vadd.f32 %v5635_v49, %v13354_v61  ;;  %v5864_v7 = vmax.f32 %v5634_v38, 0.0 }
 0x59d   : > { %v5639_v36 = vpop.f32.mrf.mxu0 }
 0x59e   : > { %v5865_v35 = vmax.f32 %v5636_v48, 0.0  ;;  %v5960_v23 = vpack.c.bf16 %v5864_v7, %v5862_v33  ;;  %v5640_v16 = vadd.f32 %v5639_v36, %v13357_v4  ;;  %v13565_v36 = vld [vmem:[%s15174_s19 + $0x20] ss:$8 sps:$4 sm:$0xff]  }
 0x59f   : > { %v5641_v29 = vpop.f32.mrf.mxu0 }
 0x5a0   : > { %v5961_v46 = vpack.c.bf16 %v5865_v35, %v5863_v63  ;;  %v5642_v60 = vadd.f32 %v5641_v29, %v13354_v61  ;;  %v5866_v31 = vmax.f32 %v5640_v16, 0.0  ;;  %v13570_v63 = vld [vmem:[%s15174_s19 + $0x24] ss:$8 sps:$4 sm:$0xff]  }
 0x5a1   : > { %v5643_v21 = vpop.f32.mrf.mxu0  ;;  %10499 = vmatprep.subr.bf16.mxu1 %v13570_v63 }
 0x5a2   : > { %v5644_v45 = vadd.f32 %v5643_v21, %v13357_v4  ;;  %6372 = vmatprep.mubr.bf16.mxu1 %v5961_v46  ;;  %v5867_v53 = vmax.f32 %v5642_v60, 0.0  ;;  %10515 = vmatpush1.bf16.msra.mxu1 %v13565_v36 }
 0x5a3   : > { %v5645_v18 = vpop.f32.mrf.mxu0  ;;  %6373 = vmatmul.mubr.bf16.gmra.mxu1 %v5960_v23 }
 0x5a4   : > { %v5646_v0 = vadd.f32 %v5645_v18, %v13354_v61  ;;  %v5868_v12 = vmax.f32 %v5644_v45, 0.0 }
 0x5a5   : > { %v5649_v15 = vpop.f32.mrf.mxu0 }
 0x5a6   : > { %v5869_v37 = vmax.f32 %v5646_v0, 0.0  ;;  %v5962_v27 = vpack.c.bf16 %v5868_v12, %v5866_v31  ;;  %v5650_v26 = vadd.f32 %v5649_v15, %v13357_v4 }
 0x5a7   : > { %v5651_v52 = vpop.f32.mrf.mxu0 }
 0x5a8   : > { %v5963_v39 = vpack.c.bf16 %v5869_v37, %v5867_v53  ;;  %v5652_v58 = vadd.f32 %v5651_v52, %v13354_v61  ;;  %v5870_v13 = vmax.f32 %v5650_v26, 0.0 }
 0x5a9   : > { %v5653_v3 = vpop.f32.mrf.mxu0 }
 0x5aa   : > { %v5654_v62 = vadd.f32 %v5653_v3, %v13357_v4  ;;  %6382 = vmatprep.mubr.bf16.mxu1 %v5963_v39  ;;  %v5871_v9 = vmax.f32 %v5652_v58, 0.0 }
 0x5ab   : > { %v5655_v32 = vpop.f32.mrf.mxu0  ;;  %6383 = vmatmul.mubr.bf16.gmra.mxu1 %v5962_v27 }
 0x5ac   : > { %v5656_v2 = vadd.f32 %v5655_v32, %v13354_v61  ;;  %v5872_v30 = vmax.f32 %v5654_v62, 0.0 }
 0x5ad   : > { %v5659_v57 = vpop.f32.mrf.mxu0 }
 0x5ae   : > { %v5873_v1 = vmax.f32 %v5656_v2, 0.0  ;;  %v5964_v42 = vpack.c.bf16 %v5872_v30, %v5870_v13  ;;  %v5660_v6 = vadd.f32 %v5659_v57, %v13357_v4  ;;  %v13585_v30 = vld [vmem:[%s15174_s19 + $0x10] ss:$8 sps:$4 sm:$0xff]  }
 0x5af   : > { %v5661_v55 = vpop.f32.mrf.mxu0 }
 0x5b0   : > { %v5965_v14 = vpack.c.bf16 %v5873_v1, %v5871_v9  ;;  %v5662_v54 = vadd.f32 %v5661_v55, %v13354_v61  ;;  %v5874_v49 = vmax.f32 %v5660_v6, 0.0  ;;  %v13590_v1 = vld [vmem:[%s15174_s19 + $0x14] ss:$8 sps:$4 sm:$0xff]  }
 0x5b1   : > { %v5663_v51 = vpop.f32.mrf.mxu0  ;;  %10500 = vmatprep.subr.bf16.mxu1 %v13590_v1 }
 0x5b2   : > { %v5664_v20 = vadd.f32 %v5663_v51, %v13357_v4  ;;  %6392 = vmatprep.mubr.bf16.mxu1 %v5965_v14  ;;  %v5875_v24 = vmax.f32 %v5662_v54, 0.0  ;;  %10516 = vmatpush1.bf16.msra.mxu1 %v13585_v30 }
 0x5b3   : > { %v5665_v5 = vpop.f32.mrf.mxu0  ;;  %6393 = vmatmul.mubr.bf16.gmra.mxu1 %v5964_v42 }
 0x5b4   : > { %v5666_v44 = vadd.f32 %v5665_v5, %v13354_v61  ;;  %v5876_v8 = vmax.f32 %v5664_v20, 0.0 }
 0x5b5   : > { %v5669_v10 = vpop.f32.mrf.mxu0 }
 0x5b6   : > { %v5877_v56 = vmax.f32 %v5666_v44, 0.0  ;;  %v5966_v7 = vpack.c.bf16 %v5876_v8, %v5874_v49  ;;  %v5670_v46 = vadd.f32 %v5669_v10, %v13357_v4 }
 0x5b7   : > { %v5671_v38 = vpop.f32.mrf.mxu0 }
 0x5b8   : > { %v5967_v43 = vpack.c.bf16 %v5877_v56, %v5875_v24  ;;  %v5672_v35 = vadd.f32 %v5671_v38, %v13354_v61  ;;  %v5878_v0 = vmax.f32 %v5670_v46, 0.0 }
 0x5b9   : > { %v5673_v48 = vpop.f32.mrf.mxu0 }
 0x5ba   : > { %v5674_v29 = vadd.f32 %v5673_v48, %v13357_v4  ;;  %6402 = vmatprep.mubr.bf16.mxu1 %v5967_v43  ;;  %v5879_v60 = vmax.f32 %v5672_v35, 0.0 }
 0x5bb   : > { %v5675_v33 = vpop.f32.mrf.mxu0  ;;  %6403 = vmatmul.mubr.bf16.gmra.mxu1 %v5966_v7 }
 0x5bc   : > { %v5676_v21 = vadd.f32 %v5675_v33, %v13354_v61  ;;  %v5880_v45 = vmax.f32 %v5674_v29, 0.0 }
 0x5bd   : > { %v5679_v23 = vpop.f32.mrf.mxu0 }
 0x5be   : > { %v5881_v18 = vmax.f32 %v5676_v21, 0.0  ;;  %v5968_v12 = vpack.c.bf16 %v5880_v45, %v5878_v0  ;;  %v5680_v39 = vadd.f32 %v5679_v23, %v13357_v4  ;;  %v13610_v0 = vld [vmem:[%s15174_s19 + $0x4] ss:$8 sps:$4 sm:$0xff]  }
 0x5bf   : > { %v5681_v16 = vpop.f32.mrf.mxu0  ;;  %10501 = vmatprep.subr.bf16.mxu1 %v13610_v0 }
 0x5c0   : > { %v5969_v15 = vpack.c.bf16 %v5881_v18, %v5879_v60  ;;  %v5682_v37 = vadd.f32 %v5681_v16, %v13354_v61  ;;  %v5882_v2 = vmax.f32 %v5680_v39, 0.0  ;;  %v13605_v16 = vld [vmem:[%s15174_s19] ss:$8 sps:$4 sm:$0xff]  }
 0x5c1   : > { %v5683_v53 = vpop.f32.mrf.mxu0  ;;  %10517 = vmatpush1.bf16.msra.mxu1 %v13605_v16 }
 0x5c2   : > { %v5684_v52 = vadd.f32 %v5683_v53, %v13357_v4  ;;  %6412 = vmatprep.mubr.bf16.mxu1 %v5969_v15  ;;  %v5883_v58 = vmax.f32 %v5682_v37, 0.0 }
 0x5c3   : > { %v5685_v31 = vpop.f32.mrf.mxu0  ;;  %6413 = vmatmul.mubr.bf16.gmra.mxu1 %v5968_v12 }
 0x5c4   : > { %v5686_v3 = vadd.f32 %v5685_v31, %v13354_v61  ;;  %v5884_v62 = vmax.f32 %v5684_v52, 0.0 }
 0x5c5   : > { %v5689_v27 = vpop.f32.mrf.mxu0 }
 0x5c6   : > { %v5885_v32 = vmax.f32 %v5686_v3, 0.0  ;;  %v5970_v55 = vpack.c.bf16 %v5884_v62, %v5882_v2  ;;  %v5690_v42 = vadd.f32 %v5689_v27, %v13357_v4 }
 0x5c7   : > { %v5691_v26 = vpop.f32.mrf.mxu0 }
 0x5c8   : > { %v5971_v57 = vpack.c.bf16 %v5885_v32, %v5883_v58  ;;  %v5692_v13 = vadd.f32 %v5691_v26, %v13354_v61  ;;  %v5886_v24 = vmax.f32 %v5690_v42, 0.0 }
 0x5c9   : > { %v5693_v9 = vpop.f32.mrf.mxu0 }
 0x5ca   : > { %v5694_v14 = vadd.f32 %v5693_v9, %v13357_v4  ;;  %6422 = vmatprep.mubr.bf16.mxu1 %v5971_v57  ;;  %v5887_v5 = vmax.f32 %v5692_v13, 0.0 }
 0x5cb   : > { %v5695_v51 = vpop.f32.mrf.mxu0  ;;  %6423 = vmatmul.mubr.bf16.gmra.mxu1 %v5970_v55 }
 0x5cc   : > { %v5696_v54 = vadd.f32 %v5695_v51, %v13354_v61  ;;  %v5888_v6 = vmax.f32 %v5694_v14, 0.0 }
 0x5cd   : > { %v5699_v20 = vpop.f32.mrf.mxu0 }
 0x5ce   : > { %v5889_v44 = vmax.f32 %v5696_v54, 0.0  ;;  %v5972_v38 = vpack.c.bf16 %v5888_v6, %v5886_v24  ;;  %v5700_v7 = vadd.f32 %v5699_v20, %v13357_v4 }
 0x5cf   : > { %v5701_v10 = vpop.f32.mrf.mxu0 }
 0x5d0   : > { %v5973_v8 = vpack.c.bf16 %v5889_v44, %v5887_v5  ;;  %v5702_v49 = vadd.f32 %v5701_v10, %v13354_v61  ;;  %v5890_v60 = vmax.f32 %v5700_v7, 0.0 }
 0x5d1   : > { %v5703_v56 = vpop.f32.mrf.mxu0 }
 0x5d2   : > { %v5704_v43 = vadd.f32 %v5703_v56, %v13357_v4  ;;  %6432 = vmatprep.mubr.bf16.mxu1 %v5973_v8  ;;  %v5891_v33 = vmax.f32 %v5702_v49, 0.0  ;;  %v13625_v8 = vld [vmem:[%s15174_s19 + $0xf0] ss:$8 sps:$4 sm:$0xff]   ;;  %v13630_v56 = vld [vmem:[%s15174_s19 + $0xf4] ss:$8 sps:$4 sm:$0xff]  }
 0x5d3   : > { %v5705_v48 = vpop.f32.mrf.mxu0  ;;  %6433 = vmatmul.mubr.bf16.gmra.mxu1 %v5972_v38  ;;  %10502 = vmatprep.subr.bf16.mxu1 %v13630_v56 }
 0x5d4   : > { %v5706_v35 = vadd.f32 %v5705_v48, %v13354_v61  ;;  %v5892_v46 = vmax.f32 %v5704_v43, 0.0  ;;  %10518 = vmatpush2.bf16.msra.mxu1 %v13625_v8 }
 0x5d5   : > { %v5709_v29 = vpop.f32.mrf.mxu0 }
 0x5d6   : > { %v5893_v21 = vmax.f32 %v5706_v35, 0.0  ;;  %v5974_v15 = vpack.c.bf16 %v5892_v46, %v5890_v60  ;;  %v5710_v52 = vadd.f32 %v5709_v29, %v13357_v4 }
 0x5d7   : > { %v5711_v23 = vpop.f32.mrf.mxu0 }
 0x5d8   : > { %v5975_v45 = vpack.c.bf16 %v5893_v21, %v5891_v33  ;;  %v5712_v53 = vadd.f32 %v5711_v23, %v13354_v61  ;;  %v5894_v32 = vmax.f32 %v5710_v52, 0.0 }
 0x5d9   : > { %v5713_v18 = vpop.f32.mrf.mxu0 }
 0x5da   : > { %v5714_v12 = vadd.f32 %v5713_v18, %v13357_v4  ;;  %6442 = vmatprep.mubr.bf16.mxu1 %v5975_v45  ;;  %v5895_v3 = vmax.f32 %v5712_v53, 0.0 }
 0x5db   : > { %v5715_v37 = vpop.f32.mrf.mxu0  ;;  %6443 = vmatmul.mubr.bf16.gmra.mxu1 %v5974_v15 }
 0x5dc   : > { %v5716_v31 = vadd.f32 %v5715_v37, %v13354_v61  ;;  %v5896_v27 = vmax.f32 %v5714_v12, 0.0 }
 0x5dd   : > { %v5719_v39 = vpop.f32.mrf.mxu0 }
 0x5de   : > { %v5897_v58 = vmax.f32 %v5716_v31, 0.0  ;;  %v5976_v57 = vpack.c.bf16 %v5896_v27, %v5894_v32  ;;  %v5720_v14 = vadd.f32 %v5719_v39, %v13357_v4  ;;  %v6028_v39 = vld [vmem:[%s15171_s16] sm:$0x3] }
 0x5df   : > { %v5721_v62 = vpop.f32.mrf.mxu0 }
 0x5e0   : > { %v5977_v26 = vpack.c.bf16 %v5897_v58, %v5895_v3  ;;  %v5722_v9 = vadd.f32 %v5721_v62, %v13354_v61  ;;  %v5898_v44 = vmax.f32 %v5720_v14, 0.0 }
 0x5e1   : > { %v5723_v2 = vpop.f32.mrf.mxu0 }
 0x5e2   : > { %v5724_v55 = vadd.f32 %v5723_v2, %v13357_v4  ;;  %6452 = vmatprep.mubr.bf16.mxu1 %v5977_v26  ;;  %v5899_v54 = vmax.f32 %v5722_v9, 0.0  ;;  %v13646_v26 = vrot.slane %v6028_v39, %v11709_v25 }
 0x5e3   : > { %v5725_v13 = vpop.f32.mrf.mxu0  ;;  %6453 = vmatmul.mubr.bf16.gmra.mxu1 %v5976_v57  ;;  %v13649_v57 = vrot.slane %v6028_v39, %v11717_v28 }
 0x5e4   : > { %v5726_v51 = vadd.f32 %v5725_v13, %v13354_v61  ;;  %v5900_v20 = vmax.f32 %v5724_v55, 0.0 }
 0x5e5   : > { %v5729_v42 = vpop.f32.mrf.mxu0 }
 0x5e6   : > { %v5901_v5 = vmax.f32 %v5726_v51, 0.0  ;;  %v5978_v38 = vpack.c.bf16 %v5900_v20, %v5898_v44  ;;  %v5730_v7 = vadd.f32 %v5729_v42, %v13357_v4  ;;  %v13655_v42 = vld [vmem:[%s15174_s19 + $0xe0] ss:$8 sps:$4 sm:$0xff]  }
 0x5e7   : > { %v5731_v6 = vpop.f32.mrf.mxu0 }
 0x5e8   : > { %v5979_v10 = vpack.c.bf16 %v5901_v5, %v5899_v54  ;;  %v5732_v49 = vadd.f32 %v5731_v6, %v13354_v61  ;;  %v5902_v60 = vmax.f32 %v5730_v7, 0.0  ;;  %v13660_v54 = vld [vmem:[%s15174_s19 + $0xe4] ss:$8 sps:$4 sm:$0xff]  }
 0x5e9   : > { %v5733_v24 = vpop.f32.mrf.mxu0  ;;  %10503 = vmatprep.subr.bf16.mxu1 %v13660_v54 }
 0x5ea   : > { %v5734_v43 = vadd.f32 %v5733_v24, %v13357_v4  ;;  %6462 = vmatprep.mubr.bf16.mxu1 %v5979_v10  ;;  %v5903_v33 = vmax.f32 %v5732_v49, 0.0  ;;  %10519 = vmatpush2.bf16.msra.mxu1 %v13655_v42 }
 0x5eb   : > { %v5735_v48 = vpop.f32.mrf.mxu0  ;;  %6463 = vmatmul.mubr.bf16.gmra.mxu1 %v5978_v38 }
 0x5ec   : > { %v5736_v35 = vadd.f32 %v5735_v48, %v13354_v61  ;;  %v5904_v46 = vmax.f32 %v5734_v43, 0.0 }
 0x5ed   : > { %v5739_v29 = vpop.f32.mrf.mxu0 }
 0x5ee   : > { %v5905_v21 = vmax.f32 %v5736_v35, 0.0  ;;  %v5980_v15 = vpack.c.bf16 %v5904_v46, %v5902_v60  ;;  %v5740_v52 = vadd.f32 %v5739_v29, %v13357_v4 }
 0x5ef   : > { %v5741_v23 = vpop.f32.mrf.mxu0 }
 0x5f0   : > { %v5981_v45 = vpack.c.bf16 %v5905_v21, %v5903_v33  ;;  %v5742_v53 = vadd.f32 %v5741_v23, %v13354_v61  ;;  %v5906_v9 = vmax.f32 %v5740_v52, 0.0 }
 0x5f1   : > { %v5743_v18 = vpop.f32.mrf.mxu0 }
 0x5f2   : > { %v5744_v12 = vadd.f32 %v5743_v18, %v13357_v4  ;;  %6472 = vmatprep.mubr.bf16.mxu1 %v5981_v45  ;;  %v5907_v27 = vmax.f32 %v5742_v53, 0.0 }
 0x5f3   : > { %v5745_v37 = vpop.f32.mrf.mxu0  ;;  %v6234_v3 = vpop.f32.mrf.mxu1  ;;  %6473 = vmatmul.mubr.bf16.gmra.mxu1 %v5980_v15 }
 0x5f4   : > { %v5746_v31 = vadd.f32 %v5745_v37, %v13354_v61  ;;  %v5908_v58 = vmax.f32 %v5744_v12, 0.0  ;;  %v6235_v10 = vadd.f32 %v6234_v3, %v13649_v57 }
 0x5f5   : > { %v5749_v32 = vpop.f32.mrf.mxu0  ;;  %v6236_v2 = vpop.f32.mrf.mxu1 }
 0x5f6   : > { %v5909_v62 = vmax.f32 %v5746_v31, 0.0  ;;  %v5982_v20 = vpack.c.bf16 %v5908_v58, %v5906_v9  ;;  %v6237_v5 = vadd.f32 %v6236_v2, %v13646_v26  ;;  %v5750_v7 = vadd.f32 %v5749_v32, %v13357_v4 }
 0x5f7   : > { %v5751_v55 = vpop.f32.mrf.mxu0  ;;  %v6238_v13 = vpop.f32.mrf.mxu1  ;;  %v6551_v60 = vmax.f32 %v6235_v10, 0.0 }
 0x5f8   : > { %v5983_v14 = vpack.c.bf16 %v5909_v62, %v5907_v27  ;;  %v6239_v51 = vadd.f32 %v6238_v13, %v13649_v57  ;;  %v5752_v49 = vadd.f32 %v5751_v55, %v13354_v61  ;;  %v6552_v46 = vmax.f32 %v6237_v5, 0.0 }
 0x5f9   : > { %v5753_v6 = vpop.f32.mrf.mxu0  ;;  %v6240_v44 = vpop.f32.mrf.mxu1  ;;  %v5910_v52 = vmax.f32 %v5750_v7, 0.0 }
 0x5fa   : > { %6482 = vmatprep.mubr.bf16.mxu1 %v5983_v14  ;;  %v5754_v24 = vadd.f32 %v5753_v6, %v13357_v4  ;;  %v6241_v38 = vadd.f32 %v6240_v44, %v13646_v26  ;;  %v6553_v35 = vmax.f32 %v6239_v51, 0.0  ;;  %v5911_v15 = vmax.f32 %v5752_v49, 0.0 }
 0x5fb   : > { %v5755_v43 = vpop.f32.mrf.mxu0  ;;  %v6244_v48 = vpop.f32.mrf.mxu1  ;;  %6483 = vmatmul.mubr.bf16.gmra.mxu1 %v5982_v20 }
 0x5fc   : > { %v6554_v29 = vmax.f32 %v6241_v38, 0.0  ;;  %v5756_v33 = vadd.f32 %v5755_v43, %v13354_v61  ;;  %v5912_v45 = vmax.f32 %v5754_v24, 0.0  ;;  %v6677_v31 = vpack.c.bf16 %v6553_v35, %v6551_v60 }
 0x5fd   : > { %v5759_v21 = vpop.f32.mrf.mxu0  ;;  %v6246_v23 = vpop.f32.mrf.mxu1  ;;  %v6245_v2 = vadd.f32 %v6244_v48, %v13649_v57 }
 0x5fe   : > { %v5913_v18 = vmax.f32 %v5756_v33, 0.0  ;;  %v6678_v37 = vpack.c.bf16 %v6554_v29, %v6552_v46  ;;  %v6247_v3 = vadd.f32 %v6246_v23, %v13646_v26  ;;  %v5984_v32 = vpack.c.bf16 %v5912_v45, %v5910_v52 }
 0x5ff   : > { %v5761_v53 = vpop.f32.mrf.mxu0  ;;  %v6248_v12 = vpop.f32.mrf.mxu1  ;;  %v5760_v20 = vadd.f32 %v5759_v21, %v13357_v4  ;;  %v6555_v49 = vmax.f32 %v6245_v2, 0.0 }
 0x600   : > { %v6249_v39 = vadd.f32 %v6248_v12, %v13649_v57  ;;  %6977 = vmatprep.mubr.bf16.mxu0 %v6678_v37  ;;  %v5985_v62 = vpack.c.bf16 %v5913_v18, %v5911_v15  ;;  %v5762_v13 = vadd.f32 %v5761_v53, %v13354_v61  ;;  %v6556_v10 = vmax.f32 %v6247_v3, 0.0 }
 0x601   : > { %v5763_v27 = vpop.f32.mrf.mxu0  ;;  %v6250_v58 = vpop.f32.mrf.mxu1  ;;  %6978 = vmatmul.mubr.bf16.vlgmr.msra.gmra.mxu0 %v6677_v31 }
 0x602   : > { %v5764_v9 = vadd.f32 %v5763_v27, %v13357_v4  ;;  %v6251_v55 = vadd.f32 %v6250_v58, %v13646_v26  ;;  %6492 = vmatprep.mubr.bf16.mxu1 %v5985_v62  ;;  %7691 = vmatpush1.bf16.msra.mxu0 %v13462_v34  ;;  %v6557_v5 = vmax.f32 %v6249_v39, 0.0  ;;  %v5915_v7 = vmax.f32 %v5762_v13, 0.0 }
 0x603   : > { %v5765_v14 = vpop.f32.mrf.mxu0  ;;  %v6254_v51 = vpop.f32.mrf.mxu1  ;;  %6493 = vmatmul.mubr.bf16.gmra.mxu1 %v5984_v32  ;;  %7692 = vmatprep.subr.bf16.mxu0 %v13490_v41  ;;  %v5914_v34 = vmax.f32 %v5760_v20, 0.0  ;;  %v13687_v41 = vld [vmem:[%s15174_s19 + $0xd4] ss:$8 sps:$4 sm:$0xff]  }
 0x604   : > { %v6558_v6 = vmax.f32 %v6251_v55, 0.0  ;;  %v5766_v44 = vadd.f32 %v5765_v14, %v13354_v61  ;;  %v5916_v43 = vmax.f32 %v5764_v9, 0.0  ;;  %v6679_v46 = vpack.c.bf16 %v6557_v5, %v6555_v49  ;;  %10504 = vmatprep.subr.bf16.mxu1 %v13687_v41 }
 0x605   : > { %v5769_v24 = vpop.f32.mrf.mxu0  ;;  %v6256_v38 = vpop.f32.mrf.mxu1  ;;  %v6255_v23 = vadd.f32 %v6254_v51, %v13649_v57 }
 0x606   : > { %v5917_v48 = vmax.f32 %v5766_v44, 0.0  ;;  %v6680_v33 = vpack.c.bf16 %v6558_v6, %v6556_v10  ;;  %7693 = vmatpush1.bf16.msra.mxu0 %v13485_v59  ;;  %v6257_v60 = vadd.f32 %v6256_v38, %v13646_v26  ;;  %v13694_v59 = vld [vmem:[%s15174_s19 + $0xd0] ss:$8 sps:$4 sm:$0xff]   ;;  %v5986_v53 = vpack.c.bf16 %v5916_v43, %v5914_v34 }
 0x607   : > { %v5771_v35 = vpop.f32.mrf.mxu0  ;;  %v6258_v29 = vpop.f32.mrf.mxu1  ;;  %7694 = vmatprep.subr.bf16.mxu0 %v13510_v19  ;;  %v5770_v39 = vadd.f32 %v5769_v24, %v13357_v4  ;;  %10520 = vmatpush2.bf16.msra.mxu1 %v13694_v59  ;;  %v6559_v9 = vmax.f32 %v6255_v23, 0.0 }
 0x608   : > { %v6259_v21 = vadd.f32 %v6258_v29, %v13649_v57  ;;  %6987 = vmatprep.mubr.bf16.mxu0 %v6680_v33  ;;  %v5987_v15 = vpack.c.bf16 %v5917_v48, %v5915_v7  ;;  %v5772_v37 = vadd.f32 %v5771_v35, %v13354_v61  ;;  %v6560_v62 = vmax.f32 %v6257_v60, 0.0 }
 0x609   : > { %v5773_v45 = vpop.f32.mrf.mxu0  ;;  %v6260_v18 = vpop.f32.mrf.mxu1  ;;  %6988 = vmatmul.mubr.bf16.gmra.mxu0 %v6679_v46  ;;  %v5918_v5 = vmax.f32 %v5770_v39, 0.0 }
 0x60a   : > { %v5774_v19 = vadd.f32 %v5773_v45, %v13357_v4  ;;  %v6261_v12 = vadd.f32 %v6260_v18, %v13646_v26  ;;  %6502 = vmatprep.mubr.bf16.mxu1 %v5987_v15  ;;  %7695 = vmatpush1.bf16.msra.mxu0 %v13505_v47  ;;  %v6561_v3 = vmax.f32 %v6259_v21, 0.0  ;;  %v5919_v14 = vmax.f32 %v5772_v37, 0.0 }
 0x60b   : > { %v5775_v52 = vpop.f32.mrf.mxu0  ;;  %v6264_v31 = vpop.f32.mrf.mxu1  ;;  %6503 = vmatmul.mubr.bf16.gmra.mxu1 %v5986_v53  ;;  %7696 = vmatprep.subr.bf16.mxu0 %v13530_v40 }
 0x60c   : > { %v6562_v27 = vmax.f32 %v6261_v12, 0.0  ;;  %v5776_v58 = vadd.f32 %v5775_v52, %v13354_v61  ;;  %v5920_v55 = vmax.f32 %v5774_v19, 0.0  ;;  %v6681_v6 = vpack.c.bf16 %v6561_v3, %v6559_v9 }
 0x60d   : > { %v5779_v32 = vpop.f32.mrf.mxu0  ;;  %v6266_v2 = vpop.f32.mrf.mxu1  ;;  %v6265_v43 = vadd.f32 %v6264_v31, %v13649_v57 }
 0x60e   : > { %v5921_v13 = vmax.f32 %v5776_v58, 0.0  ;;  %v6682_v20 = vpack.c.bf16 %v6562_v27, %v6560_v62  ;;  %7697 = vmatpush1.bf16.msra.mxu0 %v13525_v50  ;;  %v6267_v40 = vadd.f32 %v6266_v2, %v13646_v26  ;;  %v5988_v49 = vpack.c.bf16 %v5920_v55, %v5918_v5 }
 0x60f   : > { %v5781_v51 = vpop.f32.mrf.mxu0  ;;  %v6268_v47 = vpop.f32.mrf.mxu1  ;;  %7698 = vmatprep.subr.bf16.mxu0 %v13550_v17  ;;  %v5780_v17 = vadd.f32 %v5779_v32, %v13357_v4  ;;  %v6563_v45 = vmax.f32 %v6265_v43, 0.0 }
 0x610   : > { %v6269_v44 = vadd.f32 %v6268_v47, %v13649_v57  ;;  %6997 = vmatprep.mubr.bf16.mxu0 %v6682_v20  ;;  %v5989_v38 = vpack.c.bf16 %v5921_v13, %v5919_v14  ;;  %v5782_v50 = vadd.f32 %v5781_v51, %v13354_v61  ;;  %v6564_v21 = vmax.f32 %v6267_v40, 0.0 }
 0x611   : > { %v5783_v10 = vpop.f32.mrf.mxu0  ;;  %v6270_v24 = vpop.f32.mrf.mxu1  ;;  %6998 = vmatmul.mubr.bf16.gmra.mxu0 %v6681_v6 }
 0x612   : > { %v5784_v48 = vadd.f32 %v5783_v10, %v13357_v4  ;;  %v6271_v7 = vadd.f32 %v6270_v24, %v13646_v26  ;;  %6512 = vmatprep.mubr.bf16.mxu1 %v5989_v38  ;;  %7699 = vmatpush1.bf16.msra.mxu0 %v13545_v11  ;;  %v6565_v33 = vmax.f32 %v6269_v44, 0.0  ;;  %v5923_v53 = vmax.f32 %v5782_v50, 0.0 }
 0x613   : > { %v5785_v35 = vpop.f32.mrf.mxu0  ;;  %v6274_v29 = vpop.f32.mrf.mxu1  ;;  %6513 = vmatmul.mubr.bf16.gmra.mxu1 %v5988_v49  ;;  %7700 = vmatprep.subr.bf16.mxu0 %v13570_v63  ;;  %v5922_v11 = vmax.f32 %v5780_v17, 0.0  ;;  %v13723_v63 = vld [vmem:[%s15174_s19 + $0xc4] ss:$8 sps:$4 sm:$0xff]  }
 0x614   : > { %v6566_v34 = vmax.f32 %v6271_v7, 0.0  ;;  %v5786_v46 = vadd.f32 %v5785_v35, %v13354_v61  ;;  %v5924_v18 = vmax.f32 %v5784_v48, 0.0  ;;  %v6683_v52 = vpack.c.bf16 %v6565_v33, %v6563_v45  ;;  %10505 = vmatprep.subr.bf16.mxu1 %v13723_v63 }
 0x615   : > { %v5789_v23 = vpop.f32.mrf.mxu0  ;;  %v6276_v60 = vpop.f32.mrf.mxu1  ;;  %v6275_v39 = vadd.f32 %v6274_v29, %v13649_v57 }
 0x616   : > { %v5925_v15 = vmax.f32 %v5786_v46, 0.0  ;;  %v6684_v37 = vpack.c.bf16 %v6566_v34, %v6564_v21  ;;  %7701 = vmatpush1.bf16.msra.mxu0 %v13565_v36  ;;  %v6277_v3 = vadd.f32 %v6276_v60, %v13646_v26  ;;  %v13730_v36 = vld [vmem:[%s15174_s19 + $0xc0] ss:$8 sps:$4 sm:$0xff]   ;;  %v5990_v32 = vpack.c.bf16 %v5924_v18, %v5922_v11 }
 0x617   : > { %v5791_v19 = vpop.f32.mrf.mxu0  ;;  %v6278_v12 = vpop.f32.mrf.mxu1  ;;  %7702 = vmatprep.subr.bf16.mxu0 %v13590_v1  ;;  %v5790_v9 = vadd.f32 %v5789_v23, %v13357_v4  ;;  %10521 = vmatpush2.bf16.msra.mxu1 %v13730_v36  ;;  %v6567_v40 = vmax.f32 %v6275_v39, 0.0 }
 0x618   : > { %v6279_v31 = vadd.f32 %v6278_v12, %v13649_v57  ;;  %7007 = vmatprep.mubr.bf16.mxu0 %v6684_v37  ;;  %v5991_v62 = vpack.c.bf16 %v5925_v15, %v5923_v53  ;;  %v5792_v55 = vadd.f32 %v5791_v19, %v13354_v61  ;;  %v6568_v5 = vmax.f32 %v6277_v3, 0.0 }
 0x619   : > { %v5793_v27 = vpop.f32.mrf.mxu0  ;;  %v6280_v58 = vpop.f32.mrf.mxu1  ;;  %7008 = vmatmul.mubr.bf16.gmra.mxu0 %v6683_v52  ;;  %v5926_v38 = vmax.f32 %v5790_v9, 0.0 }
 0x61a   : > { %v5794_v1 = vadd.f32 %v5793_v27, %v13357_v4  ;;  %v6281_v2 = vadd.f32 %v6280_v58, %v13646_v26  ;;  %6522 = vmatprep.mubr.bf16.mxu1 %v5991_v62  ;;  %7703 = vmatpush1.bf16.msra.mxu0 %v13585_v30  ;;  %v6569_v51 = vmax.f32 %v6279_v31, 0.0  ;;  %v5927_v49 = vmax.f32 %v5792_v55, 0.0  ;;  %v10963_v31 = vld [vmem:[%s15174_s19 + $0xb0] ss:$8 sps:$4 sm:$0xff]  }
 0x61b   : > { %v5795_v13 = vpop.f32.mrf.mxu0  ;;  %v6284_v14 = vpop.f32.mrf.mxu1  ;;  %6523 = vmatmul.mubr.bf16.gmra.mxu1 %v5990_v32  ;;  %7704 = vmatprep.subr.bf16.mxu0 %v13610_v0 }
 0x61c   : > { %v6570_v47 = vmax.f32 %v6281_v2, 0.0  ;;  %v5796_v20 = vadd.f32 %v5795_v13, %v13354_v61  ;;  %v5928_v10 = vmax.f32 %v5794_v1, 0.0  ;;  %v6685_v7 = vpack.c.bf16 %v6569_v51, %v6567_v40 }
 0x61d   : > { %v5799_v6 = vpop.f32.mrf.mxu0  ;;  %v6286_v44 = vpop.f32.mrf.mxu1  ;;  %v6285_v29 = vadd.f32 %v6284_v14, %v13649_v57 }
 0x61e   : > { %v5929_v24 = vmax.f32 %v5796_v20, 0.0  ;;  %v6686_v30 = vpack.c.bf16 %v6570_v47, %v6568_v5  ;;  %7705 = vmatpush1.bf16.msra.mxu0 %v13605_v16  ;;  %v6287_v50 = vadd.f32 %v6286_v44, %v13646_v26  ;;  %v5992_v46 = vpack.c.bf16 %v5928_v10, %v5926_v38 }
 0x61f   : > { %v5801_v43 = vpop.f32.mrf.mxu0  ;;  %v6288_v48 = vpop.f32.mrf.mxu1  ;;  %7706 = vmatprep.subr.bf16.mxu0 %v13630_v56  ;;  %v5800_v21 = vadd.f32 %v5799_v6, %v13357_v4  ;;  %v6571_v19 = vmax.f32 %v6285_v29, 0.0 }
 0x620   : > { %v5802_v0 = vadd.f32 %v5801_v43, %v13354_v61  ;;  %v6289_v35 = vadd.f32 %v6288_v48, %v13649_v57  ;;  %7017 = vmatprep.mubr.bf16.mxu0 %v6686_v30  ;;  %v5993_v34 = vpack.c.bf16 %v5929_v24, %v5927_v49  ;;  %v6572_v45 = vmax.f32 %v6287_v50, 0.0  ;;  %v10966_v48 = vld [vmem:[%s15174_s19 + $0xa0] ss:$8 sps:$4 sm:$0xff]   ;;  %v10968_v30 = vld [vmem:[%s15174_s19 + $0xa4] ss:$8 sps:$4 sm:$0xff]  }
 0x621   : > { %v5803_v17 = vpop.f32.mrf.mxu0  ;;  %v6290_v33 = vpop.f32.mrf.mxu1  ;;  %7018 = vmatmul.mubr.bf16.gmra.mxu0 %v6685_v7  ;;  %v5930_v12 = vmax.f32 %v5800_v21, 0.0 }
 0x622   : > { %v5931_v23 = vmax.f32 %v5802_v0, 0.0  ;;  %v6291_v16 = vadd.f32 %v6290_v33, %v13646_v26  ;;  %6532 = vmatprep.mubr.bf16.mxu1 %v5993_v34  ;;  %7707 = vmatpush2.bf16.msra.mxu0 %v13625_v8  ;;  %v6573_v18 = vmax.f32 %v6289_v35, 0.0 }
 0x623   : > { %v5804_v60 = vpop.f32.mrf.mxu0  ;;  %v6294_v61 = vpop.f32.mrf.mxu1  ;;  %6533 = vmatmul.mubr.bf16.gmra.mxu1 %v5992_v46  ;;  %7708 = vmatprep.subr.bf16.mxu0 %v13660_v54  ;;  %v10965_v54 = vld [vmem:[%s15174_s19 + $0xb4] ss:$8 sps:$4 sm:$0xff]   ;;  %v5994_v3 = vpack.c.bf16 %v5930_v12, %v5930_v12 }
 0x624   : > { %v5995_v56 = vpack.c.bf16 %v5931_v23, %v5931_v23  ;;  %v6574_v15 = vmax.f32 %v6291_v16, 0.0  ;;  %v6687_v11 = vpack.c.bf16 %v6573_v18, %v6571_v19  ;;  %10506 = vmatprep.subr.bf16.mxu1 %v10965_v54 }
 0x625   : > { %v6296_v53 = vpop.f32.mrf.mxu1  ;;  %10522 = vmatpush2.bf16.msra.mxu1 %v10963_v31 }
 0x626   : > { %6542 = vmatprep.mubr.bf16.mxu1 %v5995_v56  ;;  %v6688_v4 = vpack.c.bf16 %v6574_v15, %v6572_v45  ;;  %7709 = vmatpush2.bf16.msra.mxu0 %v13655_v42  ;;  %v6297_v52 = vadd.f32 %v6296_v53, %v13646_v26  ;;  %v6295_v42 = vadd.f32 %v6294_v61, %v13649_v57 }
 0x627   : > { %v6298_v37 = vpop.f32.mrf.mxu1  ;;  %7710 = vmatprep.subr.bf16.mxu0 %v13687_v41  ;;  %10507 = vmatprep.subr.bf16.mxu1 %v10968_v30 }
 0x628   : > { %v6299_v8 = vadd.f32 %v6298_v37, %v13649_v57  ;;  %7027 = vmatprep.mubr.bf16.mxu0 %v6688_v4  ;;  %v6576_v62 = vmax.f32 %v6297_v52, 0.0  ;;  %v6575_v41 = vmax.f32 %v6295_v42, 0.0 }
 0x629   : > { %v6300_v39 = vpop.f32.mrf.mxu1  ;;  %7028 = vmatmul.mubr.bf16.gmra.mxu0 %v6687_v11  ;;  %10523 = vmatpush2.bf16.msra.mxu1 %v10966_v48 }
 0x62a   : > { %v6301_v27 = vadd.f32 %v6300_v39, %v13646_v26  ;;  %7711 = vmatpush2.bf16.msra.mxu0 %v13694_v59  ;;  %v6577_v32 = vmax.f32 %v6299_v8, 0.0 }
 0x62b   : > { %v6304_v58 = vpop.f32.mrf.mxu1  ;;  %6543 = vmatmul.mubr.bf16.gmra.mxu1 %v5994_v3  ;;  %7712 = vmatprep.subr.bf16.mxu0 %v13723_v63 }
 0x62c   : > { %v6578_v1 = vmax.f32 %v6301_v27, 0.0  ;;  %v6689_v13 = vpack.c.bf16 %v6577_v32, %v6575_v41  ;;  %v6305_v47 = vadd.f32 %v6304_v58, %v13649_v57  ;;  %v10969_v58 = vld [vmem:[%s15174_s19 + $0x90] ss:$8 sps:$4 sm:$0xff]  }
 0x62d   : > { %v6306_v2 = vpop.f32.mrf.mxu1 }
 0x62e   : > { %v6690_v9 = vpack.c.bf16 %v6578_v1, %v6576_v62  ;;  %7713 = vmatpush2.bf16.msra.mxu0 %v13730_v36  ;;  %v6307_v14 = vadd.f32 %v6306_v2, %v13646_v26  ;;  %v6579_v36 = vmax.f32 %v6305_v47, 0.0  ;;  %v10971_v62 = vld [vmem:[%s15174_s19 + $0x94] ss:$8 sps:$4 sm:$0xff]  }
 0x62f   : > { %v6308_v55 = vpop.f32.mrf.mxu1  ;;  %7714 = vmatprep.subr.bf16.mxu0 %v10965_v54  ;;  %10508 = vmatprep.subr.bf16.mxu1 %v10971_v62 }
 0x630   : > { %v6309_v51 = vadd.f32 %v6308_v55, %v13649_v57  ;;  %7037 = vmatprep.mubr.bf16.mxu0 %v6690_v9  ;;  %v6580_v5 = vmax.f32 %v6307_v14, 0.0  ;;  %10524 = vmatpush2.bf16.msra.mxu1 %v10969_v58 }
 0x631   : > { %v6310_v59 = vpop.f32.mrf.mxu1  ;;  %7038 = vmatmul.mubr.bf16.gmra.mxu0 %v6689_v13 }
 0x632   : > { %v6311_v20 = vadd.f32 %v6310_v59, %v13646_v26  ;;  %7715 = vmatpush2.bf16.msra.mxu0 %v10963_v31  ;;  %v6581_v6 = vmax.f32 %v6309_v51, 0.0 }
 0x633   : > { %v6314_v63 = vpop.f32.mrf.mxu1  ;;  %7716 = vmatprep.subr.bf16.mxu0 %v10968_v30 }
 0x634   : > { %v6582_v44 = vmax.f32 %v6311_v20, 0.0  ;;  %v6691_v38 = vpack.c.bf16 %v6581_v6, %v6579_v36  ;;  %v6315_v50 = vadd.f32 %v6314_v63, %v13649_v57 }
 0x635   : > { %v6316_v40 = vpop.f32.mrf.mxu1 }
 0x636   : > { %v6692_v10 = vpack.c.bf16 %v6582_v44, %v6580_v5  ;;  %v6317_v49 = vadd.f32 %v6316_v40, %v13646_v26  ;;  %7717 = vmatpush2.bf16.msra.mxu0 %v10966_v48  ;;  %v6583_v46 = vmax.f32 %v6315_v50, 0.0 }
 0x637   : > { %v6318_v24 = vpop.f32.mrf.mxu1  ;;  %7718 = vmatprep.subr.bf16.mxu0 %v10971_v62 }
 0x638   : > { %v6319_v43 = vadd.f32 %v6318_v24, %v13649_v57  ;;  %7047 = vmatprep.mubr.bf16.mxu0 %v6692_v10  ;;  %v6584_v29 = vmax.f32 %v6317_v49, 0.0 }
 0x639   : > { %v6320_v7 = vpop.f32.mrf.mxu1  ;;  %7048 = vmatmul.mubr.bf16.gmra.mxu0 %v6691_v38 }
 0x63a   : > { %v6321_v0 = vadd.f32 %v6320_v7, %v13646_v26  ;;  %v6585_v17 = vmax.f32 %v6319_v43, 0.0  ;;  %7719 = vmatpush2.bf16.msra.mxu0 %v10969_v58 }
 0x63b   : > { %v6324_v35 = vpop.f32.mrf.mxu1 }
 0x63c   : > { %v6586_v33 = vmax.f32 %v6321_v0, 0.0  ;;  %v6693_v16 = vpack.c.bf16 %v6585_v17, %v6583_v46  ;;  %v6325_v56 = vadd.f32 %v6324_v35, %v13649_v57  ;;  %v10972_v35 = vld [vmem:[%s15174_s19 + $0x80] ss:$8 sps:$4 sm:$0xff]  }
 0x63d   : > { %v6326_v34 = vpop.f32.mrf.mxu1 }
 0x63e   : > { %v6694_v21 = vpack.c.bf16 %v6586_v33, %v6584_v29  ;;  %v6327_v60 = vadd.f32 %v6326_v34, %v13646_v26  ;;  %v6587_v37 = vmax.f32 %v6325_v56, 0.0  ;;  %v10974_v29 = vld [vmem:[%s15174_s19 + $0x84] ss:$8 sps:$4 sm:$0xff]  }
 0x63f   : > { %v6328_v23 = vpop.f32.mrf.mxu1  ;;  %10509 = vmatprep.subr.bf16.mxu1 %v10974_v29  ;;  %7720 = vmatprep.subr.bf16.mxu0 %v10974_v29 }
 0x640   : > { %v6329_v61 = vadd.f32 %v6328_v23, %v13649_v57  ;;  %7057 = vmatprep.mubr.bf16.mxu0 %v6694_v21  ;;  %v6588_v53 = vmax.f32 %v6327_v60, 0.0  ;;  %10525 = vmatpush2.bf16.msra.mxu1 %v10972_v35 }
 0x641   : > { %v6330_v45 = vpop.f32.mrf.mxu1  ;;  %7058 = vmatmul.mubr.bf16.gmra.mxu0 %v6693_v16 }
 0x642   : > { %v6331_v18 = vadd.f32 %v6330_v45, %v13646_v26  ;;  %v6589_v19 = vmax.f32 %v6329_v61, 0.0  ;;  %7721 = vmatpush2.bf16.msra.mxu0 %v10972_v35 }
 0x643   : > { %v6334_v15 = vpop.f32.mrf.mxu1 }
 0x644   : > { %v6590_v12 = vmax.f32 %v6331_v18, 0.0  ;;  %v6695_v8 = vpack.c.bf16 %v6589_v19, %v6587_v37  ;;  %v6335_v3 = vadd.f32 %v6334_v15, %v13649_v57 }
 0x645   : > { %v6336_v4 = vpop.f32.mrf.mxu1 }
 0x646   : > { %v6696_v11 = vpack.c.bf16 %v6590_v12, %v6588_v53  ;;  %v6337_v31 = vadd.f32 %v6336_v4, %v13646_v26  ;;  %v6591_v9 = vmax.f32 %v6335_v3, 0.0 }
 0x647   : > { %v6338_v52 = vpop.f32.mrf.mxu1 }
 0x648   : > { %v6339_v54 = vadd.f32 %v6338_v52, %v13649_v57  ;;  %7067 = vmatprep.mubr.bf16.mxu0 %v6696_v11  ;;  %v6592_v32 = vmax.f32 %v6337_v31, 0.0 }
 0x649   : > { %v6340_v39 = vpop.f32.mrf.mxu1  ;;  %7068 = vmatmul.mubr.bf16.gmra.mxu0 %v6695_v8 }
 0x64a   : > { %v6341_v42 = vadd.f32 %v6340_v39, %v13646_v26  ;;  %v6593_v1 = vmax.f32 %v6339_v54, 0.0 }
 0x64b   : > { %v6344_v27 = vpop.f32.mrf.mxu1 }
 0x64c   : > { %v6594_v2 = vmax.f32 %v6341_v42, 0.0  ;;  %v6697_v14 = vpack.c.bf16 %v6593_v1, %v6591_v9  ;;  %v6345_v20 = vadd.f32 %v6344_v27, %v13649_v57 }
 0x64d   : > { %v6346_v41 = vpop.f32.mrf.mxu1 }
 0x64e   : > { %v6698_v55 = vpack.c.bf16 %v6594_v2, %v6592_v32  ;;  %v6347_v51 = vadd.f32 %v6346_v41, %v13646_v26  ;;  %v6595_v10 = vmax.f32 %v6345_v20, 0.0 }
 0x64f   : > { %v6348_v13 = vpop.f32.mrf.mxu1 }
 0x650   : > { %v6349_v59 = vadd.f32 %v6348_v13, %v13649_v57  ;;  %7077 = vmatprep.mubr.bf16.mxu0 %v6698_v55  ;;  %v6596_v6 = vmax.f32 %v6347_v51, 0.0 }
 0x651   : > { %v6350_v47 = vpop.f32.mrf.mxu1  ;;  %7078 = vmatmul.mubr.bf16.gmra.mxu0 %v6697_v14 }
 0x652   : > { %v6351_v63 = vadd.f32 %v6350_v47, %v13646_v26  ;;  %v6597_v44 = vmax.f32 %v6349_v59, 0.0 }
 0x653   : > { %v6354_v5 = vpop.f32.mrf.mxu1 }
 0x654   : > { %v6598_v40 = vmax.f32 %v6351_v63, 0.0  ;;  %v6699_v49 = vpack.c.bf16 %v6597_v44, %v6595_v10  ;;  %v6355_v7 = vadd.f32 %v6354_v5, %v13649_v57 }
 0x655   : > { %v6356_v36 = vpop.f32.mrf.mxu1 }
 0x656   : > { %v6700_v24 = vpack.c.bf16 %v6598_v40, %v6596_v6  ;;  %v6357_v43 = vadd.f32 %v6356_v36, %v13646_v26  ;;  %v6599_v21 = vmax.f32 %v6355_v7, 0.0 }
 0x657   : > { %v6358_v38 = vpop.f32.mrf.mxu1 }
 0x658   : > { %v6359_v48 = vadd.f32 %v6358_v38, %v13649_v57  ;;  %7087 = vmatprep.mubr.bf16.mxu0 %v6700_v24  ;;  %v6600_v17 = vmax.f32 %v6357_v43, 0.0 }
 0x659   : > { %v6360_v30 = vpop.f32.mrf.mxu1  ;;  %7088 = vmatmul.mubr.bf16.gmra.mxu0 %v6699_v49 }
 0x65a   : > { %v6361_v50 = vadd.f32 %v6360_v30, %v13646_v26  ;;  %v6601_v33 = vmax.f32 %v6359_v48, 0.0 }
 0x65b   : > { %v6364_v0 = vpop.f32.mrf.mxu1 }
 0x65c   : > { %v6602_v34 = vmax.f32 %v6361_v50, 0.0  ;;  %v6701_v60 = vpack.c.bf16 %v6601_v33, %v6599_v21  ;;  %v6365_v18 = vadd.f32 %v6364_v0, %v13649_v57 }
 0x65d   : > { %v6366_v46 = vpop.f32.mrf.mxu1 }
 0x65e   : > { %v6702_v23 = vpack.c.bf16 %v6602_v34, %v6600_v17  ;;  %v6367_v61 = vadd.f32 %v6366_v46, %v13646_v26  ;;  %v6603_v11 = vmax.f32 %v6365_v18, 0.0 }
 0x65f   : > { %v6368_v16 = vpop.f32.mrf.mxu1 }
 0x660   : > { %v6369_v45 = vadd.f32 %v6368_v16, %v13649_v57  ;;  %7097 = vmatprep.mubr.bf16.mxu0 %v6702_v23  ;;  %v6604_v19 = vmax.f32 %v6367_v61, 0.0 }
 0x661   : > { %v6370_v56 = vpop.f32.mrf.mxu1  ;;  %7098 = vmatmul.mubr.bf16.gmra.mxu0 %v6701_v60 }
 0x662   : > { %v6371_v15 = vadd.f32 %v6370_v56, %v13646_v26  ;;  %v6605_v12 = vmax.f32 %v6369_v45, 0.0 }
 0x663   : > { %v6374_v53 = vpop.f32.mrf.mxu1 }
 0x664   : > { %v6606_v4 = vmax.f32 %v6371_v15, 0.0  ;;  %v6703_v31 = vpack.c.bf16 %v6605_v12, %v6603_v11  ;;  %v6375_v42 = vadd.f32 %v6374_v53, %v13649_v57 }
 0x665   : > { %v6376_v37 = vpop.f32.mrf.mxu1 }
 0x666   : > { %v6704_v52 = vpack.c.bf16 %v6606_v4, %v6604_v19  ;;  %v6377_v54 = vadd.f32 %v6376_v37, %v13646_v26  ;;  %v6607_v41 = vmax.f32 %v6375_v42, 0.0 }
 0x667   : > { %v6378_v8 = vpop.f32.mrf.mxu1 }
 0x668   : > { %v6379_v39 = vadd.f32 %v6378_v8, %v13649_v57  ;;  %7107 = vmatprep.mubr.bf16.mxu0 %v6704_v52  ;;  %v6608_v62 = vmax.f32 %v6377_v54, 0.0 }
 0x669   : > { %v6380_v3 = vpop.f32.mrf.mxu1  ;;  %7108 = vmatmul.mubr.bf16.gmra.mxu0 %v6703_v31 }
 0x66a   : > { %v6381_v27 = vadd.f32 %v6380_v3, %v13646_v26  ;;  %v6609_v32 = vmax.f32 %v6379_v39, 0.0 }
 0x66b   : > { %v6384_v58 = vpop.f32.mrf.mxu1 }
 0x66c   : > { %v6610_v1 = vmax.f32 %v6381_v27, 0.0  ;;  %v6705_v13 = vpack.c.bf16 %v6609_v32, %v6607_v41  ;;  %v6385_v47 = vadd.f32 %v6384_v58, %v13649_v57 }
 0x66d   : > { %v6386_v2 = vpop.f32.mrf.mxu1 }
 0x66e   : > { %v6706_v9 = vpack.c.bf16 %v6610_v1, %v6608_v62  ;;  %v6387_v14 = vadd.f32 %v6386_v2, %v13646_v26  ;;  %v6611_v36 = vmax.f32 %v6385_v47, 0.0 }
 0x66f   : > { %v6388_v55 = vpop.f32.mrf.mxu1 }
 0x670   : > { %v6389_v51 = vadd.f32 %v6388_v55, %v13649_v57  ;;  %7117 = vmatprep.mubr.bf16.mxu0 %v6706_v9  ;;  %v6612_v5 = vmax.f32 %v6387_v14, 0.0  ;;  %v13837_v14 = vld [vmem:[%s15176_s21 + $0x8] sm:$0xff]  }
 0x671   : > { %v6390_v59 = vpop.f32.mrf.mxu1  ;;  %7118 = vmatmul.mubr.bf16.gmra.mxu0 %v6705_v13  ;;  %10346 = vmatprep.subr.bf16.mxu0 %v13837_v14 }
 0x672   : > { %v6391_v20 = vadd.f32 %v6390_v59, %v13646_v26  ;;  %v6613_v6 = vmax.f32 %v6389_v51, 0.0 }
 0x673   : > { %v6394_v63 = vpop.f32.mrf.mxu1 }
 0x674   : > { %v6614_v44 = vmax.f32 %v6391_v20, 0.0  ;;  %v6707_v38 = vpack.c.bf16 %v6613_v6, %v6611_v36  ;;  %v6395_v30 = vadd.f32 %v6394_v63, %v13649_v57 }
 0x675   : > { %v6396_v40 = vpop.f32.mrf.mxu1 }
 0x676   : > { %v6708_v10 = vpack.c.bf16 %v6614_v44, %v6612_v5  ;;  %v6397_v49 = vadd.f32 %v6396_v40, %v13646_v26  ;;  %v6615_v33 = vmax.f32 %v6395_v30, 0.0 }
 0x677   : > { %v6398_v24 = vpop.f32.mrf.mxu1 }
 0x678   : > { %v6399_v43 = vadd.f32 %v6398_v24, %v13649_v57  ;;  %7127 = vmatprep.mubr.bf16.mxu0 %v6708_v10  ;;  %v6616_v0 = vmax.f32 %v6397_v49, 0.0 }
 0x679   : > { %v6400_v48 = vpop.f32.mrf.mxu1  ;;  %7128 = vmatmul.mubr.bf16.gmra.mxu0 %v6707_v38 }
 0x67a   : > { %v6401_v7 = vadd.f32 %v6400_v48, %v13646_v26  ;;  %v6617_v35 = vmax.f32 %v6399_v43, 0.0 }
 0x67b   : > { %v6404_v50 = vpop.f32.mrf.mxu1 }
 0x67c   : > { %v6618_v29 = vmax.f32 %v6401_v7, 0.0  ;;  %v6709_v21 = vpack.c.bf16 %v6617_v35, %v6615_v33  ;;  %v6405_v61 = vadd.f32 %v6404_v50, %v13649_v57 }
 0x67d   : > { %v6406_v17 = vpop.f32.mrf.mxu1 }
 0x67e   : > { %v6710_v34 = vpack.c.bf16 %v6618_v29, %v6616_v0  ;;  %v6407_v23 = vadd.f32 %v6406_v17, %v13646_v26  ;;  %v6619_v12 = vmax.f32 %v6405_v61, 0.0 }
 0x67f   : > { %v6408_v46 = vpop.f32.mrf.mxu1 }
 0x680   : > { %v6409_v16 = vadd.f32 %v6408_v46, %v13649_v57  ;;  %7137 = vmatprep.mubr.bf16.mxu0 %v6710_v34  ;;  %v6620_v18 = vmax.f32 %v6407_v23, 0.0 }
 0x681   : > { %v6410_v60 = vpop.f32.mrf.mxu1  ;;  %7138 = vmatmul.mubr.bf16.gmra.mxu0 %v6709_v21 }
 0x682   : > { %v6411_v45 = vadd.f32 %v6410_v60, %v13646_v26  ;;  %v6621_v15 = vmax.f32 %v6409_v16, 0.0 }
 0x683   : > { %v6414_v56 = vpop.f32.mrf.mxu1 }
 0x684   : > { %v6622_v53 = vmax.f32 %v6411_v45, 0.0  ;;  %v6711_v11 = vpack.c.bf16 %v6621_v15, %v6619_v12  ;;  %v6415_v54 = vadd.f32 %v6414_v56, %v13649_v57 }
 0x685   : > { %v6416_v19 = vpop.f32.mrf.mxu1 }
 0x686   : > { %v6712_v4 = vpack.c.bf16 %v6622_v53, %v6620_v18  ;;  %v6417_v52 = vadd.f32 %v6416_v19, %v13646_v26  ;;  %v6623_v32 = vmax.f32 %v6415_v54, 0.0 }
 0x687   : > { %v6418_v37 = vpop.f32.mrf.mxu1 }
 0x688   : > { %v6419_v8 = vadd.f32 %v6418_v37, %v13649_v57  ;;  %7147 = vmatprep.mubr.bf16.mxu0 %v6712_v4  ;;  %v6624_v42 = vmax.f32 %v6417_v52, 0.0 }
 0x689   : > { %v6420_v31 = vpop.f32.mrf.mxu1  ;;  %7148 = vmatmul.mubr.bf16.gmra.mxu0 %v6711_v11 }
 0x68a   : > { %v6421_v39 = vadd.f32 %v6420_v31, %v13646_v26  ;;  %v6625_v27 = vmax.f32 %v6419_v8, 0.0 }
 0x68b   : > { %v6424_v3 = vpop.f32.mrf.mxu1 }
 0x68c   : > { %v6626_v58 = vmax.f32 %v6421_v39, 0.0  ;;  %v6713_v41 = vpack.c.bf16 %v6625_v27, %v6623_v32  ;;  %v6425_v51 = vadd.f32 %v6424_v3, %v13649_v57 }
 0x68d   : > { %v6426_v62 = vpop.f32.mrf.mxu1 }
 0x68e   : > { %v6714_v1 = vpack.c.bf16 %v6626_v58, %v6624_v42  ;;  %v6427_v9 = vadd.f32 %v6426_v62, %v13646_v26  ;;  %v6627_v44 = vmax.f32 %v6425_v51, 0.0 }
 0x68f   : > { %v6428_v2 = vpop.f32.mrf.mxu1 }
 0x690   : > { %v6429_v55 = vadd.f32 %v6428_v2, %v13649_v57  ;;  %7157 = vmatprep.mubr.bf16.mxu0 %v6714_v1  ;;  %v6628_v20 = vmax.f32 %v6427_v9, 0.0 }
 0x691   : > { %v6430_v13 = vpop.f32.mrf.mxu1  ;;  %7158 = vmatmul.mubr.bf16.gmra.mxu0 %v6713_v41 }
 0x692   : > { %v6431_v59 = vadd.f32 %v6430_v13, %v13646_v26  ;;  %v6629_v63 = vmax.f32 %v6429_v55, 0.0 }
 0x693   : > { %v6434_v47 = vpop.f32.mrf.mxu1 }
 0x694   : > { %v6630_v5 = vmax.f32 %v6431_v59, 0.0  ;;  %v6715_v24 = vpack.c.bf16 %v6629_v63, %v6627_v44  ;;  %v6435_v43 = vadd.f32 %v6434_v47, %v13649_v57  ;;  %v13868_v59 = vld [vmem:[%s15177_s22 + $0x38] sm:$0xff]  }
 0x695   : > { %v6436_v6 = vpop.f32.mrf.mxu1  ;;  %10414 = vmatprep.subr.bf16.mxu1 %v13868_v59 }
 0x696   : > { %v6437_v40 = vadd.f32 %v6436_v6, %v13646_v26  ;;  %v6716_v36 = vpack.c.bf16 %v6630_v5, %v6628_v20  ;;  %v6631_v29 = vmax.f32 %v6435_v43, 0.0 }
 0x697   : > { %v6438_v10 = vpop.f32.mrf.mxu1 }
 0x698   : > { %v6439_v38 = vadd.f32 %v6438_v10, %v13649_v57  ;;  %7167 = vmatprep.mubr.bf16.mxu0 %v6716_v36  ;;  %v6632_v48 = vmax.f32 %v6437_v40, 0.0 }
 0x699   : > { %v6440_v49 = vpop.f32.mrf.mxu1  ;;  %7168 = vmatmul.mubr.bf16.gmra.mxu0 %v6715_v24 }
 0x69a   : > { %v6441_v30 = vadd.f32 %v6440_v49, %v13646_v26  ;;  %v6633_v50 = vmax.f32 %v6439_v38, 0.0 }
 0x69b   : > { %v6444_v7 = vpop.f32.mrf.mxu1 }
 0x69c   : > { %v6634_v0 = vmax.f32 %v6441_v30, 0.0  ;;  %v6717_v46 = vpack.c.bf16 %v6633_v50, %v6631_v29  ;;  %v6445_v16 = vadd.f32 %v6444_v7, %v13649_v57 }
 0x69d   : > { %v6446_v35 = vpop.f32.mrf.mxu1 }
 0x69e   : > { %v6447_v17 = vadd.f32 %v6446_v35, %v13646_v26  ;;  %v6718_v33 = vpack.c.bf16 %v6634_v0, %v6632_v48  ;;  %v6635_v53 = vmax.f32 %v6445_v16, 0.0 }
 0x69f   : > { %v6448_v34 = vpop.f32.mrf.mxu1 }
 0x6a0   : > { %v6449_v21 = vadd.f32 %v6448_v34, %v13649_v57  ;;  %7177 = vmatprep.mubr.bf16.mxu0 %v6718_v33  ;;  %v6636_v60 = vmax.f32 %v6447_v17, 0.0 }
 0x6a1   : > { %v6450_v23 = vpop.f32.mrf.mxu1  ;;  %7178 = vmatmul.mubr.bf16.gmra.mxu0 %v6717_v46 }
 0x6a2   : > { %v6451_v61 = vadd.f32 %v6450_v23, %v13646_v26  ;;  %v6637_v56 = vmax.f32 %v6449_v21, 0.0 }
 0x6a3   : > { %v6454_v45 = vpop.f32.mrf.mxu1 }
 0x6a4   : > { %v6638_v18 = vmax.f32 %v6451_v61, 0.0  ;;  %v6719_v37 = vpack.c.bf16 %v6637_v56, %v6635_v53  ;;  %v6455_v8 = vadd.f32 %v6454_v45, %v13649_v57 }
 0x6a5   : > { %v6456_v15 = vpop.f32.mrf.mxu1 }
 0x6a6   : > { %v6457_v19 = vadd.f32 %v6456_v15, %v13646_v26  ;;  %v6720_v12 = vpack.c.bf16 %v6638_v18, %v6636_v60  ;;  %v6639_v58 = vmax.f32 %v6455_v8, 0.0 }
 0x6a7   : > { %v6458_v4 = vpop.f32.mrf.mxu1 }
 0x6a8   : > { %v6459_v11 = vadd.f32 %v6458_v4, %v13649_v57  ;;  %7187 = vmatprep.mubr.bf16.mxu0 %v6720_v12  ;;  %v6640_v31 = vmax.f32 %v6457_v19, 0.0 }
 0x6a9   : > { %v6460_v52 = vpop.f32.mrf.mxu1  ;;  %7188 = vmatmul.mubr.bf16.gmra.mxu0 %v6719_v37 }
 0x6aa   : > { %v6461_v54 = vadd.f32 %v6460_v52, %v13646_v26  ;;  %v6641_v3 = vmax.f32 %v6459_v11, 0.0 }
 0x6ab   : > { %v6464_v39 = vpop.f32.mrf.mxu1 }
 0x6ac   : > { %v6642_v42 = vmax.f32 %v6461_v54, 0.0  ;;  %v6721_v1 = vpack.c.bf16 %v6641_v3, %v6639_v58  ;;  %v6465_v55 = vadd.f32 %v6464_v39, %v13649_v57 }
 0x6ad   : > { %v6466_v27 = vpop.f32.mrf.mxu1 }
 0x6ae   : > { %v6722_v62 = vpack.c.bf16 %v6642_v42, %v6640_v31  ;;  %v6467_v2 = vadd.f32 %v6466_v27, %v13646_v26  ;;  %v6643_v6 = vmax.f32 %v6465_v55, 0.0 }
 0x6af   : > { %v6468_v32 = vpop.f32.mrf.mxu1 }
 0x6b0   : > { %v6469_v41 = vadd.f32 %v6468_v32, %v13649_v57  ;;  %7197 = vmatprep.mubr.bf16.mxu0 %v6722_v62  ;;  %v6644_v47 = vmax.f32 %v6467_v2, 0.0 }
 0x6b1   : > { %v6470_v9 = vpop.f32.mrf.mxu1  ;;  %7198 = vmatmul.mubr.bf16.gmra.mxu0 %v6721_v1 }
 0x6b2   : > { %v6471_v13 = vadd.f32 %v6470_v9, %v13646_v26  ;;  %v6645_v20 = vmax.f32 %v6469_v41, 0.0 }
 0x6b3   : > { %v6474_v51 = vpop.f32.mrf.mxu1 }
 0x6b4   : > { %v6646_v63 = vmax.f32 %v6471_v13, 0.0  ;;  %v6723_v36 = vpack.c.bf16 %v6645_v20, %v6643_v6  ;;  %v6475_v49 = vadd.f32 %v6474_v51, %v13649_v57 }
 0x6b5   : > { %v6476_v5 = vpop.f32.mrf.mxu1 }
 0x6b6   : > { %v6724_v44 = vpack.c.bf16 %v6646_v63, %v6644_v47  ;;  %v6477_v10 = vadd.f32 %v6476_v5, %v13646_v26  ;;  %v6647_v35 = vmax.f32 %v6475_v49, 0.0 }
 0x6b7   : > { %v6478_v40 = vpop.f32.mrf.mxu1 }
 0x6b8   : > { %v6479_v24 = vadd.f32 %v6478_v40, %v13649_v57  ;;  %7207 = vmatprep.mubr.bf16.mxu0 %v6724_v44  ;;  %v6648_v30 = vmax.f32 %v6477_v10, 0.0 }
 0x6b9   : > { %v6480_v38 = vpop.f32.mrf.mxu1  ;;  %7208 = vmatmul.mubr.bf16.gmra.mxu0 %v6723_v36 }
 0x6ba   : > { %v6481_v43 = vadd.f32 %v6480_v38, %v13646_v26  ;;  %v6649_v7 = vmax.f32 %v6479_v24, 0.0 }
 0x6bb   : > { %v6484_v48 = vpop.f32.mrf.mxu1 }
 0x6bc   : > { %v6650_v50 = vmax.f32 %v6481_v43, 0.0  ;;  %v6725_v33 = vpack.c.bf16 %v6649_v7, %v6647_v35  ;;  %v6485_v23 = vadd.f32 %v6484_v48, %v13649_v57 }
 0x6bd   : > { %v6486_v0 = vpop.f32.mrf.mxu1 }
 0x6be   : > { %v6726_v29 = vpack.c.bf16 %v6650_v50, %v6648_v30  ;;  %v6487_v34 = vadd.f32 %v6486_v0, %v13646_v26  ;;  %v6651_v53 = vmax.f32 %v6485_v23, 0.0 }
 0x6bf   : > { %v6488_v17 = vpop.f32.mrf.mxu1 }
 0x6c0   : > { %v6489_v46 = vadd.f32 %v6488_v17, %v13649_v57  ;;  %7217 = vmatprep.mubr.bf16.mxu0 %v6726_v29  ;;  %v6652_v61 = vmax.f32 %v6487_v34, 0.0  ;;  %v6773_v17 = vld [vmem:[%s15173_s18] sm:$0x3] }
 0x6c1   : > { %v6490_v21 = vpop.f32.mrf.mxu1  ;;  %v13879_v60 = vpop.f32.mrf.mxu0  ;;  %7218 = vmatmul.mubr.bf16.gmra.mxu0 %v6725_v33 }
 0x6c2   : > { %v6491_v16 = vadd.f32 %v6490_v21, %v13646_v26  ;;  %v6653_v45 = vmax.f32 %v6489_v46, 0.0 }
 0x6c3   : > { %v6494_v18 = vpop.f32.mrf.mxu1  ;;  %v13881_v15 = vpop.f32.mrf.mxu0 }
 0x6c4   : > { %v6654_v56 = vmax.f32 %v6491_v16, 0.0  ;;  %v6727_v37 = vpack.c.bf16 %v6653_v45, %v6651_v53  ;;  %v6495_v3 = vadd.f32 %v6494_v18, %v13649_v57  ;;  %v13919_v45 = vrot.slane %v6773_v17, %v11717_v28 }
 0x6c5   : > { %v6496_v19 = vpop.f32.mrf.mxu1  ;;  %v13883_v12 = vpop.f32.mrf.mxu0  ;;  %v13922_v53 = vrot.slane %v6773_v17, %v11709_v25  ;;  %v10992_v17 = vld [vmem:[%s15177_s22 + $0x30] sm:$0xff]  }
 0x6c6   : > { %v6728_v4 = vpack.c.bf16 %v6654_v56, %v6652_v61  ;;  %v6497_v31 = vadd.f32 %v6496_v19, %v13646_v26  ;;  %v6655_v9 = vmax.f32 %v6495_v3, 0.0 }
 0x6c7   : > { %v6498_v11 = vpop.f32.mrf.mxu1  ;;  %v13885_v52 = vpop.f32.mrf.mxu0 }
 0x6c8   : > { %7227 = vmatprep.mubr.bf16.mxu0 %v6728_v4  ;;  %v6499_v8 = vadd.f32 %v6498_v11, %v13649_v57  ;;  %v6656_v1 = vmax.f32 %v6497_v31, 0.0 }
 0x6c9   : > { %v6500_v54 = vpop.f32.mrf.mxu1  ;;  %v13889_v39 = vpop.f32.mrf.mxu0  ;;  %7228 = vmatmul.mubr.bf16.gmra.mxu0 %v6727_v37 }
 0x6ca   : > { %v6501_v42 = vadd.f32 %v6500_v54, %v13646_v26  ;;  %v6657_v62 = vmax.f32 %v6499_v8, 0.0 }
 0x6cb   : > { %v6504_v27 = vpop.f32.mrf.mxu1  ;;  %v13893_v58 = vpop.f32.mrf.mxu0 }
 0x6cc   : > { %v6658_v32 = vmax.f32 %v6501_v42, 0.0  ;;  %v6729_v47 = vpack.c.bf16 %v6657_v62, %v6655_v9  ;;  %v6505_v44 = vadd.f32 %v6504_v27, %v13649_v57 }
 0x6cd   : > { %v6506_v2 = vpop.f32.mrf.mxu1  ;;  %v13895_v41 = vpop.f32.mrf.mxu0 }
 0x6ce   : > { %v6730_v51 = vpack.c.bf16 %v6658_v32, %v6656_v1  ;;  %v6507_v63 = vadd.f32 %v6506_v2, %v13646_v26  ;;  %v6659_v30 = vmax.f32 %v6505_v44, 0.0 }
 0x6cf   : > { %v6508_v55 = vpop.f32.mrf.mxu1  ;;  %v13897_v13 = vpop.f32.mrf.mxu0 }
 0x6d0   : > { %v6509_v20 = vadd.f32 %v6508_v55, %v13649_v57  ;;  %7237 = vmatprep.mubr.bf16.mxu0 %v6730_v51  ;;  %v6660_v49 = vmax.f32 %v6507_v63, 0.0 }
 0x6d1   : > { %v6510_v5 = vpop.f32.mrf.mxu1  ;;  %v13901_v6 = vpop.f32.mrf.mxu0  ;;  %7238 = vmatmul.mubr.bf16.gmra.mxu0 %v6729_v47 }
 0x6d2   : > { %v6511_v40 = vadd.f32 %v6510_v5, %v13646_v26  ;;  %v6661_v24 = vmax.f32 %v6509_v20, 0.0 }
 0x6d3   : > { %v6514_v36 = vpop.f32.mrf.mxu1  ;;  %v13905_v10 = vpop.f32.mrf.mxu0 }
 0x6d4   : > { %v6662_v38 = vmax.f32 %v6511_v40, 0.0  ;;  %v6731_v35 = vpack.c.bf16 %v6661_v24, %v6659_v30  ;;  %v6515_v21 = vadd.f32 %v6514_v36, %v13649_v57 }
 0x6d5   : > { %v6516_v43 = vpop.f32.mrf.mxu1  ;;  %v13907_v48 = vpop.f32.mrf.mxu0 }
 0x6d6   : > { %v6732_v0 = vpack.c.bf16 %v6662_v38, %v6660_v49  ;;  %v6517_v33 = vadd.f32 %v6516_v43, %v13646_v26  ;;  %v6663_v11 = vmax.f32 %v6515_v21, 0.0 }
 0x6d7   : > { %v6518_v7 = vpop.f32.mrf.mxu1  ;;  %v13909_v50 = vpop.f32.mrf.mxu0 }
 0x6d8   : > { %v6519_v29 = vadd.f32 %v6518_v7, %v13649_v57  ;;  %7247 = vmatprep.mubr.bf16.mxu0 %v6732_v0  ;;  %v6664_v19 = vmax.f32 %v6517_v33, 0.0 }
 0x6d9   : > { %v6520_v34 = vpop.f32.mrf.mxu1  ;;  %v7009_v46 = vpop.f32.mrf.mxu0  ;;  %7248 = vmatmul.mubr.bf16.gmra.mxu0 %v6731_v35 }
 0x6da   : > { %v6521_v23 = vadd.f32 %v6520_v34, %v13646_v26  ;;  %v6665_v56 = vmax.f32 %v6519_v29, 0.0  ;;  %v7010_v62 = vadd.f32 %v7009_v46, %v13919_v45 }
 0x6db   : > { %v6524_v16 = vpop.f32.mrf.mxu1  ;;  %v7011_v61 = vpop.f32.mrf.mxu0 }
 0x6dc   : > { %v6666_v18 = vmax.f32 %v6521_v23, 0.0  ;;  %v7012_v31 = vadd.f32 %v7011_v61, %v13922_v53  ;;  %v6733_v27 = vpack.c.bf16 %v6665_v56, %v6663_v11  ;;  %v6525_v51 = vadd.f32 %v6524_v16, %v13649_v57 }
 0x6dd   : > { %v6526_v4 = vpop.f32.mrf.mxu1  ;;  %v7013_v37 = vpop.f32.mrf.mxu0  ;;  %v7308_v36 = vmax.f32 %v7010_v62, 0.0 }
 0x6de   : > { %v7014_v8 = vadd.f32 %v7013_v37, %v13919_v45  ;;  %v6734_v42 = vpack.c.bf16 %v6666_v18, %v6664_v19  ;;  %v6527_v2 = vadd.f32 %v6526_v4, %v13646_v26  ;;  %v7309_v5 = vmax.f32 %v7012_v31, 0.0 }
 0x6df   : > { %v6528_v54 = vpop.f32.mrf.mxu1  ;;  %v7015_v3 = vpop.f32.mrf.mxu0  ;;  %v6667_v0 = vmax.f32 %v6525_v51, 0.0 }
 0x6e0   : > { %v6529_v32 = vadd.f32 %v6528_v54, %v13649_v57  ;;  %v7016_v1 = vadd.f32 %v7015_v3, %v13922_v53  ;;  %7257 = vmatprep.mubr.bf16.mxu0 %v6734_v42  ;;  %v7310_v47 = vmax.f32 %v7014_v8, 0.0  ;;  %v6668_v49 = vmax.f32 %v6527_v2, 0.0 }
 0x6e1   : > { %v6530_v9 = vpop.f32.mrf.mxu1  ;;  %v7019_v55 = vpop.f32.mrf.mxu0  ;;  %7258 = vmatmul.mubr.bf16.gmra.mxu0 %v6733_v27 }
 0x6e2   : > { %v7311_v20 = vmax.f32 %v7016_v1, 0.0  ;;  %v6531_v63 = vadd.f32 %v6530_v9, %v13646_v26  ;;  %v6669_v24 = vmax.f32 %v6529_v32, 0.0  ;;  %v7428_v35 = vpack.c.bf16 %v7310_v47, %v7308_v36  ;;  %v10999_v1 = vld [vmem:[%s15177_s22 + $0x28] sm:$0xff]  }
 0x6e3   : > { %v6534_v44 = vpop.f32.mrf.mxu1  ;;  %v7021_v40 = vpop.f32.mrf.mxu0  ;;  %v7020_v16 = vadd.f32 %v7019_v55, %v13919_v45 }
 0x6e4   : > { %v6670_v38 = vmax.f32 %v6531_v63, 0.0  ;;  %v7429_v7 = vpack.c.bf16 %v7311_v20, %v7309_v5  ;;  %v7022_v33 = vadd.f32 %v7021_v40, %v13922_v53  ;;  %v6735_v23 = vpack.c.bf16 %v6669_v24, %v6667_v0 }
 0x6e5   : > { %v6536_v43 = vpop.f32.mrf.mxu1  ;;  %v7023_v30 = vpop.f32.mrf.mxu0  ;;  %v6535_v18 = vadd.f32 %v6534_v44, %v13649_v57  ;;  %v7312_v27 = vmax.f32 %v7020_v16, 0.0 }
 0x6e6   : > { %v7024_v29 = vadd.f32 %v7023_v30, %v13919_v45  ;;  %7752 = vmatprep.mubr.bf16.mxu1 %v7429_v7  ;;  %v6736_v21 = vpack.c.bf16 %v6670_v38, %v6668_v49  ;;  %v6537_v19 = vadd.f32 %v6536_v43, %v13646_v26  ;;  %v7313_v54 = vmax.f32 %v7022_v33, 0.0 }
 0x6e7   : > { %v6538_v34 = vpop.f32.mrf.mxu1  ;;  %v7025_v46 = vpop.f32.mrf.mxu0  ;;  %7753 = vmatmul.mubr.bf16.vlgmr.msra.gmra.mxu1 %v7428_v35  ;;  %v6671_v2 = vmax.f32 %v6535_v18, 0.0  ;;  %v6986_v7 = vadd.f32 %v13885_v52, %v13922_v53 }
 0x6e8   : > { %v6539_v61 = vadd.f32 %v6538_v34, %v13649_v57  ;;  %v7026_v56 = vadd.f32 %v7025_v46, %v13922_v53  ;;  %7267 = vmatprep.mubr.bf16.mxu0 %v6736_v21  ;;  %10415 = vmatpush3.bf16.msra.mxu1 %v13868_v59  ;;  %v7314_v11 = vmax.f32 %v7024_v29, 0.0  ;;  %v6672_v9 = vmax.f32 %v6537_v19, 0.0 }
 0x6e9   : > { %v6540_v4 = vpop.f32.mrf.mxu1  ;;  %v7029_v37 = vpop.f32.mrf.mxu0  ;;  %7268 = vmatmul.mubr.bf16.gmra.mxu0 %v6735_v23  ;;  %10416 = vmatprep.subr.bf16.mxu1 %v10992_v17  ;;  %v6982_v34 = vadd.f32 %v13881_v15, %v13922_v53  ;;  %v7299_v16 = vmax.f32 %v6986_v7, 0.0 }
 0x6ea   : > { %v7315_v8 = vmax.f32 %v7026_v56, 0.0  ;;  %v6541_v31 = vadd.f32 %v6540_v4, %v13646_v26  ;;  %v6673_v62 = vmax.f32 %v6539_v61, 0.0  ;;  %v7430_v47 = vpack.c.bf16 %v7314_v11, %v7312_v27 }
 0x6eb   : > { %v6544_v3 = vpop.f32.mrf.mxu1  ;;  %v7031_v42 = vpop.f32.mrf.mxu0  ;;  %v7030_v44 = vadd.f32 %v7029_v37, %v13919_v45  ;;  %v7297_v19 = vmax.f32 %v6982_v34, 0.0  ;;  %v6984_v37 = vadd.f32 %v13883_v12, %v13919_v45  ;;  %v6992_v12 = vadd.f32 %v13893_v58, %v13922_v53 }
 0x6ec   : > { %v6674_v32 = vmax.f32 %v6541_v31, 0.0  ;;  %v7431_v51 = vpack.c.bf16 %v7315_v8, %v7313_v54  ;;  %10417 = vmatpush3.bf16.msra.mxu1 %v10992_v17  ;;  %v7032_v20 = vadd.f32 %v7031_v42, %v13922_v53  ;;  %v6737_v38 = vpack.c.bf16 %v6673_v62, %v6671_v2 }
 0x6ed   : > { %v6546_v55 = vpop.f32.mrf.mxu1  ;;  %v7033_v59 = vpop.f32.mrf.mxu0  ;;  %10418 = vmatprep.subr.bf16.mxu1 %v10999_v1  ;;  %v6545_v49 = vadd.f32 %v6544_v3, %v13649_v57  ;;  %v7316_v46 = vmax.f32 %v7030_v44, 0.0  ;;  %v6996_v31 = vadd.f32 %v13897_v13, %v13922_v53  ;;  %v7423_v3 = vpack.c.bf16 %v7299_v16, %v7297_v19 }
 0x6ee   : > { %v6547_v63 = vadd.f32 %v6546_v55, %v13646_v26  ;;  %v7034_v5 = vadd.f32 %v7033_v59, %v13919_v45  ;;  %7762 = vmatprep.mubr.bf16.mxu1 %v7431_v51  ;;  %v6738_v24 = vpack.c.bf16 %v6674_v32, %v6672_v9  ;;  %v7317_v35 = vmax.f32 %v7032_v20, 0.0 }
 0x6ef   : > { %v6548_v40 = vpop.f32.mrf.mxu1  ;;  %v7035_v36 = vpop.f32.mrf.mxu0  ;;  %7763 = vmatmul.mubr.bf16.gmra.mxu1 %v7430_v47  ;;  %v6675_v21 = vmax.f32 %v6545_v49, 0.0  ;;  %v6980_v42 = vadd.f32 %v13879_v60, %v13919_v45  ;;  %v7298_v2 = vmax.f32 %v6984_v37, 0.0  ;;  %v7303_v59 = vmax.f32 %v6996_v31, 0.0 }
 0x6f0   : > { %v6676_v43 = vmax.f32 %v6547_v63, 0.0  ;;  %v7036_v30 = vadd.f32 %v7035_v36, %v13922_v53  ;;  %7277 = vmatprep.mubr.bf16.mxu0 %v6738_v24  ;;  %10419 = vmatpush3.bf16.msra.mxu1 %v10999_v1  ;;  %v7318_v17 = vmax.f32 %v7034_v5, 0.0  ;;  %v7301_v63 = vmax.f32 %v6992_v12, 0.0  ;;  %v10976_v24 = vld [vmem:[%s15176_s21] sm:$0xff]  }
 0x6f1   : > { %v6549_v26 = vpop.f32.mrf.mxu1  ;;  %v7039_v0 = vpop.f32.mrf.mxu0  ;;  %7278 = vmatmul.mubr.bf16.gmra.mxu0 %v6737_v38  ;;  %v6739_v11 = vpack.c.bf16 %v6675_v21, %v6675_v21  ;;  %v7296_v13 = vmax.f32 %v6980_v42, 0.0  ;;  %v6994_v58 = vadd.f32 %v13895_v41, %v13919_v45  ;;  %v7006_v38 = vadd.f32 %v13909_v50, %v13922_v53  ;;  %v10977_v12 = vld [vmem:[%s13848_s0] sm:$0xff]  }
 0x6f2   : > { %v6740_v29 = vpack.c.bf16 %v6676_v43, %v6676_v43  ;;  %v7319_v33 = vmax.f32 %v7036_v30, 0.0  ;;  %v7432_v52 = vpack.c.bf16 %v7318_v17, %v7316_v46  ;;  %v7040_v15 = vadd.f32 %v7039_v0, %v13919_v45 }
 0x6f3   : > { %v7041_v57 = vpop.f32.mrf.mxu0  ;;  %v7422_v44 = vpack.c.bf16 %v7298_v2, %v7296_v13  ;;  %v7425_v43 = vpack.c.bf16 %v7303_v59, %v7301_v63  ;;  %v6990_v30 = vadd.f32 %v13889_v39, %v13919_v45  ;;  %v7002_v0 = vadd.f32 %v13905_v10, %v13922_v53 }
 0x6f4   : > { %7287 = vmatprep.mubr.bf16.mxu0 %v6740_v29  ;;  %v7433_v23 = vpack.c.bf16 %v7319_v33, %v7317_v35  ;;  %v7042_v56 = vadd.f32 %v7041_v57, %v13922_v53  ;;  %v7320_v9 = vmax.f32 %v7040_v15, 0.0  ;;  %v7302_v29 = vmax.f32 %v6994_v58, 0.0  ;;  %v11004_v15 = vld [vmem:[%s15177_s22 + $0x20] sm:$0xff]  }
 0x6f5   : > { %v7043_v61 = vpop.f32.mrf.mxu0  ;;  %v7307_v50 = vmax.f32 %v7006_v38, 0.0  ;;  %v7300_v57 = vmax.f32 %v6990_v30, 0.0  ;;  %v7000_v19 = vadd.f32 %v13901_v6, %v13919_v45  ;;  %10420 = vmatprep.subr.bf16.mxu1 %v11004_v15 }
 0x6f6   : > { %v7044_v18 = vadd.f32 %v7043_v61, %v13919_v45  ;;  %7772 = vmatprep.mubr.bf16.mxu1 %v7433_v23  ;;  %v7321_v27 = vmax.f32 %v7042_v56, 0.0  ;;  %v7305_v23 = vmax.f32 %v7002_v0, 0.0  ;;  %10421 = vmatpush3.bf16.msra.mxu1 %v11004_v15 }
 0x6f7   : > { %v7045_v4 = vpop.f32.mrf.mxu0  ;;  %7773 = vmatmul.mubr.bf16.gmra.mxu1 %v7432_v52  ;;  %v7424_v10 = vpack.c.bf16 %v7302_v29, %v7300_v57  ;;  %v7304_v42 = vmax.f32 %v7000_v19, 0.0 }
 0x6f8   : > { %v7046_v8 = vadd.f32 %v7045_v4, %v13922_v53  ;;  %v7322_v62 = vmax.f32 %v7044_v18, 0.0  ;;  %v7427_v18 = vpack.c.bf16 %v7307_v50, %v7305_v23 }
 0x6f9   : > { %v7049_v54 = vpop.f32.mrf.mxu0  ;;  %7288 = vmatmul.mubr.bf16.gmra.mxu0 %v6739_v11 }
 0x6fa   : > { %v7323_v32 = vmax.f32 %v7046_v8, 0.0  ;;  %7722 = vmatprep.mubr.bf16.mxu0 %v7423_v3  ;;  %v7434_v47 = vpack.c.bf16 %v7322_v62, %v7320_v9  ;;  %v7050_v40 = vadd.f32 %v7049_v54, %v13919_v45 }
 0x6fb   : > { %v7051_v1 = vpop.f32.mrf.mxu0 }
 0x6fc   : > { %v7435_v55 = vpack.c.bf16 %v7323_v32, %v7321_v27  ;;  %v7052_v20 = vadd.f32 %v7051_v1, %v13922_v53  ;;  %v7324_v17 = vmax.f32 %v7050_v40, 0.0  ;;  %v10978_v40 = vld [vmem:[%s13848_s0 + $0x8] sm:$0xff]  }
 0x6fd   : > { %v7053_v51 = vpop.f32.mrf.mxu0 }
 0x6fe   : > { %v7054_v60 = vadd.f32 %v7053_v51, %v13919_v45  ;;  %7782 = vmatprep.mubr.bf16.mxu1 %v7435_v55  ;;  %v7325_v7 = vmax.f32 %v7052_v20, 0.0 }
 0x6ff   : > { %v7055_v5 = vpop.f32.mrf.mxu0  ;;  %7783 = vmatmul.mubr.bf16.gmra.mxu1 %v7434_v47 }
 0x700   : > { %v7056_v36 = vadd.f32 %v7055_v5, %v13922_v53  ;;  %v7326_v26 = vmax.f32 %v7054_v60, 0.0 }
 0x701   : > { %v7059_v49 = vpop.f32.mrf.mxu0  ;;  %7723 = vmatmul.mubr.bf16.vlgmr.msra.gmra.mxu0 %v7422_v44 }
 0x702   : > { %v7327_v41 = vmax.f32 %v7056_v36, 0.0  ;;  %7732 = vmatprep.mubr.bf16.mxu0 %v7425_v43  ;;  %10347 = vmatpush3.bf16.msra.mxu0 %v13837_v14  ;;  %v7436_v46 = vpack.c.bf16 %v7326_v26, %v7324_v17  ;;  %v7004_v14 = vadd.f32 %v13907_v48, %v13919_v45  ;;  %v7060_v61 = vadd.f32 %v7059_v49, %v13919_v45 }
 0x703   : > { %v7061_v35 = vpop.f32.mrf.mxu0  ;;  %10348 = vmatprep.subr.bf16.mxu0 %v10976_v24 }
 0x704   : > { %v7437_v33 = vpack.c.bf16 %v7327_v41, %v7325_v7  ;;  %v7062_v39 = vadd.f32 %v7061_v35, %v13922_v53  ;;  %v7306_v8 = vmax.f32 %v7004_v14, 0.0  ;;  %v7328_v31 = vmax.f32 %v7060_v61, 0.0 }
 0x705   : > { %v7063_v34 = vpop.f32.mrf.mxu0 }
 0x706   : > { %v7064_v21 = vadd.f32 %v7063_v34, %v13919_v45  ;;  %7792 = vmatprep.mubr.bf16.mxu1 %v7437_v33  ;;  %10349 = vmatpush3.bf16.msra.mxu0 %v10976_v24  ;;  %v7329_v4 = vmax.f32 %v7062_v39, 0.0  ;;  %v7426_v1 = vpack.c.bf16 %v7306_v8, %v7304_v42  ;;  %v10979_v24 = vld [vmem:[%s13848_s0 + $0x10] sm:$0xff]   ;;  %v10980_v34 = vld [vmem:[%s13848_s0 + $0x18] sm:$0xff]  }
 0x707   : > { %v7065_v16 = vpop.f32.mrf.mxu0  ;;  %7793 = vmatmul.mubr.bf16.gmra.mxu1 %v7436_v46  ;;  %v10981_v46 = vld [vmem:[%s13848_s0 + $0x20] sm:$0xff]   ;;  %v11009_v8 = vld [vmem:[%s15177_s22 + $0x18] sm:$0xff]  }
 0x708   : > { %v7066_v52 = vadd.f32 %v7065_v16, %v13922_v53  ;;  %v7330_v37 = vmax.f32 %v7064_v21, 0.0  ;;  %10422 = vmatprep.subr.bf16.mxu1 %v11009_v8 }
 0x709   : > { %v7069_v56 = vpop.f32.mrf.mxu0  ;;  %7733 = vmatmul.mubr.bf16.gmra.mxu0 %v7424_v10  ;;  %10423 = vmatpush3.bf16.msra.mxu1 %v11009_v8 }
 0x70a   : > { %v7331_v11 = vmax.f32 %v7066_v52, 0.0  ;;  %7742 = vmatprep.mubr.bf16.mxu0 %v7427_v18  ;;  %v7438_v27 = vpack.c.bf16 %v7330_v37, %v7328_v31  ;;  %v7070_v2 = vadd.f32 %v7069_v56, %v13919_v45 }
 0x70b   : > { %v7071_v48 = vpop.f32.mrf.mxu0 }
 0x70c   : > { %v7439_v54 = vpack.c.bf16 %v7331_v11, %v7329_v4  ;;  %v7072_v6 = vadd.f32 %v7071_v48, %v13922_v53  ;;  %v7332_v20 = vmax.f32 %v7070_v2, 0.0  ;;  %v10982_v11 = vld [vmem:[%s13848_s0 + $0x28] sm:$0xff]   ;;  %v10984_v48 = vld [vmem:[%s13848_s0 + $0x30] sm:$0xff]  }
 0x70d   : > { %v7073_v3 = vpop.f32.mrf.mxu0 }
 0x70e   : > { %v7074_v62 = vadd.f32 %v7073_v3, %v13919_v45  ;;  %7802 = vmatprep.mubr.bf16.mxu1 %v7439_v54  ;;  %v7333_v59 = vmax.f32 %v7072_v6, 0.0 }
 0x70f   : > { %v7075_v32 = vpop.f32.mrf.mxu0  ;;  %7803 = vmatmul.mubr.bf16.gmra.mxu1 %v7438_v27 }
 0x710   : > { %v7076_v9 = vadd.f32 %v7075_v32, %v13922_v53  ;;  %v7334_v51 = vmax.f32 %v7074_v62, 0.0 }
 0x711   : > { %v7079_v55 = vpop.f32.mrf.mxu0  ;;  %7743 = vmatmul.mubr.bf16.gmra.mxu0 %v7426_v1 }
 0x712   : > { %v7335_v13 = vmax.f32 %v7076_v9, 0.0  ;;  %10350 = vmatprep.mubr.msk.bf16.mxu0 %vm8215_vm1, %v10977_v12  ;;  %v7440_v5 = vpack.c.bf16 %v7334_v51, %v7332_v20  ;;  %v7080_v38 = vadd.f32 %v7079_v55, %v13919_v45 }
 0x713   : > { %v7081_v47 = vpop.f32.mrf.mxu0 }
 0x714   : > { %v7441_v60 = vpack.c.bf16 %v7335_v13, %v7333_v59  ;;  %v7082_v44 = vadd.f32 %v7081_v47, %v13922_v53  ;;  %v7336_v0 = vmax.f32 %v7080_v38, 0.0  ;;  %v10985_v59 = vld [vmem:[%s13848_s0 + $0x38] sm:$0xff]   ;;  %v10986_v13 = vld [vmem:[%s13848_s0 + $0x40] sm:$0xff]  }
 0x715   : > { %v7083_v63 = vpop.f32.mrf.mxu0 }
 0x716   : > { %v7084_v58 = vadd.f32 %v7083_v63, %v13919_v45  ;;  %7812 = vmatprep.mubr.bf16.mxu1 %v7441_v60  ;;  %v7337_v30 = vmax.f32 %v7082_v44, 0.0 }
 0x717   : > { %v7085_v36 = vpop.f32.mrf.mxu0  ;;  %7813 = vmatmul.mubr.bf16.gmra.mxu1 %v7440_v5 }
 0x718   : > { %v7086_v49 = vadd.f32 %v7085_v36, %v13922_v53  ;;  %v7338_v7 = vmax.f32 %v7084_v58, 0.0 }
 0x719   : > { %v7089_v43 = vpop.f32.mrf.mxu0  ;;  %10351 = vmatmul.mubr.msk.bf16.vlgmr.msra.gmra.mxu0 %vm8215_vm1, %v10978_v40 }
 0x71a   : > { %v7339_v26 = vmax.f32 %v7086_v49, 0.0  ;;  %10354 = vmatprep.mubr.msk.bf16.mxu0 %vm8215_vm1, %v10979_v24  ;;  %v7442_v17 = vpack.c.bf16 %v7338_v7, %v7336_v0  ;;  %v7090_v39 = vadd.f32 %v7089_v43, %v13919_v45 }
 0x71b   : > { %v7091_v41 = vpop.f32.mrf.mxu0 }
 0x71c   : > { %v7443_v35 = vpack.c.bf16 %v7339_v26, %v7337_v30  ;;  %v7092_v33 = vadd.f32 %v7091_v41, %v13922_v53  ;;  %v7340_v52 = vmax.f32 %v7090_v39, 0.0  ;;  %v10987_v30 = vld [vmem:[%s13848_s0 + $0x48] sm:$0xff]   ;;  %v10988_v26 = vld [vmem:[%s13848_s0 + $0x50] sm:$0xff]  }
 0x71d   : > { %v7093_v29 = vpop.f32.mrf.mxu0 }
 0x71e   : > { %v7094_v50 = vadd.f32 %v7093_v29, %v13919_v45  ;;  %7822 = vmatprep.mubr.bf16.mxu1 %v7443_v35  ;;  %v7341_v16 = vmax.f32 %v7092_v33, 0.0 }
 0x71f   : > { %v7095_v57 = vpop.f32.mrf.mxu0  ;;  %7823 = vmatmul.mubr.bf16.gmra.mxu1 %v7442_v17 }
 0x720   : > { %v7096_v21 = vadd.f32 %v7095_v57, %v13922_v53  ;;  %v7342_v10 = vmax.f32 %v7094_v50, 0.0 }
 0x721   : > { %v7099_v23 = vpop.f32.mrf.mxu0  ;;  %10355 = vmatmul.mubr.msk.bf16.gmra.mxu0 %vm8215_vm1, %v10980_v34 }
 0x722   : > { %v7343_v14 = vmax.f32 %v7096_v21, 0.0  ;;  %10358 = vmatprep.mubr.msk.bf16.mxu0 %vm8215_vm1, %v10981_v46  ;;  %v7444_v19 = vpack.c.bf16 %v7342_v10, %v7340_v52  ;;  %v7100_v31 = vadd.f32 %v7099_v23, %v13919_v45 }
 0x723   : > { %v7101_v61 = vpop.f32.mrf.mxu0 }
 0x724   : > { %v7445_v56 = vpack.c.bf16 %v7343_v14, %v7341_v16  ;;  %v7102_v4 = vadd.f32 %v7101_v61, %v13922_v53  ;;  %v7344_v32 = vmax.f32 %v7100_v31, 0.0  ;;  %v10989_v16 = vld [vmem:[%s13848_s0 + $0x58] sm:$0xff]   ;;  %v10990_v14 = vld [vmem:[%s13848_s0 + $0x60] sm:$0xff]  }
 0x725   : > { %v7103_v18 = vpop.f32.mrf.mxu0 }
 0x726   : > { %v7104_v37 = vadd.f32 %v7103_v18, %v13919_v45  ;;  %7832 = vmatprep.mubr.bf16.mxu1 %v7445_v56  ;;  %v7345_v42 = vmax.f32 %v7102_v4, 0.0  ;;  %v11014_v18 = vld [vmem:[%s15177_s22 + $0x10] sm:$0xff]  }
 0x727   : > { %v7105_v15 = vpop.f32.mrf.mxu0  ;;  %7833 = vmatmul.mubr.bf16.gmra.mxu1 %v7444_v19  ;;  %10424 = vmatprep.subr.bf16.mxu1 %v11014_v18 }
 0x728   : > { %v7106_v54 = vadd.f32 %v7105_v15, %v13922_v53  ;;  %v7346_v27 = vmax.f32 %v7104_v37, 0.0  ;;  %10425 = vmatpush3.bf16.msra.mxu1 %v11014_v18  ;;  %v10998_v18 = vld [vmem:[%s13848_s0 + $0x98] sm:$0xff]  }
 0x729   : > { %v7109_v3 = vpop.f32.mrf.mxu0  ;;  %10359 = vmatmul.mubr.msk.bf16.gmra.mxu0 %vm8215_vm1, %v10982_v11 }
 0x72a   : > { %v7347_v6 = vmax.f32 %v7106_v54, 0.0  ;;  %10362 = vmatprep.mubr.msk.bf16.mxu0 %vm8215_vm1, %v10984_v48  ;;  %v7446_v2 = vpack.c.bf16 %v7346_v27, %v7344_v32  ;;  %v7110_v47 = vadd.f32 %v7109_v3, %v13919_v45 }
 0x72b   : > { %v7111_v62 = vpop.f32.mrf.mxu0 }
 0x72c   : > { %v7447_v12 = vpack.c.bf16 %v7347_v6, %v7345_v42  ;;  %v7112_v9 = vadd.f32 %v7111_v62, %v13922_v53  ;;  %v7348_v40 = vmax.f32 %v7110_v47, 0.0  ;;  %v10991_v42 = vld [vmem:[%s13848_s0 + $0x68] sm:$0xff]   ;;  %v10993_v6 = vld [vmem:[%s13848_s0 + $0x70] sm:$0xff]  }
 0x72d   : > { %v7113_v1 = vpop.f32.mrf.mxu0 }
 0x72e   : > { %v7114_v55 = vadd.f32 %v7113_v1, %v13919_v45  ;;  %7842 = vmatprep.mubr.bf16.mxu1 %v7447_v12  ;;  %v7349_v63 = vmax.f32 %v7112_v9, 0.0 }
 0x72f   : > { %v7115_v51 = vpop.f32.mrf.mxu0  ;;  %7843 = vmatmul.mubr.bf16.gmra.mxu1 %v7446_v2 }
 0x730   : > { %v7116_v20 = vadd.f32 %v7115_v51, %v13922_v53  ;;  %v7350_v5 = vmax.f32 %v7114_v55, 0.0 }
 0x731   : > { %v7119_v60 = vpop.f32.mrf.mxu0  ;;  %10363 = vmatmul.mubr.msk.bf16.gmra.mxu0 %vm8215_vm1, %v10985_v59 }
 0x732   : > { %v7351_v44 = vmax.f32 %v7116_v20, 0.0  ;;  %10366 = vmatprep.mubr.msk.bf16.mxu0 %vm8215_vm1, %v10986_v13  ;;  %v7448_v38 = vpack.c.bf16 %v7350_v5, %v7348_v40  ;;  %v7120_v41 = vadd.f32 %v7119_v60, %v13919_v45 }
 0x733   : > { %v7121_v58 = vpop.f32.mrf.mxu0 }
 0x734   : > { %v7449_v36 = vpack.c.bf16 %v7351_v44, %v7349_v63  ;;  %v7122_v49 = vadd.f32 %v7121_v58, %v13922_v53  ;;  %v7352_v34 = vmax.f32 %v7120_v41, 0.0  ;;  %v10994_v63 = vld [vmem:[%s13848_s0 + $0x78] sm:$0xff]   ;;  %v10995_v44 = vld [vmem:[%s13848_s0 + $0x80] sm:$0xff]  }
 0x735   : > { %v7123_v24 = vpop.f32.mrf.mxu0 }
 0x736   : > { %v7124_v43 = vadd.f32 %v7123_v24, %v13919_v45  ;;  %7852 = vmatprep.mubr.bf16.mxu1 %v7449_v36  ;;  %v7353_v29 = vmax.f32 %v7122_v49, 0.0 }
 0x737   : > { %v7125_v7 = vpop.f32.mrf.mxu0  ;;  %7853 = vmatmul.mubr.bf16.gmra.mxu1 %v7448_v38 }
 0x738   : > { %v7126_v0 = vadd.f32 %v7125_v7, %v13922_v53  ;;  %v7354_v17 = vmax.f32 %v7124_v43, 0.0 }
 0x739   : > { %v7129_v35 = vpop.f32.mrf.mxu0  ;;  %10367 = vmatmul.mubr.msk.bf16.gmra.mxu0 %vm8215_vm1, %v10987_v30 }
 0x73a   : > { %v7355_v33 = vmax.f32 %v7126_v0, 0.0  ;;  %10370 = vmatprep.mubr.msk.bf16.mxu0 %vm8215_vm1, %v10988_v26  ;;  %v7450_v39 = vpack.c.bf16 %v7354_v17, %v7352_v34  ;;  %v7130_v61 = vadd.f32 %v7129_v35, %v13919_v45 }
 0x73b   : > { %v7131_v50 = vpop.f32.mrf.mxu0 }
 0x73c   : > { %v7451_v57 = vpack.c.bf16 %v7355_v33, %v7353_v29  ;;  %v7132_v21 = vadd.f32 %v7131_v50, %v13922_v53  ;;  %v7356_v15 = vmax.f32 %v7130_v61, 0.0  ;;  %v10996_v29 = vld [vmem:[%s13848_s0 + $0x88] sm:$0xff]   ;;  %v10997_v33 = vld [vmem:[%s13848_s0 + $0x90] sm:$0xff]  }
 0x73d   : > { %v7133_v46 = vpop.f32.mrf.mxu0 }
 0x73e   : > { %v7134_v23 = vadd.f32 %v7133_v46, %v13919_v45  ;;  %7862 = vmatprep.mubr.bf16.mxu1 %v7451_v57  ;;  %v7357_v19 = vmax.f32 %v7132_v21, 0.0 }
 0x73f   : > { %v7135_v10 = vpop.f32.mrf.mxu0  ;;  %7863 = vmatmul.mubr.bf16.gmra.mxu1 %v7450_v39 }
 0x740   : > { %v7136_v52 = vadd.f32 %v7135_v10, %v13922_v53  ;;  %v7358_v4 = vmax.f32 %v7134_v23, 0.0 }
 0x741   : > { %v7139_v56 = vpop.f32.mrf.mxu0  ;;  %10371 = vmatmul.mubr.msk.bf16.gmra.mxu0 %vm8215_vm1, %v10989_v16 }
 0x742   : > { %v7359_v37 = vmax.f32 %v7136_v52, 0.0  ;;  %10374 = vmatprep.mubr.msk.bf16.mxu0 %vm8215_vm1, %v10990_v14  ;;  %v7452_v31 = vpack.c.bf16 %v7358_v4, %v7356_v15  ;;  %v7140_v62 = vadd.f32 %v7139_v56, %v13919_v45 }
 0x743   : > { %v7141_v11 = vpop.f32.mrf.mxu0 }
 0x744   : > { %v7453_v48 = vpack.c.bf16 %v7359_v37, %v7357_v19  ;;  %v7142_v54 = vadd.f32 %v7141_v11, %v13922_v53  ;;  %v7360_v59 = vmax.f32 %v7140_v62, 0.0  ;;  %v11015_v19 = vld [vmem:[%s15177_s22 + $0x8] sm:$0xff]   ;;  %v11000_v37 = vld [vmem:[%s13848_s0 + $0xa0] sm:$0xff]  }
 0x745   : > { %v7143_v8 = vpop.f32.mrf.mxu0  ;;  %10426 = vmatprep.subr.bf16.mxu1 %v11015_v19 }
 0x746   : > { %v7144_v3 = vadd.f32 %v7143_v8, %v13919_v45  ;;  %7872 = vmatprep.mubr.bf16.mxu1 %v7453_v48  ;;  %v7361_v1 = vmax.f32 %v7142_v54, 0.0  ;;  %10427 = vmatpush3.bf16.msra.mxu1 %v11015_v19 }
 0x747   : > { %v7145_v27 = vpop.f32.mrf.mxu0  ;;  %7873 = vmatmul.mubr.bf16.gmra.mxu1 %v7452_v31 }
 0x748   : > { %v7146_v32 = vadd.f32 %v7145_v27, %v13922_v53  ;;  %v7362_v2 = vmax.f32 %v7144_v3, 0.0  ;;  %v11016_v3 = vld [vmem:[%s15177_s22] sm:$0xff]  }
 0x749   : > { %v7149_v12 = vpop.f32.mrf.mxu0  ;;  %10375 = vmatmul.mubr.msk.bf16.gmra.mxu0 %vm8215_vm1, %v10991_v42  ;;  %10428 = vmatprep.subr.bf16.mxu1 %v11016_v3 }
 0x74a   : > { %v7363_v9 = vmax.f32 %v7146_v32, 0.0  ;;  %10378 = vmatprep.mubr.msk.bf16.mxu0 %vm8215_vm1, %v10993_v6  ;;  %v7454_v47 = vpack.c.bf16 %v7362_v2, %v7360_v59  ;;  %v7150_v58 = vadd.f32 %v7149_v12, %v13919_v45  ;;  %10429 = vmatpush3.bf16.msra.mxu1 %v11016_v3  ;;  %v11001_v2 = vld [vmem:[%s13848_s0 + $0xa8] sm:$0xff]  }
 0x74b   : > { %v7151_v55 = vpop.f32.mrf.mxu0 }
 0x74c   : > { %v7455_v51 = vpack.c.bf16 %v7363_v9, %v7361_v1  ;;  %v7152_v20 = vadd.f32 %v7151_v55, %v13922_v53  ;;  %v7364_v30 = vmax.f32 %v7150_v58, 0.0  ;;  %v11002_v55 = vld [vmem:[%s13848_s0 + $0xb0] sm:$0xff]  }
 0x74d   : > { %v7153_v13 = vpop.f32.mrf.mxu0 }
 0x74e   : > { %v7154_v60 = vadd.f32 %v7153_v13, %v13919_v45  ;;  %7882 = vmatprep.mubr.bf16.mxu1 %v7455_v51  ;;  %v7365_v24 = vmax.f32 %v7152_v20, 0.0 }
 0x74f   : > { %v7155_v5 = vpop.f32.mrf.mxu0  ;;  %7883 = vmatmul.mubr.bf16.gmra.mxu1 %v7454_v47 }
 0x750   : > { %v7156_v40 = vadd.f32 %v7155_v5, %v13922_v53  ;;  %v7366_v38 = vmax.f32 %v7154_v60, 0.0 }
 0x751   : > { %v7159_v36 = vpop.f32.mrf.mxu0  ;;  %10379 = vmatmul.mubr.msk.bf16.gmra.mxu0 %vm8215_vm1, %v10994_v63 }
 0x752   : > { %v7367_v49 = vmax.f32 %v7156_v40, 0.0  ;;  %10382 = vmatprep.mubr.msk.bf16.mxu0 %vm8215_vm1, %v10995_v44  ;;  %v7456_v41 = vpack.c.bf16 %v7366_v38, %v7364_v30  ;;  %v7160_v50 = vadd.f32 %v7159_v36, %v13919_v45  ;;  %v11003_v38 = vld [vmem:[%s13848_s0 + $0xb8] sm:$0xff]  }
 0x753   : > { %v7161_v43 = vpop.f32.mrf.mxu0 }
 0x754   : > { %v7457_v7 = vpack.c.bf16 %v7367_v49, %v7365_v24  ;;  %v7162_v0 = vadd.f32 %v7161_v43, %v13922_v53  ;;  %v7368_v16 = vmax.f32 %v7160_v50, 0.0  ;;  %v11005_v43 = vld [vmem:[%s13848_s0 + $0xc0] sm:$0xff]  }
 0x755   : > { %v7163_v26 = vpop.f32.mrf.mxu0 }
 0x756   : > { %v7164_v35 = vadd.f32 %v7163_v26, %v13919_v45  ;;  %7892 = vmatprep.mubr.bf16.mxu1 %v7457_v7  ;;  %v7369_v46 = vmax.f32 %v7162_v0, 0.0 }
 0x757   : > { %v7165_v17 = vpop.f32.mrf.mxu0  ;;  %7893 = vmatmul.mubr.bf16.gmra.mxu1 %v7456_v41 }
 0x758   : > { %v7166_v34 = vadd.f32 %v7165_v17, %v13922_v53  ;;  %v7370_v39 = vmax.f32 %v7164_v35, 0.0 }
 0x759   : > { %v7169_v57 = vpop.f32.mrf.mxu0  ;;  %10383 = vmatmul.mubr.msk.bf16.gmra.mxu0 %vm8215_vm1, %v10996_v29 }
 0x75a   : > { %v7371_v21 = vmax.f32 %v7166_v34, 0.0  ;;  %10386 = vmatprep.mubr.msk.bf16.mxu0 %vm8215_vm1, %v10997_v33  ;;  %v7458_v61 = vpack.c.bf16 %v7370_v39, %v7368_v16  ;;  %v7170_v11 = vadd.f32 %v7169_v57, %v13919_v45  ;;  %v11006_v39 = vld [vmem:[%s13848_s0 + $0xc8] sm:$0xff]  }
 0x75b   : > { %v7171_v23 = vpop.f32.mrf.mxu0 }
 0x75c   : > { %v7459_v10 = vpack.c.bf16 %v7371_v21, %v7369_v46  ;;  %v7172_v52 = vadd.f32 %v7171_v23, %v13922_v53  ;;  %v7372_v27 = vmax.f32 %v7170_v11, 0.0  ;;  %v11007_v23 = vld [vmem:[%s13848_s0 + $0xd0] sm:$0xff]  }
 0x75d   : > { %v7173_v14 = vpop.f32.mrf.mxu0 }
 0x75e   : > { %v7174_v56 = vadd.f32 %v7173_v14, %v13919_v45  ;;  %7902 = vmatprep.mubr.bf16.mxu1 %v7459_v10  ;;  %v7373_v8 = vmax.f32 %v7172_v52, 0.0 }
 0x75f   : > { %v7175_v4 = vpop.f32.mrf.mxu0  ;;  %7903 = vmatmul.mubr.bf16.gmra.mxu1 %v7458_v61 }
 0x760   : > { %v7176_v15 = vadd.f32 %v7175_v4, %v13922_v53  ;;  %v7374_v31 = vmax.f32 %v7174_v56, 0.0 }
 0x761   : > { %v7179_v48 = vpop.f32.mrf.mxu0  ;;  %10387 = vmatmul.mubr.msk.bf16.gmra.mxu0 %vm8215_vm1, %v10998_v18 }
 0x762   : > { %v7375_v54 = vmax.f32 %v7176_v15, 0.0  ;;  %10390 = vmatprep.mubr.msk.bf16.mxu0 %vm8215_vm1, %v11000_v37  ;;  %v7460_v32 = vpack.c.bf16 %v7374_v31, %v7372_v27  ;;  %v7180_v59 = vadd.f32 %v7179_v48, %v13919_v45 }
 0x763   : > { %v7181_v42 = vpop.f32.mrf.mxu0 }
 0x764   : > { %v7461_v6 = vpack.c.bf16 %v7375_v54, %v7373_v8  ;;  %v7182_v12 = vadd.f32 %v7181_v42, %v13922_v53  ;;  %v7376_v5 = vmax.f32 %v7180_v59, 0.0  ;;  %v11008_v8 = vld [vmem:[%s13848_s0 + $0xd8] sm:$0xff]   ;;  %v11010_v54 = vld [vmem:[%s13848_s0 + $0xe0] sm:$0xff]  }
 0x765   : > { %v7183_v62 = vpop.f32.mrf.mxu0 }
 0x766   : > { %v7184_v1 = vadd.f32 %v7183_v62, %v13919_v45  ;;  %7912 = vmatprep.mubr.bf16.mxu1 %v7461_v6  ;;  %v7377_v47 = vmax.f32 %v7182_v12, 0.0 }
 0x767   : > { %v7185_v9 = vpop.f32.mrf.mxu0  ;;  %7913 = vmatmul.mubr.bf16.gmra.mxu1 %v7460_v32 }
 0x768   : > { %v7186_v51 = vadd.f32 %v7185_v9, %v13922_v53  ;;  %v7378_v20 = vmax.f32 %v7184_v1, 0.0 }
 0x769   : > { %v7189_v13 = vpop.f32.mrf.mxu0  ;;  %10391 = vmatmul.mubr.msk.bf16.gmra.mxu0 %vm8215_vm1, %v11001_v2 }
 0x76a   : > { %v7379_v60 = vmax.f32 %v7186_v51, 0.0  ;;  %10394 = vmatprep.mubr.msk.bf16.mxu0 %vm8215_vm1, %v11002_v55  ;;  %v7462_v40 = vpack.c.bf16 %v7378_v20, %v7376_v5  ;;  %v7190_v30 = vadd.f32 %v7189_v13, %v13919_v45  ;;  %v11011_v13 = vld [vmem:[%s13848_s0 + $0xe8] sm:$0xff]   ;;  %v11012_v20 = vld [vmem:[%s13848_s0 + $0xf0] sm:$0xff]  }
 0x76b   : > { %v7191_v63 = vpop.f32.mrf.mxu0 }
 0x76c   : > { %v7463_v44 = vpack.c.bf16 %v7379_v60, %v7377_v47  ;;  %v7192_v36 = vadd.f32 %v7191_v63, %v13922_v53  ;;  %v7380_v17 = vmax.f32 %v7190_v30, 0.0 }
 0x76d   : > { %v7193_v58 = vpop.f32.mrf.mxu0 }
 0x76e   : > { %v7194_v24 = vadd.f32 %v7193_v58, %v13919_v45  ;;  %7922 = vmatprep.mubr.bf16.mxu1 %v7463_v44  ;;  %v7381_v41 = vmax.f32 %v7192_v36, 0.0 }
 0x76f   : > { %v7195_v49 = vpop.f32.mrf.mxu0  ;;  %7923 = vmatmul.mubr.bf16.gmra.mxu1 %v7462_v40 }
 0x770   : > { %v7196_v7 = vadd.f32 %v7195_v49, %v13922_v53  ;;  %v7382_v0 = vmax.f32 %v7194_v24, 0.0 }
 0x771   : > { %v7199_v26 = vpop.f32.mrf.mxu0  ;;  %10395 = vmatmul.mubr.msk.bf16.gmra.mxu0 %vm8215_vm1, %v11003_v38 }
 0x772   : > { %v7383_v35 = vmax.f32 %v7196_v7, 0.0  ;;  %10398 = vmatprep.mubr.msk.bf16.mxu0 %vm8215_vm1, %v11005_v43  ;;  %v7464_v34 = vpack.c.bf16 %v7382_v0, %v7380_v17  ;;  %v7200_v16 = vadd.f32 %v7199_v26, %v13919_v45  ;;  %v11013_v26 = vld [vmem:[%s13848_s0 + $0xf8] ss:$0 sps:$4 sm:$0xff]  }
 0x773   : > { %v7201_v29 = vpop.f32.mrf.mxu0 }
 0x774   : > { %v7465_v33 = vpack.c.bf16 %v7383_v35, %v7381_v41  ;;  %v7202_v57 = vadd.f32 %v7201_v29, %v13922_v53  ;;  %v7384_v19 = vmax.f32 %v7200_v16, 0.0 }
 0x775   : > { %v7203_v50 = vpop.f32.mrf.mxu0 }
 0x776   : > { %v7204_v46 = vadd.f32 %v7203_v50, %v13919_v45  ;;  %7932 = vmatprep.mubr.bf16.mxu1 %v7465_v33  ;;  %v7385_v61 = vmax.f32 %v7202_v57, 0.0 }
 0x777   : > { %v7205_v21 = vpop.f32.mrf.mxu0  ;;  %7933 = vmatmul.mubr.bf16.gmra.mxu1 %v7464_v34 }
 0x778   : > { %v7206_v10 = vadd.f32 %v7205_v21, %v13922_v53  ;;  %v7386_v52 = vmax.f32 %v7204_v46, 0.0 }
 0x779   : > { %v7209_v14 = vpop.f32.mrf.mxu0  ;;  %10399 = vmatmul.mubr.msk.bf16.gmra.mxu0 %vm8215_vm1, %v11006_v39 }
 0x77a   : > { %v7387_v56 = vmax.f32 %v7206_v10, 0.0  ;;  %10402 = vmatprep.mubr.msk.bf16.mxu0 %vm8215_vm1, %v11007_v23  ;;  %v7466_v11 = vpack.c.bf16 %v7386_v52, %v7384_v19  ;;  %v7210_v3 = vadd.f32 %v7209_v14, %v13919_v45 }
 0x77b   : > { %v7211_v18 = vpop.f32.mrf.mxu0 }
 0x77c   : > { %v7467_v4 = vpack.c.bf16 %v7387_v56, %v7385_v61  ;;  %v7212_v15 = vadd.f32 %v7211_v18, %v13922_v53  ;;  %v7388_v1 = vmax.f32 %v7210_v3, 0.0 }
 0x77d   : > { %v7213_v37 = vpop.f32.mrf.mxu0 }
 0x77e   : > { %v7214_v48 = vadd.f32 %v7213_v37, %v13919_v45  ;;  %7942 = vmatprep.mubr.bf16.mxu1 %v7467_v4  ;;  %v7389_v6 = vmax.f32 %v7212_v15, 0.0 }
 0x77f   : > { %v7215_v31 = vpop.f32.mrf.mxu0  ;;  %7943 = vmatmul.mubr.bf16.gmra.mxu1 %v7466_v11 }
 0x780   : > { %v7216_v42 = vadd.f32 %v7215_v31, %v13922_v53  ;;  %v7390_v62 = vmax.f32 %v7214_v48, 0.0 }
 0x781   : > { %v7219_v27 = vpop.f32.mrf.mxu0  ;;  %10403 = vmatmul.mubr.msk.bf16.gmra.mxu0 %vm8215_vm1, %v11008_v8 }
 0x782   : > { %v7391_v32 = vmax.f32 %v7216_v42, 0.0  ;;  %10406 = vmatprep.mubr.msk.bf16.mxu0 %vm8215_vm1, %v11010_v54  ;;  %v7468_v55 = vpack.c.bf16 %v7390_v62, %v7388_v1  ;;  %v7220_v60 = vadd.f32 %v7219_v27, %v13919_v45 }
 0x783   : > { %v7221_v12 = vpop.f32.mrf.mxu0 }
 0x784   : > { %v7469_v2 = vpack.c.bf16 %v7391_v32, %v7389_v6  ;;  %v7222_v59 = vadd.f32 %v7221_v12, %v13922_v53  ;;  %v7392_v24 = vmax.f32 %v7220_v60, 0.0 }
 0x785   : > { %v7223_v9 = vpop.f32.mrf.mxu0 }
 0x786   : > { %v7224_v51 = vadd.f32 %v7223_v9, %v13919_v45  ;;  %7952 = vmatprep.mubr.bf16.mxu1 %v7469_v2  ;;  %v7393_v44 = vmax.f32 %v7222_v59, 0.0 }
 0x787   : > { %v7225_v47 = vpop.f32.mrf.mxu0  ;;  %7953 = vmatmul.mubr.bf16.gmra.mxu1 %v7468_v55 }
 0x788   : > { %v7226_v63 = vadd.f32 %v7225_v47, %v13922_v53  ;;  %v7394_v58 = vmax.f32 %v7224_v51, 0.0 }
 0x789   : > { %v7229_v5 = vpop.f32.mrf.mxu0  ;;  %10407 = vmatmul.mubr.msk.bf16.gmra.mxu0 %vm8215_vm1, %v11011_v13 }
 0x78a   : > { %v7395_v40 = vmax.f32 %v7226_v63, 0.0  ;;  %10410 = vmatprep.mubr.msk.bf16.mxu0 %vm8215_vm1, %v11012_v20  ;;  %v7470_v43 = vpack.c.bf16 %v7394_v58, %v7392_v24  ;;  %v7230_v0 = vadd.f32 %v7229_v5, %v13919_v45 }
 0x78b   : > { %v7231_v36 = vpop.f32.mrf.mxu0 }
 0x78c   : > { %v7471_v38 = vpack.c.bf16 %v7395_v40, %v7393_v44  ;;  %v7232_v30 = vadd.f32 %v7231_v36, %v13922_v53  ;;  %v7396_v34 = vmax.f32 %v7230_v0, 0.0 }
 0x78d   : > { %v7233_v49 = vpop.f32.mrf.mxu0 }
 0x78e   : > { %v7234_v7 = vadd.f32 %v7233_v49, %v13919_v45  ;;  %7962 = vmatprep.mubr.bf16.mxu1 %v7471_v38  ;;  %v7397_v29 = vmax.f32 %v7232_v30, 0.0 }
 0x78f   : > { %v7235_v41 = vpop.f32.mrf.mxu0  ;;  %7963 = vmatmul.mubr.bf16.gmra.mxu1 %v7470_v43 }
 0x790   : > { %v7236_v35 = vadd.f32 %v7235_v41, %v13922_v53  ;;  %v7398_v17 = vmax.f32 %v7234_v7, 0.0 }
 0x791   : > { %v7239_v50 = vpop.f32.mrf.mxu0  ;;  %10411 = vmatmul.mubr.msk.bf16.gmra.mxu0 %vm8215_vm1, %v11013_v26 }
 0x792   : > { %v7399_v33 = vmax.f32 %v7236_v35, 0.0  ;;  %v7472_v39 = vpack.c.bf16 %v7398_v17, %v7396_v34  ;;  %v7240_v10 = vadd.f32 %v7239_v50, %v13919_v45 }
 0x793   : > { %v7241_v46 = vpop.f32.mrf.mxu0 }
 0x794   : > { %v7473_v57 = vpack.c.bf16 %v7399_v33, %v7397_v29  ;;  %v7242_v23 = vadd.f32 %v7241_v46, %v13922_v53  ;;  %v7400_v4 = vmax.f32 %v7240_v10, 0.0 }
 0x795   : > { %v7243_v21 = vpop.f32.mrf.mxu0 }
 0x796   : > { %7972 = vmatprep.mubr.bf16.mxu1 %v7473_v57  ;;  %v7244_v16 = vadd.f32 %v7243_v21, %v13919_v45  ;;  %v7401_v18 = vmax.f32 %v7242_v23, 0.0 }
 0x797   : > { %v7245_v14 = vpop.f32.mrf.mxu0  ;;  %7973 = vmatmul.mubr.bf16.gmra.mxu1 %v7472_v39 }
 0x798   : > { %v7246_v61 = vadd.f32 %v7245_v14, %v13922_v53  ;;  %v7402_v52 = vmax.f32 %v7244_v16, 0.0 }
 0x799   : > { %v7249_v56 = vpop.f32.mrf.mxu0 }
 0x79a   : > { %v7403_v19 = vmax.f32 %v7246_v61, 0.0  ;;  %v7474_v15 = vpack.c.bf16 %v7402_v52, %v7400_v4  ;;  %v7250_v54 = vadd.f32 %v7249_v56, %v13919_v45 }
 0x79b   : > { %v7251_v37 = vpop.f32.mrf.mxu0 }
 0x79c   : > { %v7475_v11 = vpack.c.bf16 %v7403_v19, %v7401_v18  ;;  %v7252_v8 = vadd.f32 %v7251_v37, %v13922_v53  ;;  %v7404_v12 = vmax.f32 %v7250_v54, 0.0 }
 0x79d   : > { %v7253_v48 = vpop.f32.mrf.mxu0 }
 0x79e   : > { %v7254_v31 = vadd.f32 %v7253_v48, %v13919_v45  ;;  %7982 = vmatprep.mubr.bf16.mxu1 %v7475_v11  ;;  %v7405_v62 = vmax.f32 %v7252_v8, 0.0 }
 0x79f   : > { %v7255_v3 = vpop.f32.mrf.mxu0  ;;  %7983 = vmatmul.mubr.bf16.gmra.mxu1 %v7474_v15 }
 0x7a0   : > { %v7256_v42 = vadd.f32 %v7255_v3, %v13922_v53  ;;  %v7406_v27 = vmax.f32 %v7254_v31, 0.0 }
 0x7a1   : > { %v7259_v6 = vpop.f32.mrf.mxu0 }
 0x7a2   : > { %v7407_v32 = vmax.f32 %v7256_v42, 0.0  ;;  %v7476_v9 = vpack.c.bf16 %v7406_v27, %v7404_v12  ;;  %v7260_v13 = vadd.f32 %v7259_v6, %v13919_v45 }
 0x7a3   : > { %v7261_v1 = vpop.f32.mrf.mxu0 }
 0x7a4   : > { %v7477_v2 = vpack.c.bf16 %v7407_v32, %v7405_v62  ;;  %v7262_v59 = vadd.f32 %v7261_v1, %v13922_v53  ;;  %v7408_v36 = vmax.f32 %v7260_v13, 0.0 }
 0x7a5   : > { %v7263_v55 = vpop.f32.mrf.mxu0 }
 0x7a6   : > { %v7264_v51 = vadd.f32 %v7263_v55, %v13919_v45  ;;  %7992 = vmatprep.mubr.bf16.mxu1 %v7477_v2  ;;  %v7409_v58 = vmax.f32 %v7262_v59, 0.0 }
 0x7a7   : > { %v7265_v47 = vpop.f32.mrf.mxu0  ;;  %v14151_v20 = vpop.f32.mrf.mxu1  ;;  %7993 = vmatmul.mubr.bf16.gmra.mxu1 %v7476_v9 }
 0x7a8   : > { %v7266_v60 = vadd.f32 %v7265_v47, %v13922_v53  ;;  %v7410_v63 = vmax.f32 %v7264_v51, 0.0 }
 0x7a9   : > { %v7269_v5 = vpop.f32.mrf.mxu0  ;;  %v14154_v44 = vpop.f32.mrf.mxu1 }
 0x7aa   : > { %v7411_v40 = vmax.f32 %v7266_v60, 0.0  ;;  %v7478_v43 = vpack.c.bf16 %v7410_v63, %v7408_v36  ;;  %v7270_v0 = vadd.f32 %v7269_v5, %v13919_v45 }
 0x7ab   : > { %v7271_v24 = vpop.f32.mrf.mxu0  ;;  %v14156_v38 = vpop.f32.mrf.mxu1 }
 0x7ac   : > { %v7479_v49 = vpack.c.bf16 %v7411_v40, %v7409_v58  ;;  %v7272_v26 = vadd.f32 %v7271_v24, %v13922_v53  ;;  %v7412_v39 = vmax.f32 %v7270_v0, 0.0 }
 0x7ad   : > { %v7273_v30 = vpop.f32.mrf.mxu0  ;;  %v14158_v7 = vpop.f32.mrf.mxu1 }
 0x7ae   : > { %v7274_v41 = vadd.f32 %v7273_v30, %v13919_v45  ;;  %8002 = vmatprep.mubr.bf16.mxu1 %v7479_v49  ;;  %v7413_v57 = vmax.f32 %v7272_v26, 0.0 }
 0x7af   : > { %v7275_v35 = vpop.f32.mrf.mxu0  ;;  %v14163_v29 = vpop.f32.mrf.mxu1  ;;  %8003 = vmatmul.mubr.bf16.gmra.mxu1 %v7478_v43 }
 0x7b0   : > { %v7276_v17 = vadd.f32 %v7275_v35, %v13922_v53  ;;  %v7414_v33 = vmax.f32 %v7274_v41, 0.0 }
 0x7b1   : > { %v7279_v50 = vpop.f32.mrf.mxu0  ;;  %v14166_v34 = vpop.f32.mrf.mxu1 }
 0x7b2   : > { %v7415_v46 = vmax.f32 %v7276_v17, 0.0  ;;  %v7480_v10 = vpack.c.bf16 %v7414_v33, %v7412_v39  ;;  %v7280_v18 = vadd.f32 %v7279_v50, %v13919_v45  ;;  %v14223_v39 = vld [vmem:[%s15175_s20] sm:$0x3] }
 0x7b3   : > { %v7281_v21 = vpop.f32.mrf.mxu0  ;;  %v14168_v23 = vpop.f32.mrf.mxu1 }
 0x7b4   : > { %v7481_v16 = vpack.c.bf16 %v7415_v46, %v7413_v57  ;;  %v7282_v52 = vadd.f32 %v7281_v21, %v13922_v53  ;;  %v7416_v54 = vmax.f32 %v7280_v18, 0.0 }
 0x7b5   : > { %v7283_v14 = vpop.f32.mrf.mxu0  ;;  %v14170_v61 = vpop.f32.mrf.mxu1 }
 0x7b6   : > { %v7284_v56 = vadd.f32 %v7283_v14, %v13919_v45  ;;  %8012 = vmatprep.mubr.bf16.mxu1 %v7481_v16  ;;  %v7417_v8 = vmax.f32 %v7282_v52, 0.0  ;;  %v14233_v52 = vrot.slane %v14223_v39, %v11717_v28 }
 0x7b7   : > { %v7285_v19 = vpop.f32.mrf.mxu0  ;;  %v14175_v4 = vpop.f32.mrf.mxu1  ;;  %8013 = vmatmul.mubr.bf16.gmra.mxu1 %v7480_v10 }
 0x7b8   : > { %v7286_v37 = vadd.f32 %v7285_v19, %v13922_v53  ;;  %v7418_v11 = vmax.f32 %v7284_v56, 0.0 }
 0x7b9   : > { %v7289_v15 = vpop.f32.mrf.mxu0  ;;  %v14178_v48 = vpop.f32.mrf.mxu1 }
 0x7ba   : > { %v7419_v31 = vmax.f32 %v7286_v37, 0.0  ;;  %v7482_v62 = vpack.c.bf16 %v7418_v11, %v7416_v54  ;;  %v7290_v32 = vadd.f32 %v7289_v15, %v13919_v45 }
 0x7bb   : > { %v7291_v3 = vpop.f32.mrf.mxu0  ;;  %v14180_v42 = vpop.f32.mrf.mxu1 }
 0x7bc   : > { %v7483_v27 = vpack.c.bf16 %v7419_v31, %v7417_v8  ;;  %v7292_v6 = vadd.f32 %v7291_v3, %v13922_v53  ;;  %v7420_v51 = vmax.f32 %v7290_v32, 0.0 }
 0x7bd   : > { %v7293_v12 = vpop.f32.mrf.mxu0  ;;  %v14184_v1 = vpop.f32.mrf.mxu1 }
 0x7be   : > { %v7421_v2 = vmax.f32 %v7292_v6, 0.0  ;;  %8022 = vmatprep.mubr.bf16.mxu1 %v7483_v27  ;;  %v7484_v45 = vpack.c.bf16 %v7420_v51, %v7420_v51 }
 0x7bf   : > { %v7294_v9 = vpop.f32.mrf.mxu0  ;;  %v14186_v55 = vpop.f32.mrf.mxu1  ;;  %8023 = vmatmul.mubr.bf16.gmra.mxu1 %v7482_v62 }
 0x7c0   : > { %v7485_v59 = vpack.c.bf16 %v7421_v2, %v7421_v2 }
 0x7c1   : > { %v7724_v13 = vpop.f32.mrf.mxu0  ;;  %v14188_v47 = vpop.f32.mrf.mxu1 }
 0x7c2   : > { %8032 = vmatprep.mubr.bf16.mxu1 %v7485_v59  ;;  %v7725_v19 = vadd.f32 %v7724_v13, %v14233_v52 }
 0x7c3   : > { %v14190_v60 = vpop.f32.mrf.mxu0  ;;  %v14192_v53 = vpop.f32.mrf.mxu1 }
 0x7c5   : > { %v7728_v63 = vpop.f32.mrf.mxu0  ;;  %v14194_v5 = vpop.f32.mrf.mxu1 }
 0x7c6   : > { %v7729_v31 = vadd.f32 %v7728_v63, %v14233_v52  ;;  %v7759_v63 = vadd.f32 %v14156_v38, %v14233_v52 }
 0x7c7   : > { %v14196_v58 = vpop.f32.mrf.mxu0  ;;  %v14198_v40 = vpop.f32.mrf.mxu1  ;;  %8033 = vmatmul.mubr.bf16.gmra.mxu1 %v7484_v45 }
 0x7c9   : > { %v7734_v36 = vpop.f32.mrf.mxu0  ;;  %v14200_v24 = vpop.f32.mrf.mxu1 }
 0x7ca   : > { %v7735_v11 = vadd.f32 %v7734_v36, %v14233_v52 }
 0x7cb   : > { %v14202_v49 = vpop.f32.mrf.mxu0  ;;  %v14204_v43 = vpop.f32.mrf.mxu1 }
 0x7cd   : > { %v7738_v30 = vpop.f32.mrf.mxu0  ;;  %v14206_v26 = vpop.f32.mrf.mxu1 }
 0x7ce   : > { %v7739_v37 = vadd.f32 %v7738_v30, %v14233_v52 }
 0x7cf   : > { %v14208_v41 = vpop.f32.mrf.mxu0  ;;  %v14210_v0 = vpop.f32.mrf.mxu1 }
 0x7d1   : > { %v7744_v35 = vpop.f32.mrf.mxu0  ;;  %v14212_v17 = vpop.f32.mrf.mxu1 }
 0x7d2   : > { %v7745_v36 = vadd.f32 %v7744_v35, %v14233_v52 }
 0x7d3   : > { %v14214_v33 = vpop.f32.mrf.mxu0  ;;  %v14216_v50 = vpop.f32.mrf.mxu1 }
 0x7d5   : > { %v7748_v57 = vpop.f32.mrf.mxu0  ;;  %v14218_v46 = vpop.f32.mrf.mxu1 }
 0x7d7   : > { %v14225_v21 = vpop.f32.mrf.mxu0  ;;  %v14227_v16 = vpop.f32.mrf.mxu1 }
 0x7d9   : > { %v14229_v10 = vpop.f32.mrf.mxu1  ;;  %v10352_v14 = vpop.f32.mrf.mxu0 }
 0x7da   : > { %v8602_v27 = vadd.f32 %v10352_v14, %v7735_v11  ;;  %v7755_v14 = vadd.f32 %v14151_v20, %v14233_v52  ;;  %v7749_v11 = vadd.f32 %v7748_v57, %v14233_v52  ;;  %v7765_v57 = vadd.f32 %v14163_v29, %v14233_v52 }
 0x7db   : > { %v14235_v56 = vpop.f32.mrf.mxu1  ;;  %v8346_v18 = vpop.f32.mrf.mxu0 }
 0x7dc   : > { %v8600_v54 = vadd.f32 %v8346_v18, %v7725_v19  ;;  %v8665_v51 = vmax.f32 %v8602_v27, 0.0 }
 0x7dd   : > { %v14240_v15 = vpop.f32.mrf.mxu1  ;;  %v10353_v8 = vpop.f32.mrf.mxu0 }
 0x7de   : > { %v8603_v3 = vadd.f32 %v10353_v8, %v7739_v37  ;;  %v8663_v9 = vmax.f32 %v8600_v54, 0.0 }
 0x7df   : > { %v14243_v6 = vpop.f32.mrf.mxu1  ;;  %v8349_v28 = vpop.f32.mrf.mxu0 }
 0x7e0   : > { %v8601_v62 = vadd.f32 %v8349_v28, %v7729_v31  ;;  %v8666_v32 = vmax.f32 %v8603_v3, 0.0 }
 0x7e1   : > { %v14245_v12 = vpop.f32.mrf.mxu1  ;;  %v10356_v2 = vpop.f32.mrf.mxu0 }
 0x7e2   : > { %v8664_v59 = vmax.f32 %v8601_v62, 0.0  ;;  %v8727_v18 = vpack.c.bf16 %v8666_v32, %v8665_v51  ;;  %v8606_v54 = vadd.f32 %v10356_v2, %v7755_v14  ;;  %v7779_v2 = vadd.f32 %v14180_v42, %v14233_v52 }
 0x7e3   : > { %v14247_v13 = vpop.f32.mrf.mxu1  ;;  %v8362_v45 = vpop.f32.mrf.mxu0 }
 0x7e4   : > { %v8726_v30 = vpack.c.bf16 %v8664_v59, %v8663_v9  ;;  %v8604_v8 = vadd.f32 %v8362_v45, %v7745_v36  ;;  %v8669_v9 = vmax.f32 %v8606_v54, 0.0 }
 0x7e5   : > { %v14254_v19 = vpop.f32.mrf.mxu1  ;;  %v10357_v37 = vpop.f32.mrf.mxu0 }
 0x7e6   : > { %v8607_v31 = vadd.f32 %v10357_v37, %v7759_v63  ;;  %10430 = vmatprep.mubr.bf16.mxu1 %v8726_v30  ;;  %v8667_v20 = vmax.f32 %v8604_v8, 0.0  ;;  %v7775_v63 = vadd.f32 %v14175_v4, %v14233_v52 }
 0x7e7   : > { %v14257_v3 = vpop.f32.mrf.mxu1  ;;  %v8365_v27 = vpop.f32.mrf.mxu0  ;;  %10431 = vmatmul.mubr.bf16.vlgmr.msra.gmra.mxu1 %v8727_v18  ;;  %v7769_v18 = vadd.f32 %v14168_v23, %v14233_v52  ;;  %v7785_v23 = vadd.f32 %v14186_v55, %v14233_v52 }
 0x7e8   : > { %v8605_v38 = vadd.f32 %v8365_v27, %v7749_v11  ;;  %v8670_v35 = vmax.f32 %v8607_v31, 0.0 }
 0x7e9   : > { %v14259_v28 = vpop.f32.mrf.mxu1  ;;  %v10360_v62 = vpop.f32.mrf.mxu0 }
 0x7ea   : > { %v8668_v32 = vmax.f32 %v8605_v38, 0.0  ;;  %v8729_v36 = vpack.c.bf16 %v8670_v35, %v8669_v9  ;;  %v8610_v8 = vadd.f32 %v10360_v62, %v7775_v63  ;;  %v7799_v62 = vadd.f32 %v14204_v43, %v14233_v52 }
 0x7eb   : > { %v14261_v59 = vpop.f32.mrf.mxu1  ;;  %v8378_v51 = vpop.f32.mrf.mxu0 }
 0x7ec   : > { %v8728_v45 = vpack.c.bf16 %v8668_v32, %v8667_v20  ;;  %v8608_v37 = vadd.f32 %v8378_v51, %v7765_v57  ;;  %v8673_v20 = vmax.f32 %v8610_v8, 0.0  ;;  %v7795_v57 = vadd.f32 %v14198_v40, %v14233_v52 }
 0x7ed   : > { %v14269_v30 = vpop.f32.mrf.mxu1  ;;  %v10361_v14 = vpop.f32.mrf.mxu0 }
 0x7ee   : > { %v8611_v11 = vadd.f32 %v10361_v14, %v7779_v2  ;;  %10434 = vmatprep.mubr.bf16.mxu1 %v8728_v45  ;;  %v8671_v38 = vmax.f32 %v8608_v37, 0.0 }
 0x7ef   : > { %v14273_v31 = vpop.f32.mrf.mxu1  ;;  %v8381_v29 = vpop.f32.mrf.mxu0  ;;  %10435 = vmatmul.mubr.bf16.gmra.mxu1 %v8729_v36  ;;  %v7789_v36 = vadd.f32 %v14192_v53, %v14233_v52  ;;  %v7805_v53 = vadd.f32 %v14210_v0, %v14233_v52 }
 0x7f0   : > { %v8609_v42 = vadd.f32 %v8381_v29, %v7769_v18  ;;  %v8674_v54 = vmax.f32 %v8611_v11, 0.0 }
 0x7f1   : > { %v14275_v27 = vpop.f32.mrf.mxu1  ;;  %v10364_v4 = vpop.f32.mrf.mxu0 }
 0x7f2   : > { %v8672_v35 = vmax.f32 %v8609_v42, 0.0  ;;  %v8731_v2 = vpack.c.bf16 %v8674_v54, %v8673_v20  ;;  %v8614_v37 = vadd.f32 %v10364_v4, %v7795_v57  ;;  %v7819_v4 = vadd.f32 %v14235_v56, %v14233_v52 }
 0x7f3   : > { %v14277_v32 = vpop.f32.mrf.mxu1  ;;  %v8394_v9 = vpop.f32.mrf.mxu0 }
 0x7f4   : > { %v8730_v51 = vpack.c.bf16 %v8672_v35, %v8671_v38  ;;  %v8612_v14 = vadd.f32 %v8394_v9, %v7785_v23  ;;  %v8677_v38 = vmax.f32 %v8614_v37, 0.0  ;;  %v7815_v23 = vadd.f32 %v14227_v16, %v14233_v52 }
 0x7f5   : > { %v14285_v45 = vpop.f32.mrf.mxu1  ;;  %v10365_v63 = vpop.f32.mrf.mxu0 }
 0x7f6   : > { %v8615_v18 = vadd.f32 %v10365_v63, %v7799_v62  ;;  %10438 = vmatprep.mubr.bf16.mxu1 %v8730_v51  ;;  %v8675_v42 = vmax.f32 %v8612_v14, 0.0 }
 0x7f7   : > { %v14289_v11 = vpop.f32.mrf.mxu1  ;;  %v8397_v55 = vpop.f32.mrf.mxu0  ;;  %10439 = vmatmul.mubr.bf16.gmra.mxu1 %v8731_v2  ;;  %v7809_v2 = vadd.f32 %v14216_v50, %v14233_v52  ;;  %v7825_v50 = vadd.f32 %v14243_v6, %v14233_v52 }
 0x7f8   : > { %v8613_v43 = vadd.f32 %v8397_v55, %v7789_v36  ;;  %v8678_v8 = vmax.f32 %v8615_v18, 0.0 }
 0x7f9   : > { %v14291_v29 = vpop.f32.mrf.mxu1  ;;  %v10368_v40 = vpop.f32.mrf.mxu0 }
 0x7fa   : > { %v8676_v54 = vmax.f32 %v8613_v43, 0.0  ;;  %v8733_v62 = vpack.c.bf16 %v8678_v8, %v8677_v38  ;;  %v8618_v14 = vadd.f32 %v10368_v40, %v7815_v23 }
 0x7fb   : > { %v7858_v35 = vpop.f32.mrf.mxu1  ;;  %v8410_v20 = vpop.f32.mrf.mxu0 }
 0x7fc   : > { %v8732_v9 = vpack.c.bf16 %v8676_v54, %v8675_v42  ;;  %v8616_v63 = vadd.f32 %v8410_v20, %v7805_v53  ;;  %v8681_v42 = vmax.f32 %v8618_v14, 0.0  ;;  %v7839_v20 = vadd.f32 %v14261_v59, %v14233_v52 }
 0x7fd   : > { %v14299_v51 = vpop.f32.mrf.mxu1  ;;  %v10369_v57 = vpop.f32.mrf.mxu0  ;;  %v7835_v53 = vadd.f32 %v14257_v3, %v14233_v52 }
 0x7fe   : > { %v8619_v36 = vadd.f32 %v10369_v57, %v7819_v4  ;;  %10442 = vmatprep.mubr.bf16.mxu1 %v8732_v9  ;;  %v8679_v16 = vmax.f32 %v8616_v63, 0.0 }
 0x7ff   : > { %v7864_v18 = vpop.f32.mrf.mxu1  ;;  %v8413_v0 = vpop.f32.mrf.mxu0  ;;  %10443 = vmatmul.mubr.bf16.gmra.mxu1 %v8733_v62  ;;  %v7829_v62 = vadd.f32 %v14247_v13, %v14233_v52  ;;  %v7845_v13 = vadd.f32 %v14273_v31, %v14233_v52 }
 0x800   : > { %v8617_v37 = vadd.f32 %v8413_v0, %v7809_v2  ;;  %v8682_v56 = vmax.f32 %v8619_v36, 0.0  ;;  %v7865_v22 = vadd.f32 %v7864_v18, %v14233_v52 }
 0x801   : > { %v14303_v55 = vpop.f32.mrf.mxu1  ;;  %v10372_v43 = vpop.f32.mrf.mxu0 }
 0x802   : > { %v8680_v8 = vmax.f32 %v8617_v37, 0.0  ;;  %v8735_v4 = vpack.c.bf16 %v8682_v56, %v8681_v42  ;;  %v8622_v63 = vadd.f32 %v10372_v43, %v7835_v53  ;;  %v7855_v43 = vadd.f32 %v14289_v11, %v14233_v52 }
 0x803   : > { %v7868_v54 = vpop.f32.mrf.mxu1  ;;  %v8426_v38 = vpop.f32.mrf.mxu0 }
 0x804   : > { %v8734_v40 = vpack.c.bf16 %v8680_v8, %v8679_v16  ;;  %v8620_v57 = vadd.f32 %v8426_v38, %v7825_v50  ;;  %v8685_v16 = vmax.f32 %v8622_v63, 0.0  ;;  %v7859_v38 = vadd.f32 %v7858_v35, %v14233_v52 }
 0x805   : > { %v14311_v9 = vpop.f32.mrf.mxu1  ;;  %v10373_v23 = vpop.f32.mrf.mxu0 }
 0x806   : > { %v8623_v2 = vadd.f32 %v10373_v23, %v7839_v20  ;;  %10446 = vmatprep.mubr.bf16.mxu1 %v8734_v40  ;;  %v8683_v3 = vmax.f32 %v8620_v57, 0.0 }
 0x807   : > { %v7874_v36 = vpop.f32.mrf.mxu1  ;;  %v8429_v6 = vpop.f32.mrf.mxu0  ;;  %10447 = vmatmul.mubr.bf16.gmra.mxu1 %v8735_v4  ;;  %v7849_v4 = vadd.f32 %v14277_v32, %v14233_v52 }
 0x808   : > { %v8621_v14 = vadd.f32 %v8429_v6, %v7829_v62  ;;  %v8686_v59 = vmax.f32 %v8623_v2, 0.0 }
 0x809   : > { %v14315_v0 = vpop.f32.mrf.mxu1  ;;  %v10376_v37 = vpop.f32.mrf.mxu0 }
 0x80a   : > { %v8684_v56 = vmax.f32 %v8621_v14, 0.0  ;;  %v8737_v20 = vpack.c.bf16 %v8686_v59, %v8685_v16  ;;  %v8626_v57 = vadd.f32 %v10376_v37, %v7855_v43  ;;  %v7875_v37 = vadd.f32 %v7874_v36, %v14233_v52 }
 0x80b   : > { %v7878_v8 = vpop.f32.mrf.mxu1  ;;  %v8442_v42 = vpop.f32.mrf.mxu0  ;;  %v7869_v43 = vadd.f32 %v7868_v54, %v14233_v52 }
 0x80c   : > { %v8736_v50 = vpack.c.bf16 %v8684_v56, %v8683_v3  ;;  %v8624_v23 = vadd.f32 %v8442_v42, %v7845_v13  ;;  %v8689_v3 = vmax.f32 %v8626_v57, 0.0  ;;  %v7879_v32 = vadd.f32 %v7878_v8, %v14233_v52 }
 0x80d   : > { %v14322_v40 = vpop.f32.mrf.mxu1  ;;  %v10377_v53 = vpop.f32.mrf.mxu0 }
 0x80e   : > { %15206 = vst [vmem:[#allocation2_spill] sm:$0xff] %v14322_v40  ;;  %v8627_v62 = vadd.f32 %v10377_v53, %v7859_v38  ;;  %10450 = vmatprep.mubr.bf16.mxu1 %v8736_v50  ;;  %v8687_v11 = vmax.f32 %v8624_v23, 0.0 }
 0x80f   : > { %v7884_v2 = vpop.f32.mrf.mxu1  ;;  %v8445_v63 = vpop.f32.mrf.mxu0  ;;  %10451 = vmatmul.mubr.bf16.gmra.mxu1 %v8737_v20 }
 0x810   : > { %v8625_v31 = vadd.f32 %v8445_v63, %v7849_v4  ;;  %v8690_v35 = vmax.f32 %v8627_v62, 0.0 }
 0x811   : > { %v14326_v6 = vpop.f32.mrf.mxu1  ;;  %v10380_v14 = vpop.f32.mrf.mxu0 }
 0x812   : > { %15207 = vst [vmem:[#allocation3_spill] sm:$0xff] %v14326_v6  ;;  %v8688_v59 = vmax.f32 %v8625_v31, 0.0  ;;  %v8739_v13 = vpack.c.bf16 %v8690_v35, %v8689_v3  ;;  %v8630_v4 = vadd.f32 %v10380_v14, %v7875_v37 }
 0x813   : > { %v7888_v56 = vpop.f32.mrf.mxu1  ;;  %v8458_v16 = vpop.f32.mrf.mxu0 }
 0x814   : > { %v8738_v42 = vpack.c.bf16 %v8688_v59, %v8687_v11  ;;  %v8628_v20 = vadd.f32 %v8458_v16, %v7865_v22  ;;  %v8693_v35 = vmax.f32 %v8630_v4, 0.0  ;;  %v7885_v22 = vadd.f32 %v7884_v2, %v14233_v52 }
 0x815   : > { %v14331_v38 = vpop.f32.mrf.mxu1  ;;  %v10381_v50 = vpop.f32.mrf.mxu0  ;;  %v7889_v37 = vadd.f32 %v7888_v56, %v14233_v52 }
 0x816   : > { %15208 = vst [vmem:[#allocation4_spill] sm:$0xff] %v14331_v38  ;;  %v8631_v53 = vadd.f32 %v10381_v50, %v7879_v32  ;;  %10454 = vmatprep.mubr.bf16.mxu1 %v8738_v42  ;;  %v8691_v31 = vmax.f32 %v8628_v20, 0.0 }
 0x817   : > { %v7894_v23 = vpop.f32.mrf.mxu1  ;;  %v8461_v62 = vpop.f32.mrf.mxu0  ;;  %10455 = vmatmul.mubr.bf16.gmra.mxu1 %v8739_v13 }
 0x818   : > { %v8629_v57 = vadd.f32 %v8461_v62, %v7869_v43  ;;  %v8694_v18 = vmax.f32 %v8631_v53, 0.0  ;;  %v7895_v11 = vadd.f32 %v7894_v23, %v14233_v52 }
 0x819   : > { %v14334_v63 = vpop.f32.mrf.mxu1  ;;  %v10384_v8 = vpop.f32.mrf.mxu0 }
 0x81a   : > { %15209 = vst [vmem:[#allocation5_spill] sm:$0xff] %v14334_v63  ;;  %v8692_v36 = vmax.f32 %v8629_v57, 0.0  ;;  %v8741_v16 = vpack.c.bf16 %v8694_v18, %v8693_v35  ;;  %v8634_v43 = vadd.f32 %v10384_v8, %v7895_v11 }
 0x81b   : > { %v7898_v59 = vpop.f32.mrf.mxu1  ;;  %v8474_v3 = vpop.f32.mrf.mxu0 }
 0x81c   : > { %v8740_v54 = vpack.c.bf16 %v8692_v36, %v8691_v31  ;;  %v7899_v14 = vadd.f32 %v7898_v59, %v14233_v52  ;;  %v8632_v13 = vadd.f32 %v8474_v3, %v7885_v22  ;;  %v8697_v18 = vmax.f32 %v8634_v43, 0.0 }
 0x81d   : > { %v14339_v32 = vpop.f32.mrf.mxu1  ;;  %v10385_v42 = vpop.f32.mrf.mxu0 }
 0x81e   : > { %15210 = vst [vmem:[#allocation6_spill] sm:$0xff] %v14339_v32  ;;  %v8635_v50 = vadd.f32 %v10385_v42, %v7899_v14  ;;  %10458 = vmatprep.mubr.bf16.mxu1 %v8740_v54  ;;  %v8695_v57 = vmax.f32 %v8632_v13, 0.0 }
 0x81f   : > { %v7904_v20 = vpop.f32.mrf.mxu1  ;;  %v8477_v53 = vpop.f32.mrf.mxu0  ;;  %10459 = vmatmul.mubr.bf16.gmra.mxu1 %v8741_v16 }
 0x820   : > { %v8633_v4 = vadd.f32 %v8477_v53, %v7889_v37  ;;  %v8698_v23 = vmax.f32 %v8635_v50, 0.0  ;;  %v7905_v59 = vadd.f32 %v7904_v20, %v14233_v52 }
 0x821   : > { %v14342_v62 = vpop.f32.mrf.mxu1  ;;  %v10388_v2 = vpop.f32.mrf.mxu0 }
 0x822   : > { %15211 = vst [vmem:[#allocation7_spill] sm:$0xff] %v14342_v62  ;;  %v8696_v31 = vmax.f32 %v8633_v4, 0.0  ;;  %v8743_v3 = vpack.c.bf16 %v8698_v23, %v8697_v18 }
 0x823   : > { %v7908_v36 = vpop.f32.mrf.mxu1  ;;  %v8490_v35 = vpop.f32.mrf.mxu0 }
 0x824   : > { %v8742_v56 = vpack.c.bf16 %v8696_v31, %v8695_v57  ;;  %v7909_v11 = vadd.f32 %v7908_v36, %v14233_v52  ;;  %v8636_v54 = vadd.f32 %v8490_v35, %v7905_v59 }
 0x825   : > { %v14345_v22 = vpop.f32.mrf.mxu1  ;;  %v10389_v8 = vpop.f32.mrf.mxu0 }
 0x826   : > { %15212 = vst [vmem:[#allocation8_spill] sm:$0xff] %v14345_v22  ;;  %10462 = vmatprep.mubr.bf16.mxu1 %v8742_v56  ;;  %v8699_v43 = vmax.f32 %v8636_v54, 0.0 }
 0x827   : > { %v7914_v14 = vpop.f32.mrf.mxu1  ;;  %v8493_v16 = vpop.f32.mrf.mxu0  ;;  %10463 = vmatmul.mubr.bf16.gmra.mxu1 %v8743_v3 }
 0x828   : > { %v7915_v42 = vadd.f32 %v7914_v14, %v14233_v52  ;;  %v8637_v37 = vadd.f32 %v8493_v16, %v7909_v11 }
 0x829   : > { %v14349_v13 = vpop.f32.mrf.mxu1  ;;  %v10392_v50 = vpop.f32.mrf.mxu0 }
 0x82a   : > { %15213 = vst [vmem:[#allocation9_spill] sm:$0xff] %v14349_v13  ;;  %v8700_v20 = vmax.f32 %v8637_v37, 0.0  ;;  %v8638_v23 = vadd.f32 %v10388_v2, %v7915_v42 }
 0x82b   : > { %v7918_v53 = vpop.f32.mrf.mxu1  ;;  %v8506_v4 = vpop.f32.mrf.mxu0 }
 0x82c   : > { %v8744_v57 = vpack.c.bf16 %v8700_v20, %v8699_v43  ;;  %v7919_v31 = vadd.f32 %v7918_v53, %v14233_v52  ;;  %v8701_v3 = vmax.f32 %v8638_v23, 0.0 }
 0x82d   : > { %v14352_v18 = vpop.f32.mrf.mxu1  ;;  %v10393_v36 = vpop.f32.mrf.mxu0 }
 0x82e   : > { %15214 = vst [vmem:[#allocation10_spill] sm:$0xff] %v14352_v18  ;;  %v8639_v35 = vadd.f32 %v10389_v8, %v7919_v31  ;;  %10466 = vmatprep.mubr.bf16.mxu1 %v8744_v57 }
 0x82f   : > { %v7924_v59 = vpop.f32.mrf.mxu1  ;;  %v8509_v56 = vpop.f32.mrf.mxu0 }
 0x830   : > { %v8702_v11 = vmax.f32 %v8639_v35, 0.0  ;;  %v7925_v14 = vadd.f32 %v7924_v59, %v14233_v52 }
 0x831   : > { %v14355_v16 = vpop.f32.mrf.mxu1  ;;  %v10396_v54 = vpop.f32.mrf.mxu0 }
 0x832   : > { %15215 = vst [vmem:[#allocation11_spill] sm:$0xff] %v14355_v16  ;;  %v8745_v37 = vpack.c.bf16 %v8702_v11, %v8701_v3  ;;  %v8640_v42 = vadd.f32 %v8506_v4, %v7925_v14 }
 0x833   : > { %v7928_v22 = vpop.f32.mrf.mxu1  ;;  %v8522_v2 = vpop.f32.mrf.mxu0 }
 0x834   : > { %v7929_v43 = vadd.f32 %v7928_v22, %v14233_v52  ;;  %10467 = vmatmul.mubr.bf16.gmra.mxu1 %v8745_v37  ;;  %v8703_v23 = vmax.f32 %v8640_v42, 0.0 }
 0x835   : > { %v14358_v20 = vpop.f32.mrf.mxu1  ;;  %v10397_v8 = vpop.f32.mrf.mxu0 }
 0x836   : > { %15216 = vst [vmem:[#allocation12_spill] sm:$0xff] %v14358_v20  ;;  %v8641_v53 = vadd.f32 %v8509_v56, %v7929_v43 }
 0x837   : > { %v7934_v57 = vpop.f32.mrf.mxu1  ;;  %v8525_v31 = vpop.f32.mrf.mxu0 }
 0x838   : > { %v8704_v35 = vmax.f32 %v8641_v53, 0.0  ;;  %v7935_v59 = vadd.f32 %v7934_v57, %v14233_v52 }
 0x839   : > { %v14361_v18 = vpop.f32.mrf.mxu1  ;;  %v14363_v16 = vpop.f32.mrf.mxu0 }
 0x83a   : > { %15217 = vst [vmem:[#allocation13_spill] sm:$0xff] %v14361_v18  ;;  %v8746_v3 = vpack.c.bf16 %v8704_v35, %v8703_v23  ;;  %v8642_v14 = vadd.f32 %v10392_v50, %v7935_v59 }
 0x83b   : > { %v7938_v11 = vpop.f32.mrf.mxu1  ;;  %v8538_v4 = vpop.f32.mrf.mxu0 }
 0x83c   : > { %v7939_v22 = vadd.f32 %v7938_v11, %v14233_v52  ;;  %10470 = vmatprep.mubr.bf16.mxu1 %v8746_v3  ;;  %v8705_v53 = vmax.f32 %v8642_v14, 0.0 }
 0x83d   : > { %v14366_v37 = vpop.f32.mrf.mxu1  ;;  %v10401_v56 = vpop.f32.mrf.mxu0 }
 0x83e   : > { %15218 = vst [vmem:[#allocation14_spill] sm:$0xff] %v14366_v37  ;;  %v8643_v43 = vadd.f32 %v10393_v36, %v7939_v22 }
 0x83f   : > { %v7944_v20 = vpop.f32.mrf.mxu1  ;;  %v8541_v42 = vpop.f32.mrf.mxu0 }
 0x840   : > { %v8706_v62 = vmax.f32 %v8643_v43, 0.0  ;;  %v7945_v57 = vadd.f32 %v7944_v20, %v14233_v52 }
 0x841   : > { %v14369_v18 = vpop.f32.mrf.mxu1  ;;  %v14371_v13 = vpop.f32.mrf.mxu0 }
 0x842   : > { %15219 = vst [vmem:[#allocation15_spill] sm:$0xff] %v14369_v18  ;;  %v8747_v23 = vpack.c.bf16 %v8706_v62, %v8705_v53  ;;  %v8644_v59 = vadd.f32 %v8522_v2, %v7945_v57 }
 0x843   : > { %v7948_v35 = vpop.f32.mrf.mxu1  ;;  %v8554_v50 = vpop.f32.mrf.mxu0 }
 0x844   : > { %v7949_v3 = vadd.f32 %v7948_v35, %v14233_v52  ;;  %10471 = vmatmul.mubr.bf16.gmra.mxu1 %v8747_v23  ;;  %v8707_v37 = vmax.f32 %v8644_v59, 0.0 }
 0x845   : > { %v14374_v11 = vpop.f32.mrf.mxu1  ;;  %v14376_v36 = vpop.f32.mrf.mxu0 }
 0x846   : > { %15220 = vst [vmem:[#allocation16_spill] sm:$0xff] %v14374_v11  ;;  %v8645_v22 = vadd.f32 %v8525_v31, %v7949_v3 }
 0x847   : > { %v7954_v14 = vpop.f32.mrf.mxu1  ;;  %v8557_v43 = vpop.f32.mrf.mxu0 }
 0x848   : > { %v8708_v20 = vmax.f32 %v8645_v22, 0.0  ;;  %v7955_v18 = vadd.f32 %v7954_v14, %v14233_v52 }
 0x849   : > { %v14379_v38 = vpop.f32.mrf.mxu1  ;;  %v14381_v62 = vpop.f32.mrf.mxu0 }
 0x84a   : > { %15221 = vst [vmem:[#allocation17_spill] sm:$0xff] %v14379_v38  ;;  %v8748_v53 = vpack.c.bf16 %v8708_v20, %v8707_v37  ;;  %v8646_v23 = vadd.f32 %v10396_v54, %v7955_v18 }
 0x84b   : > { %v7958_v2 = vpop.f32.mrf.mxu1  ;;  %v14383_v57 = vpop.f32.mrf.mxu0 }
 0x84c   : > { %v7959_v35 = vadd.f32 %v7958_v2, %v14233_v52  ;;  %10474 = vmatprep.mubr.bf16.mxu1 %v8748_v53  ;;  %v8709_v14 = vmax.f32 %v8646_v23, 0.0 }
 0x84d   : > { %v14386_v11 = vpop.f32.mrf.mxu1  ;;  %v14388_v31 = vpop.f32.mrf.mxu0 }
 0x84e   : > { %15222 = vst [vmem:[#allocation18_spill] sm:$0xff] %v14386_v11  ;;  %v8647_v59 = vadd.f32 %v10397_v8, %v7959_v35 }
 0x84f   : > { %v7964_v3 = vpop.f32.mrf.mxu1  ;;  %v8573_v22 = vpop.f32.mrf.mxu0 }
 0x850   : > { %v8710_v32 = vmax.f32 %v8647_v59, 0.0  ;;  %v7965_v38 = vadd.f32 %v7964_v3, %v14233_v52 }
 0x851   : > { %v14391_v6 = vpop.f32.mrf.mxu1  ;;  %v14393_v37 = vpop.f32.mrf.mxu0 }
 0x852   : > { %15223 = vst [vmem:[#allocation19_spill] sm:$0xff] %v14391_v6  ;;  %v8749_v20 = vpack.c.bf16 %v8710_v32, %v8709_v14  ;;  %v8648_v53 = vadd.f32 %v8538_v4, %v7965_v38 }
 0x853   : > { %v7968_v18 = vpop.f32.mrf.mxu1  ;;  %v14395_v54 = vpop.f32.mrf.mxu0 }
 0x854   : > { %v7969_v2 = vadd.f32 %v7968_v18, %v14233_v52  ;;  %10475 = vmatmul.mubr.bf16.gmra.mxu1 %v8749_v20  ;;  %v8711_v59 = vmax.f32 %v8648_v53, 0.0 }
 0x855   : > { %v14398_v11 = vpop.f32.mrf.mxu1  ;;  %v10413_v8 = vpop.f32.mrf.mxu0 }
 0x856   : > { %15224 = vst [vmem:[#allocation20_spill] sm:$0xff] %v14398_v11  ;;  %v8649_v35 = vadd.f32 %v8541_v42, %v7969_v2 }
 0x857   : > { %v7974_v23 = vpop.f32.mrf.mxu1 }
 0x858   : > { %v8712_v63 = vmax.f32 %v8649_v35, 0.0  ;;  %v7975_v3 = vadd.f32 %v7974_v23, %v14233_v52 }
 0x859   : > { %v14401_v6 = vpop.f32.mrf.mxu1 }
 0x85a   : > { %v8750_v40 = vpack.c.bf16 %v8712_v63, %v8711_v59  ;;  %v8650_v14 = vadd.f32 %v14363_v16, %v7975_v3 }
 0x85b   : > { %v7978_v32 = vpop.f32.mrf.mxu1 }
 0x85c   : > { %v7979_v38 = vadd.f32 %v7978_v32, %v14233_v52  ;;  %10478 = vmatprep.mubr.bf16.mxu1 %v8750_v40  ;;  %v8713_v8 = vmax.f32 %v8650_v14, 0.0 }
 0x85d   : > { %v14405_v4 = vpop.f32.mrf.mxu1 }
 0x85e   : > { %v8651_v20 = vadd.f32 %v10401_v56, %v7979_v38 }
 0x85f   : > { %v7984_v18 = vpop.f32.mrf.mxu1 }
 0x860   : > { %v8714_v42 = vmax.f32 %v8651_v20, 0.0  ;;  %v7985_v53 = vadd.f32 %v7984_v18, %v14233_v52 }
 0x861   : > { %v14408_v2 = vpop.f32.mrf.mxu1 }
 0x862   : > { %v8751_v35 = vpack.c.bf16 %v8714_v42, %v8713_v8  ;;  %v8652_v11 = vadd.f32 %v8554_v50, %v7985_v53 }
 0x863   : > { %v7988_v23 = vpop.f32.mrf.mxu1 }
 0x864   : > { %v7989_v63 = vadd.f32 %v7988_v23, %v14233_v52  ;;  %10479 = vmatmul.mubr.bf16.gmra.mxu1 %v8751_v35  ;;  %v8715_v3 = vmax.f32 %v8652_v11, 0.0 }
 0x865   : > { %v14411_v16 = vpop.f32.mrf.mxu1 }
 0x866   : > { %v8653_v59 = vadd.f32 %v8557_v43, %v7989_v63 }
 0x867   : > { %v7994_v40 = vpop.f32.mrf.mxu1 }
 0x868   : > { %v8716_v32 = vmax.f32 %v8653_v59, 0.0  ;;  %v7995_v56 = vadd.f32 %v7994_v40, %v14233_v52 }
 0x869   : > { %v14414_v14 = vpop.f32.mrf.mxu1 }
 0x86a   : > { %v8752_v38 = vpack.c.bf16 %v8716_v32, %v8715_v3  ;;  %v8654_v18 = vadd.f32 %v14371_v13, %v7995_v56 }
 0x86b   : > { %v7998_v20 = vpop.f32.mrf.mxu1 }
 0x86c   : > { %v7999_v8 = vadd.f32 %v7998_v20, %v14233_v52  ;;  %10482 = vmatprep.mubr.bf16.mxu1 %v8752_v38  ;;  %v8717_v43 = vmax.f32 %v8654_v18, 0.0 }
 0x86d   : > { %v14418_v50 = vpop.f32.mrf.mxu1 }
 0x86e   : > { %v8655_v42 = vadd.f32 %v14376_v36, %v7999_v8 }
 0x86f   : > { %v8004_v53 = vpop.f32.mrf.mxu1 }
 0x870   : > { %v8718_v35 = vmax.f32 %v8655_v42, 0.0  ;;  %v8005_v11 = vadd.f32 %v8004_v53, %v14233_v52 }
 0x871   : > { %v14422_v23 = vpop.f32.mrf.mxu1 }
 0x872   : > { %v8753_v63 = vpack.c.bf16 %v8718_v35, %v8717_v43  ;;  %v8656_v40 = vadd.f32 %v14383_v57, %v8005_v11 }
 0x873   : > { %v8008_v59 = vpop.f32.mrf.mxu1 }
 0x874   : > { %v8009_v13 = vadd.f32 %v8008_v59, %v14233_v52  ;;  %10483 = vmatmul.mubr.bf16.gmra.mxu1 %v8753_v63  ;;  %v8719_v38 = vmax.f32 %v8656_v40, 0.0 }
 0x875   : > { %v14426_v3 = vpop.f32.mrf.mxu1 }
 0x876   : > { %v8657_v32 = vadd.f32 %v8573_v22, %v8009_v13 }
 0x877   : > { %v8014_v56 = vpop.f32.mrf.mxu1 }
 0x878   : > { %v8720_v36 = vmax.f32 %v8657_v32, 0.0  ;;  %v8015_v20 = vadd.f32 %v8014_v56, %v14233_v52 }
 0x879   : > { %v14429_v18 = vpop.f32.mrf.mxu1 }
 0x87a   : > { %v8754_v8 = vpack.c.bf16 %v8720_v36, %v8719_v38  ;;  %v8658_v53 = vadd.f32 %v14381_v62, %v8015_v20  ;;  %v8589_v38 = vpop.f32.mrf.mxu0 }
 0x87b   : > { %v8018_v42 = vpop.f32.mrf.mxu1 }
 0x87c   : > { %v8019_v43 = vadd.f32 %v8018_v42, %v14233_v52  ;;  %10486 = vmatprep.mubr.bf16.mxu1 %v8754_v8  ;;  %v8721_v22 = vmax.f32 %v8658_v53, 0.0 }
 0x87d   : > { %v14433_v57 = vpop.f32.mrf.mxu1 }
 0x87e   : > { %v8659_v35 = vadd.f32 %v14388_v31, %v8019_v43 }
 0x87f   : > { %v8024_v11 = vpop.f32.mrf.mxu1 }
 0x880   : > { %v8722_v63 = vmax.f32 %v8659_v35, 0.0  ;;  %v8025_v59 = vadd.f32 %v8024_v11, %v14233_v52 }
 0x881   : > { %v14437_v40 = vpop.f32.mrf.mxu1 }
 0x882   : > { %v8755_v13 = vpack.c.bf16 %v8722_v63, %v8721_v22  ;;  %v8660_v56 = vadd.f32 %v14395_v54, %v8025_v59 }
 0x883   : > { %v8028_v32 = vpop.f32.mrf.mxu1 }
 0x884   : > { %v8029_v62 = vadd.f32 %v8028_v32, %v14233_v52  ;;  %10487 = vmatmul.mubr.bf16.gmra.mxu1 %v8755_v13  ;;  %v8723_v31 = vmax.f32 %v8660_v56, 0.0  ;;  %v14450_v13 = vld [vmem:[%s15178_s23] ss:$0 sm:$0xff]  ;;  %v14454_v32 = vrot.slane %v14223_v39, %v11709_v25 }
 0x885   : > { %v14441_v36 = vpop.f32.mrf.mxu1 }
 0x886   : > { %v8661_v20 = vadd.f32 %v8589_v38, %v8029_v62  ;;  %v7727_v38 = vadd.f32 %v14190_v60, %v14454_v32 }
 0x887   : > { %v8034_v8 = vpop.f32.mrf.mxu1 }
 0x888   : > { %v8724_v42 = vmax.f32 %v8661_v20, 0.0  ;;  %v8035_v53 = vadd.f32 %v8034_v8, %v14233_v52 }
 0x889   : > { %v14444_v43 = vpop.f32.mrf.mxu1 }
 0x88a   : > { %v8662_v35 = vadd.f32 %v14393_v37, %v8035_v53  ;;  %v8756_v11 = vpack.c.bf16 %v8724_v42, %v8723_v31  ;;  %v7737_v37 = vadd.f32 %v14202_v49, %v14454_v32  ;;  %v7741_v42 = vadd.f32 %v14208_v41, %v14454_v32 }
 0x88b   : > { %v8038_v22 = vpop.f32.mrf.mxu1  ;;  %v7731_v53 = vadd.f32 %v14196_v58, %v14454_v32  ;;  %v7757_v41 = vadd.f32 %v14154_v44, %v14454_v32  ;;  %v7747_v58 = vadd.f32 %v14214_v33, %v14454_v32  ;;  %v7761_v44 = vadd.f32 %v14158_v7, %v14454_v32 }
 0x88c   : > { %v8725_v63 = vmax.f32 %v8662_v35, 0.0  ;;  %10490 = vmatprep.mubr.bf16.mxu1 %v8756_v11  ;;  %v7751_v33 = vadd.f32 %v14225_v21, %v14454_v32  ;;  %v7777_v7 = vadd.f32 %v14178_v48, %v14454_v32  ;;  %v7767_v21 = vadd.f32 %v14166_v34, %v14454_v32 }
 0x88d   : > { %v8039_v54 = vpop.f32.mrf.mxu1  ;;  %v7771_v34 = vadd.f32 %v14170_v61, %v14454_v32 }
 0x88e   : > { %v8757_v59 = vpack.c.bf16 %v8725_v63, %v8725_v63 }
 0x890   : > { %10491 = vmatmul.mubr.bf16.gmra.mxu1 %v8757_v59 }
 0x8a7   : > { %v10432_v52 = vpop.f32.mrf.mxu1 }
 0x8a8   : > { %v8872_v56 = vadd.f32 %v10432_v52, %v14450_v13 }
 0x8a9   : > { %v8863_v62 = vpop.f32.mrf.mxu1 }
 0x8aa   : > { %v14461_v20 = vadd.f32 %v8872_v56, %v7737_v37  ;;  %v8864_v8 = vadd.f32 %v14450_v13, %v8863_v62 }
 0x8ab   : > { %v10433_v31 = vpop.f32.mrf.mxu1 }
 0x8ac   : > { %v10209_v25 = vmul.f32 -1.442695, %v14461_v20  ;;  %v14467_v39 = vadd.f32 %v8864_v8, %v7727_v38  ;;  %v8875_v49 = vadd.f32 %v10433_v31, %v14450_v13 }
 0x8ad   : > { %v8866_v35 = vpop.f32.mrf.mxu1 }
 0x8ae   : > { %11017 = vpow2.f32 %v10209_v25  ;;  %v10207_v60 = vmul.f32 -1.442695, %v14467_v39  ;;  %v14473_v11 = vadd.f32 %v8875_v49, %v7741_v42  ;;  %v8867_v22 = vadd.f32 %v14450_v13, %v8866_v35 }
 0x8af   : > { %v10436_v63 = vpop.f32.mrf.mxu1 }
 0x8b0   : > { %11019 = vpow2.f32 %v10207_v60  ;;  %v10210_v54 = vmul.f32 -1.442695, %v14473_v11  ;;  %v14479_v59 = vadd.f32 %v8867_v22, %v7731_v53  ;;  %v8888_v52 = vadd.f32 %v10436_v63, %v14450_v13 }
 0x8b1   : > { %v8879_v37 = vpop.f32.mrf.mxu1 }
 0x8b2   : > { %11021 = vpow2.f32 %v10210_v54  ;;  %v10208_v56 = vmul.f32 -1.442695, %v14479_v59  ;;  %v14485_v62 = vadd.f32 %v8888_v52, %v7757_v41  ;;  %v8880_v38 = vadd.f32 %v14450_v13, %v8879_v37 }
 0x8b3   : > { %v10437_v8 = vpop.f32.mrf.mxu1 }
 0x8b4   : > { %11023 = vpow2.f32 %v10208_v56  ;;  %v10213_v31 = vmul.f32 -1.442695, %v14485_v62  ;;  %v14491_v42 = vadd.f32 %v8880_v38, %v7747_v58  ;;  %v8891_v25 = vadd.f32 %v10437_v8, %v14450_v13 }
 0x8b5   : > { %v8882_v49 = vpop.f32.mrf.mxu1 }
 0x8b6   : > { %11025 = vpow2.f32 %v10213_v31  ;;  %v10211_v53 = vmul.f32 -1.442695, %v14491_v42  ;;  %v14497_v35 = vadd.f32 %v8891_v25, %v7761_v44  ;;  %v8883_v60 = vadd.f32 %v14450_v13, %v8882_v49 }
 0x8b7   : > { %v10440_v22 = vpop.f32.mrf.mxu1 }
 0x8b8   : > { %11027 = vpow2.f32 %v10211_v53  ;;  %v10214_v41 = vmul.f32 -1.442695, %v14497_v35  ;;  %v14503_v63 = vadd.f32 %v8883_v60, %v7751_v33  ;;  %v8904_v54 = vadd.f32 %v10440_v22, %v14450_v13 }
 0x8b9   : > { %v8895_v52 = vpop.f32.mrf.mxu1  ;;  %v7781_v33 = vadd.f32 %v14184_v1, %v14454_v32 }
 0x8ba   : > { %11029 = vpow2.f32 %v10214_v41  ;;  %v10212_v58 = vmul.f32 -1.442695, %v14503_v63  ;;  %v14509_v37 = vadd.f32 %v8904_v54, %v7777_v7  ;;  %v8896_v56 = vadd.f32 %v14450_v13, %v8895_v52 }
 0x8bb   : > { %v11018_v48 = vpop.eup %11017  ;;  %v10441_v38 = vpop.f32.mrf.mxu1  ;;  %v7797_v54 = vadd.f32 %v14200_v24, %v14454_v32 }
 0x8bc   : > { %v9374_v44 = vadd.f32 1.0, %v11018_v48  ;;  %11031 = vpow2.f32 %v10212_v58  ;;  %v10217_v8 = vmul.f32 -1.442695, %v14509_v37  ;;  %v14513_v31 = vadd.f32 %v8896_v56, %v7767_v21 }
 0x8bd   : > { %v11020_v25 = vpop.eup %11019  ;;  %v8907_v49 = vadd.f32 %v10441_v38, %v14450_v13  ;;  %v8898_v53 = vpop.f32.mrf.mxu1 }
 0x8be   : > { %11033 = vrcp.f32 %v9374_v44  ;;  %v9372_v60 = vadd.f32 1.0, %v11020_v25  ;;  %v10215_v7 = vmul.f32 -1.442695, %v14513_v31  ;;  %v8899_v22 = vadd.f32 %v14450_v13, %v8898_v53 }
 0x8bf   : > { %v11022_v41 = vpop.eup %11021  ;;  %11035 = vpow2.f32 %v10217_v8  ;;  %v14524_v21 = vadd.f32 %v8907_v49, %v7781_v33  ;;  %v10444_v61 = vpop.f32.mrf.mxu1  ;;  %v7787_v33 = vadd.f32 %v14188_v47, %v14454_v32 }
 0x8c0   : > { %11037 = vrcp.f32 %v9372_v60  ;;  %v9375_v52 = vadd.f32 1.0, %v11022_v41  ;;  %v14526_v1 = vadd.f32 %v8899_v22, %v7771_v34  ;;  %v8920_v58 = vadd.f32 %v10444_v61, %v14450_v13 }
 0x8c1   : > { %v11024_v56 = vpop.eup %11023  ;;  %11039 = vpow2.f32 %v10215_v7  ;;  %v10218_v48 = vmul.f32 -1.442695, %v14524_v21  ;;  %v8911_v38 = vpop.f32.mrf.mxu1  ;;  %v7801_v34 = vadd.f32 %v14206_v26, %v14454_v32  ;;  %v15225_v61 = vlaneseq }
 0x8c2   : > { %11041 = vrcp.f32 %v9375_v52  ;;  %v9373_v44 = vadd.f32 1.0, %v11024_v56  ;;  %v10216_v25 = vmul.f32 -1.442695, %v14526_v1  ;;  %v14531_v24 = vadd.f32 %v8920_v58, %v7797_v54 }
 0x8c3   : > { %v11026_v8 = vpop.eup %11025  ;;  %11043 = vpow2.f32 %v10218_v48  ;;  %v8912_v49 = vadd.f32 %v14450_v13, %v8911_v38  ;;  %v10445_v53 = vpop.f32.mrf.mxu1  ;;  %v7791_v54 = vadd.f32 %v14194_v5, %v14454_v32  ;;  %v14543_v47 = vand.u32 127, %v15225_v61 }
 0x8c4   : > { %11045 = vrcp.f32 %v9373_v44  ;;  %v9378_v60 = vadd.f32 1.0, %v11026_v8  ;;  %v10221_v7 = vmul.f32 -1.442695, %v14531_v24  ;;  %v8923_v22 = vadd.f32 %v10445_v53, %v14450_v13 }
 0x8c5   : > { %v11028_v41 = vpop.eup %11027  ;;  %11047 = vpow2.f32 %v10216_v25  ;;  %v14545_v26 = vadd.f32 %v8912_v49, %v7787_v33  ;;  %v8914_v52 = vpop.f32.mrf.mxu1  ;;  %v7807_v44 = vadd.f32 %v14212_v17, %v14454_v32  ;;  %v7817_v5 = vadd.f32 %v14229_v10, %v14454_v32 }
 0x8c6   : > { %11049 = vrcp.f32 %v9378_v60  ;;  %v9376_v58 = vadd.f32 1.0, %v11028_v41  ;;  %v14547_v56 = vadd.f32 %v8923_v22, %v7801_v34  ;;  %v8915_v48 = vadd.f32 %v14450_v13, %v8914_v52 }
 0x8c7   : > { %v11030_v38 = vpop.eup %11029  ;;  %11051 = vpow2.f32 %v10221_v7  ;;  %v10219_v25 = vmul.f32 -1.442695, %v14545_v26  ;;  %v10448_v8 = vpop.f32.mrf.mxu1  ;;  %vm9182_vm2 = vcmp.lt.s32.totalorder %v14543_v47, 3 }
 0x8c8   : > { %11053 = vrcp.f32 %v9376_v58  ;;  %v9379_v33 = vadd.f32 1.0, %v11030_v38  ;;  %v10222_v49 = vmul.f32 -1.442695, %v14547_v56  ;;  %v14557_v34 = vadd.f32 %v8915_v48, %v7791_v54 }
 0x8c9   : > { %v11032_v53 = vpop.eup %11031  ;;  %11055 = vpow2.f32 %v10219_v25  ;;  %v8936_v17 = vadd.f32 %v10448_v8, %v14450_v13  ;;  %v8927_v60 = vpop.f32.mrf.mxu1  ;;  %v7821_v54 = vadd.f32 %v14240_v15, %v14454_v32 }
 0x8ca   : > { %11057 = vrcp.f32 %v9379_v33  ;;  %v9377_v10 = vadd.f32 1.0, %v11032_v53  ;;  %v10220_v7 = vmul.f32 -1.442695, %v14557_v34  ;;  %v8928_v22 = vadd.f32 %v14450_v13, %v8927_v60 }
 0x8cb   : > { %v11034_v41 = vpop.eup %11033  ;;  %11059 = vpow2.f32 %v10222_v49  ;;  %v14570_v61 = vadd.f32 %v8936_v17, %v7817_v5  ;;  %v10449_v52 = vpop.f32.mrf.mxu1  ;;  %v7811_v33 = vadd.f32 %v14218_v46, %v14454_v32 }
 0x8cc   : > { %v11036_v58 = vpop.eup %11035  ;;  %v9563_v48 = vsel %vm9182_vm2, %v11034_v41, %v14461_v20  ;;  %11061 = vrcp.f32 %v9377_v10  ;;  %v14575_v38 = vadd.f32 %v8928_v22, %v7807_v44  ;;  %v8939_v25 = vadd.f32 %v10449_v52, %v14450_v13 }
 0x8cd   : > { %v11038_v8 = vpop.eup %11037  ;;  %9627 = vst.msk [vmem:[%s14564_s7 + $0x10] sm:$0xff] %vm9624_vm3, %v9563_v48  ;;  %v9382_v15 = vadd.f32 1.0, %v11036_v58  ;;  %11063 = vpow2.f32 %v10220_v7  ;;  %v10225_v5 = vmul.f32 -1.442695, %v14570_v61  ;;  %v8930_v49 = vpop.f32.mrf.mxu1  ;;  %v7827_v10 = vadd.f32 %v14245_v12, %v14454_v32 }
 0x8ce   : > { %v11040_v53 = vpop.eup %11039  ;;  %v9561_v20 = vsel %vm9182_vm2, %v11038_v8, %v14467_v39  ;;  %v10223_v44 = vmul.f32 -1.442695, %v14575_v38  ;;  %v14587_v17 = vadd.f32 %v8939_v25, %v7821_v54  ;;  %v8931_v60 = vadd.f32 %v14450_v13, %v8930_v49 }
 0x8cf   : > { %v11042_v46 = vpop.eup %11041  ;;  %9625 = vst.msk [vmem:[%s14564_s7] sm:$0xff] %vm9624_vm3, %v9561_v20  ;;  %11065 = vrcp.f32 %v9382_v15  ;;  %v9380_v7 = vadd.f32 1.0, %v11040_v53  ;;  %v10452_v22 = vpop.f32.mrf.mxu1  ;;  %v7837_v12 = vadd.f32 %v14259_v28, %v14454_v32  ;;  %v7841_v28 = vadd.f32 %v14269_v30, %v14454_v32 }
 0x8d0   : > { %v11044_v41 = vpop.eup %11043  ;;  %v9564_v39 = vsel %vm9182_vm2, %v11042_v46, %v14473_v11  ;;  %11067 = vpow2.f32 %v10225_v5  ;;  %v10226_v54 = vmul.f32 -1.442695, %v14587_v17  ;;  %v14598_v52 = vadd.f32 %v8931_v60, %v7811_v33 }
 0x8d1   : > { %v11046_v58 = vpop.eup %11045  ;;  %9628 = vst.msk [vmem:[%s14564_s7 + $0x18] sm:$0xff] %vm9624_vm3, %v9564_v39  ;;  %11069 = vrcp.f32 %v9380_v7  ;;  %v9383_v48 = vadd.f32 1.0, %v11044_v41  ;;  %v8952_v25 = vadd.f32 %v10452_v22, %v14450_v13  ;;  %v8943_v8 = vpop.f32.mrf.mxu1  ;;  %v7831_v30 = vadd.f32 %v14254_v19, %v14454_v32 }
 0x8d2   : > { %v11048_v15 = vpop.eup %11047  ;;  %v9562_v11 = vsel %vm9182_vm2, %v11046_v58, %v14479_v59  ;;  %11071 = vpow2.f32 %v10223_v44  ;;  %v10224_v33 = vmul.f32 -1.442695, %v14598_v52  ;;  %v8944_v5 = vadd.f32 %v14450_v13, %v8943_v8 }
 0x8d3   : > { %v11050_v49 = vpop.eup %11049  ;;  %9626 = vst.msk [vmem:[%s14564_s7 + $0x8] sm:$0xff] %vm9624_vm3, %v9562_v11  ;;  %11073 = vrcp.f32 %v9383_v48  ;;  %v9381_v53 = vadd.f32 1.0, %v11048_v15  ;;  %v14614_v20 = vadd.f32 %v8952_v25, %v7837_v12  ;;  %v10453_v60 = vpop.f32.mrf.mxu1  ;;  %v7857_v19 = vadd.f32 %v14291_v29, %v14454_v32 }
 0x8d4   : > { %v11052_v46 = vpop.eup %11051  ;;  %v9567_v59 = vsel %vm9182_vm2, %v11050_v49, %v14485_v62  ;;  %11075 = vpow2.f32 %v10226_v54  ;;  %v14619_v44 = vadd.f32 %v8944_v5, %v7827_v10  ;;  %v8955_v7 = vadd.f32 %v10453_v60, %v14450_v13 }
 0x8d5   : > { %v11054_v22 = vpop.eup %11053  ;;  %9631 = vst.msk [vmem:[%s14564_s7 + $0x30] sm:$0xff] %vm9624_vm3, %v9567_v59  ;;  %11077 = vrcp.f32 %v9381_v53  ;;  %v9386_v41 = vadd.f32 1.0, %v11052_v46  ;;  %v10229_v39 = vmul.f32 -1.442695, %v14614_v20  ;;  %v8946_v58 = vpop.f32.mrf.mxu1  ;;  %v7847_v29 = vadd.f32 %v14275_v27, %v14454_v32 }
 0x8d6   : > { %v11056_v12 = vpop.eup %11055  ;;  %v9565_v62 = vsel %vm9182_vm2, %v11054_v22, %v14491_v42  ;;  %11079 = vpow2.f32 %v10224_v33  ;;  %v10227_v10 = vmul.f32 -1.442695, %v14619_v44  ;;  %v14631_v54 = vadd.f32 %v8955_v7, %v7841_v28 }
 0x8d7   : > { %v11058_v48 = vpop.eup %11057  ;;  %9629 = vst.msk [vmem:[%s14564_s7 + $0x20] sm:$0xff] %vm9624_vm3, %v9565_v62  ;;  %11081 = vrcp.f32 %v9386_v41  ;;  %v9384_v25 = vadd.f32 1.0, %v11056_v12  ;;  %v8947_v8 = vadd.f32 %v14450_v13, %v8946_v58  ;;  %v10456_v15 = vpop.f32.mrf.mxu1  ;;  %v7861_v27 = vadd.f32 %v14299_v51, %v14454_v32 }
 0x8d8   : > { %v11060_v11 = vpop.eup %11059  ;;  %v9568_v42 = vsel %vm9182_vm2, %v11058_v48, %v14497_v35  ;;  %11083 = vpow2.f32 %v10229_v39  ;;  %v10230_v33 = vmul.f32 -1.442695, %v14631_v54  ;;  %v8968_v5 = vadd.f32 %v10456_v15, %v14450_v13 }
 0x8d9   : > { %v11062_v49 = vpop.eup %11061  ;;  %9632 = vst.msk [vmem:[%s14564_s7 + $0x38] sm:$0xff] %vm9624_vm3, %v9568_v42  ;;  %11085 = vrcp.f32 %v9384_v25  ;;  %v9387_v28 = vadd.f32 1.0, %v11060_v11  ;;  %v14647_v53 = vadd.f32 %v8947_v8, %v7831_v30  ;;  %v8959_v60 = vpop.f32.mrf.mxu1  ;;  %v7851_v51 = vadd.f32 %v14285_v45, %v14454_v32 }
 0x8da   : > { %v11064_v46 = vpop.eup %11063  ;;  %v9566_v35 = vsel %vm9182_vm2, %v11062_v49, %v14503_v63  ;;  %11087 = vpow2.f32 %v10227_v10  ;;  %v14652_v59 = vadd.f32 %v8968_v5, %v7857_v19  ;;  %v8960_v7 = vadd.f32 %v14450_v13, %v8959_v60 }
 0x8db   : > { %9630 = vst.msk [vmem:[%s14564_s7 + $0x28] sm:$0xff] %vm9624_vm3, %v9566_v35  ;;  %11089 = vrcp.f32 %v9387_v28  ;;  %v9385_v22 = vadd.f32 1.0, %v11064_v46  ;;  %v10228_v30 = vmul.f32 -1.442695, %v14647_v53  ;;  %v10457_v41 = vpop.f32.mrf.mxu1  ;;  %v7877_v45 = vadd.f32 %v14315_v0, %v14454_v32 }
 0x8dc   : > { %v11066_v39 = vpop.eup %11065  ;;  %11091 = vpow2.f32 %v10230_v33  ;;  %v10233_v63 = vmul.f32 -1.442695, %v14652_v59  ;;  %v14661_v58 = vadd.f32 %v8960_v7, %v7847_v29  ;;  %v8971_v12 = vadd.f32 %v10457_v41, %v14450_v13 }
 0x8dd   : > { %v11068_v62 = vpop.eup %11067  ;;  %v9571_v10 = vsel %vm9182_vm2, %v11066_v39, %v14509_v37  ;;  %11093 = vrcp.f32 %v9385_v22  ;;  %v8962_v48 = vpop.f32.mrf.mxu1  ;;  %v7867_v0 = vadd.f32 %v14303_v55, %v14454_v32  ;;  %v7871_v55 = vadd.f32 %v14311_v9, %v14454_v32  ;;  %v15226_v9 = vld [vmem:[#allocation2_spill] sm:$0xff] }
 0x8de   : > { %v11070_v19 = vpop.eup %11069  ;;  %9635 = vst.msk [vmem:[%s14564_s7 + $0x50] sm:$0xff] %vm9624_vm3, %v9571_v10  ;;  %v9390_v25 = vadd.f32 1.0, %v11068_v62  ;;  %11095 = vpow2.f32 %v10228_v30  ;;  %v10231_v8 = vmul.f32 -1.442695, %v14661_v58  ;;  %v14672_v15 = vadd.f32 %v8971_v12, %v7861_v27 }
 0x8df   : > { %v11072_v11 = vpop.eup %11071  ;;  %v9569_v37 = vsel %vm9182_vm2, %v11070_v19, %v14513_v31  ;;  %11097 = vpow2.f32 %v10233_v63  ;;  %v8963_v42 = vadd.f32 %v14450_v13, %v8962_v48  ;;  %v10460_v33 = vpop.f32.mrf.mxu1  ;;  %v7881_v19 = vadd.f32 %v15226_v9, %v14454_v32 }
 0x8e0   : > { %v11074_v5 = vpop.eup %11073  ;;  %9633 = vst.msk [vmem:[%s14564_s7 + $0x40] sm:$0xff] %vm9624_vm3, %v9569_v37  ;;  %11099 = vrcp.f32 %v9390_v25  ;;  %v9388_v49 = vadd.f32 1.0, %v11072_v11  ;;  %v10234_v29 = vmul.f32 -1.442695, %v14672_v15  ;;  %v8984_v28 = vadd.f32 %v10460_v33, %v14450_v13 }
 0x8e1   : > { %v11076_v60 = vpop.eup %11075  ;;  %v9572_v31 = vsel %vm9182_vm2, %v11074_v5, %v14524_v21  ;;  %11101 = vpow2.f32 %v10231_v8  ;;  %v14689_v46 = vadd.f32 %v8963_v42, %v7851_v51  ;;  %v8975_v35 = vpop.f32.mrf.mxu1  ;;  %v15227_v5 = vld [vmem:[#allocation5_spill] sm:$0xff] }
 0x8e2   : > { %v11078_v7 = vpop.eup %11077  ;;  %9636 = vst.msk [vmem:[%s14564_s7 + $0x58] sm:$0xff] %vm9624_vm3, %v9572_v31  ;;  %11103 = vrcp.f32 %v9388_v49  ;;  %v9391_v27 = vadd.f32 1.0, %v11076_v60  ;;  %v14693_v22 = vadd.f32 %v8984_v28, %v7877_v45  ;;  %v8976_v30 = vadd.f32 %v14450_v13, %v8975_v35 }
 0x8e3   : > { %v11080_v41 = vpop.eup %11079  ;;  %v9570_v21 = vsel %vm9182_vm2, %v11078_v7, %v14526_v1  ;;  %11105 = vpow2.f32 %v10234_v29  ;;  %v10232_v39 = vmul.f32 -1.442695, %v14689_v46  ;;  %v10461_v63 = vpop.f32.mrf.mxu1  ;;  %v7897_v49 = vadd.f32 %v15227_v5, %v14454_v32 }
 0x8e4   : > { %v11082_v12 = vpop.eup %11081  ;;  %9634 = vst.msk [vmem:[%s14564_s7 + $0x48] sm:$0xff] %vm9624_vm3, %v9570_v21  ;;  %11107 = vrcp.f32 %v9391_v27  ;;  %v9389_v62 = vadd.f32 1.0, %v11080_v41  ;;  %v10237_v51 = vmul.f32 -1.442695, %v14693_v22  ;;  %v14705_v10 = vadd.f32 %v8976_v30, %v7867_v0  ;;  %v15228_v27 = vld [vmem:[#allocation3_spill] sm:$0xff] }
 0x8e5   : > { %v11084_v48 = vpop.eup %11083  ;;  %v9575_v1 = vsel %vm9182_vm2, %v11082_v12, %v14531_v24  ;;  %11109 = vpow2.f32 %v10232_v39  ;;  %v8987_v25 = vadd.f32 %v10461_v63, %v14450_v13  ;;  %v8978_v8 = vpop.f32.mrf.mxu1  ;;  %v7887_v30 = vadd.f32 %v15228_v27, %v14454_v32 }
 0x8e6   : > { %v11086_v11 = vpop.eup %11085  ;;  %9639 = vst.msk [vmem:[%s14564_s7 + $0x70] sm:$0xff] %vm9624_vm3, %v9575_v1  ;;  %11111 = vrcp.f32 %v9389_v62  ;;  %v9394_v45 = vadd.f32 1.0, %v11084_v48  ;;  %v10235_v37 = vmul.f32 -1.442695, %v14705_v10  ;;  %v8979_v42 = vadd.f32 %v14450_v13, %v8978_v8 }
 0x8e7   : > { %v11088_v33 = vpop.eup %11087  ;;  %v9573_v24 = vsel %vm9182_vm2, %v11086_v11, %v14545_v26  ;;  %11113 = vpow2.f32 %v10237_v51  ;;  %v14722_v29 = vadd.f32 %v8987_v25, %v7881_v19  ;;  %v10464_v28 = vpop.f32.mrf.mxu1  ;;  %v15229_v51 = vld [vmem:[#allocation6_spill] sm:$0xff] }
 0x8e8   : > { %v11090_v60 = vpop.eup %11089  ;;  %9637 = vst.msk [vmem:[%s14564_s7 + $0x60] sm:$0xff] %vm9624_vm3, %v9573_v24  ;;  %11115 = vrcp.f32 %v9394_v45  ;;  %v9392_v0 = vadd.f32 1.0, %v11088_v33  ;;  %v14726_v31 = vadd.f32 %v8979_v42, %v7871_v55  ;;  %v9000_v35 = vadd.f32 %v10464_v28, %v14450_v13 }
 0x8e9   : > { %v11092_v7 = vpop.eup %11091  ;;  %v9576_v26 = vsel %vm9182_vm2, %v11090_v60, %v14547_v56  ;;  %11117 = vpow2.f32 %v10235_v37  ;;  %v10238_v41 = vmul.f32 -1.442695, %v14722_v29  ;;  %v8991_v21 = vpop.f32.mrf.mxu1  ;;  %v7901_v48 = vadd.f32 %v15229_v51, %v14454_v32  ;;  %v15230_v37 = vld [vmem:[#allocation4_spill] sm:$0xff] }
 0x8ea   : > { %v11094_v39 = vpop.eup %11093  ;;  %9640 = vst.msk [vmem:[%s14564_s7 + $0x78] sm:$0xff] %vm9624_vm3, %v9576_v26  ;;  %11119 = vrcp.f32 %v9392_v0  ;;  %v9395_v55 = vadd.f32 1.0, %v11092_v7  ;;  %v10236_v63 = vmul.f32 -1.442695, %v14726_v31  ;;  %v14738_v12 = vadd.f32 %v9000_v35, %v7897_v49 }
 0x8eb   : > { %v11096_v62 = vpop.eup %11095  ;;  %v9574_v56 = vsel %vm9182_vm2, %v11094_v39, %v14557_v34  ;;  %11121 = vpow2.f32 %v10238_v41  ;;  %v8992_v9 = vadd.f32 %v14450_v13, %v8991_v21  ;;  %v10465_v19 = vpop.f32.mrf.mxu1  ;;  %v7891_v42 = vadd.f32 %v15230_v37, %v14454_v32 }
 0x8ec   : > { %v11098_v1 = vpop.eup %11097  ;;  %9638 = vst.msk [vmem:[%s14564_s7 + $0x68] sm:$0xff] %vm9624_vm3, %v9574_v56  ;;  %11123 = vrcp.f32 %v9395_v55  ;;  %v9393_v25 = vadd.f32 1.0, %v11096_v62  ;;  %v10241_v8 = vmul.f32 -1.442695, %v14738_v12  ;;  %v9003_v11 = vadd.f32 %v10465_v19, %v14450_v13  ;;  %v15231_v19 = vld [vmem:[#allocation9_spill] sm:$0xff] }
 0x8ed   : > { %v11100_v45 = vpop.eup %11099  ;;  %v9398_v33 = vadd.f32 1.0, %v11098_v1  ;;  %11125 = vpow2.f32 %v10236_v63  ;;  %v14752_v34 = vadd.f32 %v8992_v9, %v7887_v30  ;;  %v8994_v5 = vpop.f32.mrf.mxu1 }
 0x8ee   : > { %v11102_v49 = vpop.eup %11101  ;;  %v9579_v24 = vsel %vm9182_vm2, %v11100_v45, %v14570_v61  ;;  %11127 = vrcp.f32 %v9393_v25  ;;  %v14757_v28 = vadd.f32 %v9003_v11, %v7901_v48  ;;  %v8995_v60 = vadd.f32 %v14450_v13, %v8994_v5  ;;  %v15232_v11 = vld [vmem:[#allocation7_spill] sm:$0xff] }
 0x8ef   : > { %v11104_v0 = vpop.eup %11103  ;;  %9643 = vst.msk [vmem:[%s14564_s7 + $0x90] sm:$0xff] %vm9624_vm3, %v9579_v24  ;;  %11129 = vrcp.f32 %v9398_v33  ;;  %v9396_v35 = vadd.f32 1.0, %v11102_v49  ;;  %v10239_v7 = vmul.f32 -1.442695, %v14752_v34  ;;  %v7907_v45 = vadd.f32 %v15232_v11, %v14454_v32 }
 0x8f0   : > { %v11106_v27 = vpop.eup %11105  ;;  %v9577_v30 = vsel %vm9182_vm2, %v11104_v0, %v14575_v38  ;;  %11131 = vpow2.f32 %v10241_v8  ;;  %v10242_v61 = vmul.f32 -1.442695, %v14757_v28  ;;  %v14767_v26 = vadd.f32 %v8995_v60, %v7891_v42 }
 0x8f1   : > { %v11108_v41 = vpop.eup %11107  ;;  %9641 = vst.msk [vmem:[%s14564_s7 + $0x80] sm:$0xff] %vm9624_vm3, %v9577_v30  ;;  %11133 = vrcp.f32 %v9396_v35  ;;  %v9399_v21 = vadd.f32 1.0, %v11106_v27 }
 0x8f2   : > { %v11110_v39 = vpop.eup %11109  ;;  %v9580_v55 = vsel %vm9182_vm2, %v11108_v41, %v14587_v17  ;;  %11135 = vpow2.f32 %v10239_v7  ;;  %v10240_v63 = vmul.f32 -1.442695, %v14767_v26  ;;  %v7917_v17 = vadd.f32 %v15231_v19, %v14454_v32 }
 0x8f3   : > { %v11112_v38 = vpop.eup %11111  ;;  %9644 = vst.msk [vmem:[%s14564_s7 + $0x98] sm:$0xff] %vm9624_vm3, %v9580_v55  ;;  %11137 = vrcp.f32 %v9399_v21  ;;  %v9397_v62 = vadd.f32 1.0, %v11110_v39  ;;  %v15234_v21 = vld [vmem:[#allocation10_spill] sm:$0xff] }
 0x8f4   : > { %v11114_v51 = vpop.eup %11113  ;;  %v9578_v48 = vsel %vm9182_vm2, %v11112_v38, %v14598_v52  ;;  %11139 = vpow2.f32 %v10242_v61  ;;  %v10468_v56 = vpop.f32.mrf.mxu1  ;;  %v15233_v61 = vld [vmem:[#allocation8_spill] sm:$0xff]  ;;  %v7921_v39 = vadd.f32 %v15234_v21, %v14454_v32  ;;  %v15236_v21 = vld [vmem:[#allocation11_spill] sm:$0xff] }
 0x8f5   : > { %v11116_v9 = vpop.eup %11115  ;;  %9642 = vst.msk [vmem:[%s14564_s7 + $0x88] sm:$0xff] %vm9624_vm3, %v9578_v48  ;;  %11141 = vrcp.f32 %v9397_v62  ;;  %v9402_v1 = vadd.f32 1.0, %v11114_v51  ;;  %v9016_v25 = vadd.f32 %v10468_v56, %v14450_v13  ;;  %v7911_v41 = vadd.f32 %v15233_v61, %v14454_v32 }
 0x8f6   : > { %v11118_v8 = vpop.eup %11117  ;;  %v9583_v52 = vsel %vm9182_vm2, %v11116_v9, %v14614_v20  ;;  %11143 = vpow2.f32 %v10240_v63  ;;  %v9007_v37 = vpop.f32.mrf.mxu1 }
 0x8f7   : > { %v11120_v42 = vpop.eup %11119  ;;  %9647 = vst.msk [vmem:[%s14564_s7 + $0xb0] sm:$0xff] %vm9624_vm3, %v9583_v52  ;;  %11145 = vrcp.f32 %v9402_v1  ;;  %v9400_v33 = vadd.f32 1.0, %v11118_v8  ;;  %v14792_v5 = vadd.f32 %v9016_v25, %v7917_v17  ;;  %v9008_v49 = vadd.f32 %v14450_v13, %v9007_v37 }
 0x8f8   : > { %v11122_v24 = vpop.eup %11121  ;;  %v9581_v60 = vsel %vm9182_vm2, %v11120_v42, %v14619_v44  ;;  %v10469_v0 = vpop.f32.mrf.mxu1 }
 0x8f9   : > { %v11124_v35 = vpop.eup %11123  ;;  %9645 = vst.msk [vmem:[%s14564_s7 + $0xa0] sm:$0xff] %vm9624_vm3, %v9581_v60  ;;  %11147 = vrcp.f32 %v9400_v33  ;;  %v9403_v20 = vadd.f32 1.0, %v11122_v24  ;;  %v10245_v7 = vmul.f32 -1.442695, %v14792_v5  ;;  %v14801_v27 = vadd.f32 %v9008_v49, %v7907_v45 }
 0x8fa   : > { %v11126_v30 = vpop.eup %11125  ;;  %v9584_v44 = vsel %vm9182_vm2, %v11124_v35, %v14631_v54  ;;  %v9019_v55 = vadd.f32 %v10469_v0, %v14450_v13  ;;  %v9010_v63 = vpop.f32.mrf.mxu1 }
 0x8fb   : > { %v11128_v38 = vpop.eup %11127  ;;  %9648 = vst.msk [vmem:[%s14564_s7 + $0xb8] sm:$0xff] %vm9624_vm3, %v9584_v44  ;;  %11149 = vrcp.f32 %v9403_v20  ;;  %v9401_v62 = vadd.f32 1.0, %v11126_v30  ;;  %v10243_v51 = vmul.f32 -1.442695, %v14801_v27  ;;  %v9011_v48 = vadd.f32 %v14450_v13, %v9010_v63  ;;  %v15235_v20 = vld [vmem:[#allocation13_spill] sm:$0xff] }
 0x8fc   : > { %v11130_v56 = vpop.eup %11129  ;;  %v9582_v9 = vsel %vm9182_vm2, %v11128_v38, %v14647_v53  ;;  %11151 = vpow2.f32 %v10245_v7  ;;  %v14818_v54 = vadd.f32 %v9019_v55, %v7921_v39  ;;  %v7937_v7 = vadd.f32 %v15235_v20, %v14454_v32  ;;  %v15237_v38 = vld [vmem:[#allocation14_spill] sm:$0xff] }
 0x8fd   : > { %v11132_v19 = vpop.eup %11131  ;;  %9646 = vst.msk [vmem:[%s14564_s7 + $0xa8] sm:$0xff] %vm9624_vm3, %v9582_v9  ;;  %v9587_v17 = vsel %vm9182_vm2, %v11130_v56, %v14652_v59  ;;  %11153 = vrcp.f32 %v9401_v62  ;;  %v14825_v1 = vadd.f32 %v9011_v48, %v7911_v41  ;;  %v7927_v39 = vadd.f32 %v15236_v21, %v14454_v32 }
 0x8fe   : > { %v11134_v25 = vpop.eup %11133  ;;  %9651 = vst.msk [vmem:[%s14564_s7 + $0xd0] sm:$0xff] %vm9624_vm3, %v9587_v17  ;;  %v9406_v8 = vadd.f32 1.0, %v11132_v19  ;;  %11155 = vpow2.f32 %v10243_v51  ;;  %v10246_v53 = vmul.f32 -1.442695, %v14818_v54  ;;  %v7941_v62 = vadd.f32 %v15237_v38, %v14454_v32 }
 0x8ff   : > { %v11136_v11 = vpop.eup %11135  ;;  %v9585_v45 = vsel %vm9182_vm2, %v11134_v25, %v14661_v58  ;;  %v10244_v52 = vmul.f32 -1.442695, %v14825_v1 }
 0x900   : > { %v11138_v59 = vpop.eup %11137  ;;  %9649 = vst.msk [vmem:[%s14564_s7 + $0xc0] sm:$0xff] %vm9624_vm3, %v9585_v45  ;;  %11157 = vrcp.f32 %v9406_v8  ;;  %v9404_v37 = vadd.f32 1.0, %v11136_v11 }
 0x901   : > { %v11140_v42 = vpop.eup %11139  ;;  %v9588_v33 = vsel %vm9182_vm2, %v11138_v59, %v14672_v15  ;;  %11159 = vpow2.f32 %v10246_v53 }
 0x902   : > { %v11142_v49 = vpop.eup %11141  ;;  %9652 = vst.msk [vmem:[%s14564_s7 + $0xd8] sm:$0xff] %vm9624_vm3, %v9588_v33  ;;  %11161 = vrcp.f32 %v9404_v37  ;;  %v9407_v58 = vadd.f32 1.0, %v11140_v42 }
 0x903   : > { %v11144_v24 = vpop.eup %11143  ;;  %v9586_v60 = vsel %vm9182_vm2, %v11142_v49, %v14689_v46  ;;  %11163 = vpow2.f32 %v10244_v52  ;;  %v15238_v52 = vld [vmem:[#allocation12_spill] sm:$0xff] }
 0x904   : > { %v11146_v0 = vpop.eup %11145  ;;  %9650 = vst.msk [vmem:[%s14564_s7 + $0xc8] sm:$0xff] %vm9624_vm3, %v9586_v60  ;;  %11165 = vrcp.f32 %v9407_v58  ;;  %v9405_v35 = vadd.f32 1.0, %v11144_v24  ;;  %v10472_v15 = vpop.f32.mrf.mxu1  ;;  %v7931_v59 = vadd.f32 %v15238_v52, %v14454_v32 }
 0x905   : > { %v9591_v30 = vsel %vm9182_vm2, %v11146_v0, %v14693_v22  ;;  %v9032_v61 = vadd.f32 %v10472_v15, %v14450_v13 }
 0x906   : > { %v11148_v41 = vpop.eup %11147  ;;  %9655 = vst.msk [vmem:[%s14564_s7 + $0xf0] sm:$0xff] %vm9624_vm3, %v9591_v30  ;;  %11167 = vrcp.f32 %v9405_v35  ;;  %v9023_v46 = vpop.f32.mrf.mxu1 }
 0x907   : > { %v9589_v44 = vsel %vm9182_vm2, %v11148_v41, %v14705_v10  ;;  %v14859_v55 = vadd.f32 %v9032_v61, %v7937_v7  ;;  %v9024_v63 = vadd.f32 %v14450_v13, %v9023_v46  ;;  %v15239_v46 = vld [vmem:[#allocation17_spill] sm:$0xff] }
 0x908   : > { %v11150_v22 = vpop.eup %11149  ;;  %9653 = vst.msk [vmem:[%s14564_s7 + $0xe0] sm:$0xff] %vm9624_vm3, %v9589_v44  ;;  %v10473_v51 = vpop.f32.mrf.mxu1  ;;  %v7957_v21 = vadd.f32 %v15239_v46, %v14454_v32  ;;  %v15243_v46 = vld [vmem:[#allocation19_spill] sm:$0xff] }
 0x909   : > { %v11152_v48 = vpop.eup %11151  ;;  %v9592_v56 = vsel %vm9182_vm2, %v11150_v22, %v14722_v29  ;;  %v10249_v9 = vmul.f32 -1.442695, %v14859_v55  ;;  %v14870_v10 = vadd.f32 %v9024_v63, %v7927_v39  ;;  %v9035_v19 = vadd.f32 %v10473_v51, %v14450_v13 }
 0x90a   : > { %v11154_v17 = vpop.eup %11153  ;;  %9656 = vst.msk [vmem:[%s14564_s7 + $0xf8] sm:$0xff] %vm9624_vm3, %v9592_v56  ;;  %v9410_v25 = vadd.f32 1.0, %v11152_v48  ;;  %v9026_v8 = vpop.f32.mrf.mxu1 }
 0x90b   : > { %v11156_v53 = vpop.eup %11155  ;;  %v9590_v11 = vsel %vm9182_vm2, %v11154_v17, %v14726_v31  ;;  %11169 = vpow2.f32 %v10249_v9  ;;  %v10247_v29 = vmul.f32 -1.442695, %v14870_v10  ;;  %v14879_v45 = vadd.f32 %v9035_v19, %v7941_v62 }
 0x90c   : > { %9654 = vst.msk [vmem:[%s14564_s7 + $0xe8] sm:$0xff] %vm9624_vm3, %v9590_v11  ;;  %11171 = vrcp.f32 %v9410_v25  ;;  %v9408_v37 = vadd.f32 1.0, %v11156_v53  ;;  %v9027_v42 = vadd.f32 %v14450_v13, %v9026_v8  ;;  %v14926_v25 = vld [vmem:[%s15178_s23] ss:$0 sm:$0xff] }
 0x90d   : > { %v11158_v33 = vpop.eup %11157  ;;  %11173 = vpow2.f32 %v10247_v29  ;;  %v10250_v31 = vmul.f32 -1.442695, %v14879_v45 }
 0x90e   : > { %v11160_v49 = vpop.eup %11159  ;;  %v9595_v58 = vsel %vm9182_vm2, %v11158_v33, %v14738_v12  ;;  %11175 = vrcp.f32 %v9408_v37  ;;  %v14890_v24 = vadd.f32 %v9027_v42, %v7931_v59  ;;  %v15242_v33 = vld [vmem:[#allocation16_spill] sm:$0xff] }
 0x90f   : > { %v11162_v60 = vpop.eup %11161  ;;  %9659 = vst.msk [vmem:[%s14564_s7 + $0x110] sm:$0xff] %vm9624_vm3, %v9595_v58  ;;  %v9411_v0 = vadd.f32 1.0, %v11160_v49  ;;  %11177 = vpow2.f32 %v10250_v31  ;;  %v7951_v31 = vadd.f32 %v15242_v33, %v14454_v32 }
 0x910   : > { %v11164_v35 = vpop.eup %11163  ;;  %v9593_v15 = vsel %vm9182_vm2, %v11162_v60, %v14752_v34  ;;  %v10248_v20 = vmul.f32 -1.442695, %v14890_v24 }
 0x911   : > { %v11166_v7 = vpop.eup %11165  ;;  %9657 = vst.msk [vmem:[%s14564_s7 + $0x100] sm:$0xff] %vm9624_vm3, %v9593_v15  ;;  %11179 = vrcp.f32 %v9411_v0  ;;  %v9409_v12 = vadd.f32 1.0, %v11164_v35 }
 0x912   : > { %v9596_v30 = vsel %vm9182_vm2, %v11166_v7, %v14757_v28  ;;  %11181 = vpow2.f32 %v10248_v20  ;;  %v15240_v28 = vld [vmem:[#allocation15_spill] sm:$0xff] }
 0x913   : > { %v11168_v61 = vpop.eup %11167  ;;  %9660 = vst.msk [vmem:[%s14564_s7 + $0x118] sm:$0xff] %vm9624_vm3, %v9596_v30  ;;  %11183 = vrcp.f32 %v9409_v12  ;;  %v7947_v63 = vadd.f32 %v15240_v28, %v14454_v32  ;;  %v7981_v28 = vadd.f32 %v14405_v4, %v14454_v32 }
 0x914   : > { %v9594_v34 = vsel %vm9182_vm2, %v11168_v61, %v14767_v26  ;;  %v10476_v41 = vpop.f32.mrf.mxu1  ;;  %v15241_v26 = vld [vmem:[#allocation18_spill] sm:$0xff] }
 0x915   : > { %9658 = vst.msk [vmem:[%s14564_s7 + $0x108] sm:$0xff] %vm9624_vm3, %v9594_v34  ;;  %v9048_v39 = vadd.f32 %v10476_v41, %v14450_v13  ;;  %v7961_v51 = vadd.f32 %v15241_v26, %v14454_v32 }
 0x916   : > { %v9039_v44 = vpop.f32.mrf.mxu1 }
 0x917   : > { %v14915_v22 = vadd.f32 %v9048_v39, %v7957_v21  ;;  %v9040_v38 = vadd.f32 %v14450_v13, %v9039_v44  ;;  %v7967_v21 = vadd.f32 %v15243_v46, %v14454_v32 }
 0x918   : > { %v11170_v62 = vpop.eup %11169  ;;  %v10477_v48 = vpop.f32.mrf.mxu1 }
 0x919   : > { %v11172_v56 = vpop.eup %11171  ;;  %v9414_v9 = vadd.f32 1.0, %v11170_v62  ;;  %v10253_v19 = vmul.f32 -1.442695, %v14915_v22  ;;  %v14921_v17 = vadd.f32 %v9040_v38, %v7947_v63  ;;  %v9051_v8 = vadd.f32 %v14926_v25, %v10477_v48 }
 0x91a   : > { %v11174_v13 = vpop.eup %11173  ;;  %v9599_v53 = vsel %vm9182_vm2, %v11172_v56, %v14792_v5  ;;  %v9042_v11 = vpop.f32.mrf.mxu1 }
 0x91b   : > { %v11176_v29 = vpop.eup %11175  ;;  %9663 = vst.msk [vmem:[%s14564_s7 + $0x130] sm:$0xff] %vm9624_vm3, %v9599_v53  ;;  %11185 = vrcp.f32 %v9414_v9  ;;  %v9412_v52 = vadd.f32 1.0, %v11174_v13  ;;  %v10251_v59 = vmul.f32 -1.442695, %v14921_v17  ;;  %v14935_v37 = vadd.f32 %v9051_v8, %v7961_v51  ;;  %v15244_v53 = vld [vmem:[#allocation20_spill] sm:$0xff] }
 0x91c   : > { %v11178_v42 = vpop.eup %11177  ;;  %v9597_v49 = vsel %vm9182_vm2, %v11176_v29, %v14801_v27  ;;  %11187 = vpow2.f32 %v10253_v19  ;;  %v9043_v5 = vadd.f32 %v14926_v25, %v9042_v11  ;;  %v7971_v11 = vadd.f32 %v15244_v53, %v14454_v32 }
 0x91d   : > { %9661 = vst.msk [vmem:[%s14564_s7 + $0x120] sm:$0xff] %vm9624_vm3, %v9597_v49  ;;  %11189 = vrcp.f32 %v9412_v52  ;;  %v9415_v58 = vadd.f32 1.0, %v11178_v42  ;;  %v10254_v60 = vmul.f32 -1.442695, %v14935_v37 }
 0x91e   : > { %v11180_v0 = vpop.eup %11179  ;;  %11191 = vpow2.f32 %v10251_v59  ;;  %v14946_v35 = vadd.f32 %v9043_v5, %v7951_v31 }
 0x91f   : > { %v11182_v15 = vpop.eup %11181  ;;  %v9600_v20 = vsel %vm9182_vm2, %v11180_v0, %v14818_v54  ;;  %11193 = vrcp.f32 %v9415_v58  ;;  %v7977_v54 = vadd.f32 %v14401_v6, %v14454_v32 }
 0x920   : > { %v11184_v27 = vpop.eup %11183  ;;  %9664 = vst.msk [vmem:[%s14564_s7 + $0x138] sm:$0xff] %vm9624_vm3, %v9600_v20  ;;  %v9413_v7 = vadd.f32 1.0, %v11182_v15  ;;  %11195 = vpow2.f32 %v10254_v60  ;;  %v10252_v12 = vmul.f32 -1.442695, %v14946_v35  ;;  %v7997_v15 = vadd.f32 %v14414_v14, %v14454_v32 }
 0x921   : > { %v9598_v30 = vsel %vm9182_vm2, %v11184_v27, %v14825_v1 }
 0x922   : > { %9662 = vst.msk [vmem:[%s14564_s7 + $0x128] sm:$0xff] %vm9624_vm3, %v9598_v30  ;;  %11197 = vrcp.f32 %v9413_v7  ;;  %v7987_v7 = vadd.f32 %v14408_v2, %v14454_v32 }
 0x923   : > { %11199 = vpow2.f32 %v10252_v12 }
 0x924   : > { %v10480_v61 = vpop.f32.mrf.mxu1 }
 0x925   : > { %v9064_v34 = vadd.f32 %v14926_v25, %v10480_v61  ;;  %v8001_v61 = vadd.f32 %v14418_v50, %v14454_v32 }
 0x926   : > { %v9055_v41 = vpop.f32.mrf.mxu1 }
 0x927   : > { %v14964_v39 = vadd.f32 %v9064_v34, %v7977_v54  ;;  %v9056_v44 = vadd.f32 %v14926_v25, %v9055_v41 }
 0x928   : > { %v11186_v1 = vpop.eup %11185  ;;  %v10481_v63 = vpop.f32.mrf.mxu1 }
 0x929   : > { %v11188_v38 = vpop.eup %11187  ;;  %v9603_v6 = vsel %vm9182_vm2, %v11186_v1, %v14859_v55  ;;  %v10257_v62 = vmul.f32 -1.442695, %v14964_v39  ;;  %v14973_v26 = vadd.f32 %v9056_v44, %v7967_v21  ;;  %v9067_v51 = vadd.f32 %v14926_v25, %v10481_v63 }
 0x92a   : > { %v11190_v48 = vpop.eup %11189  ;;  %9667 = vst.msk [vmem:[%s14564_s7 + $0x150] sm:$0xff] %vm9624_vm3, %v9603_v6  ;;  %v9418_v56 = vadd.f32 1.0, %v11188_v38  ;;  %v9058_v9 = vpop.f32.mrf.mxu1 }
 0x92b   : > { %v11192_v4 = vpop.eup %11191  ;;  %v9601_v19 = vsel %vm9182_vm2, %v11190_v48, %v14870_v10  ;;  %11201 = vpow2.f32 %v10257_v62  ;;  %v10255_v55 = vmul.f32 -1.442695, %v14973_v26  ;;  %v14982_v8 = vadd.f32 %v9067_v51, %v7981_v28 }
 0x92c   : > { %v11194_v13 = vpop.eup %11193  ;;  %9665 = vst.msk [vmem:[%s14564_s7 + $0x140] sm:$0xff] %vm9624_vm3, %v9601_v19  ;;  %11203 = vrcp.f32 %v9418_v56  ;;  %v9416_v29 = vadd.f32 1.0, %v11192_v4  ;;  %v9059_v52 = vadd.f32 %v14926_v25, %v9058_v9  ;;  %v7991_v62 = vadd.f32 %v14411_v16, %v14454_v32 }
 0x92d   : > { %v11196_v59 = vpop.eup %11195  ;;  %v9604_v10 = vsel %vm9182_vm2, %v11194_v13, %v14879_v45  ;;  %11205 = vpow2.f32 %v10255_v55  ;;  %v10258_v42 = vmul.f32 -1.442695, %v14982_v8 }
 0x92e   : > { %9668 = vst.msk [vmem:[%s14564_s7 + $0x158] sm:$0xff] %vm9624_vm3, %v9604_v10  ;;  %11207 = vrcp.f32 %v9416_v29  ;;  %v9419_v33 = vadd.f32 1.0, %v11196_v59  ;;  %v14995_v31 = vadd.f32 %v9059_v52, %v7971_v11  ;;  %v8017_v11 = vadd.f32 %v14429_v18, %v14454_v32 }
 0x92f   : > { %v11198_v49 = vpop.eup %11197  ;;  %11209 = vpow2.f32 %v10258_v42  ;;  %v8007_v59 = vadd.f32 %v14422_v23, %v14454_v32 }
 0x930   : > { %v11200_v5 = vpop.eup %11199  ;;  %v9602_v58 = vsel %vm9182_vm2, %v11198_v49, %v14890_v24  ;;  %11211 = vrcp.f32 %v9419_v33  ;;  %v10256_v60 = vmul.f32 -1.442695, %v14995_v31  ;;  %v8021_v33 = vadd.f32 %v14433_v57, %v14454_v32 }
 0x931   : > { %9666 = vst.msk [vmem:[%s14564_s7 + $0x148] sm:$0xff] %vm9624_vm3, %v9602_v58  ;;  %v9417_v45 = vadd.f32 1.0, %v11200_v5 }
 0x932   : > { %11213 = vpow2.f32 %v10256_v60 }
 0x933   : > { %11215 = vrcp.f32 %v9417_v45 }
 0x934   : > { %v10484_v0 = vpop.f32.mrf.mxu1 }
 0x935   : > { %v9080_v20 = vadd.f32 %v14926_v25, %v10484_v0 }
 0x936   : > { %v9071_v27 = vpop.f32.mrf.mxu1 }
 0x937   : > { %v15008_v24 = vadd.f32 %v9080_v20, %v7997_v15  ;;  %v9072_v12 = vadd.f32 %v14926_v25, %v9071_v27 }
 0x938   : > { %v11202_v30 = vpop.eup %11201  ;;  %v10485_v54 = vpop.f32.mrf.mxu1 }
 0x939   : > { %v11204_v34 = vpop.eup %11203  ;;  %v9422_v41 = vadd.f32 1.0, %v11202_v30  ;;  %v10261_v14 = vmul.f32 -1.442695, %v15008_v24  ;;  %v15014_v46 = vadd.f32 %v9072_v12, %v7987_v7  ;;  %v9083_v21 = vadd.f32 %v14926_v25, %v10485_v54 }
 0x93a   : > { %v11206_v44 = vpop.eup %11205  ;;  %v9607_v2 = vsel %vm9182_vm2, %v11204_v34, %v14915_v22  ;;  %v9074_v1 = vpop.f32.mrf.mxu1  ;;  %v8011_v12 = vadd.f32 %v14426_v3, %v14454_v32 }
 0x93b   : > { %v11208_v28 = vpop.eup %11207  ;;  %9671 = vst.msk [vmem:[%s14564_s7 + $0x170] sm:$0xff] %vm9624_vm3, %v9607_v2  ;;  %11217 = vrcp.f32 %v9422_v41  ;;  %v9420_v50 = vadd.f32 1.0, %v11206_v44  ;;  %v10259_v63 = vmul.f32 -1.442695, %v15014_v46  ;;  %v15023_v38 = vadd.f32 %v9083_v21, %v8001_v61 }
 0x93c   : > { %v11210_v6 = vpop.eup %11209  ;;  %v9605_v51 = vsel %vm9182_vm2, %v11208_v28, %v14921_v17  ;;  %11219 = vpow2.f32 %v10261_v14  ;;  %v9075_v22 = vadd.f32 %v14926_v25, %v9074_v1  ;;  %v8037_v1 = vadd.f32 %v14444_v43, %v14454_v32 }
 0x93d   : > { %v11212_v48 = vpop.eup %11211  ;;  %9669 = vst.msk [vmem:[%s14564_s7 + $0x160] sm:$0xff] %vm9624_vm3, %v9605_v51  ;;  %11221 = vrcp.f32 %v9420_v50  ;;  %v9423_v56 = vadd.f32 1.0, %v11210_v6  ;;  %v10262_v9 = vmul.f32 -1.442695, %v15023_v38  ;;  %v8027_v6 = vadd.f32 %v14437_v40, %v14454_v32 }
 0x93e   : > { %v9608_v4 = vsel %vm9182_vm2, %v11212_v48, %v14935_v37  ;;  %11223 = vpow2.f32 %v10259_v63  ;;  %v15037_v16 = vadd.f32 %v9075_v22, %v7991_v62  ;;  %v8031_v43 = vadd.f32 %v14441_v36, %v14454_v32 }
 0x93f   : > { %v11214_v19 = vpop.eup %11213  ;;  %9672 = vst.msk [vmem:[%s14564_s7 + $0x178] sm:$0xff] %vm9624_vm3, %v9608_v4  ;;  %11225 = vrcp.f32 %v9423_v56 }
 0x940   : > { %v11216_v17 = vpop.eup %11215  ;;  %v9421_v55 = vadd.f32 1.0, %v11214_v19  ;;  %11227 = vpow2.f32 %v10262_v9  ;;  %v10260_v13 = vmul.f32 -1.442695, %v15037_v16 }
 0x941   : > { %v9606_v53 = vsel %vm9182_vm2, %v11216_v17, %v14946_v35 }
 0x942   : > { %9670 = vst.msk [vmem:[%s14564_s7 + $0x168] sm:$0xff] %vm9624_vm3, %v9606_v53  ;;  %11229 = vrcp.f32 %v9421_v55 }
 0x943   : > { %11231 = vpow2.f32 %v10260_v13 }
 0x944   : > { %v10488_v37 = vpop.f32.mrf.mxu1 }
 0x945   : > { %v9096_v29 = vadd.f32 %v14926_v25, %v10488_v37 }
 0x946   : > { %v9087_v52 = vpop.f32.mrf.mxu1 }
 0x947   : > { %v15052_v10 = vadd.f32 %v9096_v29, %v8017_v11  ;;  %v9088_v42 = vadd.f32 %v14926_v25, %v9087_v52 }
 0x948   : > { %v11218_v35 = vpop.eup %11217  ;;  %v10489_v49 = vpop.f32.mrf.mxu1 }
 0x949   : > { %v11220_v5 = vpop.eup %11219  ;;  %v9611_v18 = vsel %vm9182_vm2, %v11218_v35, %v14964_v39  ;;  %v10265_v58 = vmul.f32 -1.442695, %v15052_v10  ;;  %v15061_v60 = vadd.f32 %v9088_v42, %v8007_v59  ;;  %v9099_v23 = vadd.f32 %v14926_v25, %v10489_v49 }
 0x94a   : > { %v11222_v45 = vpop.eup %11221  ;;  %9675 = vst.msk [vmem:[%s14564_s7 + $0x190] sm:$0xff] %vm9624_vm3, %v9611_v18  ;;  %v9426_v0 = vadd.f32 1.0, %v11220_v5  ;;  %v9090_v15 = vpop.f32.mrf.mxu1 }
 0x94b   : > { %v11224_v57 = vpop.eup %11223  ;;  %v9609_v20 = vsel %vm9182_vm2, %v11222_v45, %v14973_v26  ;;  %11233 = vpow2.f32 %v10265_v58  ;;  %v10263_v39 = vmul.f32 -1.442695, %v15061_v60  ;;  %v15070_v27 = vadd.f32 %v9099_v23, %v8021_v33 }
 0x94c   : > { %v11226_v7 = vpop.eup %11225  ;;  %9673 = vst.msk [vmem:[%s14564_s7 + $0x180] sm:$0xff] %vm9624_vm3, %v9609_v20  ;;  %11235 = vrcp.f32 %v9426_v0  ;;  %v9424_v30 = vadd.f32 1.0, %v11224_v57  ;;  %v9091_v61 = vadd.f32 %v14926_v25, %v9090_v15 }
 0x94d   : > { %v11228_v54 = vpop.eup %11227  ;;  %v9612_v26 = vsel %vm9182_vm2, %v11226_v7, %v14982_v8  ;;  %11237 = vpow2.f32 %v10263_v39  ;;  %v10266_v34 = vmul.f32 -1.442695, %v15070_v27 }
 0x94e   : > { %9676 = vst.msk [vmem:[%s14564_s7 + $0x198] sm:$0xff] %vm9624_vm3, %v9612_v26  ;;  %11239 = vrcp.f32 %v9424_v30  ;;  %v9427_v41 = vadd.f32 1.0, %v11228_v54  ;;  %v15083_v3 = vadd.f32 %v9091_v61, %v8011_v12 }
 0x94f   : > { %v11230_v14 = vpop.eup %11229  ;;  %11241 = vpow2.f32 %v10266_v34 }
 0x950   : > { %v11232_v21 = vpop.eup %11231  ;;  %v9610_v44 = vsel %vm9182_vm2, %v11230_v14, %v14995_v31  ;;  %11243 = vrcp.f32 %v9427_v41  ;;  %v10264_v2 = vmul.f32 -1.442695, %v15083_v3  ;;  %v10492_v8 = vpop.f32.mrf.mxu1 }
 0x951   : > { %9674 = vst.msk [vmem:[%s14564_s7 + $0x188] sm:$0xff] %vm9624_vm3, %v9610_v44  ;;  %v9425_v28 = vadd.f32 1.0, %v11232_v21  ;;  %v9112_v50 = vadd.f32 %v14926_v25, %v10492_v8 }
 0x952   : > { %11245 = vpow2.f32 %v10264_v2  ;;  %v9103_v63 = vpop.f32.mrf.mxu1 }
 0x953   : > { %11247 = vrcp.f32 %v9425_v28  ;;  %v9179_v62 = vadd.f32 %v9112_v50, %v8037_v1  ;;  %v9104_v31 = vadd.f32 %v14926_v25, %v9103_v63 }
 0x954   : > { %v10493_v51 = vpop.f32.mrf.mxu1 }
 0x955   : > { %v10269_v22 = vmul.f32 -1.442695, %v9179_v62  ;;  %v9177_v48 = vadd.f32 %v9104_v31, %v8027_v6 }
 0x956   : > { %v9106_v56 = vpop.f32.mrf.mxu1 }
 0x957   : > { %11249 = vpow2.f32 %v10269_v22  ;;  %v10267_v9 = vmul.f32 -1.442695, %v9177_v48  ;;  %v9107_v4 = vadd.f32 %v14926_v25, %v9106_v56 }
 0x958   : > { %v11234_v19 = vpop.eup %11233 }
 0x959   : > { %v11236_v17 = vpop.eup %11235  ;;  %v9430_v40 = vadd.f32 1.0, %v11234_v19  ;;  %11251 = vpow2.f32 %v10267_v9  ;;  %v9178_v55 = vadd.f32 %v9107_v4, %v8031_v43 }
 0x95a   : > { %v11238_v13 = vpop.eup %11237  ;;  %v9615_v53 = vsel %vm9182_vm2, %v11236_v17, %v15008_v24 }
 0x95b   : > { %v11240_v37 = vpop.eup %11239  ;;  %9679 = vst.msk [vmem:[%s14564_s7 + $0x1b0] sm:$0xff] %vm9624_vm3, %v9615_v53  ;;  %11253 = vrcp.f32 %v9430_v40  ;;  %v9428_v36 = vadd.f32 1.0, %v11238_v13  ;;  %v10268_v32 = vmul.f32 -1.442695, %v9178_v55 }
 0x95c   : > { %v11242_v25 = vpop.eup %11241  ;;  %v9613_v11 = vsel %vm9182_vm2, %v11240_v37, %v15014_v46 }
 0x95d   : > { %v11244_v29 = vpop.eup %11243  ;;  %9677 = vst.msk [vmem:[%s14564_s7 + $0x1a0] sm:$0xff] %vm9624_vm3, %v9613_v11  ;;  %11255 = vrcp.f32 %v9428_v36  ;;  %v9431_v52 = vadd.f32 1.0, %v11242_v25 }
 0x95e   : > { %v9616_v24 = vsel %vm9182_vm2, %v11244_v29, %v15023_v38  ;;  %11257 = vpow2.f32 %v10268_v32 }
 0x95f   : > { %v11246_v59 = vpop.eup %11245  ;;  %9680 = vst.msk [vmem:[%s14564_s7 + $0x1b8] sm:$0xff] %vm9624_vm3, %v9616_v24  ;;  %11259 = vrcp.f32 %v9431_v52 }
 0x960   : > { %v11248_v42 = vpop.eup %11247  ;;  %v9429_v35 = vadd.f32 1.0, %v11246_v59 }
 0x961   : > { %v9614_v46 = vsel %vm9182_vm2, %v11248_v42, %v15037_v16 }
 0x962   : > { %9678 = vst.msk [vmem:[%s14564_s7 + $0x1a8] sm:$0xff] %vm9624_vm3, %v9614_v46  ;;  %11261 = vrcp.f32 %v9429_v35 }
 0x964   : > { %v11250_v33 = vpop.eup %11249 }
 0x965   : > { %v9434_v49 = vadd.f32 1.0, %v11250_v33 }
 0x966   : > { %v11252_v38 = vpop.eup %11251 }
 0x967   : > { %11263 = vrcp.f32 %v9434_v49  ;;  %v9432_v5 = vadd.f32 1.0, %v11252_v38 }
 0x968   : > { %v11254_v18 = vpop.eup %11253 }
 0x969   : > { %v9619_v58 = vsel %vm9182_vm2, %v11254_v18, %v15052_v10  ;;  %11265 = vrcp.f32 %v9432_v5 }
 0x96a   : > { %v11256_v23 = vpop.eup %11255  ;;  %9683 = vst.msk [vmem:[%s14564_s7 + $0x1d0] sm:$0xff] %vm9624_vm3, %v9619_v58 }
 0x96b   : > { %v11258_v16 = vpop.eup %11257  ;;  %v9617_v45 = vsel %vm9182_vm2, %v11256_v23, %v15061_v60 }
 0x96c   : > { %v11260_v0 = vpop.eup %11259  ;;  %9681 = vst.msk [vmem:[%s14564_s7 + $0x1c0] sm:$0xff] %vm9624_vm3, %v9617_v45  ;;  %v9433_v15 = vadd.f32 1.0, %v11258_v16 }
 0x96d   : > { %v9620_v10 = vsel %vm9182_vm2, %v11260_v0, %v15070_v27 }
 0x96e   : > { %9684 = vst.msk [vmem:[%s14564_s7 + $0x1d8] sm:$0xff] %vm9624_vm3, %v9620_v10  ;;  %11267 = vrcp.f32 %v9433_v15 }
 0x96f   : > { %v11262_v57 = vpop.eup %11261 }
 0x970   : > { %v9618_v20 = vsel %vm9182_vm2, %v11262_v57, %v15083_v3 }
 0x971   : > { %9682 = vst.msk [vmem:[%s14564_s7 + $0x1c8] sm:$0xff] %vm9624_vm3, %v9618_v20 }
 0x974   : > { %v11264_v60 = vpop.eup %11263 }
 0x975   : > { %v9623_v39 = vsel %vm9182_vm2, %v11264_v60, %v9179_v62 }
 0x976   : > { %v11266_v7 = vpop.eup %11265  ;;  %9687 = vst.msk [vmem:[%s14564_s7 + $0x1f0] sm:$0xff] %vm9624_vm3, %v9623_v39 }
 0x977   : > { %v9621_v27 = vsel %vm9182_vm2, %v11266_v7, %v9177_v48 }
 0x978   : > { %9685 = vst.msk [vmem:[%s14564_s7 + $0x1e0] sm:$0xff] %vm9624_vm3, %v9621_v27 }
 0x97b   : > { %v11268_v12 = vpop.eup %11267 }
 0x97c   : > { %v9622_v30 = vsel %vm9182_vm2, %v11268_v12, %v9178_v55 }
 0x97d   : > { %9686 = vst.msk [vmem:[%s14564_s7 + $0x1e8] sm:$0xff] %vm9624_vm3, %v9622_v30 }
 0x97e PF: > { %s34_s5 = sadd.s32 1, %s11308_s5  }
 0x97f   : > { %p31_p4 = scmp.ge.s32.totalorder %s34_s5, 4  }
 0x981   :  { %33 = sbr.rel (!%p31_p4) target bundleno = 10 (0xa), region = 149 }

</bundles_post_ra>
